<compile_context>
chip_gen: v7x
topology: tpu7x:2x2x1
jax: 0.10.0
libtpu: 0.0.40
codegen_flags: <defaults>
</compile_context>

<pallas_src>
import functools
import math

import numpy as np

import jax
import jax.numpy as jnp
from jax.experimental import pallas as pl
from jax.experimental.pallas import tpu as pltpu

POOL_SIZE = ((5, 10), (3, 6), (2, 4))   # RegionAttention default pool_size
P_VALUE = 1e-8
EVAL_TEMPERATURE = 0.03                 # MyGumbelSigmoid eval-mode temperature


# --------------------- fused region-attention kernel (Bt batches / step) ---------------------
def _region_attn_kernel(x_ref, w_ref, b_ref, pallT_ref, memT_ref,
                        invcnt_ref, regw_ref, g_ref, o_ref,
                        *, bt, d, hw, inv_temp):
    """One grid step == `bt` batches.

    x_ref     : (bt*d, hw)      channels on sublanes, pixels on lanes (matmul dtype)
    w_ref     : (2*bt*d, bt*d)  [block_diag(wq) x bt ; block_diag(wk) x bt] (matmul dtype)
    b_ref     : (2*bt*d, 1)     [bq tiled ; bk tiled] (f32)
    pallT_ref : (hw, R)         exact {0,1} pixel -> region membership (matmul dtype)
    memT_ref  : (R, hw)         exact {0,1} region -> pixel scatter (matmul dtype)
    invcnt_ref: (1, R)          1 / pixels-per-region (f32; keeps pallT exact in bf16)
    regw_ref  : (1, R)          score-linear weight of the region's level * D**-0.5 (f32)
    g_ref     : (1, bt, hw)     Gumbel(x) - Gumbel(r) + b_score (all purely additive, f32)
    o_ref     : (1, bt, hw)     output mask (f32)
    """
    bd = bt * d
    x2 = x_ref[...]                                                      # (bt*d, hw)
    mm = x2.dtype
    w = w_ref[...]
    b = b_ref[...]

    # q projection for all bt batches in one MXU op (block-diagonal wq -> K = bt*d).
    q = jnp.dot(w[:bd], x2, preferred_element_type=jnp.float32) + b[:bd]          # (bt*d, hw)

    # Spatial-pyramid block sums of x (batch-stacked along sublanes), exact f32 means.
    pool = jnp.dot(x2, pallT_ref[...], preferred_element_type=jnp.float32)        # (bt*d, R)
    means = pool * invcnt_ref[...]

    # Project pooled means with wk (block-diagonal), bias, per-region score*scale weight.
    kpm = jnp.dot(w[bd:], means.astype(mm), preferred_element_type=jnp.float32) + b[bd:]
    scaled = kpm * regw_ref[...]                                                   # (bt*d, R)

    # Scatter the weighted region means back to their pixels (batch-stacked).
    wpk = jnp.dot(scaled.astype(mm), memT_ref[...], preferred_element_type=jnp.float32)

    # logits[b, p] = sum_d q[b,d,p] * wpk[b,d,p]   (per-batch channel reduce, f32 on VPU/XLU).
    logits = (q * wpk).reshape(bt, d, hw).sum(axis=1)                              # (bt, hw)

    # MyGumbelSigmoid (eval mode): 2-way softmax keeping channel 0 == sigmoid of the
    # log-odds difference; log-odds of sigmoid(logits) is just `logits`, and the score bias
    # plus Gumbel noise difference are already folded into g_ref -> a single sigmoid.
    o_ref[0] = jax.nn.sigmoid((logits + g_ref[0]) * inv_temp)


# ------------------------------ structural constants (host side) ------------------------------
def _build_region_constants(H, W, pool_size):
    """Exact {0,1} block-membership matrices of the spatial pyramid + region sizes/levels."""
    HW = H * W
    hh, ww = np.meshgrid(np.arange(H), np.arange(W), indexing="ij")
    members, counts, level_ids = [], [], []
    for lvl, (psh, psw) in enumerate(pool_size):
        kh, kw = H // psh, W // psw
        reg = (hh // kh) * psw + (ww // kw)                                         # (H, W)
        members.append((reg.reshape(HW, 1) == np.arange(psh * psw)[None, :])
                       .astype(np.float32))                                         # (HW, n_r)
        counts.append(np.full((psh * psw,), float(kh * kw), np.float32))
        level_ids.append(np.full((psh * psw,), lvl, np.int32))
    pallT = np.concatenate(members, axis=1)                                          # (HW, R)
    return (pallT, np.ascontiguousarray(pallT.T),
            np.concatenate(counts), np.concatenate(level_ids))


# -------------------------------------- wrapper (glue) --------------------------------------
@functools.partial(jax.jit, static_argnames=("pool_size", "temperature", "batch_tile",
                                             "matmul_dtype", "core_parallel"))
def region_attention_forward(x, w_qk, b_qk, w_score, b_score, noise_x, noise_r, *,
                             pool_size=POOL_SIZE, temperature=EVAL_TEMPERATURE,
                             batch_tile=None, matmul_dtype=jnp.bfloat16,
                             core_parallel=False):
    """RegionAttention.forward (eval mode) -> (B, H*W, 1) mask, one fused Pallas kernel."""
    B, H, W, D = x.shape
    for psh, psw in pool_size:
        assert H % psh == 0 and W % psw == 0, "module requires divisible spatial dims"
    HW = H * W
    scale = D ** (-0.5)

    # ---- batch tile: Bt batches per grid step (8 fills 256 MXU rows on v6e/v7x; 4 on v5e) ----
    if batch_tile is None:
        batch_tile = 8
    Bt = max(1, min(int(batch_tile), B))
    Bp = ((B + Bt - 1) // Bt) * Bt            # pad batch up to a multiple of the tile
    G = Bp // Bt

    # ---- layout plumbing: cast to the MXU dtype BEFORE the channels-first transpose ----
    xT = jnp.transpose(x.reshape(B, HW, D).astype(matmul_dtype), (0, 2, 1))       # (B, D, HW)
    if Bp != B:
        xT = jnp.concatenate([xT, jnp.zeros((Bp - B, D, HW), matmul_dtype)], axis=0)
    x_flat = xT.reshape(Bp * D, HW)                                               # (Bp*D, HW)

    # ---- fused, block-diagonal qk weights: one arg, batched projections with K = Bt*D ----
    w_qk_f = w_qk.astype(jnp.float32)
    if b_qk is None:
        b_qk = jnp.zeros((2 * D,), jnp.float32)
    b_qk_f = b_qk.astype(jnp.float32)
    eye = jnp.eye(Bt, dtype=jnp.float32)
    w_all = jnp.concatenate([jnp.kron(eye, w_qk_f[:D]), jnp.kron(eye, w_qk_f[D:])],
                            axis=0).astype(matmul_dtype)                          # (2BtD, BtD)
    b_all = jnp.concatenate([jnp.tile(b_qk_f[:D], Bt),
                             jnp.tile(b_qk_f[D:], Bt)]).reshape(2 * Bt * D, 1)    # f32

    # ---- spatial-pyramid constants (exact {0,1} -> lossless in bf16) ----
    pallT_np, memT_np, counts_np, level_ids = _build_region_constants(H, W, pool_size)
    R = pallT_np.shape[1]
    pallT = jnp.asarray(pallT_np, matmul_dtype)
    memT = jnp.asarray(memT_np, matmul_dtype)
    invcnt = jnp.asarray(1.0 / counts_np, jnp.float32).reshape(1, R)
    regw = (w_score.reshape(-1).astype(jnp.float32) * scale)[level_ids].reshape(1, R)

    # ---- Gumbel noise difference + score bias: purely additive to the logits ----
    p = P_VALUE
    ux = jnp.minimum(noise_x.reshape(B, HW).astype(jnp.float32), 1.0 - 1e-6)
    ur = jnp.minimum(noise_r.reshape(B, HW).astype(jnp.float32), 1.0 - 1e-6)
    g = (-jnp.log(-jnp.log(ux + p) + p)) - (-jnp.log(-jnp.log(ur + p) + p))
    g = g + b_score.reshape(()).astype(jnp.float32)
    if Bp != B:
        g = jnp.concatenate([g, jnp.zeros((Bp - B, HW), jnp.float32)], axis=0)
    g = g.reshape(G, Bt, HW)

    kernel = functools.partial(_region_attn_kernel, bt=Bt, d=D, hw=HW,
                               inv_temp=float(1.0 / (temperature + P_VALUE)))

    out = pl.pallas_call(
        kernel,
        out_shape=jax.ShapeDtypeStruct((G, Bt, HW), jnp.float32),
        grid_spec=pltpu.PrefetchScalarGridSpec(
            num_scalar_prefetch=0,
            grid=(G,),
            in_specs=[
                pl.BlockSpec((Bt * D, HW), lambda b: (b, 0)),          # x (channels-first)
                pl.BlockSpec((2 * Bt * D, Bt * D), lambda b: (0, 0)),  # block-diag wq/wk
                pl.BlockSpec((2 * Bt * D, 1), lambda b: (0, 0)),       # bq/bk (f32)
                pl.BlockSpec((HW, R), lambda b: (0, 0)),               # pixel -> region {0,1}
                pl.BlockSpec((R, HW), lambda b: (0, 0)),               # region -> pixel {0,1}
                pl.BlockSpec((1, R), lambda b: (0, 0)),                # 1 / region size
                pl.BlockSpec((1, R), lambda b: (0, 0)),                # score weight * scale
                pl.BlockSpec((1, Bt, HW), lambda b: (b, 0, 0)),        # gumbel diff + bias
            ],
            out_specs=pl.BlockSpec((1, Bt, HW), lambda b: (b, 0, 0)),
        ),
        compiler_params=pltpu.CompilerParams(
            # "parallel" is safe on every generation; core_parallel=True forces the batch-tile
            # grid axis onto both TensorCores of a v7x megacore.
            dimension_semantics=((pltpu.CORE_PARALLEL if core_parallel else "parallel"),),
            vmem_limit_bytes=32 * 1024 * 1024,
        ),
    )(x_flat, w_all, b_all, pallT, memT, invcnt, regw, g)

    return out.reshape(Bp, HW)[:B].reshape(B, HW, 1)       # same shape as the PyTorch module


# ----------------------------------- pure-JAX reference -----------------------------------
def _reference(x, w_qk, b_qk, w_score, b_score, noise_x, noise_r,
               pool_size=POOL_SIZE, temperature=EVAL_TEMPERATURE):
    B, H, W, D = x.shape
    HW = H * W
    scale = D ** (-0.5)
    xf = x.reshape(B, HW, D).astype(jnp.float32)
    qk = xf @ w_qk.astype(jnp.float32).T + b_qk.astype(jnp.float32)
    q = qk[..., :D].reshape(B, H, W, D)
    k = qk[..., D:].reshape(B, H, W, D)
    logits = jnp.zeros((B, H, W), jnp.float32) + b_score.reshape(()).astype(jnp.float32)
    wv = w_score.reshape(-1).astype(jnp.float32)
    for j, (psh, psw) in enumerate(pool_size):
        kh, kw = H // psh, W // psw
        km = k.reshape(B, psh, kh, psw, kw, D).mean(axis=(2, 4))
        km_full = jnp.repeat(jnp.repeat(km, kh, axis=1), kw, axis=2)
        logits = logits + jnp.sum(q * km_full, axis=-1) * scale * wv[j]
    a = jax.nn.sigmoid(logits).reshape(B, HW)
    p = P_VALUE
    ux = jnp.minimum(noise_x.reshape(B, HW).astype(jnp.float32), 1.0 - 1e-6)
    ur = jnp.minimum(noise_r.reshape(B, HW).astype(jnp.float32), 1.0 - 1e-6)
    gx = -jnp.log(-jnp.log(ux + p) + p)
    gr = -jnp.log(-jnp.log(ur + p) + p)
    num = jnp.log(a + p) - jnp.log((1.0 - a) + p) + gx - gr
    return jax.nn.sigmoid(num / (temperature + p)).reshape(B, HW, 1)


if __name__ == "__main__":
    # H must be divisible by {5,3,2}, W by {10,6,4} for the default pool_size.
    B, H, W, D = 16, 30, 60, 32
    key = jax.random.PRNGKey(0)
    k1, k2, k3, k4, k5, k6, k7 = jax.random.split(key, 7)

    # deterministic parameter init (torch.nn.Linear-style uniform bounds)
    bound_qk = 1.0 / math.sqrt(D)
    w_qk = jax.random.uniform(k1, (2 * D, D), jnp.float32, -bound_qk, bound_qk)
    b_qk = jax.random.uniform(k2, (2 * D,), jnp.float32, -bound_qk, bound_qk)
    L = len(POOL_SIZE)
    bound_s = 1.0 / math.sqrt(L)
    w_score = jax.random.uniform(k3, (1, L), jnp.float32, -bound_s, bound_s)
    b_score = jax.random.uniform(k4, (1,), jnp.float32, -bound_s, bound_s)

    x = jax.random.normal(k5, (B, H, W, D), jnp.float32)
    noise_x = jax.random.uniform(k6, (B, H * W), jnp.float32)   # torch.rand_like(x)
    noise_r = jax.random.uniform(k7, (B, H * W), jnp.float32)   # torch.rand_like(r)

    ref = _reference(x, w_qk, b_qk, w_score, b_score, noise_x, noise_r)

    # exact-arithmetic check: f32 MXU operands, v5e-style batch tile of 4.
    mask_f32 = region_attention_forward(x, w_qk, b_qk, w_score, b_score, noise_x, noise_r,
                                        matmul_dtype=jnp.float32, batch_tile=4)
    mask_f32 = jax.block_until_ready(mask_f32)
    assert mask_f32.shape == (B, H * W, 1)
    err_f32 = float(jnp.max(jnp.abs(mask_f32 - ref)))
    assert err_f32 < 1e-3, f"f32-path mismatch vs reference: {err_f32}"

    # production path: bf16 MXU operands, Bt=8 batches per grid step.
    mask = region_attention_forward(x, w_qk, b_qk, w_score, b_score, noise_x, noise_r)
    mask = jax.block_until_ready(mask)
    assert mask.shape == (B, H * W, 1)
    assert bool(jnp.all(jnp.isfinite(mask)))
    assert bool(jnp.all((mask >= 0.0) & (mask <= 1.0)))
    max_err = float(jnp.max(jnp.abs(mask - ref)))
    mean_err = float(jnp.mean(jnp.abs(mask - ref)))
    # T=0.03 sharpens the gumbel sigmoid ~33x, so bf16 logit rounding can surface as a
    # few-percent deviation on the rare pixels whose pre-sigmoid argument lands near 0.
    assert max_err < 5e-2, f"bf16-path max mismatch vs reference: {max_err}"
    assert mean_err < 2e-3, f"bf16-path mean mismatch vs reference: {mean_err}"
    print("KERNEL_OK")
</pallas_src>

<mosaic_0001>
module attributes {stable_mosaic.version = 11 : i64} {
  func.func @_region_attn_kernel(%arg0: i32, %arg1: memref<128x1800xf32, #tpu.memory_space<vmem>>, %arg2: memref<256x128xf32, #tpu.memory_space<vmem>>, %arg3: memref<256x1xf32, #tpu.memory_space<vmem>>, %arg4: memref<1800x76xf32, #tpu.memory_space<vmem>>, %arg5: memref<76x1800xf32, #tpu.memory_space<vmem>>, %arg6: memref<1x76xf32, #tpu.memory_space<vmem>>, %arg7: memref<1x76xf32, #tpu.memory_space<vmem>>, %arg8: memref<1x4x1800xf32, #tpu.memory_space<vmem>>, %arg9: memref<1x4x1800xf32, #tpu.memory_space<vmem>>) attributes {dimension_semantics = [#tpu.dimension_semantics<parallel>], iteration_bounds = array<i64: 4>, scalar_prefetch = 0 : i64, scratch_operands = 0 : i64, tpu.core_type = #tpu.core_type<tc>, window_params = [{transform_indices = @transform_0, window_bounds = array<i64: 128, 1800>}, {pipeline_mode = #tpu.pipeline_mode<synchronous>, transform_indices = @transform_1, window_bounds = array<i64: 256, 128>}, {pipeline_mode = #tpu.pipeline_mode<synchronous>, transform_indices = @transform_2, window_bounds = array<i64: 256, 1>}, {pipeline_mode = #tpu.pipeline_mode<synchronous>, transform_indices = @transform_3, window_bounds = array<i64: 1800, 76>}, {pipeline_mode = #tpu.pipeline_mode<synchronous>, transform_indices = @transform_4, window_bounds = array<i64: 76, 1800>}, {pipeline_mode = #tpu.pipeline_mode<synchronous>, transform_indices = @transform_5, window_bounds = array<i64: 1, 76>}, {pipeline_mode = #tpu.pipeline_mode<synchronous>, transform_indices = @transform_6, window_bounds = array<i64: 1, 76>}, {transform_indices = @transform_7, window_bounds = array<i64: 1, 4, 1800>}, {transform_indices = @transform_8, window_bounds = array<i64: 1, 4, 1800>}]} {
    %c0 = arith.constant 0 : index
    %c0_0 = arith.constant 0 : index
    %0 = vector.load %arg1[%c0, %c0_0] : memref<128x1800xf32, #tpu.memory_space<vmem>>, vector<128x1800xf32>
    %c0_1 = arith.constant 0 : index
    %c0_2 = arith.constant 0 : index
    %1 = vector.load %arg2[%c0_1, %c0_2] : memref<256x128xf32, #tpu.memory_space<vmem>>, vector<256x128xf32>
    %c0_3 = arith.constant 0 : index
    %c0_4 = arith.constant 0 : index
    %2 = vector.load %arg3[%c0_3, %c0_4] : memref<256x1xf32, #tpu.memory_space<vmem>>, vector<256x1xf32>
    %3 = vector.extract_strided_slice %1 {offsets = [0, 0], sizes = [128, 128], strides = [1, 1]} : vector<256x128xf32> to vector<128x128xf32>
    %cst = arith.constant dense<0.000000e+00> : vector<128x1800xf32>
    %4 = tpu.matmul %3, %0, %cst {dimension_numbers = #tpu.dot_dimension_numbers<[1], [0], [0], [1], [0, 0, 1, 1], [], []>} : vector<128x128xf32>, vector<128x1800xf32>, vector<128x1800xf32> -> vector<128x1800xf32>
    %5 = vector.extract_strided_slice %2 {offsets = [0, 0], sizes = [128, 1], strides = [1, 1]} : vector<256x1xf32> to vector<128x1xf32>
    %6 = vector.broadcast %5 : vector<128x1xf32> to vector<128x1800xf32>
    %7 = arith.addf %4, %6 : vector<128x1800xf32>
    %c0_5 = arith.constant 0 : index
    %c0_6 = arith.constant 0 : index
    %8 = vector.load %arg4[%c0_5, %c0_6] : memref<1800x76xf32, #tpu.memory_space<vmem>>, vector<1800x76xf32>
    %cst_7 = arith.constant dense<0.000000e+00> : vector<128x76xf32>
    %9 = tpu.matmul %0, %8, %cst_7 {dimension_numbers = #tpu.dot_dimension_numbers<[1], [0], [0], [1], [0, 0, 1, 1], [], []>} : vector<128x1800xf32>, vector<1800x76xf32>, vector<128x76xf32> -> vector<128x76xf32>
    %c0_8 = arith.constant 0 : index
    %c0_9 = arith.constant 0 : index
    %10 = vector.load %arg6[%c0_8, %c0_9] : memref<1x76xf32, #tpu.memory_space<vmem>>, vector<1x76xf32>
    %11 = vector.broadcast %10 : vector<1x76xf32> to vector<128x76xf32>
    %12 = arith.mulf %9, %11 : vector<128x76xf32>
    %13 = vector.extract_strided_slice %1 {offsets = [128, 0], sizes = [128, 128], strides = [1, 1]} : vector<256x128xf32> to vector<128x128xf32>
    %cst_10 = arith.constant dense<0.000000e+00> : vector<128x76xf32>
    %14 = tpu.matmul %13, %12, %cst_10 {dimension_numbers = #tpu.dot_dimension_numbers<[1], [0], [0], [1], [0, 0, 1, 1], [], []>} : vector<128x128xf32>, vector<128x76xf32>, vector<128x76xf32> -> vector<128x76xf32>
    %15 = vector.extract_strided_slice %2 {offsets = [128, 0], sizes = [128, 1], strides = [1, 1]} : vector<256x1xf32> to vector<128x1xf32>
    %16 = vector.broadcast %15 : vector<128x1xf32> to vector<128x76xf32>
    %17 = arith.addf %14, %16 : vector<128x76xf32>
    %c0_11 = arith.constant 0 : index
    %c0_12 = arith.constant 0 : index
    %18 = vector.load %arg7[%c0_11, %c0_12] : memref<1x76xf32, #tpu.memory_space<vmem>>, vector<1x76xf32>
    %19 = vector.broadcast %18 : vector<1x76xf32> to vector<128x76xf32>
    %20 = arith.mulf %17, %19 : vector<128x76xf32>
    %c0_13 = arith.constant 0 : index
    %c0_14 = arith.constant 0 : index
    %21 = vector.load %arg5[%c0_13, %c0_14] : memref<76x1800xf32, #tpu.memory_space<vmem>>, vector<76x1800xf32>
    %cst_15 = arith.constant dense<0.000000e+00> : vector<128x1800xf32>
    %22 = tpu.matmul %20, %21, %cst_15 {dimension_numbers = #tpu.dot_dimension_numbers<[1], [0], [0], [1], [0, 0, 1, 1], [], []>} : vector<128x76xf32>, vector<76x1800xf32>, vector<128x1800xf32> -> vector<128x1800xf32>
    %23 = arith.mulf %7, %22 : vector<128x1800xf32>
    %24 = vector.shape_cast %23 : vector<128x1800xf32> to vector<4x32x1800xf32>
    %cst_16 = arith.constant dense<0.000000e+00> : vector<4x1800xf32>
    %25 = vector.multi_reduction <add>, %24, %cst_16 [1] : vector<4x32x1800xf32> to vector<4x1800xf32>
    %c0_17 = arith.constant 0 : index
    %c0_18 = arith.constant 0 : index
    %c0_19 = arith.constant 0 : index
    %26 = vector.load %arg8[%c0_17, %c0_18, %c0_19] : memref<1x4x1800xf32, #tpu.memory_space<vmem>>, vector<1x4x1800xf32>
    %27 = vector.shape_cast %26 : vector<1x4x1800xf32> to vector<4x1800xf32>
    %28 = arith.addf %25, %27 : vector<4x1800xf32>
    %cst_20 = arith.constant 33.3333206 : f32
    %29 = vector.broadcast %cst_20 : f32 to vector<4x1800xf32>
    %30 = arith.mulf %28, %29 : vector<4x1800xf32>
    %31 = arith.negf %30 : vector<4x1800xf32>
    %32 = math.exp %31 : vector<4x1800xf32>
    %cst_21 = arith.constant 1.000000e+00 : f32
    %33 = vector.broadcast %cst_21 : f32 to vector<4x1800xf32>
    %34 = arith.addf %33, %32 : vector<4x1800xf32>
    %35 = arith.divf %33, %34 : vector<4x1800xf32>
    %c0_22 = arith.constant 0 : index
    %c0_23 = arith.constant 0 : index
    %c0_24 = arith.constant 0 : index
    %36 = vector.load %arg9[%c0_22, %c0_23, %c0_24] : memref<1x4x1800xf32, #tpu.memory_space<vmem>>, vector<1x4x1800xf32>
    %37 = vector.shape_cast %36 : vector<1x4x1800xf32> to vector<4x1800xf32>
    %38 = vector.shape_cast %35 : vector<4x1800xf32> to vector<1x4x1800xf32>
    tpu.vector_store %arg9[%c0_22, %c0_23, %c0_24], %38 {strides = array<i32>} : memref<1x4x1800xf32, #tpu.memory_space<vmem>>, vector<1x4x1800xf32>,
    return
  }
  func.func @transform_0(%arg0: i32) -> (i32, i32) {
    %c0_i32 = arith.constant 0 : i32
    %c0_i32_0 = arith.constant 0 : i32
    return %arg0, %c0_i32 : i32, i32
  }
  func.func @transform_1(%arg0: i32) -> (i32, i32) {
    %c0_i32 = arith.constant 0 : i32
    %c0_i32_0 = arith.constant 0 : i32
    %c0_i32_1 = arith.constant 0 : i32
    return %c0_i32, %c0_i32_0 : i32, i32
  }
  func.func @transform_2(%arg0: i32) -> (i32, i32) {
    %c0_i32 = arith.constant 0 : i32
    %c0_i32_0 = arith.constant 0 : i32
    %c0_i32_1 = arith.constant 0 : i32
    return %c0_i32, %c0_i32_0 : i32, i32
  }
  func.func @transform_3(%arg0: i32) -> (i32, i32) {
    %c0_i32 = arith.constant 0 : i32
    %c0_i32_0 = arith.constant 0 : i32
    %c0_i32_1 = arith.constant 0 : i32
    return %c0_i32, %c0_i32_0 : i32, i32
  }
  func.func @transform_4(%arg0: i32) -> (i32, i32) {
    %c0_i32 = arith.constant 0 : i32
    %c0_i32_0 = arith.constant 0 : i32
    %c0_i32_1 = arith.constant 0 : i32
    return %c0_i32, %c0_i32_0 : i32, i32
  }
  func.func @transform_5(%arg0: i32) -> (i32, i32) {
    %c0_i32 = arith.constant 0 : i32
    %c0_i32_0 = arith.constant 0 : i32
    %c0_i32_1 = arith.constant 0 : i32
    return %c0_i32, %c0_i32_0 : i32, i32
  }
  func.func @transform_6(%arg0: i32) -> (i32, i32) {
    %c0_i32 = arith.constant 0 : i32
    %c0_i32_0 = arith.constant 0 : i32
    %c0_i32_1 = arith.constant 0 : i32
    return %c0_i32, %c0_i32_0 : i32, i32
  }
  func.func @transform_7(%arg0: i32) -> (i32, i32, i32) {
    %c0_i32 = arith.constant 0 : i32
    %c0_i32_0 = arith.constant 0 : i32
    %c0_i32_1 = arith.constant 0 : i32
    return %arg0, %c0_i32, %c0_i32_0 : i32, i32, i32
  }
  func.func @transform_8(%arg0: i32) -> (i32, i32, i32) {
    %c0_i32 = arith.constant 0 : i32
    %c0_i32_0 = arith.constant 0 : i32
    %c0_i32_1 = arith.constant 0 : i32
    return %arg0, %c0_i32, %c0_i32_0 : i32, i32, i32
  }
}

</mosaic_0001>

<bundles_post_ra>
// kernel: tile.18
= control target key start
LH: loop header
LB: loop body
LE: loop exit
PB: predicated region body
PF: predicated region fallthrough
CT: control target
= control target key end

     0   :  { %s22_s0 = inlined_call_operand.vmem [shape: f32[32], index: 0, kind: input, shape index: {}]   ;;  %s23_s1 = inlined_call_operand.vmem [shape: f32[4,32], index: 1, kind: output, shape index: {}]  }
   0x1   :  { %v4_v0 = vld [vmem:[%s22_s0] ss:$0 sm:$0xff] }
   0x2   :  { %5 = vst [vmem:[%s23_s1] sm:$0xf] %v4_v0 }

// kernel: tile.19
= control target key start
LH: loop header
LB: loop body
LE: loop exit
PB: predicated region body
PF: predicated region fallthrough
CT: control target
= control target key end

     0   :  { %vm7_vm0 = vcmask 261120   ;;  %s37_s8 = smov 32   ;;  %s38_s9 = smov 64   ;;  %vm13_vm1 = vcmask 1048320   ;;  %vm19_vm2 = vcmask 785920   ;;  %vm25_vm3 = vcmask 523520   ;;  %s55_s0 = inlined_call_operand.vmem [shape: f32[4,32], index: 0, kind: input, shape index: {}]   ;;  %s56_s1 = inlined_call_operand.vmem [shape: f32[128], index: 1, kind: output, shape index: {}]  }
   0x1   :  { %v4_v0 = vld [vmem:[%s55_s0] sm:$0xf]  ;;  %s36_s0 = smov 96  }
   0x2   :  { %5 = vst [vmem:[#allocation1] sm:$0xf] %v4_v0 }
   0x9   :  { %v10_v1 = vld [vmem:[#allocation1 + $0x3] sm:$0x1]   ;;  %v22_v2 = vld [vmem:[#allocation1 + $0x1] sm:$0x1]   ;;  %v6_v3 = vld [vmem:[#allocation1] sm:$0x1]  }
   0xa   :  { %11 = vrot.lane.b32.xlu0 %v10_v1, %s36_s0  ;;  %23 = vrot.lane.b32.xlu1 %v22_v2, %s37_s8  ;;  %v16_v4 = vld [vmem:[#allocation1 + $0x2] sm:$0x1]   ;;  %8 = vst.msk [vmem:[#allocation0] sm:$0x1] %vm7_vm0, %v6_v3  }
   0xe   :  { %17 = vrot.lane.b32.xlu0 %v16_v4, %s38_s9 }
  0x7c   :  { %v12_v5 = vpop.permute.xlu0 %11   ;;  %v24_v6 = vpop.permute.xlu1 %23  }
  0x7d   :  { %14 = vst.msk [vmem:[#allocation0] sm:$0x1] %vm13_vm1, %v12_v5  }
  0x80   :  { %v18_v7 = vpop.permute.xlu0 %17  }
  0x81   :  { %20 = vst.msk [vmem:[#allocation0] sm:$0x1] %vm19_vm2, %v18_v7  }
  0x82   :  { %26 = vst.msk [vmem:[#allocation0] sm:$0x1] %vm25_vm3, %v24_v6  }
  0x89   :  { %v30_v8 = vld [vmem:[#allocation0] sm:$0x1] }
  0x8a   :  { %32 = vst [vmem:[%s56_s1] sm:$0x1] %v30_v8 }

// kernel: region_attention_forward.1
= control target key start
LH: loop header
LB: loop body
LE: loop exit
PB: predicated region body
PF: predicated region fallthrough
CT: control target
= control target key end

     0   :  { %s9208_s27 = smov 0   ;;  %s14699_s0 = inlined_call_operand.vmem [shape: f32[512,1800], index: 0, kind: input, shape index: {}]   ;;  %s14700_s1 = inlined_call_operand.vmem [shape: f32[256,128], index: 1, kind: input, shape index: {}]   ;;  %s14701_s2 = inlined_call_operand.vmem [shape: f32[256,1], index: 2, kind: input, shape index: {}]   ;;  %s14702_s3 = inlined_call_operand.vmem [shape: f32[1800,76], index: 3, kind: input, shape index: {}]   ;;  %s14703_s4 = inlined_call_operand.vmem [shape: f32[76,1800], index: 4, kind: input, shape index: {}]   ;;  %s14704_s5 = inlined_call_operand.vmem [shape: f32[1,76], index: 5, kind: input, shape index: {}]   ;;  %s14705_s6 = inlined_call_operand.vmem [shape: f32[1,76], index: 6, kind: input, shape index: {}]   ;;  %s14706_s7 = inlined_call_operand.vmem [shape: f32[4,4,1800], index: 7, kind: input, shape index: {}]   ;;  %s14707_s8 = inlined_call_operand.vmem [shape: f32[4,4,1800], index: 8, kind: output, shape index: {}]  }
   0x1 LB: > { %s9214_s28 = sadd.s32 4294967295, %s9158_s27   ;;  %p6867_p0 = scmp.ge.s32.totalorder %s9158_s27, 1  ;;  %s9158_s27 = sphi %s9208_s27, %s18_s27  }
   0x2   : > { %p274_p1 = scmp.lt.s32.totalorder %s9158_s27, 5 }
   0x4   : > { %p275_p2 = pnand %p6867_p0, %p274_p1 }
   0x6   : > { %278 = sbr.rel (%p275_p2) target bundleno = 1599 (0x63f), region = 52 }
   0xd   : > { %s6868_s29 = sshll.u32 %s9214_s28, 4  ;;  %v14708_v0 = vmov 0.0   ;;  %v9161_v1 = vmov 0   ;;  %v619_v2 = vld [vmem:[%s14701_s2 + $0x80] sm:$0xff]  ;;  %v621_v3 = vld [vmem:[%s14701_s2 + $0x90] sm:$0xff]  ;;  %v620_v4 = vld [vmem:[%s14701_s2 + $0x88] sm:$0xff] }
   0xe   : > { %p315_p3 = scmp.lt.s32.totalorder %s6868_s29, 63  ;;  %779 = vmatprep.mubr.f32.mxu0 %v14708_v0  ;;  %940 = vmatprep.mubr.f32.mxu1 %v14708_v0  ;;  %v622_v5 = vld [vmem:[%s14701_s2 + $0x98] sm:$0xff]  ;;  %v623_v9 = vld [vmem:[%s14701_s2 + $0xa0] sm:$0xff]  ;;  %v624_v19 = vld [vmem:[%s14701_s2 + $0xa8] sm:$0xff]  ;;  %vm2212_vm0 = vcmask 64512   ;;  %vm3891_vm1 = vcmask 1043456  }
   0xf   : > { %8645 = vset.pattern.permute.xlu0 %v9161_v1  ;;  %8646 = vset.pattern.permute.xlu1 %v9161_v1  ;;  %v625_v33 = vld [vmem:[%s14701_s2 + $0xb0] sm:$0xff]  ;;  %v626_v39 = vld [vmem:[%s14701_s2 + $0xb8] sm:$0xff]  ;;  %v627_v53 = vld [vmem:[%s14701_s2 + $0xc0] sm:$0xff]  ;;  %vm9162_vm2 = vmmov 1   ;;  %vm3842_vm4 = vcmask 621568   ;;  %p321_p4 = scmp.lt.s32.totalorder %s9214_s28, 3 }
  0x10   : > { %s15687_s29 = smov (!%p315_p3, %s6868_s29), 63  ;;  %3446 = vperm.xlu0 %8645, %v619_v2   ;;  %3456 = vperm.xlu1 %8646, %v621_v3   ;;  %vm11598_vm3 = vmpackc.low %vm3891_vm1, %vm9162_vm2  ;;  %vm6702_vm5 = vcmask 1041409   ;;  %vm6704_vm6 = vcmask 1045509   ;;  %vm6707_vm7 = vcmask 1042434   ;;  %vm6709_vm8 = vcmask 1046534  }
  0x11   : > { %s8632_s12 = smul.u32 120, %s15687_s29  ;;  %s15689_s28 = smov (!%p321_p4, %s9214_s28), 3  ;;  %vm6712_vm9 = vcmask 1043459   ;;  %vm6714_vm10 = vcmask 1047559   ;;  %vm6794_vm11 = vcmask 60416  }
  0x12   : > { %s8633_s15 = smul.u32 60, %s15689_s28 }
  0x13   : > { %s9236_s19 = scalar_lea.vmem %s14699_s0, %s8632_s12 }
  0x14   : > { %v332_v6 = vld [vmem:[%s9236_s19 + $0x8] sm:$0xff]  ;;  %v347_v7 = vld [vmem:[%s9236_s19 + $0x80] sm:$0xff]  ;;  %v334_v8 = vld [vmem:[%s9236_s19 + $0x18] sm:$0xff]  ;;  %3451 = vperm.xlu0 %8645, %v620_v4   ;;  %3461 = vperm.xlu1 %8646, %v622_v5   ;;  %s13483_s18 = scalar_lea.vmem %s14706_s7, %s8633_s15  ;;  %s13909_s21 = scalar_lea.vmem %s14707_s8, %s8633_s15 }
  0x15   : > { %v7944_v10 = vpack.c.bf16 %v347_v7, %v332_v6  ;;  %v349_v11 = vld [vmem:[%s9236_s19 + $0x90] sm:$0xff]  ;;  %v331_v12 = vld [vmem:[%s9236_s19] sm:$0xff]  ;;  %v346_v13 = vld [vmem:[%s9236_s19 + $0x78] sm:$0xff] }
  0x16   : > { %v7976_v14 = vpack.c.bf16 %v349_v11, %v334_v8  ;;  %v7946_v15 = vpack.c.bf16 %v346_v13, %v331_v12  ;;  %v333_v16 = vld [vmem:[%s9236_s19 + $0x10] sm:$0xff]  ;;  %v348_v17 = vld [vmem:[%s9236_s19 + $0x88] sm:$0xff]  ;;  %v362_v18 = vld [vmem:[%s9236_s19 + $0xf8] sm:$0xff] }
  0x17   : > { %7945 = vmatprep.subr.bf16.mxu0 %v7944_v10  ;;  %v7978_v20 = vpack.c.bf16 %v348_v17, %v333_v16  ;;  %v377_v21 = vld [vmem:[%s9236_s19 + $0x170] sm:$0xff]  ;;  %v364_v22 = vld [vmem:[%s9236_s19 + $0x108] sm:$0xff]  ;;  %v379_v23 = vld [vmem:[%s9236_s19 + $0x180] sm:$0xff] }
  0x18   : > { %7977 = vmatprep.subr.bf16.mxu1 %v7976_v14  ;;  %7947 = vmatpush1.bf16.msra.mxu0 %v7946_v15  ;;  %v7948_v24 = vpack.c.bf16 %v377_v21, %v362_v18  ;;  %v7980_v25 = vpack.c.bf16 %v379_v23, %v364_v22  ;;  %v361_v26 = vld [vmem:[%s9236_s19 + $0xf0] sm:$0xff]  ;;  %v376_v27 = vld [vmem:[%s9236_s19 + $0x168] sm:$0xff]  ;;  %v363_v28 = vld [vmem:[%s9236_s19 + $0x100] sm:$0xff] }
  0x19   : > { %7979 = vmatpush1.bf16.msra.mxu1 %v7978_v20  ;;  %v7950_v29 = vpack.c.bf16 %v376_v27, %v361_v26  ;;  %v378_v30 = vld [vmem:[%s9236_s19 + $0x178] sm:$0xff]  ;;  %v392_v31 = vld [vmem:[%s9236_s19 + $0x1e8] sm:$0xff]  ;;  %v407_v32 = vld [vmem:[%s9236_s19 + $0x260] sm:$0xff]  ;;  %3466 = vperm.xlu0 %8645, %v623_v9  }
  0x1a   : > { %7949 = vmatprep.subr.bf16.mxu0 %v7948_v24  ;;  %7981 = vmatprep.subr.bf16.mxu1 %v7980_v25  ;;  %v7982_v34 = vpack.c.bf16 %v378_v30, %v363_v28  ;;  %v7952_v35 = vpack.c.bf16 %v407_v32, %v392_v31  ;;  %v394_v36 = vld [vmem:[%s9236_s19 + $0x1f8] sm:$0xff]  ;;  %v409_v37 = vld [vmem:[%s9236_s19 + $0x270] sm:$0xff]  ;;  %v391_v38 = vld [vmem:[%s9236_s19 + $0x1e0] sm:$0xff] }
  0x1b   : > { %v7984_v40 = vpack.c.bf16 %v409_v37, %v394_v36  ;;  %v406_v41 = vld [vmem:[%s9236_s19 + $0x258] sm:$0xff]  ;;  %v393_v42 = vld [vmem:[%s9236_s19 + $0x1f0] sm:$0xff]  ;;  %v408_v43 = vld [vmem:[%s9236_s19 + $0x268] sm:$0xff]  ;;  %3471 = vperm.xlu1 %8646, %v624_v19  }
  0x1c   : > { %7951 = vmatpush1.bf16.msra.mxu0 %v7950_v29  ;;  %v7954_v44 = vpack.c.bf16 %v406_v41, %v391_v38  ;;  %v422_v45 = vld [vmem:[%s9236_s19 + $0x2d8] sm:$0xff]  ;;  %v437_v46 = vld [vmem:[%s9236_s19 + $0x350] sm:$0xff]  ;;  %v424_v47 = vld [vmem:[%s9236_s19 + $0x2e8] sm:$0xff]  ;;  %v7986_v48 = vpack.c.bf16 %v408_v43, %v393_v42 }
  0x1d   : > { %7983 = vmatpush1.bf16.msra.mxu1 %v7982_v34  ;;  %7953 = vmatprep.subr.bf16.mxu0 %v7952_v35  ;;  %v7956_v49 = vpack.c.bf16 %v437_v46, %v422_v45  ;;  %v439_v50 = vld [vmem:[%s9236_s19 + $0x360] sm:$0xff]  ;;  %v421_v51 = vld [vmem:[%s9236_s19 + $0x2d0] sm:$0xff]  ;;  %v436_v52 = vld [vmem:[%s9236_s19 + $0x348] sm:$0xff] }
  0x1e   : > { %7985 = vmatprep.subr.bf16.mxu1 %v7984_v40  ;;  %v7988_v54 = vpack.c.bf16 %v439_v50, %v424_v47  ;;  %v423_v55 = vld [vmem:[%s9236_s19 + $0x2e0] sm:$0xff]  ;;  %v438_v56 = vld [vmem:[%s9236_s19 + $0x358] sm:$0xff]  ;;  %v452_v57 = vld [vmem:[%s9236_s19 + $0x3c8] sm:$0xff]  ;;  %3476 = vperm.xlu0 %8645, %v625_v33   ;;  %v7958_v61 = vpack.c.bf16 %v436_v52, %v421_v51 }
  0x1f   : > { %v467_v58 = vld [vmem:[%s9236_s19 + $0x440] sm:$0xff]  ;;  %v454_v59 = vld [vmem:[%s9236_s19 + $0x3d8] sm:$0xff]  ;;  %v469_v60 = vld [vmem:[%s9236_s19 + $0x450] sm:$0xff]  ;;  %3481 = vperm.xlu1 %8646, %v626_v39   ;;  %v7990_v62 = vpack.c.bf16 %v438_v56, %v423_v55 }
  0x20   : > { %7955 = vmatpush1.bf16.msra.mxu0 %v7954_v44  ;;  %v7960_v63 = vpack.c.bf16 %v467_v58, %v452_v57  ;;  %v451_v1 = vld [vmem:[%s9236_s19 + $0x3c0] sm:$0xff]  ;;  %v466_v2 = vld [vmem:[%s9236_s19 + $0x438] sm:$0xff]  ;;  %v453_v3 = vld [vmem:[%s9236_s19 + $0x3d0] sm:$0xff]  ;;  %v7992_v4 = vpack.c.bf16 %v469_v60, %v454_v59 }
  0x21   : > { %7987 = vmatpush1.bf16.msra.mxu1 %v7986_v48  ;;  %7957 = vmatprep.subr.bf16.mxu0 %v7956_v49  ;;  %v468_v5 = vld [vmem:[%s9236_s19 + $0x448] sm:$0xff]  ;;  %v482_v6 = vld [vmem:[%s9236_s19 + $0x4b8] sm:$0xff]  ;;  %v497_v7 = vld [vmem:[%s9236_s19 + $0x530] sm:$0xff]  ;;  %v7962_v10 = vpack.c.bf16 %v466_v2, %v451_v1 }
  0x22   : > { %7989 = vmatprep.subr.bf16.mxu1 %v7988_v54  ;;  %3486 = vperm.xlu0 %8645, %v627_v53   ;;  %v484_v8 = vld [vmem:[%s9236_s19 + $0x4c8] sm:$0xff]  ;;  %v499_v9 = vld [vmem:[%s9236_s19 + $0x540] sm:$0xff]  ;;  %v7994_v11 = vpack.c.bf16 %v468_v5, %v453_v3  ;;  %v7964_v12 = vpack.c.bf16 %v497_v7, %v482_v6  ;;  %v481_v13 = vld [vmem:[%s9236_s19 + $0x4b0] sm:$0xff] }
  0x23   : > { %v496_v14 = vld [vmem:[%s9236_s19 + $0x528] sm:$0xff]  ;;  %v483_v15 = vld [vmem:[%s9236_s19 + $0x4c0] sm:$0xff]  ;;  %v7996_v16 = vpack.c.bf16 %v499_v9, %v484_v8  ;;  %v498_v17 = vld [vmem:[%s9236_s19 + $0x538] sm:$0xff] }
  0x24   : > { %7959 = vmatpush1.bf16.msra.mxu0 %v7958_v61  ;;  %v512_v18 = vld [vmem:[%s9236_s19 + $0x5a8] sm:$0xff]  ;;  %v527_v19 = vld [vmem:[%s9236_s19 + $0x620] sm:$0xff]  ;;  %v514_v20 = vld [vmem:[%s9236_s19 + $0x5b8] sm:$0xff]  ;;  %v7966_v22 = vpack.c.bf16 %v496_v14, %v481_v13  ;;  %v7998_v23 = vpack.c.bf16 %v498_v17, %v483_v15 }
  0x25   : > { %7991 = vmatpush1.bf16.msra.mxu1 %v7990_v62  ;;  %7961 = vmatprep.subr.bf16.mxu0 %v7960_v63  ;;  %v529_v21 = vld [vmem:[%s9236_s19 + $0x630] sm:$0xff]  ;;  %v7968_v24 = vpack.c.bf16 %v527_v19, %v512_v18  ;;  %v511_v25 = vld [vmem:[%s9236_s19 + $0x5a0] sm:$0xff]  ;;  %v526_v26 = vld [vmem:[%s9236_s19 + $0x618] sm:$0xff] }
  0x26   : > { %7993 = vmatprep.subr.bf16.mxu1 %v7992_v4  ;;  %v513_v27 = vld [vmem:[%s9236_s19 + $0x5b0] sm:$0xff]  ;;  %v8000_v28 = vpack.c.bf16 %v529_v21, %v514_v20  ;;  %v528_v29 = vld [vmem:[%s9236_s19 + $0x628] sm:$0xff]  ;;  %v542_v30 = vld [vmem:[%s9236_s19 + $0x698] sm:$0xff]  ;;  %v7970_v34 = vpack.c.bf16 %v526_v26, %v511_v25 }
  0x27   : > { %v557_v31 = vld [vmem:[%s9236_s19 + $0x710] sm:$0xff]  ;;  %v544_v32 = vld [vmem:[%s9236_s19 + $0x6a8] sm:$0xff]  ;;  %v559_v33 = vld [vmem:[%s9236_s19 + $0x720] sm:$0xff]  ;;  %v8002_v35 = vpack.c.bf16 %v528_v29, %v513_v27 }
  0x28   : > { %7963 = vmatpush1.bf16.msra.mxu0 %v7962_v10  ;;  %v7972_v36 = vpack.c.bf16 %v557_v31, %v542_v30  ;;  %v541_v37 = vld [vmem:[%s9236_s19 + $0x690] sm:$0xff]  ;;  %v556_v38 = vld [vmem:[%s9236_s19 + $0x708] sm:$0xff]  ;;  %v543_v39 = vld [vmem:[%s9236_s19 + $0x6a0] sm:$0xff]  ;;  %v8004_v40 = vpack.c.bf16 %v559_v33, %v544_v32 }
  0x29   : > { %7995 = vmatpush1.bf16.msra.mxu1 %v7994_v11  ;;  %7965 = vmatprep.subr.bf16.mxu0 %v7964_v12  ;;  %v558_v41 = vld [vmem:[%s9236_s19 + $0x718] sm:$0xff]  ;;  %v336_v42 = vld [vmem:[%s9236_s19 + $0x28] sm:$0xff]  ;;  %v351_v43 = vld [vmem:[%s9236_s19 + $0xa0] sm:$0xff]  ;;  %v7974_v46 = vpack.c.bf16 %v556_v38, %v541_v37 }
  0x2a   : > { %7997 = vmatprep.subr.bf16.mxu1 %v7996_v16  ;;  %v338_v44 = vld [vmem:[%s9236_s19 + $0x38] sm:$0xff]  ;;  %v353_v45 = vld [vmem:[%s9236_s19 + $0xb0] sm:$0xff]  ;;  %v8006_v47 = vpack.c.bf16 %v558_v41, %v543_v39  ;;  %v8008_v48 = vpack.c.bf16 %v351_v43, %v336_v42  ;;  %v352_v51 = vld [vmem:[%s9236_s19 + $0xa8] sm:$0xff] }
  0x2b   : > { %v8040_v49 = vpack.c.bf16 %v353_v45, %v338_v44  ;;  %v337_v50 = vld [vmem:[%s9236_s19 + $0x30] sm:$0xff]  ;;  %v335_v52 = vld [vmem:[%s9236_s19 + $0x20] sm:$0xff]  ;;  %v350_v53 = vld [vmem:[%s9236_s19 + $0x98] sm:$0xff] }
  0x2c   : > { %7967 = vmatpush1.bf16.msra.mxu0 %v7966_v22  ;;  %v368_v54 = vld [vmem:[%s9236_s19 + $0x128] sm:$0xff]  ;;  %v383_v55 = vld [vmem:[%s9236_s19 + $0x1a0] sm:$0xff]  ;;  %v366_v57 = vld [vmem:[%s9236_s19 + $0x118] sm:$0xff]  ;;  %v8042_v59 = vpack.c.bf16 %v352_v51, %v337_v50  ;;  %v8010_v60 = vpack.c.bf16 %v350_v53, %v335_v52 }
  0x2d   : > { %7999 = vmatpush1.bf16.msra.mxu1 %v7998_v23  ;;  %7969 = vmatprep.subr.bf16.mxu0 %v7968_v24  ;;  %v9330_v56 = vld [vmem:[%s14700_s1] sm:$0xff]  ;;  %v381_v58 = vld [vmem:[%s9236_s19 + $0x190] sm:$0xff]  ;;  %v8044_v61 = vpack.c.bf16 %v383_v55, %v368_v54  ;;  %v382_v63 = vld [vmem:[%s9236_s19 + $0x198] sm:$0xff] }
  0x2e   : > { %8001 = vmatprep.subr.bf16.mxu1 %v8000_v28  ;;  %v367_v62 = vld [vmem:[%s9236_s19 + $0x120] sm:$0xff]  ;;  %v365_v1 = vld [vmem:[%s9236_s19 + $0x110] sm:$0xff]  ;;  %v8012_v2 = vpack.c.bf16 %v381_v58, %v366_v57  ;;  %v380_v3 = vld [vmem:[%s9236_s19 + $0x188] sm:$0xff] }
  0x2f   : > { %v398_v4 = vld [vmem:[%s9236_s19 + $0x218] sm:$0xff]  ;;  %v413_v5 = vld [vmem:[%s9236_s19 + $0x290] sm:$0xff]  ;;  %v9346_v6 = vld [vmem:[%s14700_s1 + $0x8] sm:$0xff]  ;;  %v8046_v9 = vpack.c.bf16 %v382_v63, %v367_v62  ;;  %v8014_v10 = vpack.c.bf16 %v380_v3, %v365_v1 }
  0x30   : > { %7971 = vmatpush1.bf16.msra.mxu0 %v7970_v34  ;;  %v396_v7 = vld [vmem:[%s9236_s19 + $0x208] sm:$0xff]  ;;  %v411_v8 = vld [vmem:[%s9236_s19 + $0x280] sm:$0xff]  ;;  %v8048_v11 = vpack.c.bf16 %v413_v5, %v398_v4  ;;  %v397_v12 = vld [vmem:[%s9236_s19 + $0x210] sm:$0xff] }
  0x31   : > { %8003 = vmatpush1.bf16.msra.mxu1 %v8002_v35  ;;  %7973 = vmatprep.subr.bf16.mxu0 %v7972_v36  ;;  %v412_v13 = vld [vmem:[%s9236_s19 + $0x288] sm:$0xff]  ;;  %v395_v14 = vld [vmem:[%s9236_s19 + $0x200] sm:$0xff]  ;;  %v8016_v15 = vpack.c.bf16 %v411_v8, %v396_v7  ;;  %v410_v16 = vld [vmem:[%s9236_s19 + $0x278] sm:$0xff] }
  0x32   : > { %8005 = vmatprep.subr.bf16.mxu1 %v8004_v40  ;;  %v428_v17 = vld [vmem:[%s9236_s19 + $0x308] sm:$0xff]  ;;  %v443_v18 = vld [vmem:[%s9236_s19 + $0x380] sm:$0xff]  ;;  %v9363_v19 = vld [vmem:[%s14700_s1 + $0x10] sm:$0xff]  ;;  %v8050_v22 = vpack.c.bf16 %v412_v13, %v397_v12  ;;  %v8018_v23 = vpack.c.bf16 %v410_v16, %v395_v14 }
  0x33   : > { %v426_v20 = vld [vmem:[%s9236_s19 + $0x2f8] sm:$0xff]  ;;  %v441_v21 = vld [vmem:[%s9236_s19 + $0x370] sm:$0xff]  ;;  %v8052_v24 = vpack.c.bf16 %v443_v18, %v428_v17  ;;  %v427_v25 = vld [vmem:[%s9236_s19 + $0x300] sm:$0xff] }
  0x34   : > { %7975 = vmatpush1.bf16.msra.mxu0 %v7974_v46  ;;  %v442_v26 = vld [vmem:[%s9236_s19 + $0x378] sm:$0xff]  ;;  %v425_v27 = vld [vmem:[%s9236_s19 + $0x2f0] sm:$0xff]  ;;  %v8020_v28 = vpack.c.bf16 %v441_v21, %v426_v20  ;;  %v440_v29 = vld [vmem:[%s9236_s19 + $0x368] sm:$0xff] }
  0x35   : > { %8007 = vmatpush1.bf16.msra.mxu1 %v8006_v47  ;;  %8009 = vmatprep.subr.bf16.mxu0 %v8008_v48  ;;  %v458_v30 = vld [vmem:[%s9236_s19 + $0x3f8] sm:$0xff]  ;;  %v473_v31 = vld [vmem:[%s9236_s19 + $0x470] sm:$0xff]  ;;  %v456_v33 = vld [vmem:[%s9236_s19 + $0x3e8] sm:$0xff]  ;;  %v8054_v35 = vpack.c.bf16 %v442_v26, %v427_v25  ;;  %v8022_v36 = vpack.c.bf16 %v440_v29, %v425_v27 }
  0x36   : > { %8041 = vmatprep.subr.bf16.mxu1 %v8040_v49  ;;  %v9380_v32 = vld [vmem:[%s14700_s1 + $0x18] sm:$0xff]  ;;  %v471_v34 = vld [vmem:[%s9236_s19 + $0x460] sm:$0xff]  ;;  %v8056_v37 = vpack.c.bf16 %v473_v31, %v458_v30  ;;  %v457_v38 = vld [vmem:[%s9236_s19 + $0x3f0] sm:$0xff] }
  0x37   : > { %780 = vmatmul.mubr.f32.vlgmr.msra.gmra.mrb[0].mxu0 %v9330_v56  ;;  %v472_v39 = vld [vmem:[%s9236_s19 + $0x468] sm:$0xff]  ;;  %v455_v40 = vld [vmem:[%s9236_s19 + $0x3e0] sm:$0xff]  ;;  %v8024_v41 = vpack.c.bf16 %v471_v34, %v456_v33  ;;  %v470_v42 = vld [vmem:[%s9236_s19 + $0x458] sm:$0xff] }
  0x38   : > { %941 = vmatmul.mubr.f32.vlgmr.msra.gmra.mrb[0].mxu1 %v9330_v56  ;;  %785 = vmatprep.mubr.f32.mxu0 %v14708_v0  ;;  %v488_v43 = vld [vmem:[%s9236_s19 + $0x4e8] sm:$0xff]  ;;  %v503_v44 = vld [vmem:[%s9236_s19 + $0x560] sm:$0xff]  ;;  %v486_v46 = vld [vmem:[%s9236_s19 + $0x4d8] sm:$0xff]  ;;  %v8058_v48 = vpack.c.bf16 %v472_v39, %v457_v38  ;;  %v8026_v49 = vpack.c.bf16 %v470_v42, %v455_v40 }
  0x39   : > { %8043 = vmatpush1.bf16.msra.mxu1 %v8042_v59  ;;  %946 = vmatprep.mubr.f32.mxu1 %v14708_v0  ;;  %v9397_v45 = vld [vmem:[%s14700_s1 + $0x20] sm:$0xff]  ;;  %v501_v47 = vld [vmem:[%s9236_s19 + $0x550] sm:$0xff]  ;;  %v8060_v50 = vpack.c.bf16 %v503_v44, %v488_v43  ;;  %v502_v52 = vld [vmem:[%s9236_s19 + $0x558] sm:$0xff] }
  0x3a   : > { %8011 = vmatpush1.bf16.msra.mxu0 %v8010_v60  ;;  %8045 = vmatprep.subr.bf16.mxu1 %v8044_v61  ;;  %v487_v51 = vld [vmem:[%s9236_s19 + $0x4e0] sm:$0xff]  ;;  %v485_v53 = vld [vmem:[%s9236_s19 + $0x4d0] sm:$0xff]  ;;  %v8028_v54 = vpack.c.bf16 %v501_v47, %v486_v46  ;;  %v500_v55 = vld [vmem:[%s9236_s19 + $0x548] sm:$0xff] }
  0x3b   : > { %786 = vmatmul.mubr.f32.gmra.mrb[2].mxu0 %v9346_v6  ;;  %8013 = vmatprep.subr.bf16.mxu0 %v8012_v2  ;;  %v518_v57 = vld [vmem:[%s9236_s19 + $0x5d8] sm:$0xff]  ;;  %v533_v58 = vld [vmem:[%s9236_s19 + $0x650] sm:$0xff]  ;;  %v9414_v59 = vld [vmem:[%s14700_s1 + $0x28] sm:$0xff]  ;;  %v8062_v62 = vpack.c.bf16 %v502_v52, %v487_v51  ;;  %v8030_v63 = vpack.c.bf16 %v500_v55, %v485_v53 }
  0x3c   : > { %947 = vmatmul.mubr.f32.gmra.mrb[2].mxu1 %v9346_v6  ;;  %791 = vmatprep.mubr.f32.mxu0 %v14708_v0  ;;  %v516_v60 = vld [vmem:[%s9236_s19 + $0x5c8] sm:$0xff]  ;;  %v531_v61 = vld [vmem:[%s9236_s19 + $0x640] sm:$0xff]  ;;  %v8064_v1 = vpack.c.bf16 %v533_v58, %v518_v57  ;;  %v517_v2 = vld [vmem:[%s9236_s19 + $0x5d0] sm:$0xff] }
  0x3d   : > { %952 = vmatprep.mubr.f32.mxu1 %v14708_v0  ;;  %8047 = vmatpush1.bf16.msra.mxu1 %v8046_v9  ;;  %v532_v3 = vld [vmem:[%s9236_s19 + $0x648] sm:$0xff]  ;;  %v515_v4 = vld [vmem:[%s9236_s19 + $0x5c0] sm:$0xff]  ;;  %v8032_v5 = vpack.c.bf16 %v531_v61, %v516_v60  ;;  %v530_v7 = vld [vmem:[%s9236_s19 + $0x638] sm:$0xff] }
  0x3e   : > { %8015 = vmatpush1.bf16.msra.mxu0 %v8014_v10  ;;  %8049 = vmatprep.subr.bf16.mxu1 %v8048_v11  ;;  %v548_v8 = vld [vmem:[%s9236_s19 + $0x6c8] sm:$0xff]  ;;  %v563_v9 = vld [vmem:[%s9236_s19 + $0x740] sm:$0xff]  ;;  %v9431_v10 = vld [vmem:[%s14700_s1 + $0x30] sm:$0xff]  ;;  %v8066_v11 = vpack.c.bf16 %v532_v3, %v517_v2  ;;  %v8034_v12 = vpack.c.bf16 %v530_v7, %v515_v4 }
  0x3f   : > { %792 = vmatmul.mubr.f32.gmra.mrb[4].mxu0 %v9363_v19  ;;  %8017 = vmatprep.subr.bf16.mxu0 %v8016_v15  ;;  %v8068_v13 = vpack.c.bf16 %v563_v9, %v548_v8  ;;  %v547_v14 = vld [vmem:[%s9236_s19 + $0x6c0] sm:$0xff]  ;;  %v562_v15 = vld [vmem:[%s9236_s19 + $0x738] sm:$0xff]  ;;  %v561_v17 = vld [vmem:[%s9236_s19 + $0x730] sm:$0xff] }
  0x40   : > { %953 = vmatmul.mubr.f32.gmra.mrb[4].mxu1 %v9363_v19  ;;  %797 = vmatprep.mubr.f32.mxu0 %v14708_v0  ;;  %v546_v16 = vld [vmem:[%s9236_s19 + $0x6b8] sm:$0xff]  ;;  %v629_v20 = vld [vmem:[%s14701_s2 + $0xd0] sm:$0xff]  ;;  %v8070_v21 = vpack.c.bf16 %v562_v15, %v547_v14  ;;  %v628_v25 = vld [vmem:[%s14701_s2 + $0xc8] sm:$0xff] }
  0x41   : > { %958 = vmatprep.mubr.f32.mxu1 %v14708_v0  ;;  %8051 = vmatpush1.bf16.msra.mxu1 %v8050_v22  ;;  %v9444_v18 = vld [vmem:[%s14700_s1 + $0x38] sm:$0xff]  ;;  %v8036_v22 = vpack.c.bf16 %v561_v17, %v546_v16  ;;  %v357_v27 = vld [vmem:[%s9236_s19 + $0xd0] sm:$0xff]  ;;  %v631_v29 = vld [vmem:[%s14701_s2 + $0xe0] sm:$0xff] }
  0x42   : > { %8019 = vmatpush1.bf16.msra.mxu0 %v8018_v23  ;;  %8053 = vmatprep.subr.bf16.mxu1 %v8052_v24  ;;  %v545_v23 = vld [vmem:[%s9236_s19 + $0x6b0] sm:$0xff]  ;;  %v560_v24 = vld [vmem:[%s9236_s19 + $0x728] sm:$0xff]  ;;  %v342_v26 = vld [vmem:[%s9236_s19 + $0x58] sm:$0xff] }
  0x43   : > { %798 = vmatmul.mubr.f32.gmra.mrb[6].mxu0 %v9380_v32  ;;  %8021 = vmatprep.subr.bf16.mxu0 %v8020_v28  ;;  %v9463_v28 = vld [vmem:[%s14700_s1 + $0x40] sm:$0xff]  ;;  %v8038_v30 = vpack.c.bf16 %v560_v24, %v545_v23  ;;  %v8104_v31 = vpack.c.bf16 %v357_v27, %v342_v26  ;;  %v340_v33 = vld [vmem:[%s9236_s19 + $0x48] sm:$0xff]  ;;  %v9495_v40 = vld [vmem:[%s14700_s1 + $0x50] sm:$0xff] }
  0x44   : > { %959 = vmatmul.mubr.f32.gmra.mrb[6].mxu1 %v9380_v32  ;;  %803 = vmatprep.mubr.f32.mxu0 %v14708_v0  ;;  %v355_v34 = vld [vmem:[%s9236_s19 + $0xc0] sm:$0xff]  ;;  %v632_v39 = vld [vmem:[%s14701_s2 + $0xe8] sm:$0xff]  ;;  %v634_v42 = vld [vmem:[%s14701_s2 + $0xf8] sm:$0xff] }
  0x45   : > { %964 = vmatprep.mubr.f32.mxu1 %v14708_v0  ;;  %8055 = vmatpush1.bf16.msra.mxu1 %v8054_v35  ;;  %v630_v35 = vld [vmem:[%s14701_s2 + $0xd8] sm:$0xff]  ;;  %v8072_v38 = vpack.c.bf16 %v355_v34, %v340_v33  ;;  %v603_v44 = vld [vmem:[%s14701_s2] sm:$0xff]  ;;  %v608_v46 = vld [vmem:[%s14701_s2 + $0x28] sm:$0xff] }
  0x46   : > { %8023 = vmatpush1.bf16.msra.mxu0 %v8022_v36  ;;  %8057 = vmatprep.subr.bf16.mxu1 %v8056_v37  ;;  %v9480_v36 = vld [vmem:[%s14700_s1 + $0x48] sm:$0xff]  ;;  %v633_v37 = vld [vmem:[%s14701_s2 + $0xf0] sm:$0xff]  ;;  %v9510_v43 = vld [vmem:[%s14700_s1 + $0x58] sm:$0xff] }
  0x47   : > { %804 = vmatmul.mubr.f32.gmra.mrb[8].mxu0 %v9397_v45  ;;  %8025 = vmatprep.subr.bf16.mxu0 %v8024_v41  ;;  %v607_v41 = vld [vmem:[%s14701_s2 + $0x20] sm:$0xff]  ;;  %v612_v51 = vld [vmem:[%s14701_s2 + $0x48] sm:$0xff]  ;;  %v9555_v53 = vld [vmem:[%s14700_s1 + $0x70] sm:$0xff] }
  0x48   : > { %965 = vmatmul.mubr.f32.gmra.mrb[8].mxu1 %v9397_v45  ;;  %809 = vmatprep.mubr.f32.mxu0 %v14708_v0  ;;  %v9525_v47 = vld [vmem:[%s14700_s1 + $0x60] sm:$0xff]  ;;  %v605_v55 = vld [vmem:[%s14701_s2 + $0x10] sm:$0xff]  ;;  %v9570_v57 = vld [vmem:[%s14700_s1 + $0x78] sm:$0xff] }
  0x49   : > { %970 = vmatprep.mubr.f32.mxu1 %v14708_v0  ;;  %8059 = vmatpush1.bf16.msra.mxu1 %v8058_v48  ;;  %v609_v48 = vld [vmem:[%s14701_s2 + $0x30] sm:$0xff]  ;;  %v611_v52 = vld [vmem:[%s14701_s2 + $0x40] sm:$0xff]  ;;  %v356_v61 = vld [vmem:[%s9236_s19 + $0xc8] sm:$0xff] }
  0x4a   : > { %8027 = vmatpush1.bf16.msra.mxu0 %v8026_v49  ;;  %8061 = vmatprep.subr.bf16.mxu1 %v8060_v50  ;;  %v604_v49 = vld [vmem:[%s14701_s2 + $0x8] sm:$0xff]  ;;  %v615_v58 = vld [vmem:[%s14701_s2 + $0x60] sm:$0xff]  ;;  %v341_v60 = vld [vmem:[%s9236_s19 + $0x50] sm:$0xff] }
  0x4b   : > { %810 = vmatmul.mubr.f32.gmra.mrb[10].mxu0 %v9414_v59  ;;  %8029 = vmatprep.subr.bf16.mxu0 %v8028_v54  ;;  %v9540_v50 = vld [vmem:[%s14700_s1 + $0x68] sm:$0xff]  ;;  %v610_v54 = vld [vmem:[%s14701_s2 + $0x38] sm:$0xff]  ;;  %v387_v2 = vld [vmem:[%s9236_s19 + $0x1c0] sm:$0xff]  ;;  %v8106_v8 = vpack.c.bf16 %v356_v61, %v341_v60 }
  0x4c   : > { %971 = vmatmul.mubr.f32.gmra.mrb[10].mxu1 %v9414_v59  ;;  %815 = vmatprep.mubr.f32.mxu0 %v14708_v0  ;;  %v613_v3 = vld [vmem:[%s14701_s2 + $0x50] sm:$0xff]  ;;  %v370_v4 = vld [vmem:[%s9236_s19 + $0x138] sm:$0xff]  ;;  %v384_v16 = vld [vmem:[%s9236_s19 + $0x1a8] sm:$0xff] }
  0x4d   : > { %976 = vmatprep.mubr.f32.mxu1 %v14708_v0  ;;  %8063 = vmatpush1.bf16.msra.mxu1 %v8062_v62  ;;  %v339_v62 = vld [vmem:[%s9236_s19 + $0x40] sm:$0xff]  ;;  %v606_v7 = vld [vmem:[%s14701_s2 + $0x18] sm:$0xff]  ;;  %v369_v14 = vld [vmem:[%s9236_s19 + $0x130] sm:$0xff] }
  0x4e   : > { %8031 = vmatpush1.bf16.msra.mxu0 %v8030_v63  ;;  %8065 = vmatprep.subr.bf16.mxu1 %v8064_v1  ;;  %v354_v63 = vld [vmem:[%s9236_s19 + $0xb8] sm:$0xff]  ;;  %v372_v1 = vld [vmem:[%s9236_s19 + $0x148] sm:$0xff]  ;;  %v8078_v24 = vpack.c.bf16 %v384_v16, %v369_v14  ;;  %v401_v26 = vld [vmem:[%s9236_s19 + $0x230] sm:$0xff] }
  0x4f   : > { %816 = vmatmul.mubr.f32.gmra.mrb[12].mxu0 %v9431_v10  ;;  %8033 = vmatprep.subr.bf16.mxu0 %v8032_v5  ;;  %v385_v5 = vld [vmem:[%s9236_s19 + $0x1b0] sm:$0xff]  ;;  %v8074_v9 = vpack.c.bf16 %v354_v63, %v339_v62  ;;  %v402_v17 = vld [vmem:[%s9236_s19 + $0x238] sm:$0xff]  ;;  %v416_v27 = vld [vmem:[%s9236_s19 + $0x2a8] sm:$0xff] }
  0x50   : > { %977 = vmatmul.mubr.f32.gmra.mrb[12].mxu1 %v9431_v10  ;;  %821 = vmatprep.mubr.f32.mxu0 %v14708_v0  ;;  %v8076_v15 = vpack.c.bf16 %v385_v5, %v370_v4  ;;  %v432_v33 = vld [vmem:[%s9236_s19 + $0x328] sm:$0xff]  ;;  %v447_v34 = vld [vmem:[%s9236_s19 + $0x3a0] sm:$0xff]  ;;  %v461_v62 = vld [vmem:[%s9236_s19 + $0x410] sm:$0xff] }
  0x51   : > { %982 = vmatprep.mubr.f32.mxu1 %v14708_v0  ;;  %8067 = vmatpush1.bf16.msra.mxu1 %v8066_v11  ;;  %v8108_v11 = vpack.c.bf16 %v387_v2, %v372_v1  ;;  %v476_v63 = vld [vmem:[%s9236_s19 + $0x488] sm:$0xff]  ;;  %v459_v1 = vld [vmem:[%s9236_s19 + $0x400] sm:$0xff]  ;;  %v506_v14 = vld [vmem:[%s9236_s19 + $0x578] sm:$0xff] }
  0x52   : > { %8035 = vmatpush1.bf16.msra.mxu0 %v8034_v12  ;;  %8069 = vmatprep.subr.bf16.mxu1 %v8068_v13  ;;  %v371_v12 = vld [vmem:[%s9236_s19 + $0x140] sm:$0xff]  ;;  %v386_v13 = vld [vmem:[%s9236_s19 + $0x1b8] sm:$0xff]  ;;  %v492_v4 = vld [vmem:[%s9236_s19 + $0x508] sm:$0xff] }
  0x53   : > { %822 = vmatmul.mubr.f32.gmra.mrb[14].mxu0 %v9444_v18  ;;  %3496 = vperm.xlu0 %8645, %v629_v20   ;;  %v417_v20 = vld [vmem:[%s9236_s19 + $0x2b0] sm:$0xff]  ;;  %v8110_v23 = vpack.c.bf16 %v386_v13, %v371_v12  ;;  %v507_v5 = vld [vmem:[%s9236_s19 + $0x580] sm:$0xff] }
  0x54   : > { %983 = vmatmul.mubr.f32.gmra.mrb[14].mxu1 %v9444_v18  ;;  %827 = vmatprep.mubr.f32.mxu0 %v14708_v0  ;;  %v8124_v12 = vpack.c.bf16 %v507_v5, %v492_v4  ;;  %v491_v13 = vld [vmem:[%s9236_s19 + $0x500] sm:$0xff]  ;;  %v618_v4 = vld [vmem:[%s14701_s2 + $0x78] sm:$0xff] }
  0x55   : > { %988 = vmatprep.mubr.f32.mxu1 %v14708_v0  ;;  %8071 = vmatpush1.bf16.msra.mxu1 %v8070_v21  ;;  %v400_v21 = vld [vmem:[%s9236_s19 + $0x228] sm:$0xff]  ;;  %v343_v5 = vld [vmem:[%s9236_s19 + $0x60] sm:$0xff] }
  0x56   : > { %8037 = vmatprep.subr.bf16.mxu0 %v8036_v22  ;;  %3491 = vperm.xlu1 %8646, %v628_v25   ;;  %v415_v22 = vld [vmem:[%s9236_s19 + $0x2a0] sm:$0xff]  ;;  %v8112_v25 = vpack.c.bf16 %v417_v20, %v402_v17  ;;  %v504_v17 = vld [vmem:[%s9236_s19 + $0x568] sm:$0xff]  ;;  %v522_v20 = vld [vmem:[%s9236_s19 + $0x5f8] sm:$0xff] }
  0x57   : > { %828 = vmatmul.mubr.f32.gmra.mrb[16].mxu0 %v9463_v28  ;;  %3506 = vperm.xlu0 %8645, %v631_v29   ;;  %v399_v29 = vld [vmem:[%s9236_s19 + $0x220] sm:$0xff] }
  0x58   : > { %989 = vmatmul.mubr.f32.gmra.mrb[16].mxu1 %v9463_v28  ;;  %833 = vmatprep.mubr.f32.mxu0 %v14708_v0 }
  0x59   : > { %994 = vmatprep.mubr.f32.mxu1 %v14708_v0  ;;  %8039 = vmatpush1.bf16.msra.mxu0 %v8038_v30  ;;  %v8080_v30 = vpack.c.bf16 %v415_v22, %v400_v21  ;;  %v537_v21 = vld [vmem:[%s9236_s19 + $0x670] sm:$0xff]  ;;  %v520_v22 = vld [vmem:[%s9236_s19 + $0x5e8] sm:$0xff] }
  0x5a   : > { %8105 = vmatprep.subr.bf16.mxu1 %v8104_v31  ;;  %3501 = vperm.xlu1 %8646, %v630_v35   ;;  %v414_v31 = vld [vmem:[%s9236_s19 + $0x298] sm:$0xff] }
  0x5b   : > { %834 = vmatmul.mubr.f32.gmra.mrb[18].mxu0 %v9480_v36  ;;  %3516 = vperm.xlu0 %8645, %v633_v37   ;;  %v430_v35 = vld [vmem:[%s9236_s19 + $0x318] sm:$0xff]  ;;  %v445_v37 = vld [vmem:[%s9236_s19 + $0x390] sm:$0xff] }
  0x5c   : > { %995 = vmatmul.mubr.f32.gmra.mrb[18].mxu1 %v9480_v36  ;;  %839 = vmatprep.mubr.f32.mxu0 %v14708_v0 }
  0x5d   : > { %1000 = vmatprep.mubr.f32.mxu1 %v14708_v0  ;;  %8073 = vmatprep.subr.bf16.mxu0 %v8072_v38  ;;  %v8114_v38 = vpack.c.bf16 %v416_v27, %v401_v26  ;;  %v8128_v26 = vpack.c.bf16 %v537_v21, %v522_v20  ;;  %v521_v27 = vld [vmem:[%s9236_s19 + $0x5f0] sm:$0xff]  ;;  %v420_v21 = vld [vmem:[%s9236_s19 + $0x2c8] sm:$0xff] }
  0x5e   : > { %3511 = vperm.xlu1 %8646, %v632_v39   ;;  %v8082_v39 = vpack.c.bf16 %v414_v31, %v399_v29  ;;  %v536_v29 = vld [vmem:[%s9236_s19 + $0x668] sm:$0xff]  ;;  %v405_v20 = vld [vmem:[%s9236_s19 + $0x250] sm:$0xff] }
  0x5f   : > { %840 = vmatmul.mubr.f32.gmra.mrb[20].mxu0 %v9495_v40  ;;  %657 = vperm.xlu0 %8645, %v607_v41   ;;  %v8116_v41 = vpack.c.bf16 %v447_v34, %v432_v33  ;;  %v534_v33 = vld [vmem:[%s9236_s19 + $0x658] sm:$0xff]  ;;  %v552_v34 = vld [vmem:[%s9236_s19 + $0x6e8] sm:$0xff] }
  0x60   : > { %1001 = vmatmul.mubr.f32.gmra.mrb[20].mxu1 %v9495_v40  ;;  %845 = vmatprep.mubr.f32.mxu0 %v14708_v0 }
  0x61   : > { %1006 = vmatprep.mubr.f32.mxu1 %v14708_v0 }
  0x62   : > { %3521 = vperm.xlu1 %8646, %v634_v42   ;;  %v431_v42 = vld [vmem:[%s9236_s19 + $0x320] sm:$0xff] }
  0x63   : > { %846 = vmatmul.mubr.f32.gmra.mrb[22].mxu0 %v9510_v43  ;;  %637 = vperm.xlu0 %8645, %v603_v44   ;;  %v446_v44 = vld [vmem:[%s9236_s19 + $0x398] sm:$0xff] }
  0x64   : > { %1007 = vmatmul.mubr.f32.gmra.mrb[22].mxu1 %v9510_v43  ;;  %851 = vmatprep.mubr.f32.mxu0 %v14708_v0 }
  0x65   : > { %1012 = vmatprep.mubr.f32.mxu1 %v14708_v0 }
  0x66   : > { %662 = vperm.xlu1 %8646, %v608_v46   ;;  %v429_v46 = vld [vmem:[%s9236_s19 + $0x310] sm:$0xff] }
  0x67   : > { %852 = vmatmul.mubr.f32.gmra.mrb[24].mxu0 %v9525_v47  ;;  %667 = vperm.xlu0 %8645, %v609_v48   ;;  %v8084_v48 = vpack.c.bf16 %v445_v37, %v430_v35  ;;  %v567_v35 = vld [vmem:[%s9236_s19 + $0x760] sm:$0xff]  ;;  %v8130_v37 = vpack.c.bf16 %v536_v29, %v521_v27  ;;  %v418_v27 = vld [vmem:[%s9236_s19 + $0x2b8] sm:$0xff] }
  0x68   : > { %1013 = vmatmul.mubr.f32.gmra.mrb[24].mxu1 %v9525_v47  ;;  %857 = vmatprep.mubr.f32.mxu0 %v14708_v0  ;;  %v435_v29 = vld [vmem:[%s9236_s19 + $0x340] sm:$0xff] }
  0x69   : > { %1018 = vmatprep.mubr.f32.mxu1 %v14708_v0 }
  0x6a   : > { %642 = vperm.xlu1 %8646, %v604_v49   ;;  %v444_v49 = vld [vmem:[%s9236_s19 + $0x388] sm:$0xff] }
  0x6b   : > { %858 = vmatmul.mubr.f32.gmra.mrb[26].mxu0 %v9540_v50  ;;  %682 = vperm.xlu0 %8645, %v612_v51   ;;  %v462_v51 = vld [vmem:[%s9236_s19 + $0x418] sm:$0xff]  ;;  %v8086_v60 = vpack.c.bf16 %v444_v49, %v429_v46  ;;  %v565_v46 = vld [vmem:[%s9236_s19 + $0x750] sm:$0xff]  ;;  %v360_v49 = vld [vmem:[%s9236_s19 + $0xe8] sm:$0xff] }
  0x6c   : > { %1019 = vmatmul.mubr.f32.gmra.mrb[26].mxu1 %v9540_v50  ;;  %863 = vmatprep.mubr.f32.mxu0 %v14708_v0 }
  0x6d   : > { %1024 = vmatprep.mubr.f32.mxu1 %v14708_v0 }
  0x6e   : > { %677 = vperm.xlu1 %8646, %v611_v52   ;;  %v477_v52 = vld [vmem:[%s9236_s19 + $0x490] sm:$0xff] }
  0x6f   : > { %864 = vmatmul.mubr.f32.gmra.mrb[28].mxu0 %v9555_v53  ;;  %672 = vperm.xlu0 %8645, %v610_v54   ;;  %v460_v54 = vld [vmem:[%s9236_s19 + $0x408] sm:$0xff]  ;;  %v8120_v61 = vpack.c.bf16 %v477_v52, %v462_v51 }
  0x70   : > { %1025 = vmatmul.mubr.f32.gmra.mrb[28].mxu1 %v9555_v53  ;;  %869 = vmatprep.mubr.f32.mxu0 %v14708_v0  ;;  %v616_v51 = vld [vmem:[%s14701_s2 + $0x68] sm:$0xff] }
  0x71   : > { %1030 = vmatprep.mubr.f32.mxu1 %v14708_v0 }
  0x72   : > { %647 = vperm.xlu1 %8646, %v605_v55   ;;  %v475_v55 = vld [vmem:[%s9236_s19 + $0x480] sm:$0xff] }
  0x73   : > { %870 = vmatmul.mubr.f32.gmra.mrb[30].mxu0 %v9570_v57  ;;  %697 = vperm.xlu0 %8645, %v615_v58   ;;  %v8118_v58 = vpack.c.bf16 %v446_v44, %v431_v42  ;;  %v8088_v2 = vpack.c.bf16 %v475_v55, %v460_v54  ;;  %v566_v42 = vld [vmem:[%s9236_s19 + $0x758] sm:$0xff]  ;;  %v549_v55 = vld [vmem:[%s9236_s19 + $0x6d0] sm:$0xff] }
  0x74   : > { %1031 = vmatmul.mubr.f32.gmra.mrb[30].mxu1 %v9570_v57  ;;  %1101 = vmatprep.mubr.f32.mxu0 %v14708_v0  ;;  %v550_v44 = vld [vmem:[%s9236_s19 + $0x6d8] sm:$0xff] }
  0x75   : > { %1262 = vmatprep.mubr.f32.mxu1 %v14708_v0  ;;  %v8100_v54 = vpack.c.bf16 %v565_v46, %v550_v44  ;;  %v479_v44 = vld [vmem:[%s9236_s19 + $0x4a0] sm:$0xff] }
  0x76   : > { %687 = vperm.xlu1 %8646, %v613_v3   ;;  %v474_v3 = vld [vmem:[%s9236_s19 + $0x478] sm:$0xff] }
  0x77   : > { %1102 = vmatmul.mubr.f32.vlgmr.msra.gmra.mrb[32].mxu0 %v9330_v56  ;;  %652 = vperm.xlu0 %8645, %v606_v7   ;;  %v490_v7 = vld [vmem:[%s9236_s19 + $0x4f8] sm:$0xff] }
  0x78   : > { %1263 = vmatmul.mubr.f32.vlgmr.msra.gmra.mrb[32].mxu1 %v9330_v56  ;;  %1107 = vmatprep.mubr.f32.mxu0 %v14708_v0 }
  0x79   : > { %8107 = vmatpush1.bf16.msra.mxu1 %v8106_v8  ;;  %1268 = vmatprep.mubr.f32.mxu1 %v14708_v0  ;;  %v505_v8 = vld [vmem:[%s9236_s19 + $0x570] sm:$0xff] }
  0x7a   : > { %8075 = vmatpush1.bf16.msra.mxu0 %v8074_v9  ;;  %8109 = vmatprep.subr.bf16.mxu1 %v8108_v11  ;;  %v8122_v9 = vpack.c.bf16 %v476_v63, %v461_v62  ;;  %v8090_v11 = vpack.c.bf16 %v474_v3, %v459_v1  ;;  %v8092_v16 = vpack.c.bf16 %v505_v8, %v490_v7  ;;  %v359_v62 = vld [vmem:[%s9236_s19 + $0xe0] sm:$0xff]  ;;  %v614_v63 = vld [vmem:[%s14701_s2 + $0x58] sm:$0xff]  ;;  %v617_v3 = vld [vmem:[%s14701_s2 + $0x70] sm:$0xff] }
  0x7b   : > { %1108 = vmatmul.mubr.f32.gmra.mrb[34].mxu0 %v9346_v6  ;;  %8077 = vmatprep.subr.bf16.mxu0 %v8076_v15  ;;  %v489_v15 = vld [vmem:[%s9236_s19 + $0x4f0] sm:$0xff]  ;;  %v358_v7 = vld [vmem:[%s9236_s19 + $0xd8] sm:$0xff]  ;;  %v375_v8 = vld [vmem:[%s9236_s19 + $0x160] sm:$0xff] }
  0x7c   : > { %1269 = vmatmul.mubr.f32.gmra.mrb[34].mxu1 %v9346_v6  ;;  %1113 = vmatprep.mubr.f32.mxu0 %v14708_v0 }
  0x7d   : > { %1274 = vmatprep.mubr.f32.mxu1 %v14708_v0  ;;  %8111 = vmatpush1.bf16.msra.mxu1 %v8110_v23  ;;  %v535_v23 = vld [vmem:[%s9236_s19 + $0x660] sm:$0xff] }
  0x7e   : > { %8079 = vmatpush1.bf16.msra.mxu0 %v8078_v24  ;;  %8113 = vmatprep.subr.bf16.mxu1 %v8112_v25  ;;  %v8126_v24 = vpack.c.bf16 %v506_v14, %v491_v13  ;;  %v8094_v25 = vpack.c.bf16 %v504_v17, %v489_v15  ;;  %v8096_v31 = vpack.c.bf16 %v535_v23, %v520_v22  ;;  %v373_v15 = vld [vmem:[%s9236_s19 + $0x150] sm:$0xff]  ;;  %v388_v17 = vld [vmem:[%s9236_s19 + $0x1c8] sm:$0xff]  ;;  %v419_v23 = vld [vmem:[%s9236_s19 + $0x2c0] sm:$0xff] }
  0x7f   : > { %1114 = vmatmul.mubr.f32.gmra.mrb[36].mxu0 %v9363_v19  ;;  %8081 = vmatprep.subr.bf16.mxu0 %v8080_v30  ;;  %v519_v30 = vld [vmem:[%s9236_s19 + $0x5e0] sm:$0xff]  ;;  %v8138_v13 = vpack.c.bf16 %v358_v7, %v343_v5  ;;  %v404_v22 = vld [vmem:[%s9236_s19 + $0x248] sm:$0xff] }
  0x80   : > { %1275 = vmatmul.mubr.f32.gmra.mrb[36].mxu1 %v9363_v19  ;;  %1119 = vmatprep.mubr.f32.mxu0 %v14708_v0 }
  0x81   : > { %1280 = vmatprep.mubr.f32.mxu1 %v14708_v0  ;;  %8115 = vmatpush1.bf16.msra.mxu1 %v8114_v38  ;;  %v8098_v38 = vpack.c.bf16 %v534_v33, %v519_v30  ;;  %v450_v30 = vld [vmem:[%s9236_s19 + $0x3b8] sm:$0xff]  ;;  %v449_v33 = vld [vmem:[%s9236_s19 + $0x3b0] sm:$0xff] }
  0x82   : > { %8083 = vmatpush1.bf16.msra.mxu0 %v8082_v39  ;;  %8117 = vmatprep.subr.bf16.mxu1 %v8116_v41  ;;  %v8132_v39 = vpack.c.bf16 %v567_v35, %v552_v34  ;;  %v551_v41 = vld [vmem:[%s9236_s19 + $0x6e0] sm:$0xff]  ;;  %v8180_v35 = vpack.c.bf16 %v450_v30, %v435_v29  ;;  %v1990_v30 = vld [vmem:[%s14702_s3 + $0x18] sm:$0xff] }
  0x83   : > { %1120 = vmatmul.mubr.f32.gmra.mrb[38].mxu0 %v9380_v32  ;;  %8085 = vmatprep.subr.bf16.mxu0 %v8084_v48  ;;  %v345_v48 = vld [vmem:[%s9236_s19 + $0x70] sm:$0xff]  ;;  %v8134_v52 = vpack.c.bf16 %v566_v42, %v551_v41  ;;  %v480_v41 = vld [vmem:[%s9236_s19 + $0x4a8] sm:$0xff] }
  0x84   : > { %1281 = vmatmul.mubr.f32.gmra.mrb[38].mxu1 %v9380_v32  ;;  %1125 = vmatprep.mubr.f32.mxu0 %v14708_v0  ;;  %v464_v42 = vld [vmem:[%s9236_s19 + $0x428] sm:$0xff] }
  0x85   : > { %1286 = vmatprep.mubr.f32.mxu1 %v14708_v0  ;;  %8119 = vmatpush1.bf16.msra.mxu1 %v8118_v58  ;;  %v564_v58 = vld [vmem:[%s9236_s19 + $0x748] sm:$0xff] }
  0x86   : > { %8087 = vmatpush1.bf16.msra.mxu0 %v8086_v60  ;;  %8121 = vmatprep.subr.bf16.mxu1 %v8120_v61  ;;  %v9679_v60 = vpack.c.bf16 %v360_v49, %v345_v48  ;;  %v344_v61 = vld [vmem:[%s9236_s19 + $0x68] sm:$0xff]  ;;  %v8102_v1 = vpack.c.bf16 %v564_v58, %v549_v55  ;;  %v463_v49 = vld [vmem:[%s9236_s19 + $0x420] sm:$0xff]  ;;  %v494_v55 = vld [vmem:[%s9236_s19 + $0x518] sm:$0xff] }
  0x87   : > { %1126 = vmatmul.mubr.f32.gmra.mrb[40].mxu0 %v9397_v45  ;;  %8089 = vmatprep.subr.bf16.mxu0 %v8088_v2  ;;  %v8136_v2 = vpack.c.bf16 %v359_v62, %v344_v61  ;;  %v509_v58 = vld [vmem:[%s9236_s19 + $0x590] sm:$0xff] }
  0x88   : > { %1287 = vmatmul.mubr.f32.gmra.mrb[40].mxu1 %v9397_v45  ;;  %1131 = vmatprep.mubr.f32.mxu0 %v14708_v0  ;;  %v493_v62 = vld [vmem:[%s9236_s19 + $0x510] sm:$0xff] }
  0x89   : > { %1292 = vmatprep.mubr.f32.mxu1 %v14708_v0  ;;  %8123 = vmatpush1.bf16.msra.mxu1 %v8122_v9  ;;  %v390_v9 = vld [vmem:[%s9236_s19 + $0x1d8] sm:$0xff] }
  0x8a   : > { %8091 = vmatpush1.bf16.msra.mxu0 %v8090_v11  ;;  %8125 = vmatprep.subr.bf16.mxu1 %v8124_v12  ;;  %v374_v11 = vld [vmem:[%s9236_s19 + $0x158] sm:$0xff]  ;;  %v389_v12 = vld [vmem:[%s9236_s19 + $0x1d0] sm:$0xff]  ;;  %v8172_v14 = vpack.c.bf16 %v390_v9, %v375_v8  ;;  %v523_v8 = vld [vmem:[%s9236_s19 + $0x600] sm:$0xff] }
  0x8b   : > { %1132 = vmatmul.mubr.f32.gmra.mrb[42].mxu0 %v9414_v59  ;;  %8093 = vmatprep.subr.bf16.mxu0 %v8092_v16  ;;  %v8140_v16 = vpack.c.bf16 %v389_v12, %v374_v11  ;;  %v538_v9 = vld [vmem:[%s9236_s19 + $0x678] sm:$0xff]  ;;  %v555_v11 = vld [vmem:[%s9236_s19 + $0x700] sm:$0xff] }
  0x8c   : > { %1293 = vmatmul.mubr.f32.gmra.mrb[42].mxu1 %v9414_v59  ;;  %1137 = vmatprep.mubr.f32.mxu0 %v14708_v0  ;;  %v570_v12 = vld [vmem:[%s9236_s19 + $0x778] sm:$0xff] }
  0x8d   : > { %1298 = vmatprep.mubr.f32.mxu1 %v14708_v0  ;;  %8127 = vmatpush1.bf16.msra.mxu1 %v8126_v24  ;;  %v8142_v24 = vpack.c.bf16 %v388_v17, %v373_v15  ;;  %v8162_v15 = vpack.c.bf16 %v538_v9, %v523_v8  ;;  %v553_v17 = vld [vmem:[%s9236_s19 + $0x6f0] sm:$0xff]  ;;  %v2026_v9 = vld [vmem:[%s14702_s3 + $0x138] sm:$0xff] }
  0x8e   : > { %8095 = vmatpush1.bf16.msra.mxu0 %v8094_v25  ;;  %8129 = vmatprep.subr.bf16.mxu1 %v8128_v26  ;;  %v8176_v25 = vpack.c.bf16 %v420_v21, %v405_v20  ;;  %v403_v26 = vld [vmem:[%s9236_s19 + $0x240] sm:$0xff]  ;;  %v568_v21 = vld [vmem:[%s9236_s19 + $0x768] sm:$0xff] }
  0x8f   : > { %1138 = vmatmul.mubr.f32.gmra.mrb[44].mxu0 %v9431_v10  ;;  %8097 = vmatprep.subr.bf16.mxu0 %v8096_v31  ;;  %v434_v31 = vld [vmem:[%s9236_s19 + $0x338] sm:$0xff]  ;;  %v8146_v34 = vpack.c.bf16 %v418_v27, %v403_v26 }
  0x90   : > { %1299 = vmatmul.mubr.f32.gmra.mrb[44].mxu1 %v9431_v10  ;;  %1143 = vmatprep.mubr.f32.mxu0 %v14708_v0 }
  0x91   : > { %1304 = vmatprep.mubr.f32.mxu1 %v14708_v0  ;;  %8131 = vmatpush1.bf16.msra.mxu1 %v8130_v37  ;;  %v433_v37 = vld [vmem:[%s9236_s19 + $0x330] sm:$0xff] }
  0x92   : > { %8099 = vmatpush1.bf16.msra.mxu0 %v8098_v38  ;;  %8133 = vmatprep.subr.bf16.mxu1 %v8132_v39  ;;  %v448_v38 = vld [vmem:[%s9236_s19 + $0x3a8] sm:$0xff]  ;;  %v465_v39 = vld [vmem:[%s9236_s19 + $0x430] sm:$0xff] }
  0x93   : > { %1144 = vmatmul.mubr.f32.gmra.mrb[46].mxu0 %v9444_v18  ;;  %702 = vperm.xlu1 %8646, %v616_v51   ;;  %v8150_v46 = vpack.c.bf16 %v448_v38, %v433_v37  ;;  %v8184_v48 = vpack.c.bf16 %v480_v41, %v465_v39  ;;  %v478_v51 = vld [vmem:[%s9236_s19 + $0x498] sm:$0xff]  ;;  %v2021_v37 = vld [vmem:[%s14702_s3 + $0x110] sm:$0xff]  ;;  %v8895_v38 = vld [vmem:[%s14700_s1 + $0x8] sm:$0xff] }
  0x94   : > { %1305 = vmatmul.mubr.f32.gmra.mrb[46].mxu1 %v9444_v18  ;;  %1149 = vmatprep.mubr.f32.mxu0 %v14708_v0  ;;  %v2039_v39 = vld [vmem:[%s14702_s3 + $0x1a0] sm:$0xff]  ;;  %v2040_v41 = vld [vmem:[%s14702_s3 + $0x1a8] sm:$0xff] }
  0x95   : > { %1310 = vmatprep.mubr.f32.mxu1 %v14708_v0  ;;  %8135 = vmatpush1.bf16.msra.mxu1 %v8134_v52  ;;  %v495_v52 = vld [vmem:[%s9236_s19 + $0x520] sm:$0xff] }
  0x96   : > { %8101 = vmatprep.subr.bf16.mxu0 %v8100_v54  ;;  %8169 = vmatprep.subr.bf16.mxu1 %v9679_v60  ;;  %v510_v54 = vld [vmem:[%s9236_s19 + $0x598] sm:$0xff] }
  0x97   : > { %1150 = vmatmul.mubr.f32.gmra.mrb[48].mxu0 %v9463_v28  ;;  %692 = vperm.xlu1 %8646, %v614_v63   ;;  %v8188_v61 = vpack.c.bf16 %v510_v54, %v495_v52  ;;  %v508_v63 = vld [vmem:[%s9236_s19 + $0x588] sm:$0xff]  ;;  %v2010_v52 = vld [vmem:[%s14702_s3 + $0xb8] sm:$0xff]  ;;  %v8240_v54 = vpack.c.bf16 %v2040_v41, %v2039_v39  ;;  %v2017_v41 = vld [vmem:[%s14702_s3 + $0xf0] sm:$0xff] }
  0x98   : > { %1311 = vmatmul.mubr.f32.gmra.mrb[48].mxu1 %v9463_v28  ;;  %1155 = vmatprep.mubr.f32.mxu0 %v14708_v0  ;;  %v8158_v5 = vpack.c.bf16 %v508_v63, %v493_v62  ;;  %v2042_v62 = vld [vmem:[%s14702_s3 + $0x1b8] sm:$0xff]  ;;  %v2000_v39 = vld [vmem:[%s14702_s3 + $0x68] sm:$0xff] }
  0x99   : > { %1316 = vmatprep.mubr.f32.mxu1 %v14708_v0  ;;  %8103 = vmatpush1.bf16.msra.mxu0 %v8102_v1  ;;  %v525_v1 = vld [vmem:[%s9236_s19 + $0x610] sm:$0xff] }
  0x9a   : > { %8137 = vmatprep.subr.bf16.mxu0 %v8136_v2  ;;  %707 = vperm.xlu0 %8645, %v617_v3   ;;  %v540_v2 = vld [vmem:[%s9236_s19 + $0x688] sm:$0xff] }
  0x9b   : > { %1156 = vmatmul.mubr.f32.gmra.mrb[50].mxu0 %v9480_v36  ;;  %712 = vperm.xlu1 %8646, %v618_v4   ;;  %v524_v3 = vld [vmem:[%s9236_s19 + $0x608] sm:$0xff]  ;;  %v539_v4 = vld [vmem:[%s9236_s19 + $0x680] sm:$0xff]  ;;  %v8192_v7 = vpack.c.bf16 %v540_v2, %v525_v1  ;;  %v1993_v2 = vld [vmem:[%s14702_s3 + $0x30] sm:$0xff] }
  0x9c   : > { %1317 = vmatmul.mubr.f32.gmra.mrb[50].mxu1 %v9480_v36  ;;  %1161 = vmatprep.mubr.f32.mxu0 %v14708_v0 }
  0x9d   : > { %1322 = vmatprep.mubr.f32.mxu1 %v14708_v0 }
  0x9f   : > { %1162 = vmatmul.mubr.f32.gmra.mrb[52].mxu0 %v9495_v40 }
  0xa0   : > { %1323 = vmatmul.mubr.f32.gmra.mrb[52].mxu1 %v9495_v40  ;;  %1167 = vmatprep.mubr.f32.mxu0 %v14708_v0 }
  0xa1   : > { %1328 = vmatprep.mubr.f32.mxu1 %v14708_v0 }
  0xa3   : > { %1168 = vmatmul.mubr.f32.gmra.mrb[54].mxu0 %v9510_v43 }
  0xa4   : > { %1329 = vmatmul.mubr.f32.gmra.mrb[54].mxu1 %v9510_v43  ;;  %1173 = vmatprep.mubr.f32.mxu0 %v14708_v0 }
  0xa5   : > { %1334 = vmatprep.mubr.f32.mxu1 %v14708_v0 }
  0xa7   : > { %1174 = vmatmul.mubr.f32.gmra.mrb[56].mxu0 %v9525_v47 }
  0xa8   : > { %1335 = vmatmul.mubr.f32.gmra.mrb[56].mxu1 %v9525_v47  ;;  %1179 = vmatprep.mubr.f32.mxu0 %v14708_v0 }
  0xa9   : > { %1340 = vmatprep.mubr.f32.mxu1 %v14708_v0 }
  0xab   : > { %1180 = vmatmul.mubr.f32.gmra.mrb[58].mxu0 %v9540_v50 }
  0xac   : > { %1341 = vmatmul.mubr.f32.gmra.mrb[58].mxu1 %v9540_v50  ;;  %1185 = vmatprep.mubr.f32.mxu0 %v14708_v0 }
  0xad   : > { %1346 = vmatprep.mubr.f32.mxu1 %v14708_v0 }
  0xaf   : > { %1186 = vmatmul.mubr.f32.gmra.mrb[60].mxu0 %v9555_v53 }
  0xb0   : > { %1347 = vmatmul.mubr.f32.gmra.mrb[60].mxu1 %v9555_v53  ;;  %1191 = vmatprep.mubr.f32.mxu0 %v14708_v0 }
  0xb1   : > { %1352 = vmatprep.mubr.f32.mxu1 %v14708_v0 }
  0xb3   : > { %1192 = vmatmul.mubr.f32.gmra.mrb[62].mxu0 %v9570_v57 }
  0xb4   : > { %1353 = vmatmul.mubr.f32.gmra.mrb[62].mxu1 %v9570_v57  ;;  %1423 = vmatprep.mubr.f32.mxu0 %v14708_v0 }
  0xb5   : > { %1584 = vmatprep.mubr.f32.mxu1 %v14708_v0 }
  0xb7   : > { %1424 = vmatmul.mubr.f32.vlgmr.msra.gmra.mrb[64].mxu0 %v9330_v56 }
  0xb8   : > { %1585 = vmatmul.mubr.f32.vlgmr.msra.gmra.mrb[64].mxu1 %v9330_v56  ;;  %1429 = vmatprep.mubr.f32.mxu0 %v14708_v0  ;;  %v8144_v56 = vpack.c.bf16 %v419_v23, %v404_v22  ;;  %v2004_v22 = vld [vmem:[%s14702_s3 + $0x88] sm:$0xff]  ;;  %v2035_v23 = vld [vmem:[%s14702_s3 + $0x180] sm:$0xff] }
  0xb9   : > { %8171 = vmatpush3.bf16.msra.mxu1 %v9679_v60  ;;  %1590 = vmatprep.mubr.f32.mxu1 %v14708_v0  ;;  %v8154_v60 = vpack.c.bf16 %v478_v51, %v463_v49  ;;  %v1992_v49 = vld [vmem:[%s14702_s3 + $0x28] sm:$0xff] }
  0xba   : > { %8139 = vmatpush1.bf16.msra.mxu0 %v8138_v13  ;;  %8173 = vmatprep.subr.bf16.mxu1 %v8172_v14  ;;  %v554_v13 = vld [vmem:[%s9236_s19 + $0x6f8] sm:$0xff] }
  0xbb   : > { %1430 = vmatmul.mubr.f32.gmra.mrb[66].mxu0 %v9346_v6  ;;  %8141 = vmatprep.subr.bf16.mxu0 %v8140_v16  ;;  %v8196_v16 = vpack.c.bf16 %v570_v12, %v555_v11  ;;  %v8899_v11 = vld [vmem:[%s14700_s1 + $0x28] sm:$0xff]  ;;  %v2043_v12 = vld [vmem:[%s14702_s3 + $0x1c0] sm:$0xff] }
  0xbc   : > { %1591 = vmatmul.mubr.f32.gmra.mrb[66].mxu1 %v9346_v6  ;;  %1435 = vmatprep.mubr.f32.mxu0 %v14708_v0  ;;  %v8148_v6 = vpack.c.bf16 %v449_v33, %v434_v31  ;;  %v2007_v33 = vld [vmem:[%s14702_s3 + $0xa0] sm:$0xff] }
  0xbd   : > { %1596 = vmatprep.mubr.f32.mxu1 %v14708_v0  ;;  %8175 = vmatpush3.bf16.msra.mxu1 %v8172_v14  ;;  %v569_v14 = vld [vmem:[%s9236_s19 + $0x770] sm:$0xff] }
  0xbe   : > { %8143 = vmatpush1.bf16.msra.mxu0 %v8142_v24  ;;  %8177 = vmatprep.subr.bf16.mxu1 %v8176_v25  ;;  %v8164_v20 = vpack.c.bf16 %v569_v14, %v554_v13  ;;  %v2036_v24 = vld [vmem:[%s14702_s3 + $0x188] sm:$0xff]  ;;  %v9969_v14 = vld [vmem:[%s14700_s1 + $0x30] sm:$0xff] }
  0xbf   : > { %1436 = vmatmul.mubr.f32.gmra.mrb[68].mxu0 %v9363_v19  ;;  %8145 = vmatprep.subr.bf16.mxu0 %v8144_v56  ;;  %v8894_v56 = vld [vmem:[%s14700_s1] sm:$0xff]  ;;  %v2044_v13 = vld [vmem:[%s14702_s3 + $0x1c8] sm:$0xff] }
  0xc0   : > { %1597 = vmatmul.mubr.f32.gmra.mrb[68].mxu1 %v9363_v19  ;;  %1441 = vmatprep.mubr.f32.mxu0 %v14708_v0  ;;  %v8152_v19 = vpack.c.bf16 %v479_v44, %v464_v42  ;;  %v8896_v42 = vld [vmem:[%s14700_s1 + $0x10] sm:$0xff] }
  0xc1   : > { %1602 = vmatprep.mubr.f32.mxu1 %v14708_v0  ;;  %8179 = vmatpush3.bf16.msra.mxu1 %v8176_v25  ;;  %v8166_v25 = vpack.c.bf16 %v568_v21, %v553_v17  ;;  %v1995_v17 = vld [vmem:[%s14702_s3 + $0x40] sm:$0xff]  ;;  %v2013_v21 = vld [vmem:[%s14702_s3 + $0xd0] sm:$0xff] }
  0xc2   : > { %8147 = vmatpush1.bf16.msra.mxu0 %v8146_v34  ;;  %8181 = vmatprep.subr.bf16.mxu1 %v8180_v35  ;;  %v2008_v34 = vld [vmem:[%s14702_s3 + $0xa8] sm:$0xff] }
  0xc3   : > { %1442 = vmatmul.mubr.f32.gmra.mrb[70].mxu0 %v9380_v32  ;;  %8149 = vmatprep.subr.bf16.mxu0 %v8148_v6  ;;  %v2022_v6 = vld [vmem:[%s14702_s3 + $0x118] sm:$0xff] }
  0xc4   : > { %1603 = vmatmul.mubr.f32.gmra.mrb[70].mxu1 %v9380_v32  ;;  %1447 = vmatprep.mubr.f32.mxu0 %v14708_v0  ;;  %v8156_v32 = vpack.c.bf16 %v509_v58, %v494_v55  ;;  %v8238_v51 = vpack.c.bf16 %v2022_v6, %v2021_v37  ;;  %v2023_v55 = vld [vmem:[%s14702_s3 + $0x120] sm:$0xff]  ;;  %v2024_v58 = vld [vmem:[%s14702_s3 + $0x128] sm:$0xff] }
  0xc5   : > { %1608 = vmatprep.mubr.f32.mxu1 %v14708_v0  ;;  %8183 = vmatpush3.bf16.msra.mxu1 %v8180_v35 }
  0xc6   : > { %8151 = vmatpush1.bf16.msra.mxu0 %v8150_v46  ;;  %8185 = vmatprep.subr.bf16.mxu1 %v8184_v48  ;;  %v8208_v46 = vpack.c.bf16 %v2008_v34, %v2007_v33  ;;  %v2048_v33 = vld [vmem:[%s14702_s3 + $0x1e8] sm:$0xff]  ;;  %v10043_v34 = vld [vmem:[%s14700_s1 + $0x50] sm:$0xff] }
  0xc7   : > { %1448 = vmatmul.mubr.f32.gmra.mrb[72].mxu0 %v9397_v45  ;;  %8153 = vmatprep.subr.bf16.mxu0 %v8152_v19  ;;  %v2009_v19 = vld [vmem:[%s14702_s3 + $0xb0] sm:$0xff] }
  0xc8   : > { %1609 = vmatmul.mubr.f32.gmra.mrb[72].mxu1 %v9397_v45  ;;  %1453 = vmatprep.mubr.f32.mxu0 %v14708_v0  ;;  %v8160_v45 = vpack.c.bf16 %v539_v4, %v524_v3  ;;  %v8212_v1 = vpack.c.bf16 %v2010_v52, %v2009_v19  ;;  %v1994_v3 = vld [vmem:[%s14702_s3 + $0x38] sm:$0xff]  ;;  %v2011_v4 = vld [vmem:[%s14702_s3 + $0xc0] sm:$0xff] }
  0xc9   : > { %1614 = vmatprep.mubr.f32.mxu1 %v14708_v0  ;;  %8187 = vmatpush3.bf16.msra.mxu1 %v8184_v48  ;;  %v1991_v48 = vld [vmem:[%s14702_s3 + $0x20] sm:$0xff] }
  0xca   : > { %8155 = vmatpush1.bf16.msra.mxu0 %v8154_v60  ;;  %8189 = vmatprep.subr.bf16.mxu1 %v8188_v61  ;;  %v8897_v60 = vld [vmem:[%s14700_s1 + $0x18] sm:$0xff]  ;;  %v8210_v63 = vpack.c.bf16 %v1992_v49, %v1991_v48  ;;  %v2031_v19 = vld [vmem:[%s14702_s3 + $0x160] sm:$0xff] }
  0xcb   : > { %1454 = vmatmul.mubr.f32.gmra.mrb[74].mxu0 %v9414_v59  ;;  %8157 = vmatprep.subr.bf16.mxu0 %v8156_v32  ;;  %v8898_v32 = vld [vmem:[%s14700_s1 + $0x20] sm:$0xff]  ;;  %v2018_v48 = vld [vmem:[%s14702_s3 + $0xf8] sm:$0xff] }
  0xcc   : > { %1615 = vmatmul.mubr.f32.gmra.mrb[74].mxu1 %v9414_v59  ;;  %1459 = vmatprep.mubr.f32.mxu0 %v14708_v0  ;;  %v2003_v59 = vld [vmem:[%s14702_s3 + $0x80] sm:$0xff] }
  0xcd   : > { %1620 = vmatprep.mubr.f32.mxu1 %v14708_v0  ;;  %8191 = vmatpush3.bf16.msra.mxu1 %v8188_v61  ;;  %v8200_v26 = vpack.c.bf16 %v2004_v22, %v2003_v59  ;;  %v2041_v61 = vld [vmem:[%s14702_s3 + $0x1b0] sm:$0xff]  ;;  %v2014_v22 = vld [vmem:[%s14702_s3 + $0xd8] sm:$0xff] }
  0xce   : > { %8159 = vmatpush1.bf16.msra.mxu0 %v8158_v5  ;;  %8193 = vmatprep.subr.bf16.mxu1 %v8192_v7  ;;  %v8242_v5 = vpack.c.bf16 %v2024_v58, %v2023_v55  ;;  %v8244_v8 = vpack.c.bf16 %v2042_v62, %v2041_v61  ;;  %v2049_v55 = vld [vmem:[%s14702_s3 + $0x1f0] sm:$0xff]  ;;  %v2050_v58 = vld [vmem:[%s14702_s3 + $0x1f8] sm:$0xff] }
  0xcf   : > { %1460 = vmatmul.mubr.f32.gmra.mrb[76].mxu0 %v9431_v10  ;;  %8161 = vmatprep.subr.bf16.mxu0 %v8160_v45  ;;  %v2025_v45 = vld [vmem:[%s14702_s3 + $0x130] sm:$0xff] }
  0xd0   : > { %1621 = vmatmul.mubr.f32.gmra.mrb[76].mxu1 %v9431_v10  ;;  %1465 = vmatprep.mubr.f32.mxu0 %v14708_v0  ;;  %v8232_v10 = vpack.c.bf16 %v2036_v24, %v2035_v23  ;;  %v8246_v59 = vpack.c.bf16 %v2026_v9, %v2025_v45  ;;  %v8248_v23 = vpack.c.bf16 %v2044_v13, %v2043_v12  ;;  %v2027_v24 = vld [vmem:[%s14702_s3 + $0x140] sm:$0xff]  ;;  %v2033_v45 = vld [vmem:[%s14702_s3 + $0x170] sm:$0xff]  ;;  %v2034_v9 = vld [vmem:[%s14702_s3 + $0x178] sm:$0xff] }
  0xd1   : > { %1626 = vmatprep.mubr.f32.mxu1 %v14708_v0  ;;  %8195 = vmatpush3.bf16.msra.mxu1 %v8192_v7  ;;  %v2012_v7 = vld [vmem:[%s14702_s3 + $0xc8] sm:$0xff]  ;;  %v2099_v13 = vld [vmem:[%s14702_s3 + $0x380] sm:$0xff] }
  0xd2   : > { %8163 = vmatpush1.bf16.msra.mxu0 %v8162_v15  ;;  %8197 = vmatprep.subr.bf16.mxu1 %v8196_v16  ;;  %v8214_v15 = vpack.c.bf16 %v1994_v3, %v1993_v2  ;;  %v2067_v2 = vld [vmem:[%s14702_s3 + $0x280] sm:$0xff]  ;;  %v10121_v12 = vld [vmem:[%s14700_s1 + $0x68] sm:$0xff] }
  0xd3   : > { %1466 = vmatmul.mubr.f32.gmra.mrb[78].mxu0 %v9444_v18  ;;  %8165 = vmatprep.subr.bf16.mxu0 %v8164_v20  ;;  %v1996_v20 = vld [vmem:[%s14702_s3 + $0x48] sm:$0xff] }
  0xd4   : > { %1627 = vmatmul.mubr.f32.gmra.mrb[78].mxu1 %v9444_v18  ;;  %1471 = vmatprep.mubr.f32.mxu0 %v14708_v0  ;;  %v1987_v18 = vld [vmem:[%s14702_s3] sm:$0xff] }
  0xd5   : > { %1632 = vmatprep.mubr.f32.mxu1 %v14708_v0  ;;  %8199 = vmatpush3.bf16.msra.mxu1 %v8196_v16  ;;  %v8216_v16 = vpack.c.bf16 %v2012_v7, %v2011_v4  ;;  %v2068_v7 = vld [vmem:[%s14702_s3 + $0x288] sm:$0xff] }
  0xd6   : > { %8167 = vmatpush1.bf16.msra.mxu0 %v8166_v25  ;;  %8201 = vmatprep.subr.bf16.mxu1 %v8200_v26  ;;  %v2028_v25 = vld [vmem:[%s14702_s3 + $0x148] sm:$0xff]  ;;  %v9993_v26 = vld [vmem:[%s14700_s1 + $0x38] sm:$0xff] }
  0xd7   : > { %1472 = vmatmul.mubr.f32.gmra.mrb[80].mxu0 %v9463_v28  ;;  %8233 = vmatprep.subr.bf16.mxu0 %v8232_v10  ;;  %v2045_v10 = vld [vmem:[%s14702_s3 + $0x1d0] sm:$0xff] }
  0xd8   : > { %1633 = vmatmul.mubr.f32.gmra.mrb[80].mxu1 %v9463_v28  ;;  %1477 = vmatprep.mubr.f32.mxu0 %v14708_v0  ;;  %v1988_v28 = vld [vmem:[%s14702_s3 + $0x8] sm:$0xff] }
  0xd9   : > { %1638 = vmatprep.mubr.f32.mxu1 %v14708_v0  ;;  %v8202_v27 = vpack.c.bf16 %v1988_v28, %v1987_v18  ;;  %v2046_v18 = vld [vmem:[%s14702_s3 + $0x1d8] sm:$0xff]  ;;  %v10006_v28 = vld [vmem:[%s14700_s1 + $0x40] sm:$0xff] }
  0xdb   : > { %1478 = vmatmul.mubr.f32.gmra.mrb[82].mxu0 %v9480_v36 }
  0xdc   : > { %1639 = vmatmul.mubr.f32.gmra.mrb[82].mxu1 %v9480_v36  ;;  %1483 = vmatprep.mubr.f32.mxu0 %v14708_v0  ;;  %v2005_v36 = vld [vmem:[%s14702_s3 + $0x90] sm:$0xff] }
  0xdd   : > { %1644 = vmatprep.mubr.f32.mxu1 %v14708_v0 }
  0xdf   : > { %1484 = vmatmul.mubr.f32.gmra.mrb[84].mxu0 %v9495_v40 }
  0xe0   : > { %1645 = vmatmul.mubr.f32.gmra.mrb[84].mxu1 %v9495_v40  ;;  %1489 = vmatprep.mubr.f32.mxu0 %v14708_v0  ;;  %v2006_v40 = vld [vmem:[%s14702_s3 + $0x98] sm:$0xff] }
  0xe1   : > { %1650 = vmatprep.mubr.f32.mxu1 %v14708_v0  ;;  %v8204_v29 = vpack.c.bf16 %v2006_v40, %v2005_v36  ;;  %v8218_v36 = vpack.c.bf16 %v1996_v20, %v1995_v17  ;;  %v8220_v40 = vpack.c.bf16 %v2014_v22, %v2013_v21  ;;  %v8264_v20 = vpack.c.bf16 %v2068_v7, %v2067_v2  ;;  %v2051_v21 = vld [vmem:[%s14702_s3 + $0x200] sm:$0xff]  ;;  %v2058_v2 = vld [vmem:[%s14702_s3 + $0x238] sm:$0xff] }
  0xe2   : > { %v8262_v22 = vpack.c.bf16 %v2034_v9, %v2033_v45  ;;  %v2076_v45 = vld [vmem:[%s14702_s3 + $0x2c8] sm:$0xff] }
  0xe3   : > { %1490 = vmatmul.mubr.f32.gmra.mrb[86].mxu0 %v9510_v43 }
  0xe4   : > { %1651 = vmatmul.mubr.f32.gmra.mrb[86].mxu1 %v9510_v43  ;;  %1495 = vmatprep.mubr.f32.mxu0 %v14708_v0  ;;  %v2019_v43 = vld [vmem:[%s14702_s3 + $0x100] sm:$0xff] }
  0xe5   : > { %1656 = vmatprep.mubr.f32.mxu1 %v14708_v0 }
  0xe7   : > { %1496 = vmatmul.mubr.f32.gmra.mrb[88].mxu0 %v9525_v47 }
  0xe8   : > { %1657 = vmatmul.mubr.f32.gmra.mrb[88].mxu1 %v9525_v47  ;;  %1501 = vmatprep.mubr.f32.mxu0 %v14708_v0  ;;  %v2020_v47 = vld [vmem:[%s14702_s3 + $0x108] sm:$0xff] }
  0xe9   : > { %1662 = vmatprep.mubr.f32.mxu1 %v14708_v0  ;;  %v8234_v31 = vpack.c.bf16 %v2020_v47, %v2019_v43  ;;  %v1997_v43 = vld [vmem:[%s14702_s3 + $0x50] sm:$0xff]  ;;  %v1998_v47 = vld [vmem:[%s14702_s3 + $0x58] sm:$0xff] }
  0xeb   : > { %1502 = vmatmul.mubr.f32.gmra.mrb[90].mxu0 %v9540_v50 }
  0xec   : > { %1663 = vmatmul.mubr.f32.gmra.mrb[90].mxu1 %v9540_v50  ;;  %1507 = vmatprep.mubr.f32.mxu0 %v14708_v0  ;;  %v2037_v50 = vld [vmem:[%s14702_s3 + $0x190] sm:$0xff] }
  0xed   : > { %1668 = vmatprep.mubr.f32.mxu1 %v14708_v0 }
  0xef   : > { %1508 = vmatmul.mubr.f32.gmra.mrb[92].mxu0 %v9555_v53 }
  0xf0   : > { %1669 = vmatmul.mubr.f32.gmra.mrb[92].mxu1 %v9555_v53  ;;  %1513 = vmatprep.mubr.f32.mxu0 %v14708_v0  ;;  %v2038_v53 = vld [vmem:[%s14702_s3 + $0x198] sm:$0xff] }
  0xf1   : > { %1674 = vmatprep.mubr.f32.mxu1 %v14708_v0  ;;  %v8236_v35 = vpack.c.bf16 %v2038_v53, %v2037_v50  ;;  %v2015_v50 = vld [vmem:[%s14702_s3 + $0xe0] sm:$0xff]  ;;  %v8250_v53 = vpack.c.bf16 %v2028_v25, %v2027_v24  ;;  %v2069_v25 = vld [vmem:[%s14702_s3 + $0x290] sm:$0xff] }
  0xf3   : > { %1514 = vmatmul.mubr.f32.gmra.mrb[94].mxu0 %v9570_v57 }
  0xf4   : > { %1675 = vmatmul.mubr.f32.gmra.mrb[94].mxu1 %v9570_v57  ;;  %1745 = vmatprep.mubr.f32.mxu0 %v14708_v0  ;;  %v1989_v57 = vld [vmem:[%s14702_s3 + $0x10] sm:$0xff] }
  0xf5   : > { %7794 = vmatprep.mubr.f32.mxu1 %v8894_v56  ;;  %v8206_v44 = vpack.c.bf16 %v1990_v30, %v1989_v57  ;;  %v2030_v57 = vld [vmem:[%s14702_s3 + $0x158] sm:$0xff]  ;;  %v10030_v30 = vld [vmem:[%s14700_s1 + $0x48] sm:$0xff] }
  0xf7   : > { %1746 = vmatmul.mubr.f32.vlgmr.msra.gmra.mrb[96].mxu0 %v8894_v56  ;;  %v2016_v56 = vld [vmem:[%s14702_s3 + $0xe8] sm:$0xff] }
  0xf8   : > { %7795 = vmatmul.mubr.f32.vlgmr.msra.gmra.mrb[96].mxu1 %v8895_v38  ;;  %1751 = vmatprep.mubr.f32.mxu0 %v14708_v0  ;;  %v8224_v6 = vpack.c.bf16 %v2016_v56, %v2015_v50  ;;  %v2054_v56 = vld [vmem:[%s14702_s3 + $0x218] sm:$0xff] }
  0xf9   : > { %8203 = vmatpush3.bf16.msra.mxu1 %v8202_v27  ;;  %7797 = vmatprep.mubr.f32.mxu1 %v8896_v42  ;;  %v8252_v27 = vpack.c.bf16 %v2046_v18, %v2045_v10  ;;  %v2070_v10 = vld [vmem:[%s14702_s3 + $0x298] sm:$0xff] }
  0xfa   : > { %8205 = vmatprep.subr.bf16.mxu1 %v8204_v29  ;;  %8235 = vmatpush3.bf16.msra.mxu0 %v8234_v31  ;;  %v2029_v29 = vld [vmem:[%s14702_s3 + $0x150] sm:$0xff]  ;;  %v2047_v31 = vld [vmem:[%s14702_s3 + $0x1e0] sm:$0xff]  ;;  %v8268_v50 = vpack.c.bf16 %v2070_v10, %v2069_v25 }
  0xfb   : > { %1752 = vmatmul.mubr.f32.gmra.mrb[98].mxu0 %v8895_v38  ;;  %8237 = vmatprep.subr.bf16.mxu0 %v8236_v35  ;;  %v8222_v35 = vpack.c.bf16 %v1998_v47, %v1997_v43  ;;  %v1999_v38 = vld [vmem:[%s14702_s3 + $0x60] sm:$0xff]  ;;  %v8256_v49 = vpack.c.bf16 %v2048_v33, %v2047_v31  ;;  %v2072_v31 = vld [vmem:[%s14702_s3 + $0x2a8] sm:$0xff]  ;;  %v2077_v10 = vld [vmem:[%s14702_s3 + $0x2d0] sm:$0xff] }
  0xfc   : > { %7798 = vmatmul.mubr.f32.gmra.mrb[98].mxu1 %v8897_v60  ;;  %1757 = vmatprep.mubr.f32.mxu0 %v14708_v0  ;;  %v8226_v61 = vpack.c.bf16 %v2000_v39, %v1999_v38 }
  0xfd   : > { %8207 = vmatpush3.bf16.msra.mxu1 %v8206_v44  ;;  %7800 = vmatprep.mubr.f32.mxu1 %v8898_v32 }
  0xfe   : > { %8209 = vmatprep.subr.bf16.mxu1 %v8208_v46  ;;  %8239 = vmatpush3.bf16.msra.mxu0 %v8238_v51  ;;  %v2032_v51 = vld [vmem:[%s14702_s3 + $0x168] sm:$0xff] }
  0xff   : > { %1758 = vmatmul.mubr.f32.gmra.mrb[100].mxu0 %v8896_v42  ;;  %8241 = vmatprep.subr.bf16.mxu0 %v8240_v54  ;;  %v8254_v42 = vpack.c.bf16 %v2030_v57, %v2029_v29  ;;  %v10075_v54 = vld [vmem:[%s14700_s1 + $0x58] sm:$0xff]  ;;  %v8258_v3 = vpack.c.bf16 %v2032_v51, %v2031_v19  ;;  %v2071_v57 = vld [vmem:[%s14702_s3 + $0x2a0] sm:$0xff]  ;;  %v2073_v19 = vld [vmem:[%s14702_s3 + $0x2b0] sm:$0xff] }
 0x100   : > { %7801 = vmatmul.mubr.f32.gmra.mrb[100].mxu1 %v8899_v11  ;;  %1763 = vmatprep.mubr.f32.mxu0 %v14708_v0  ;;  %v8272_v39 = vpack.c.bf16 %v2072_v31, %v2071_v57  ;;  %v2074_v51 = vld [vmem:[%s14702_s3 + $0x2b8] sm:$0xff]  ;;  %v2061_v57 = vld [vmem:[%s14702_s3 + $0x250] sm:$0xff] }
 0x101   : > { %8211 = vmatpush3.bf16.msra.mxu1 %v8210_v63  ;;  %7803 = vmatprep.mubr.f32.mxu1 %v9969_v14  ;;  %v2001_v63 = vld [vmem:[%s14702_s3 + $0x70] sm:$0xff]  ;;  %v2062_v31 = vld [vmem:[%s14702_s3 + $0x258] sm:$0xff] }
 0x102   : > { %8213 = vmatprep.subr.bf16.mxu1 %v8212_v1  ;;  %8243 = vmatpush3.bf16.msra.mxu0 %v8242_v5  ;;  %v2002_v1 = vld [vmem:[%s14702_s3 + $0x78] sm:$0xff] }
 0x103   : > { %1764 = vmatmul.mubr.f32.gmra.mrb[102].mxu0 %v8897_v60  ;;  %8245 = vmatprep.subr.bf16.mxu0 %v8244_v8  ;;  %v10088_v60 = vld [vmem:[%s14700_s1 + $0x60] sm:$0xff]  ;;  %v8260_v8 = vpack.c.bf16 %v2050_v58, %v2049_v55  ;;  %v8913_v58 = vld [vmem:[%s9236_s19 + $0x78] sm:$0xff] }
 0x104   : > { %7804 = vmatmul.mubr.f32.gmra.mrb[102].mxu1 %v9993_v26  ;;  %1769 = vmatprep.mubr.f32.mxu0 %v14708_v0 }
 0x105   : > { %8215 = vmatpush3.bf16.msra.mxu1 %v8214_v15  ;;  %7806 = vmatprep.mubr.f32.mxu1 %v10006_v28  ;;  %v10134_v15 = vld [vmem:[%s14700_s1 + $0x70] sm:$0xff] }
 0x106   : > { %8217 = vmatprep.subr.bf16.mxu1 %v8216_v16  ;;  %8247 = vmatpush3.bf16.msra.mxu0 %v8246_v59  ;;  %v8230_v16 = vpack.c.bf16 %v2002_v1, %v2001_v63  ;;  %v2052_v59 = vld [vmem:[%s14702_s3 + $0x208] sm:$0xff]  ;;  %v8276_v63 = vpack.c.bf16 %v2074_v51, %v2073_v19  ;;  %v2057_v1 = vld [vmem:[%s14702_s3 + $0x230] sm:$0xff]  ;;  %v8920_v19 = vld [vmem:[%s9236_s19 + $0x260] sm:$0xff] }
 0x107   : > { %1770 = vmatmul.mubr.f32.gmra.mrb[104].mxu0 %v8898_v32  ;;  %8249 = vmatprep.subr.bf16.mxu0 %v8248_v23  ;;  %v8228_v32 = vpack.c.bf16 %v2018_v48, %v2017_v41  ;;  %v8266_v43 = vpack.c.bf16 %v2052_v59, %v2051_v21  ;;  %v2055_v41 = vld [vmem:[%s14702_s3 + $0x220] sm:$0xff]  ;;  %v2060_v59 = vld [vmem:[%s14702_s3 + $0x248] sm:$0xff] }
 0x108   : > { %7807 = vmatmul.mubr.f32.gmra.mrb[104].mxu1 %v10030_v30  ;;  %1775 = vmatprep.mubr.f32.mxu0 %v14708_v0  ;;  %v2059_v21 = vld [vmem:[%s14702_s3 + $0x240] sm:$0xff] }
 0x109   : > { %8219 = vmatpush3.bf16.msra.mxu1 %v8218_v36  ;;  %7809 = vmatprep.mubr.f32.mxu1 %v10043_v34 }
 0x10a   : > { %8221 = vmatprep.subr.bf16.mxu1 %v8220_v40  ;;  %v10046_v37 = vpop.f32.mrb[0].mxu0  ;;  %8251 = vmatpush3.bf16.msra.mxu0 %v8250_v53  ;;  %v10161_v40 = vld [vmem:[%s14700_s1 + $0x78] sm:$0xff]  ;;  %v2053_v53 = vld [vmem:[%s14702_s3 + $0x210] sm:$0xff] }
 0x10b   : > { %v10057_v44 = vpop.f32.mrb[0].mxu1  ;;  %1776 = vmatmul.mubr.f32.gmra.mrb[106].mxu0 %v8899_v11  ;;  %v10059_v46 = vpop.f32.mrb[1].mxu0  ;;  %8253 = vmatprep.subr.bf16.mxu0 %v8252_v27 }
 0x10c   : > { %v10070_v52 = vpop.f32.mrb[1].mxu1  ;;  %7810 = vmatmul.mubr.f32.gmra.mrb[106].mxu1 %v10075_v54  ;;  %1781 = vmatprep.mubr.f32.mxu0 %v14708_v0 }
 0x10d   : > { %8223 = vmatpush3.bf16.msra.mxu1 %v8222_v35  ;;  %7812 = vmatprep.mubr.f32.mxu1 %v10088_v60  ;;  %v8911_v35 = vld [vmem:[%s9236_s19] sm:$0xff] }
 0x10e   : > { %8225 = vmatprep.subr.bf16.mxu1 %v8224_v6  ;;  %v10091_v62 = vpop.f32.mrb[2].mxu0  ;;  %8255 = vmatpush3.bf16.msra.mxu0 %v8254_v42  ;;  %v8270_v6 = vpack.c.bf16 %v2054_v56, %v2053_v53  ;;  %v2056_v42 = vld [vmem:[%s14702_s3 + $0x228] sm:$0xff] }
 0x10f   : > { %v10102_v4 = vpop.f32.mrb[2].mxu1  ;;  %1782 = vmatmul.mubr.f32.gmra.mrb[108].mxu0 %v9969_v14  ;;  %v10105_v5 = vpop.f32.mrb[3].mxu0  ;;  %8257 = vmatprep.subr.bf16.mxu0 %v8256_v49  ;;  %v2100_v14 = vld [vmem:[%s14702_s3 + $0x388] sm:$0xff] }
 0x110   : > { %v10116_v11 = vpop.f32.mrb[3].mxu1  ;;  %7813 = vmatmul.mubr.f32.gmra.mrb[108].mxu1 %v10121_v12  ;;  %1787 = vmatprep.mubr.f32.mxu0 %v14708_v0  ;;  %v8296_v18 = vpack.c.bf16 %v2100_v14, %v2099_v13  ;;  %v8915_v13 = vld [vmem:[%s9236_s19 + $0xf0] sm:$0xff] }
 0x111   : > { %8227 = vmatpush3.bf16.msra.mxu1 %v8226_v61  ;;  %7815 = vmatprep.mubr.f32.mxu1 %v10134_v15  ;;  %v8914_v61 = vld [vmem:[%s9236_s19 + $0xf8] sm:$0xff]  ;;  %v8916_v14 = vld [vmem:[%s9236_s19 + $0x170] sm:$0xff] }
 0x112   : > { %8229 = vmatprep.subr.bf16.mxu1 %v8228_v32  ;;  %v10137_v17 = vpop.f32.mrb[4].mxu0  ;;  %8259 = vmatpush3.bf16.msra.mxu0 %v8258_v3 }
 0x113   : > { %v10145_v23 = vpop.f32.mrb[4].mxu1  ;;  %1788 = vmatmul.mubr.f32.gmra.mrb[110].mxu0 %v9993_v26  ;;  %v10148_v24 = vpop.f32.mrb[5].mxu0  ;;  %8261 = vmatprep.subr.bf16.mxu0 %v8260_v8  ;;  %v8910_v26 = vld [vmem:[%s9236_s19 + $0x8] sm:$0xff]  ;;  %v2075_v8 = vld [vmem:[%s14702_s3 + $0x2c0] sm:$0xff] }
 0x114   : > { %v10156_v36 = vpop.f32.mrb[5].mxu1  ;;  %7816 = vmatmul.mubr.f32.gmra.mrb[110].mxu1 %v10161_v40  ;;  %1793 = vmatprep.mubr.f32.mxu0 %v14708_v0 }
 0x115   : > { %8231 = vmatpush3.bf16.msra.mxu1 %v8230_v16  ;;  %2325 = vmatprep.mubr.f32.mxu1 %v8910_v26 }
 0x116   : > { %8265 = vmatprep.subr.bf16.mxu1 %v8264_v20  ;;  %v10166_v47 = vpop.f32.mrb[6].mxu0  ;;  %8263 = vmatpush3.bf16.msra.mxu0 %v8262_v22  ;;  %v8280_v20 = vpack.c.bf16 %v2076_v45, %v2075_v8  ;;  %v2082_v8 = vld [vmem:[%s14702_s3 + $0x2f8] sm:$0xff] }
 0x117   : > { %v10174_v27 = vpop.f32.mrb[6].mxu1  ;;  %1794 = vmatmul.mubr.f32.gmra.mrb[112].mxu0 %v10006_v28  ;;  %v10177_v29 = vpop.f32.mrb[7].mxu0  ;;  %8297 = vmatprep.subr.bf16.mxu0 %v8296_v18  ;;  %v8912_v28 = vld [vmem:[%s9236_s19 + $0x80] sm:$0xff]  ;;  %v2078_v18 = vld [vmem:[%s14702_s3 + $0x2d8] sm:$0xff] }
 0x118   : > { %v10185_v33 = vpop.f32.mrb[7].mxu1  ;;  %2326 = vmatmul.mubr.f32.vlgmr.msra.gmra.mrb[112].mxu1 %v8911_v35  ;;  %1799 = vmatprep.mubr.f32.mxu0 %v14708_v0  ;;  %v8284_v56 = vpack.c.bf16 %v2078_v18, %v2077_v10 }
 0x119   : > { %8267 = vmatpush3.bf16.msra.mxu1 %v8266_v43  ;;  %2330 = vmatprep.mubr.f32.mxu1 %v8912_v28  ;;  %v8917_v43 = vld [vmem:[%s9236_s19 + $0x168] sm:$0xff] }
 0x11a   : > { %v10190_v38 = vpop.f32.mrb[8].mxu0  ;;  %8269 = vmatprep.subr.bf16.mxu1 %v8268_v50  ;;  %v8918_v50 = vld [vmem:[%s9236_s19 + $0x1e8] sm:$0xff] }
 0x11b   : > { %v10198_v48 = vpop.f32.mrb[8].mxu1  ;;  %1800 = vmatmul.mubr.f32.gmra.mrb[114].mxu0 %v10030_v30  ;;  %v10201_v49 = vpop.f32.mrb[9].mxu0  ;;  %v8274_v30 = vpack.c.bf16 %v2056_v42, %v2055_v41  ;;  %v8919_v42 = vld [vmem:[%s9236_s19 + $0x1e0] sm:$0xff] }
 0x11c   : > { %v10209_v55 = vpop.f32.mrb[9].mxu1  ;;  %2331 = vmatmul.mubr.f32.gmra.mrb[114].mxu1 %v8913_v58  ;;  %1805 = vmatprep.mubr.f32.mxu0 %v14708_v0 }
 0x11d   : > { %2335 = vmatprep.mubr.f32.mxu1 %v8914_v61  ;;  %8271 = vmatpush3.bf16.msra.mxu1 %v8270_v6  ;;  %v2079_v6 = vld [vmem:[%s14702_s3 + $0x2e0] sm:$0xff] }
 0x11e   : > { %v10214_v32 = vpop.f32.mrb[10].mxu0  ;;  %8273 = vmatprep.subr.bf16.mxu1 %v8272_v39  ;;  %v2080_v39 = vld [vmem:[%s14702_s3 + $0x2e8] sm:$0xff]  ;;  %v2063_v61 = vld [vmem:[%s14702_s3 + $0x260] sm:$0xff] }
 0x11f   : > { %v10222_v3 = vpop.f32.mrb[10].mxu1  ;;  %1806 = vmatmul.mubr.f32.gmra.mrb[116].mxu0 %v10043_v34  ;;  %v10225_v7 = vpop.f32.mrb[11].mxu0  ;;  %v8278_v34 = vpack.c.bf16 %v2058_v2, %v2057_v1  ;;  %v8288_v58 = vpack.c.bf16 %v2080_v39, %v2079_v6  ;;  %v2081_v2 = vld [vmem:[%s14702_s3 + $0x2f0] sm:$0xff]  ;;  %v2083_v6 = vld [vmem:[%s14702_s3 + $0x300] sm:$0xff]  ;;  %v2084_v39 = vld [vmem:[%s14702_s3 + $0x308] sm:$0xff] }
 0x120   : > { %v10233_v9 = vpop.f32.mrb[11].mxu1  ;;  %2336 = vmatmul.mubr.f32.gmra.mrb[116].mxu1 %v8915_v13  ;;  %1811 = vmatprep.mubr.f32.mxu0 %v14708_v0  ;;  %v8921_v13 = vld [vmem:[%s9236_s19 + $0x258] sm:$0xff] }
 0x121   : > { %2340 = vmatprep.mubr.f32.mxu1 %v8916_v14  ;;  %8275 = vmatpush3.bf16.msra.mxu1 %v8274_v30  ;;  %v2064_v30 = vld [vmem:[%s14702_s3 + $0x268] sm:$0xff]  ;;  %v8922_v14 = vld [vmem:[%s9236_s19 + $0x2d8] sm:$0xff] }
 0x122   : > { %v10238_v16 = vpop.f32.mrb[12].mxu0  ;;  %8277 = vmatprep.subr.bf16.mxu1 %v8276_v63 }
 0x123   : > { %v10246_v22 = vpop.f32.mrb[12].mxu1  ;;  %1812 = vmatmul.mubr.f32.gmra.mrb[118].mxu0 %v10075_v54  ;;  %v10249_v25 = vpop.f32.mrb[13].mxu0  ;;  %v8282_v54 = vpack.c.bf16 %v2060_v59, %v2059_v21  ;;  %v2065_v21 = vld [vmem:[%s14702_s3 + $0x270] sm:$0xff]  ;;  %v2066_v59 = vld [vmem:[%s14702_s3 + $0x278] sm:$0xff] }
 0x124   : > { %14719 = vst [vmem:[#allocation2_spill] sm:$0xff] %v10249_v25  ;;  %v10257_v26 = vpop.f32.mrb[13].mxu1  ;;  %2341 = vmatmul.mubr.f32.gmra.mrb[118].mxu1 %v8917_v43  ;;  %1817 = vmatprep.mubr.f32.mxu0 %v14708_v0  ;;  %v2131_v43 = vld [vmem:[%s14702_s3 + $0x480] sm:$0xff] }
 0x125   : > { %14720 = vst [vmem:[#allocation3_spill] sm:$0xff] %v10257_v26  ;;  %2345 = vmatprep.mubr.f32.mxu1 %v8918_v50  ;;  %8279 = vmatpush3.bf16.msra.mxu1 %v8278_v34  ;;  %v2132_v50 = vld [vmem:[%s14702_s3 + $0x488] sm:$0xff] }
 0x126   : > { %v10262_v53 = vpop.f32.mrb[14].mxu0  ;;  %8281 = vmatprep.subr.bf16.mxu1 %v8280_v20  ;;  %v8292_v20 = vpack.c.bf16 %v2082_v8, %v2081_v2  ;;  %v8925_v2 = vld [vmem:[%s9236_s19 + $0x348] sm:$0xff]  ;;  %v8926_v8 = vld [vmem:[%s9236_s19 + $0x18] sm:$0xff] }
 0x127   : > { %14721 = vst [vmem:[#allocation4_spill] sm:$0xff] %v10262_v53  ;;  %v10270_v35 = vpop.f32.mrb[14].mxu1  ;;  %1818 = vmatmul.mubr.f32.gmra.mrb[120].mxu0 %v10088_v60  ;;  %v10273_v28 = vpop.f32.mrb[15].mxu0  ;;  %v8286_v60 = vpack.c.bf16 %v2062_v31, %v2061_v57  ;;  %v8924_v57 = vld [vmem:[%s9236_s19 + $0x350] sm:$0xff] }
 0x128   : > { %14722 = vst [vmem:[#allocation5_spill] sm:$0xff] %v10270_v35  ;;  %14723 = vst [vmem:[#allocation6_spill] sm:$0xff] %v10273_v28  ;;  %v10281_v41 = vpop.f32.mrb[15].mxu1  ;;  %2346 = vmatmul.mubr.f32.gmra.mrb[120].mxu1 %v8919_v42  ;;  %1823 = vmatprep.mubr.f32.mxu0 %v14708_v0  ;;  %v8328_v42 = vpack.c.bf16 %v2132_v50, %v2131_v43  ;;  %v8928_v43 = vld [vmem:[%s9236_s19 + $0x10] sm:$0xff] }
 0x129   : > { %14724 = vst [vmem:[#allocation7_spill] sm:$0xff] %v10281_v41  ;;  %2350 = vmatprep.mubr.f32.mxu1 %v8920_v19  ;;  %8283 = vmatpush3.bf16.msra.mxu1 %v8282_v54 }
 0x12a   : > { %v10286_v51 = vpop.f32.mrb[16].mxu0  ;;  %8285 = vmatprep.subr.bf16.mxu1 %v8284_v56  ;;  %v8923_v56 = vld [vmem:[%s9236_s19 + $0x2d0] sm:$0xff] }
 0x12b   : > { %14725 = vst [vmem:[#allocation8_spill] sm:$0xff] %v10286_v51  ;;  %v10294_v63 = vpop.f32.mrb[16].mxu1  ;;  %1824 = vmatmul.mubr.f32.gmra.mrb[122].mxu0 %v10121_v12  ;;  %v10297_v1 = vpop.f32.mrb[17].mxu0  ;;  %v8290_v12 = vpack.c.bf16 %v2064_v30, %v2063_v61  ;;  %v2102_v61 = vld [vmem:[%s14702_s3 + $0x398] sm:$0xff] }
 0x12c   : > { %14726 = vst [vmem:[#allocation9_spill] sm:$0xff] %v10294_v63  ;;  %14727 = vst [vmem:[#allocation10_spill] sm:$0xff] %v10297_v1  ;;  %v10305_v45 = vpop.f32.mrb[17].mxu1  ;;  %2351 = vmatmul.mubr.f32.gmra.mrb[122].mxu1 %v8921_v13  ;;  %1829 = vmatprep.mubr.f32.mxu0 %v14708_v0  ;;  %v8927_v13 = vld [vmem:[%s9236_s19 + $0x3c8] sm:$0xff] }
 0x12d   : > { %14728 = vst [vmem:[#allocation11_spill] sm:$0xff] %v10305_v45  ;;  %2355 = vmatprep.mubr.f32.mxu1 %v8922_v14  ;;  %8287 = vmatpush3.bf16.msra.mxu1 %v8286_v60 }
 0x12e   : > { %v10310_v34 = vpop.f32.mrb[18].mxu0  ;;  %8289 = vmatprep.subr.bf16.mxu1 %v8288_v58  ;;  %v2101_v58 = vld [vmem:[%s14702_s3 + $0x390] sm:$0xff] }
 0x12f   : > { %14729 = vst [vmem:[#allocation12_spill] sm:$0xff] %v10310_v34  ;;  %v10318_v10 = vpop.f32.mrb[18].mxu1  ;;  %1830 = vmatmul.mubr.f32.gmra.mrb[124].mxu0 %v10134_v15  ;;  %v10321_v18 = vpop.f32.mrb[19].mxu0  ;;  %v8294_v15 = vpack.c.bf16 %v2066_v59, %v2065_v21  ;;  %v2086_v21 = vld [vmem:[%s14702_s3 + $0x318] sm:$0xff] }
 0x130   : > { %14730 = vst [vmem:[#allocation13_spill] sm:$0xff] %v10318_v10  ;;  %14731 = vst [vmem:[#allocation14_spill] sm:$0xff] %v10321_v18  ;;  %v10329_v54 = vpop.f32.mrb[19].mxu1  ;;  %2356 = vmatmul.mubr.f32.gmra.mrb[124].mxu1 %v8923_v56  ;;  %1835 = vmatprep.mubr.f32.mxu0 %v14708_v0  ;;  %v2103_v56 = vld [vmem:[%s14702_s3 + $0x3a0] sm:$0xff] }
 0x131   : > { %14732 = vst [vmem:[#allocation15_spill] sm:$0xff] %v10329_v54  ;;  %2360 = vmatprep.mubr.f32.mxu1 %v8924_v57  ;;  %8291 = vmatpush3.bf16.msra.mxu1 %v8290_v12  ;;  %v8300_v12 = vpack.c.bf16 %v2102_v61, %v2101_v58  ;;  %v2104_v57 = vld [vmem:[%s14702_s3 + $0x3a8] sm:$0xff]  ;;  %v14933_v54 = vmov 0.0  }
 0x132   : > { %v10334_v31 = vpop.f32.mrb[20].mxu0  ;;  %8293 = vmatprep.subr.bf16.mxu1 %v8292_v20  ;;  %v2085_v20 = vld [vmem:[%s14702_s3 + $0x310] sm:$0xff] }
 0x133   : > { %14733 = vst [vmem:[#allocation16_spill] sm:$0xff] %v10334_v31  ;;  %v10342_v19 = vpop.f32.mrb[20].mxu1  ;;  %1836 = vmatmul.mubr.f32.gmra.mrb[126].mxu0 %v10161_v40  ;;  %v10345_v60 = vpop.f32.mrb[21].mxu0  ;;  %v8298_v40 = vpack.c.bf16 %v2084_v39, %v2083_v6  ;;  %v8929_v6 = vld [vmem:[%s9236_s19 + $0x3c0] sm:$0xff]  ;;  %v8930_v39 = vld [vmem:[%s9236_s19 + $0x90] sm:$0xff]  ;;  %v8302_v58 = vpack.c.bf16 %v2086_v21, %v2085_v20  ;;  %v9148_v31 = vld [vmem:[%s9236_s19 + $0x778] sm:$0xff] }
 0x134   : > { %14734 = vst [vmem:[#allocation17_spill] sm:$0xff] %v10342_v19  ;;  %14735 = vst [vmem:[#allocation18_spill] sm:$0xff] %v10345_v60  ;;  %v10353_v30 = vpop.f32.mrb[21].mxu1  ;;  %2361 = vmatmul.mubr.f32.gmra.mrb[126].mxu1 %v8925_v2  ;;  %2470 = vmatprep.mubr.f32.mxu0 %v8926_v8  ;;  %v8304_v2 = vpack.c.bf16 %v2104_v57, %v2103_v56  ;;  %v2087_v8 = vld [vmem:[%s14702_s3 + $0x320] sm:$0xff]  ;;  %v2105_v20 = vld [vmem:[%s14702_s3 + $0x3b0] sm:$0xff] }
 0x135   : > { %14736 = vst [vmem:[#allocation19_spill] sm:$0xff] %v10353_v30  ;;  %2365 = vmatprep.mubr.f32.mxu1 %v8927_v13  ;;  %8295 = vmatpush3.bf16.msra.mxu1 %v8294_v15  ;;  %v2088_v13 = vld [vmem:[%s14702_s3 + $0x328] sm:$0xff]  ;;  %v8933_v56 = vld [vmem:[%s9236_s19 + $0x438] sm:$0xff]  ;;  %v9145_v60 = vld [vmem:[%s9236_s19 + $0x6f0] sm:$0xff] }
 0x136   : > { %v10358_v14 = vpop.f32.mrb[22].mxu0  ;;  %8329 = vmatprep.subr.bf16.mxu1 %v8328_v42  ;;  %v8931_v42 = vld [vmem:[%s9236_s19 + $0x440] sm:$0xff]  ;;  %v8934_v57 = vld [vmem:[%s9236_s19 + $0x108] sm:$0xff] }
 0x137   : > { %14737 = vst [vmem:[#allocation20_spill] sm:$0xff] %v10358_v14  ;;  %v10366_v59 = vpop.f32.mrb[22].mxu1  ;;  %2471 = vmatmul.mubr.f32.vlgmr.msra.gmra.mrb[128].mxu0 %v8928_v43  ;;  %v10369_v50 = vpop.f32.mrb[23].mxu0  ;;  %v9141_v14 = vld [vmem:[%s9236_s19 + $0x678] sm:$0xff] }
 0x138   : > { %14738 = vst [vmem:[#allocation21_spill] sm:$0xff] %v10366_v59  ;;  %14739 = vst [vmem:[#allocation22_spill] sm:$0xff] %v10369_v50  ;;  %v10377_v15 = vpop.f32.mrb[23].mxu1  ;;  %2366 = vmatmul.mubr.f32.gmra.mrb[128].mxu1 %v8929_v6  ;;  %2475 = vmatprep.mubr.f32.mxu0 %v8930_v39  ;;  %v8932_v6 = vld [vmem:[%s9236_s19 + $0x88] sm:$0xff]  ;;  %v8935_v39 = vld [vmem:[%s9236_s19 + $0x4b8] sm:$0xff] }
 0x139   : > { %14740 = vst [vmem:[#allocation23_spill] sm:$0xff] %v10377_v15  ;;  %2370 = vmatprep.mubr.f32.mxu1 %v8931_v42  ;;  %8299 = vmatpush3.bf16.msra.mxu0 %v8298_v40  ;;  %v8306_v42 = vpack.c.bf16 %v2088_v13, %v2087_v8  ;;  %v2107_v8 = vld [vmem:[%s14702_s3 + $0x3c0] sm:$0xff]  ;;  %v9134_v15 = vld [vmem:[%s9236_s19 + $0x430] sm:$0xff] }
 0x13a   : > { %v10382_v61 = vpop.f32.mrb[24].mxu0  ;;  %8301 = vmatprep.subr.bf16.mxu0 %v8300_v12  ;;  %v2106_v12 = vld [vmem:[%s14702_s3 + $0x3b8] sm:$0xff]  ;;  %v9138_v50 = vld [vmem:[%s9236_s19 + $0x520] sm:$0xff] }
 0x13b   : > { %14741 = vst [vmem:[#allocation24_spill] sm:$0xff] %v10382_v61  ;;  %v10390_v43 = vpop.f32.mrb[24].mxu1  ;;  %2476 = vmatmul.mubr.f32.gmra.mrb[130].mxu0 %v8932_v6  ;;  %v10393_v40 = vpop.f32.mrb[25].mxu0  ;;  %v8308_v0 = vpack.c.bf16 %v2106_v12, %v2105_v20  ;;  %v8937_v20 = vld [vmem:[%s9236_s19 + $0x4b0] sm:$0xff]  ;;  %v8938_v12 = vld [vmem:[%s9236_s19 + $0x180] sm:$0xff] }
 0x13c   : > { %14742 = vst [vmem:[#allocation25_spill] sm:$0xff] %v10390_v43  ;;  %14743 = vst [vmem:[#allocation26_spill] sm:$0xff] %v10393_v40  ;;  %v10401_v21 = vpop.f32.mrb[25].mxu1  ;;  %2371 = vmatmul.mubr.f32.gmra.mrb[130].mxu1 %v8933_v56  ;;  %2480 = vmatprep.mubr.f32.mxu0 %v8934_v57  ;;  %v2089_v40 = vld [vmem:[%s14702_s3 + $0x330] sm:$0xff]  ;;  %v2090_v56 = vld [vmem:[%s14702_s3 + $0x338] sm:$0xff] }
 0x13d   : > { %14744 = vst [vmem:[#allocation27_spill] sm:$0xff] %v10401_v21  ;;  %2375 = vmatprep.mubr.f32.mxu1 %v8935_v39  ;;  %8303 = vmatpush3.bf16.msra.mxu0 %v8302_v58  ;;  %v8936_v21 = vld [vmem:[%s9236_s19 + $0x100] sm:$0xff]  ;;  %v8939_v39 = vld [vmem:[%s9236_s19 + $0x530] sm:$0xff] }
 0x13e   : > { %v10406_v6 = vpop.f32.mrb[26].mxu0  ;;  %8305 = vmatprep.subr.bf16.mxu0 %v8304_v2  ;;  %v2108_v2 = vld [vmem:[%s14702_s3 + $0x3c8] sm:$0xff]  ;;  %v2183_v43 = vld [vmem:[%s14702_s3 + $0x620] sm:$0xff] }
 0x13f   : > { %14745 = vst [vmem:[#allocation28_spill] sm:$0xff] %v10406_v6  ;;  %v10414_v57 = vpop.f32.mrb[26].mxu1  ;;  %2481 = vmatmul.mubr.f32.gmra.mrb[132].mxu0 %v8936_v21  ;;  %v10417_v58 = vpop.f32.mrb[27].mxu0  ;;  %v8310_v21 = vpack.c.bf16 %v2090_v56, %v2089_v40  ;;  %v2091_v6 = vld [vmem:[%s14702_s3 + $0x340] sm:$0xff]  ;;  %v2109_v40 = vld [vmem:[%s14702_s3 + $0x3d0] sm:$0xff] }
 0x140   : > { %14746 = vst [vmem:[#allocation29_spill] sm:$0xff] %v10414_v57  ;;  %14747 = vst [vmem:[#allocation30_spill] sm:$0xff] %v10417_v58  ;;  %v10425_v13 = vpop.f32.mrb[27].mxu1  ;;  %2376 = vmatmul.mubr.f32.gmra.mrb[132].mxu1 %v8937_v20  ;;  %2485 = vmatprep.mubr.f32.mxu0 %v8938_v12  ;;  %v8312_v57 = vpack.c.bf16 %v2108_v2, %v2107_v8  ;;  %v2092_v20 = vld [vmem:[%s14702_s3 + $0x348] sm:$0xff]  ;;  %v8942_v2 = vld [vmem:[%s9236_s19 + $0x1f8] sm:$0xff] }
 0x141   : > { %14748 = vst [vmem:[#allocation31_spill] sm:$0xff] %v10425_v13  ;;  %2380 = vmatprep.mubr.f32.mxu1 %v8939_v39  ;;  %8307 = vmatpush3.bf16.msra.mxu0 %v8306_v42  ;;  %v8940_v13 = vld [vmem:[%s9236_s19 + $0x178] sm:$0xff]  ;;  %v8941_v8 = vld [vmem:[%s9236_s19 + $0x528] sm:$0xff]  ;;  %v9130_v61 = vld [vmem:[%s9236_s19 + $0x340] sm:$0xff] }
 0x142   : > { %v10430_v58 = vpop.f32.mrb[28].mxu0  ;;  %8309 = vmatprep.subr.bf16.mxu0 %v8308_v0  ;;  %v2110_v0 = vld [vmem:[%s14702_s3 + $0x3d8] sm:$0xff]  ;;  %v8943_v39 = vld [vmem:[%s9236_s19 + $0x5a8] sm:$0xff] }
 0x143   : > { %14749 = vst [vmem:[#allocation32_spill] sm:$0xff] %v10430_v58  ;;  %v10438_v12 = vpop.f32.mrb[28].mxu1  ;;  %2486 = vmatmul.mubr.f32.gmra.mrb[134].mxu0 %v8940_v13  ;;  %v10441_v42 = vpop.f32.mrb[29].mxu0  ;;  %v8314_v13 = vpack.c.bf16 %v2092_v20, %v2091_v6  ;;  %v2093_v58 = vld [vmem:[%s14702_s3 + $0x350] sm:$0xff]  ;;  %v2111_v6 = vld [vmem:[%s14702_s3 + $0x3e0] sm:$0xff] }
 0x144   : > { %14750 = vst [vmem:[#allocation33_spill] sm:$0xff] %v10438_v12  ;;  %14751 = vst [vmem:[#allocation34_spill] sm:$0xff] %v10441_v42  ;;  %v10449_v56 = vpop.f32.mrb[29].mxu1  ;;  %2381 = vmatmul.mubr.f32.gmra.mrb[134].mxu1 %v8941_v8  ;;  %2490 = vmatprep.mubr.f32.mxu0 %v8942_v2  ;;  %v8316_v12 = vpack.c.bf16 %v2110_v0, %v2109_v40  ;;  %v2094_v8 = vld [vmem:[%s14702_s3 + $0x358] sm:$0xff]  ;;  %v8945_v40 = vld [vmem:[%s9236_s19 + $0x5a0] sm:$0xff] }
 0x145   : > { %14752 = vst [vmem:[#allocation35_spill] sm:$0xff] %v10449_v56  ;;  %2385 = vmatprep.mubr.f32.mxu1 %v8943_v39  ;;  %8311 = vmatpush3.bf16.msra.mxu0 %v8310_v21  ;;  %v8944_v56 = vld [vmem:[%s9236_s19 + $0x1f0] sm:$0xff]  ;;  %v8947_v39 = vld [vmem:[%s9236_s19 + $0x620] sm:$0xff] }
 0x146   : > { %v10454_v42 = vpop.f32.mrb[30].mxu0  ;;  %8313 = vmatprep.subr.bf16.mxu0 %v8312_v57  ;;  %v2112_v57 = vld [vmem:[%s14702_s3 + $0x3e8] sm:$0xff]  ;;  %v8946_v0 = vld [vmem:[%s9236_s19 + $0x270] sm:$0xff] }
 0x147   : > { %14753 = vst [vmem:[#allocation36_spill] sm:$0xff] %v10454_v42  ;;  %v10462_v2 = vpop.f32.mrb[30].mxu1  ;;  %2491 = vmatmul.mubr.f32.gmra.mrb[136].mxu0 %v8944_v56  ;;  %v10465_v21 = vpop.f32.mrb[31].mxu0  ;;  %v8318_v56 = vpack.c.bf16 %v2094_v8, %v2093_v58  ;;  %v2095_v42 = vld [vmem:[%s14702_s3 + $0x360] sm:$0xff]  ;;  %v2113_v58 = vld [vmem:[%s14702_s3 + $0x3f0] sm:$0xff] }
 0x148   : > { %14754 = vst [vmem:[#allocation37_spill] sm:$0xff] %v10462_v2  ;;  %14755 = vst [vmem:[#allocation38_spill] sm:$0xff] %v10465_v21  ;;  %v10473_v20 = vpop.f32.mrb[31].mxu1  ;;  %2386 = vmatmul.mubr.f32.gmra.mrb[136].mxu1 %v8945_v40  ;;  %2495 = vmatprep.mubr.f32.mxu0 %v8946_v0  ;;  %v8320_v2 = vpack.c.bf16 %v2112_v57, %v2111_v6  ;;  %v2096_v40 = vld [vmem:[%s14702_s3 + $0x368] sm:$0xff]  ;;  %v8949_v6 = vld [vmem:[%s9236_s19 + $0x618] sm:$0xff] }
 0x149   : > { %14756 = vst [vmem:[#allocation39_spill] sm:$0xff] %v10473_v20  ;;  %2390 = vmatprep.mubr.f32.mxu1 %v8947_v39  ;;  %8315 = vmatpush3.bf16.msra.mxu0 %v8314_v13  ;;  %v8948_v20 = vld [vmem:[%s9236_s19 + $0x268] sm:$0xff]  ;;  %v8951_v39 = vld [vmem:[%s9236_s19 + $0x698] sm:$0xff] }
 0x14a   : > { %v10478_v21 = vpop.f32.mrb[32].mxu0  ;;  %8317 = vmatprep.subr.bf16.mxu0 %v8316_v12  ;;  %v2114_v12 = vld [vmem:[%s14702_s3 + $0x3f8] sm:$0xff]  ;;  %v8950_v57 = vld [vmem:[%s9236_s19 + $0x2e8] sm:$0xff] }
 0x14b   : > { %14757 = vst [vmem:[#allocation40_spill] sm:$0xff] %v10478_v21  ;;  %v10486_v0 = vpop.f32.mrb[32].mxu1  ;;  %2496 = vmatmul.mubr.f32.gmra.mrb[138].mxu0 %v8948_v20  ;;  %v10489_v13 = vpop.f32.mrb[33].mxu0  ;;  %v8322_v20 = vpack.c.bf16 %v2096_v40, %v2095_v42  ;;  %v2097_v21 = vld [vmem:[%s14702_s3 + $0x370] sm:$0xff]  ;;  %v2163_v42 = vld [vmem:[%s14702_s3 + $0x580] sm:$0xff] }
 0x14c   : > { %14758 = vst [vmem:[#allocation41_spill] sm:$0xff] %v10486_v0  ;;  %14759 = vst [vmem:[#allocation42_spill] sm:$0xff] %v10489_v13  ;;  %v10497_v8 = vpop.f32.mrb[33].mxu1  ;;  %2391 = vmatmul.mubr.f32.gmra.mrb[138].mxu1 %v8949_v6  ;;  %2500 = vmatprep.mubr.f32.mxu0 %v8950_v57  ;;  %v8324_v0 = vpack.c.bf16 %v2114_v12, %v2113_v58  ;;  %v2098_v6 = vld [vmem:[%s14702_s3 + $0x378] sm:$0xff]  ;;  %v8953_v58 = vld [vmem:[%s9236_s19 + $0x690] sm:$0xff] }
 0x14d   : > { %14760 = vst [vmem:[#allocation43_spill] sm:$0xff] %v10497_v8  ;;  %2395 = vmatprep.mubr.f32.mxu1 %v8951_v39  ;;  %8319 = vmatpush3.bf16.msra.mxu0 %v8318_v56  ;;  %v8952_v8 = vld [vmem:[%s9236_s19 + $0x2e0] sm:$0xff]  ;;  %v8955_v39 = vld [vmem:[%s9236_s19 + $0x710] sm:$0xff] }
 0x14e   : > { %v10502_v13 = vpop.f32.mrb[34].mxu0  ;;  %8321 = vmatprep.subr.bf16.mxu0 %v8320_v2  ;;  %v2164_v2 = vld [vmem:[%s14702_s3 + $0x588] sm:$0xff]  ;;  %v8954_v12 = vld [vmem:[%s9236_s19 + $0x360] sm:$0xff] }
 0x14f   : > { %14761 = vst [vmem:[#allocation44_spill] sm:$0xff] %v10502_v13  ;;  %v10510_v57 = vpop.f32.mrb[34].mxu1  ;;  %2501 = vmatmul.mubr.f32.gmra.mrb[140].mxu0 %v8952_v8  ;;  %v10513_v56 = vpop.f32.mrb[35].mxu0  ;;  %v8326_v8 = vpack.c.bf16 %v2098_v6, %v2097_v21  ;;  %v8956_v13 = vld [vmem:[%s9236_s19 + $0x358] sm:$0xff]  ;;  %v2133_v21 = vld [vmem:[%s14702_s3 + $0x490] sm:$0xff] }
 0x150   : > { %14762 = vst [vmem:[#allocation45_spill] sm:$0xff] %v10510_v57  ;;  %14763 = vst [vmem:[#allocation46_spill] sm:$0xff] %v10513_v56  ;;  %v10521_v40 = vpop.f32.mrb[35].mxu1  ;;  %2396 = vmatmul.mubr.f32.gmra.mrb[140].mxu1 %v8953_v58  ;;  %2505 = vmatprep.mubr.f32.mxu0 %v8954_v12  ;;  %v2115_v57 = vld [vmem:[%s14702_s3 + $0x400] sm:$0xff]  ;;  %v8360_v58 = vpack.c.bf16 %v2164_v2, %v2163_v42  ;;  %v2134_v6 = vld [vmem:[%s14702_s3 + $0x498] sm:$0xff] }
 0x151   : > { %14764 = vst [vmem:[#allocation47_spill] sm:$0xff] %v10521_v40  ;;  %2400 = vmatprep.mubr.f32.mxu1 %v8955_v39  ;;  %8323 = vmatpush3.bf16.msra.mxu0 %v8322_v20  ;;  %v2116_v40 = vld [vmem:[%s14702_s3 + $0x408] sm:$0xff] }
 0x152   : > { %v10526_v56 = vpop.f32.mrb[36].mxu0  ;;  %8325 = vmatprep.subr.bf16.mxu0 %v8324_v0  ;;  %v8958_v0 = vld [vmem:[%s9236_s19 + $0x3d8] sm:$0xff]  ;;  %v8959_v42 = vld [vmem:[%s9236_s19 + $0x28] sm:$0xff] }
 0x153   : > { %14765 = vst [vmem:[#allocation48_spill] sm:$0xff] %v10526_v56  ;;  %v10534_v12 = vpop.f32.mrb[36].mxu1  ;;  %2506 = vmatmul.mubr.f32.gmra.mrb[142].mxu0 %v8956_v13  ;;  %v10537_v20 = vpop.f32.mrb[37].mxu0  ;;  %v8957_v56 = vld [vmem:[%s9236_s19 + $0x708] sm:$0xff]  ;;  %v8330_v13 = vpack.c.bf16 %v2116_v40, %v2115_v57  ;;  %v2135_v40 = vld [vmem:[%s14702_s3 + $0x4a0] sm:$0xff] }
 0x154   : > { %14766 = vst [vmem:[#allocation49_spill] sm:$0xff] %v10534_v12  ;;  %14767 = vst [vmem:[#allocation50_spill] sm:$0xff] %v10537_v20  ;;  %v10545_v39 = vpop.f32.mrb[37].mxu1  ;;  %2401 = vmatmul.mubr.f32.gmra.mrb[142].mxu1 %v8957_v56  ;;  %2510 = vmatprep.mubr.f32.mxu0 %v8958_v0  ;;  %v8332_v20 = vpack.c.bf16 %v2134_v6, %v2133_v21  ;;  %v2117_v12 = vld [vmem:[%s14702_s3 + $0x410] sm:$0xff]  ;;  %v2118_v56 = vld [vmem:[%s14702_s3 + $0x418] sm:$0xff] }
 0x155   : > { %14768 = vst [vmem:[#allocation51_spill] sm:$0xff] %v10545_v39  ;;  %2615 = vmatprep.mubr.f32.mxu1 %v8959_v42  ;;  %8327 = vmatpush3.bf16.msra.mxu0 %v8326_v8  ;;  %v8960_v39 = vld [vmem:[%s9236_s19 + $0x3d0] sm:$0xff]  ;;  %v2136_v8 = vld [vmem:[%s14702_s3 + $0x4a8] sm:$0xff]  ;;  %v8961_v6 = vld [vmem:[%s9236_s19 + $0x20] sm:$0xff]  ;;  %v8334_v42 = vpack.c.bf16 %v2118_v56, %v2117_v12 }
 0x156   : > { %v10550_v2 = vpop.f32.mrb[38].mxu0  ;;  %8361 = vmatprep.subr.bf16.mxu0 %v8360_v58  ;;  %v8962_v58 = vld [vmem:[%s9236_s19 + $0x450] sm:$0xff] }
 0x157   : > { %14769 = vst [vmem:[#allocation52_spill] sm:$0xff] %v10550_v2  ;;  %v10558_v0 = vpop.f32.mrb[38].mxu1  ;;  %2511 = vmatmul.mubr.f32.gmra.mrb[144].mxu0 %v8960_v39  ;;  %v10561_v57 = vpop.f32.mrb[39].mxu0  ;;  %v8963_v39 = vld [vmem:[%s9236_s19 + $0xa0] sm:$0xff]  ;;  %v2137_v12 = vld [vmem:[%s14702_s3 + $0x4b0] sm:$0xff] }
 0x158   : > { %14770 = vst [vmem:[#allocation53_spill] sm:$0xff] %v10558_v0  ;;  %14771 = vst [vmem:[#allocation54_spill] sm:$0xff] %v10561_v57  ;;  %v10569_v21 = vpop.f32.mrb[39].mxu1  ;;  %2616 = vmatmul.mubr.f32.vlgmr.msra.gmra.mrb[144].mxu1 %v8961_v6  ;;  %2515 = vmatprep.mubr.f32.mxu0 %v8962_v58  ;;  %v8336_v0 = vpack.c.bf16 %v2136_v8, %v2135_v40  ;;  %v2119_v2 = vld [vmem:[%s14702_s3 + $0x420] sm:$0xff]  ;;  %v2120_v6 = vld [vmem:[%s14702_s3 + $0x428] sm:$0xff] }
 0x159   : > { %14772 = vst [vmem:[#allocation55_spill] sm:$0xff] %v10569_v21  ;;  %8331 = vmatpush3.bf16.msra.mxu1 %v8330_v13  ;;  %2620 = vmatprep.mubr.f32.mxu1 %v8963_v39  ;;  %v8964_v13 = vld [vmem:[%s9236_s19 + $0x448] sm:$0xff]  ;;  %v8965_v40 = vld [vmem:[%s9236_s19 + $0x98] sm:$0xff]  ;;  %v2121_v21 = vld [vmem:[%s14702_s3 + $0x430] sm:$0xff] }
 0x15a   : > { %v10574_v57 = vpop.f32.mrb[40].mxu0  ;;  %8333 = vmatprep.subr.bf16.mxu1 %v8332_v20  ;;  %v2138_v20 = vld [vmem:[%s14702_s3 + $0x4b8] sm:$0xff]  ;;  %v8966_v8 = vld [vmem:[%s9236_s19 + $0x4c8] sm:$0xff] }
 0x15b   : > { %14773 = vst [vmem:[#allocation56_spill] sm:$0xff] %v10574_v57  ;;  %v10582_v58 = vpop.f32.mrb[40].mxu1  ;;  %2516 = vmatmul.mubr.f32.gmra.mrb[146].mxu0 %v8964_v13  ;;  %v10585_v39 = vpop.f32.mrb[41].mxu0  ;;  %v8338_v13 = vpack.c.bf16 %v2120_v6, %v2119_v2  ;;  %v8340_v57 = vpack.c.bf16 %v2138_v20, %v2137_v12  ;;  %v2139_v2 = vld [vmem:[%s14702_s3 + $0x4c0] sm:$0xff]  ;;  %v8971_v20 = vld [vmem:[%s9236_s19 + $0x190] sm:$0xff] }
 0x15c   : > { %14774 = vst [vmem:[#allocation57_spill] sm:$0xff] %v10582_v58  ;;  %14775 = vst [vmem:[#allocation58_spill] sm:$0xff] %v10585_v39  ;;  %v10593_v56 = vpop.f32.mrb[41].mxu1  ;;  %2621 = vmatmul.mubr.f32.gmra.mrb[146].mxu1 %v8965_v40  ;;  %2520 = vmatprep.mubr.f32.mxu0 %v8966_v8  ;;  %v8967_v58 = vld [vmem:[%s9236_s19 + $0x118] sm:$0xff]  ;;  %v8970_v12 = vld [vmem:[%s9236_s19 + $0x540] sm:$0xff] }
 0x15d   : > { %14776 = vst [vmem:[#allocation59_spill] sm:$0xff] %v10593_v56  ;;  %2625 = vmatprep.mubr.f32.mxu1 %v8967_v58  ;;  %8335 = vmatpush3.bf16.msra.mxu1 %v8334_v42  ;;  %v2122_v40 = vld [vmem:[%s14702_s3 + $0x438] sm:$0xff]  ;;  %v8968_v56 = vld [vmem:[%s9236_s19 + $0x4c0] sm:$0xff]  ;;  %v8969_v58 = vld [vmem:[%s9236_s19 + $0x110] sm:$0xff] }
 0x15e   : > { %v10598_v39 = vpop.f32.mrb[42].mxu0  ;;  %8337 = vmatprep.subr.bf16.mxu1 %v8336_v0  ;;  %v2140_v0 = vld [vmem:[%s14702_s3 + $0x4c8] sm:$0xff] }
 0x15f   : > { %14777 = vst [vmem:[#allocation60_spill] sm:$0xff] %v10598_v39  ;;  %v10606_v8 = vpop.f32.mrb[42].mxu1  ;;  %2521 = vmatmul.mubr.f32.gmra.mrb[148].mxu0 %v8968_v56  ;;  %v10609_v42 = vpop.f32.mrb[43].mxu0  ;;  %v8342_v56 = vpack.c.bf16 %v2122_v40, %v2121_v21  ;;  %v2123_v39 = vld [vmem:[%s14702_s3 + $0x440] sm:$0xff]  ;;  %v2141_v21 = vld [vmem:[%s14702_s3 + $0x4d0] sm:$0xff] }
 0x160   : > { %14778 = vst [vmem:[#allocation61_spill] sm:$0xff] %v10606_v8  ;;  %14779 = vst [vmem:[#allocation62_spill] sm:$0xff] %v10609_v42  ;;  %v10617_v6 = vpop.f32.mrb[43].mxu1  ;;  %2626 = vmatmul.mubr.f32.gmra.mrb[148].mxu1 %v8969_v58  ;;  %2525 = vmatprep.mubr.f32.mxu0 %v8970_v12  ;;  %v8344_v8 = vpack.c.bf16 %v2140_v0, %v2139_v2  ;;  %v2124_v58 = vld [vmem:[%s14702_s3 + $0x448] sm:$0xff]  ;;  %v8974_v0 = vld [vmem:[%s9236_s19 + $0x5b8] sm:$0xff] }
 0x161   : > { %14780 = vst [vmem:[#allocation63_spill] sm:$0xff] %v10617_v6  ;;  %2630 = vmatprep.mubr.f32.mxu1 %v8971_v20  ;;  %8339 = vmatpush3.bf16.msra.mxu1 %v8338_v13  ;;  %v8972_v6 = vld [vmem:[%s9236_s19 + $0x538] sm:$0xff]  ;;  %v8973_v2 = vld [vmem:[%s9236_s19 + $0x188] sm:$0xff] }
 0x162   : > { %v10622_v42 = vpop.f32.mrb[44].mxu0  ;;  %8341 = vmatprep.subr.bf16.mxu1 %v8340_v57  ;;  %v2142_v57 = vld [vmem:[%s14702_s3 + $0x4d8] sm:$0xff]  ;;  %v8975_v20 = vld [vmem:[%s9236_s19 + $0x208] sm:$0xff] }
 0x163   : > { %14781 = vst [vmem:[#allocation64_spill] sm:$0xff] %v10622_v42  ;;  %v10630_v12 = vpop.f32.mrb[44].mxu1  ;;  %2526 = vmatmul.mubr.f32.gmra.mrb[150].mxu0 %v8972_v6  ;;  %v10633_v13 = vpop.f32.mrb[45].mxu0  ;;  %v8346_v6 = vpack.c.bf16 %v2124_v58, %v2123_v39  ;;  %v2125_v42 = vld [vmem:[%s14702_s3 + $0x450] sm:$0xff]  ;;  %v2143_v39 = vld [vmem:[%s14702_s3 + $0x4e0] sm:$0xff] }
 0x164   : > { %14782 = vst [vmem:[#allocation65_spill] sm:$0xff] %v10630_v12  ;;  %14783 = vst [vmem:[#allocation66_spill] sm:$0xff] %v10633_v13  ;;  %v10641_v40 = vpop.f32.mrb[45].mxu1  ;;  %2631 = vmatmul.mubr.f32.gmra.mrb[150].mxu1 %v8973_v2  ;;  %2530 = vmatprep.mubr.f32.mxu0 %v8974_v0  ;;  %v8348_v12 = vpack.c.bf16 %v2142_v57, %v2141_v21  ;;  %v2126_v2 = vld [vmem:[%s14702_s3 + $0x458] sm:$0xff]  ;;  %v8977_v21 = vld [vmem:[%s9236_s19 + $0x200] sm:$0xff] }
 0x165   : > { %14784 = vst [vmem:[#allocation67_spill] sm:$0xff] %v10641_v40  ;;  %2635 = vmatprep.mubr.f32.mxu1 %v8975_v20  ;;  %8343 = vmatpush3.bf16.msra.mxu1 %v8342_v56  ;;  %v8976_v40 = vld [vmem:[%s9236_s19 + $0x5b0] sm:$0xff]  ;;  %v8979_v20 = vld [vmem:[%s9236_s19 + $0x280] sm:$0xff] }
 0x166   : > { %v10646_v13 = vpop.f32.mrb[46].mxu0  ;;  %8345 = vmatprep.subr.bf16.mxu1 %v8344_v8  ;;  %v2144_v8 = vld [vmem:[%s14702_s3 + $0x4e8] sm:$0xff]  ;;  %v8978_v57 = vld [vmem:[%s9236_s19 + $0x630] sm:$0xff] }
 0x167   : > { %14785 = vst [vmem:[#allocation68_spill] sm:$0xff] %v10646_v13  ;;  %v10654_v0 = vpop.f32.mrb[46].mxu1  ;;  %2531 = vmatmul.mubr.f32.gmra.mrb[152].mxu0 %v8976_v40  ;;  %v10657_v56 = vpop.f32.mrb[47].mxu0  ;;  %v8350_v40 = vpack.c.bf16 %v2126_v2, %v2125_v42  ;;  %v2127_v13 = vld [vmem:[%s14702_s3 + $0x460] sm:$0xff]  ;;  %v2145_v42 = vld [vmem:[%s14702_s3 + $0x4f0] sm:$0xff] }
 0x168   : > { %14786 = vst [vmem:[#allocation69_spill] sm:$0xff] %v10654_v0  ;;  %14787 = vst [vmem:[#allocation70_spill] sm:$0xff] %v10657_v56  ;;  %v10665_v58 = vpop.f32.mrb[47].mxu1  ;;  %2636 = vmatmul.mubr.f32.gmra.mrb[152].mxu1 %v8977_v21  ;;  %2535 = vmatprep.mubr.f32.mxu0 %v8978_v57  ;;  %v8352_v0 = vpack.c.bf16 %v2144_v8, %v2143_v39  ;;  %v2128_v21 = vld [vmem:[%s14702_s3 + $0x468] sm:$0xff]  ;;  %v8981_v39 = vld [vmem:[%s9236_s19 + $0x278] sm:$0xff] }
 0x169   : > { %14788 = vst [vmem:[#allocation71_spill] sm:$0xff] %v10665_v58  ;;  %2640 = vmatprep.mubr.f32.mxu1 %v8979_v20  ;;  %8347 = vmatpush3.bf16.msra.mxu1 %v8346_v6  ;;  %v8980_v58 = vld [vmem:[%s9236_s19 + $0x628] sm:$0xff]  ;;  %v8983_v20 = vld [vmem:[%s9236_s19 + $0x2f8] sm:$0xff] }
 0x16a   : > { %v10670_v56 = vpop.f32.mrb[48].mxu0  ;;  %8349 = vmatprep.subr.bf16.mxu1 %v8348_v12  ;;  %v2146_v12 = vld [vmem:[%s14702_s3 + $0x4f8] sm:$0xff]  ;;  %v8982_v8 = vld [vmem:[%s9236_s19 + $0x6a8] sm:$0xff] }
 0x16b   : > { %14789 = vst [vmem:[#allocation72_spill] sm:$0xff] %v10670_v56  ;;  %v10678_v57 = vpop.f32.mrb[48].mxu1  ;;  %2536 = vmatmul.mubr.f32.gmra.mrb[154].mxu0 %v8980_v58  ;;  %v10681_v6 = vpop.f32.mrb[49].mxu0  ;;  %v8354_v58 = vpack.c.bf16 %v2128_v21, %v2127_v13  ;;  %v2129_v56 = vld [vmem:[%s14702_s3 + $0x470] sm:$0xff]  ;;  %v2195_v13 = vld [vmem:[%s14702_s3 + $0x680] sm:$0xff] }
 0x16c   : > { %14790 = vst [vmem:[#allocation73_spill] sm:$0xff] %v10678_v57  ;;  %14791 = vst [vmem:[#allocation74_spill] sm:$0xff] %v10681_v6  ;;  %v10689_v2 = vpop.f32.mrb[49].mxu1  ;;  %2641 = vmatmul.mubr.f32.gmra.mrb[154].mxu1 %v8981_v39  ;;  %2540 = vmatprep.mubr.f32.mxu0 %v8982_v8  ;;  %v8356_v57 = vpack.c.bf16 %v2146_v12, %v2145_v42  ;;  %v2130_v39 = vld [vmem:[%s14702_s3 + $0x478] sm:$0xff]  ;;  %v8985_v42 = vld [vmem:[%s9236_s19 + $0x2f0] sm:$0xff] }
 0x16d   : > { %14792 = vst [vmem:[#allocation75_spill] sm:$0xff] %v10689_v2  ;;  %2645 = vmatprep.mubr.f32.mxu1 %v8983_v20  ;;  %8351 = vmatpush3.bf16.msra.mxu1 %v8350_v40  ;;  %v8984_v2 = vld [vmem:[%s9236_s19 + $0x6a0] sm:$0xff]  ;;  %v8987_v20 = vld [vmem:[%s9236_s19 + $0x370] sm:$0xff] }
 0x16e   : > { %v10694_v6 = vpop.f32.mrb[50].mxu0  ;;  %8353 = vmatprep.subr.bf16.mxu1 %v8352_v0  ;;  %v2196_v0 = vld [vmem:[%s14702_s3 + $0x688] sm:$0xff]  ;;  %v8986_v12 = vld [vmem:[%s9236_s19 + $0x720] sm:$0xff] }
 0x16f   : > { %14793 = vst [vmem:[#allocation76_spill] sm:$0xff] %v10694_v6  ;;  %v10702_v8 = vpop.f32.mrb[50].mxu1  ;;  %2541 = vmatmul.mubr.f32.gmra.mrb[156].mxu0 %v8984_v2  ;;  %v10705_v40 = vpop.f32.mrb[51].mxu0  ;;  %v8358_v2 = vpack.c.bf16 %v2130_v39, %v2129_v56  ;;  %v8988_v6 = vld [vmem:[%s9236_s19 + $0x718] sm:$0xff]  ;;  %v2165_v56 = vld [vmem:[%s14702_s3 + $0x590] sm:$0xff] }
 0x170   : > { %14794 = vst [vmem:[#allocation77_spill] sm:$0xff] %v10702_v8  ;;  %14795 = vst [vmem:[#allocation78_spill] sm:$0xff] %v10705_v40  ;;  %v10713_v21 = vpop.f32.mrb[51].mxu1  ;;  %2646 = vmatmul.mubr.f32.gmra.mrb[156].mxu1 %v8985_v42  ;;  %2545 = vmatprep.mubr.f32.mxu0 %v8986_v12  ;;  %v2147_v8 = vld [vmem:[%s14702_s3 + $0x500] sm:$0xff]  ;;  %v8392_v42 = vpack.c.bf16 %v2196_v0, %v2195_v13  ;;  %v2166_v39 = vld [vmem:[%s14702_s3 + $0x598] sm:$0xff] }
 0x171   : > { %14796 = vst [vmem:[#allocation79_spill] sm:$0xff] %v10713_v21  ;;  %2650 = vmatprep.mubr.f32.mxu1 %v8987_v20  ;;  %8355 = vmatpush3.bf16.msra.mxu1 %v8354_v58  ;;  %v2148_v21 = vld [vmem:[%s14702_s3 + $0x508] sm:$0xff] }
 0x172   : > { %v10718_v40 = vpop.f32.mrb[52].mxu0  ;;  %8357 = vmatprep.subr.bf16.mxu1 %v8356_v57  ;;  %v8990_v57 = vld [vmem:[%s9236_s19 + $0x38] sm:$0xff]  ;;  %v8991_v13 = vld [vmem:[%s9236_s19 + $0x3e8] sm:$0xff] }
 0x173   : > { %14797 = vst [vmem:[#allocation80_spill] sm:$0xff] %v10718_v40  ;;  %v10726_v12 = vpop.f32.mrb[52].mxu1  ;;  %2546 = vmatmul.mubr.f32.gmra.mrb[158].mxu0 %v8988_v6  ;;  %v10729_v58 = vpop.f32.mrb[53].mxu0  ;;  %v8989_v40 = vld [vmem:[%s9236_s19 + $0x368] sm:$0xff]  ;;  %v8362_v6 = vpack.c.bf16 %v2148_v21, %v2147_v8  ;;  %v2167_v21 = vld [vmem:[%s14702_s3 + $0x5a0] sm:$0xff] }
 0x174   : > { %14798 = vst [vmem:[#allocation81_spill] sm:$0xff] %v10726_v12  ;;  %14799 = vst [vmem:[#allocation82_spill] sm:$0xff] %v10729_v58  ;;  %v10737_v20 = vpop.f32.mrb[53].mxu1  ;;  %2651 = vmatmul.mubr.f32.gmra.mrb[158].mxu1 %v8989_v40  ;;  %2760 = vmatprep.mubr.f32.mxu0 %v8990_v57  ;;  %v8364_v58 = vpack.c.bf16 %v2166_v39, %v2165_v56  ;;  %v2149_v12 = vld [vmem:[%s14702_s3 + $0x510] sm:$0xff]  ;;  %v2150_v40 = vld [vmem:[%s14702_s3 + $0x518] sm:$0xff] }
 0x175   : > { %14800 = vst [vmem:[#allocation83_spill] sm:$0xff] %v10737_v20  ;;  %2655 = vmatprep.mubr.f32.mxu1 %v8991_v13  ;;  %8359 = vmatpush3.bf16.msra.mxu1 %v8358_v2  ;;  %v8992_v20 = vld [vmem:[%s9236_s19 + $0x30] sm:$0xff]  ;;  %v2168_v2 = vld [vmem:[%s14702_s3 + $0x5a8] sm:$0xff]  ;;  %v8993_v39 = vld [vmem:[%s9236_s19 + $0x3e0] sm:$0xff] }
 0x176   : > { %v10742_v0 = vpop.f32.mrb[54].mxu0  ;;  %8393 = vmatprep.subr.bf16.mxu1 %v8392_v42  ;;  %v8994_v42 = vld [vmem:[%s9236_s19 + $0xb0] sm:$0xff]  ;;  %v8995_v13 = vld [vmem:[%s9236_s19 + $0x460] sm:$0xff] }
 0x177   : > { %14801 = vst [vmem:[#allocation84_spill] sm:$0xff] %v10742_v0  ;;  %v10750_v57 = vpop.f32.mrb[54].mxu1  ;;  %2761 = vmatmul.mubr.f32.vlgmr.msra.gmra.mrb[160].mxu0 %v8992_v20  ;;  %v10753_v8 = vpop.f32.mrb[55].mxu0  ;;  %v8366_v20 = vpack.c.bf16 %v2150_v40, %v2149_v12  ;;  %v2151_v0 = vld [vmem:[%s14702_s3 + $0x520] sm:$0xff]  ;;  %v2169_v12 = vld [vmem:[%s14702_s3 + $0x5b0] sm:$0xff] }
 0x178   : > { %14802 = vst [vmem:[#allocation85_spill] sm:$0xff] %v10750_v57  ;;  %14803 = vst [vmem:[#allocation86_spill] sm:$0xff] %v10753_v8  ;;  %v10761_v56 = vpop.f32.mrb[55].mxu1  ;;  %2656 = vmatmul.mubr.f32.gmra.mrb[160].mxu1 %v8993_v39  ;;  %2765 = vmatprep.mubr.f32.mxu0 %v8994_v42  ;;  %v8368_v57 = vpack.c.bf16 %v2168_v2, %v2167_v21  ;;  %v2152_v39 = vld [vmem:[%s14702_s3 + $0x528] sm:$0xff]  ;;  %v8997_v21 = vld [vmem:[%s9236_s19 + $0x458] sm:$0xff] }
 0x179   : > { %14804 = vst [vmem:[#allocation87_spill] sm:$0xff] %v10761_v56  ;;  %2660 = vmatprep.mubr.f32.mxu1 %v8995_v13  ;;  %8363 = vmatpush3.bf16.msra.mxu0 %v8362_v6  ;;  %v8996_v56 = vld [vmem:[%s9236_s19 + $0xa8] sm:$0xff]  ;;  %v8999_v13 = vld [vmem:[%s9236_s19 + $0x4d8] sm:$0xff] }
 0x17a   : > { %v10766_v8 = vpop.f32.mrb[56].mxu0  ;;  %8365 = vmatprep.subr.bf16.mxu0 %v8364_v58  ;;  %v2170_v58 = vld [vmem:[%s14702_s3 + $0x5b8] sm:$0xff]  ;;  %v8998_v2 = vld [vmem:[%s9236_s19 + $0x128] sm:$0xff] }
 0x17b   : > { %14805 = vst [vmem:[#allocation88_spill] sm:$0xff] %v10766_v8  ;;  %v10774_v42 = vpop.f32.mrb[56].mxu1  ;;  %2766 = vmatmul.mubr.f32.gmra.mrb[162].mxu0 %v8996_v56  ;;  %v10777_v6 = vpop.f32.mrb[57].mxu0  ;;  %v8370_v56 = vpack.c.bf16 %v2152_v39, %v2151_v0  ;;  %v2153_v8 = vld [vmem:[%s14702_s3 + $0x530] sm:$0xff]  ;;  %v2171_v0 = vld [vmem:[%s14702_s3 + $0x5c0] sm:$0xff] }
 0x17c   : > { %14806 = vst [vmem:[#allocation89_spill] sm:$0xff] %v10774_v42  ;;  %14807 = vst [vmem:[#allocation90_spill] sm:$0xff] %v10777_v6  ;;  %v10785_v40 = vpop.f32.mrb[57].mxu1  ;;  %2661 = vmatmul.mubr.f32.gmra.mrb[162].mxu1 %v8997_v21  ;;  %2770 = vmatprep.mubr.f32.mxu0 %v8998_v2  ;;  %v8372_v42 = vpack.c.bf16 %v2170_v58, %v2169_v12  ;;  %v2154_v21 = vld [vmem:[%s14702_s3 + $0x538] sm:$0xff]  ;;  %v9001_v12 = vld [vmem:[%s9236_s19 + $0x4d0] sm:$0xff] }
 0x17d   : > { %14808 = vst [vmem:[#allocation91_spill] sm:$0xff] %v10785_v40  ;;  %2665 = vmatprep.mubr.f32.mxu1 %v8999_v13  ;;  %8367 = vmatpush3.bf16.msra.mxu0 %v8366_v20  ;;  %v9000_v40 = vld [vmem:[%s9236_s19 + $0x120] sm:$0xff]  ;;  %v9003_v13 = vld [vmem:[%s9236_s19 + $0x550] sm:$0xff] }
 0x17e   : > { %v10790_v6 = vpop.f32.mrb[58].mxu0  ;;  %8369 = vmatprep.subr.bf16.mxu0 %v8368_v57  ;;  %v2172_v57 = vld [vmem:[%s14702_s3 + $0x5c8] sm:$0xff]  ;;  %v9002_v58 = vld [vmem:[%s9236_s19 + $0x1a0] sm:$0xff] }
 0x17f   : > { %14809 = vst [vmem:[#allocation92_spill] sm:$0xff] %v10790_v6  ;;  %v10798_v2 = vpop.f32.mrb[58].mxu1  ;;  %2771 = vmatmul.mubr.f32.gmra.mrb[164].mxu0 %v9000_v40  ;;  %v10801_v20 = vpop.f32.mrb[59].mxu0  ;;  %v8374_v40 = vpack.c.bf16 %v2154_v21, %v2153_v8  ;;  %v2155_v6 = vld [vmem:[%s14702_s3 + $0x540] sm:$0xff]  ;;  %v2173_v8 = vld [vmem:[%s14702_s3 + $0x5d0] sm:$0xff] }
 0x180   : > { %14810 = vst [vmem:[#allocation93_spill] sm:$0xff] %v10798_v2  ;;  %14811 = vst [vmem:[#allocation94_spill] sm:$0xff] %v10801_v20  ;;  %v10809_v39 = vpop.f32.mrb[59].mxu1  ;;  %2666 = vmatmul.mubr.f32.gmra.mrb[164].mxu1 %v9001_v12  ;;  %2775 = vmatprep.mubr.f32.mxu0 %v9002_v58  ;;  %v8376_v2 = vpack.c.bf16 %v2172_v57, %v2171_v0  ;;  %v2156_v12 = vld [vmem:[%s14702_s3 + $0x548] sm:$0xff]  ;;  %v9006_v57 = vld [vmem:[%s9236_s19 + $0x218] sm:$0xff] }
 0x181   : > { %14812 = vst [vmem:[#allocation95_spill] sm:$0xff] %v10809_v39  ;;  %2670 = vmatprep.mubr.f32.mxu1 %v9003_v13  ;;  %8371 = vmatpush3.bf16.msra.mxu0 %v8370_v56  ;;  %v9004_v39 = vld [vmem:[%s9236_s19 + $0x198] sm:$0xff]  ;;  %v9005_v0 = vld [vmem:[%s9236_s19 + $0x548] sm:$0xff] }
 0x182   : > { %v10814_v20 = vpop.f32.mrb[60].mxu0  ;;  %8373 = vmatprep.subr.bf16.mxu0 %v8372_v42  ;;  %v2174_v42 = vld [vmem:[%s14702_s3 + $0x5d8] sm:$0xff]  ;;  %v9007_v13 = vld [vmem:[%s9236_s19 + $0x5c8] sm:$0xff] }
 0x183   : > { %14813 = vst [vmem:[#allocation96_spill] sm:$0xff] %v10814_v20  ;;  %v10822_v58 = vpop.f32.mrb[60].mxu1  ;;  %2776 = vmatmul.mubr.f32.gmra.mrb[166].mxu0 %v9004_v39  ;;  %v10825_v56 = vpop.f32.mrb[61].mxu0  ;;  %v8378_v39 = vpack.c.bf16 %v2156_v12, %v2155_v6  ;;  %v2157_v20 = vld [vmem:[%s14702_s3 + $0x550] sm:$0xff]  ;;  %v2175_v6 = vld [vmem:[%s14702_s3 + $0x5e0] sm:$0xff] }
 0x184   : > { %14814 = vst [vmem:[#allocation97_spill] sm:$0xff] %v10822_v58  ;;  %14815 = vst [vmem:[#allocation98_spill] sm:$0xff] %v10825_v56  ;;  %v10833_v21 = vpop.f32.mrb[61].mxu1  ;;  %2671 = vmatmul.mubr.f32.gmra.mrb[166].mxu1 %v9005_v0  ;;  %2780 = vmatprep.mubr.f32.mxu0 %v9006_v57  ;;  %v8380_v58 = vpack.c.bf16 %v2174_v42, %v2173_v8  ;;  %v2158_v0 = vld [vmem:[%s14702_s3 + $0x558] sm:$0xff]  ;;  %v9009_v8 = vld [vmem:[%s9236_s19 + $0x5c0] sm:$0xff] }
 0x185   : > { %14816 = vst [vmem:[#allocation99_spill] sm:$0xff] %v10833_v21  ;;  %2675 = vmatprep.mubr.f32.mxu1 %v9007_v13  ;;  %8375 = vmatpush3.bf16.msra.mxu0 %v8374_v40  ;;  %v9008_v21 = vld [vmem:[%s9236_s19 + $0x210] sm:$0xff]  ;;  %v9011_v13 = vld [vmem:[%s9236_s19 + $0x640] sm:$0xff] }
 0x186   : > { %v10838_v56 = vpop.f32.mrb[62].mxu0  ;;  %8377 = vmatprep.subr.bf16.mxu0 %v8376_v2  ;;  %v2176_v2 = vld [vmem:[%s14702_s3 + $0x5e8] sm:$0xff]  ;;  %v9010_v42 = vld [vmem:[%s9236_s19 + $0x290] sm:$0xff] }
 0x187   : > { %14817 = vst [vmem:[#allocation100_spill] sm:$0xff] %v10838_v56  ;;  %v10846_v57 = vpop.f32.mrb[62].mxu1  ;;  %2781 = vmatmul.mubr.f32.gmra.mrb[168].mxu0 %v9008_v21  ;;  %v10849_v40 = vpop.f32.mrb[63].mxu0  ;;  %v8382_v21 = vpack.c.bf16 %v2158_v0, %v2157_v20  ;;  %v2159_v56 = vld [vmem:[%s14702_s3 + $0x560] sm:$0xff]  ;;  %v2177_v20 = vld [vmem:[%s14702_s3 + $0x5f0] sm:$0xff] }
 0x188   : > { %14818 = vst [vmem:[#allocation101_spill] sm:$0xff] %v10846_v57  ;;  %14819 = vst [vmem:[#allocation102_spill] sm:$0xff] %v10849_v40  ;;  %v10857_v12 = vpop.f32.mrb[63].mxu1  ;;  %2676 = vmatmul.mubr.f32.gmra.mrb[168].mxu1 %v9009_v8  ;;  %2785 = vmatprep.mubr.f32.mxu0 %v9010_v42  ;;  %v8384_v57 = vpack.c.bf16 %v2176_v2, %v2175_v6  ;;  %v2160_v8 = vld [vmem:[%s14702_s3 + $0x568] sm:$0xff]  ;;  %v9013_v6 = vld [vmem:[%s9236_s19 + $0x638] sm:$0xff] }
 0x189   : > { %14820 = vst [vmem:[#allocation103_spill] sm:$0xff] %v10857_v12  ;;  %2680 = vmatprep.mubr.f32.mxu1 %v9011_v13  ;;  %8379 = vmatpush3.bf16.msra.mxu0 %v8378_v39  ;;  %v9012_v12 = vld [vmem:[%s9236_s19 + $0x288] sm:$0xff]  ;;  %v9015_v13 = vld [vmem:[%s9236_s19 + $0x6b8] sm:$0xff] }
 0x18a   : > { %v10862_v40 = vpop.f32.mrb[64].mxu0  ;;  %8381 = vmatprep.subr.bf16.mxu0 %v8380_v58  ;;  %v2178_v58 = vld [vmem:[%s14702_s3 + $0x5f8] sm:$0xff]  ;;  %v9014_v2 = vld [vmem:[%s9236_s19 + $0x308] sm:$0xff] }
 0x18b   : > { %14821 = vst [vmem:[#allocation104_spill] sm:$0xff] %v10862_v40  ;;  %v10870_v42 = vpop.f32.mrb[64].mxu1  ;;  %2786 = vmatmul.mubr.f32.gmra.mrb[170].mxu0 %v9012_v12  ;;  %v10873_v39 = vpop.f32.mrb[65].mxu0  ;;  %v8386_v12 = vpack.c.bf16 %v2160_v8, %v2159_v56  ;;  %v2161_v40 = vld [vmem:[%s14702_s3 + $0x570] sm:$0xff] }
 0x18c   : > { %14822 = vst [vmem:[#allocation105_spill] sm:$0xff] %v10870_v42  ;;  %14823 = vst [vmem:[#allocation106_spill] sm:$0xff] %v10873_v39  ;;  %v10881_v0 = vpop.f32.mrb[65].mxu1  ;;  %2681 = vmatmul.mubr.f32.gmra.mrb[170].mxu1 %v9013_v6  ;;  %2790 = vmatprep.mubr.f32.mxu0 %v9014_v2  ;;  %v8388_v42 = vpack.c.bf16 %v2178_v58, %v2177_v20  ;;  %v2162_v6 = vld [vmem:[%s14702_s3 + $0x578] sm:$0xff]  ;;  %v9016_v2 = vld [vmem:[%s9236_s19 + $0x300] sm:$0xff] }
 0x18d   : > { %14824 = vst [vmem:[#allocation107_spill] sm:$0xff] %v10881_v0  ;;  %2685 = vmatprep.mubr.f32.mxu1 %v9015_v13  ;;  %8383 = vmatpush3.bf16.msra.mxu0 %v8382_v21  ;;  %v9017_v8 = vld [vmem:[%s9236_s19 + $0x6b0] sm:$0xff]  ;;  %v8390_v58 = vpack.c.bf16 %v2162_v6, %v2161_v40  ;;  %v10926_v6 = vld [vmem:[%s14702_s3 + $0x700] sm:$0xff] }
 0x18e   : > { %v10886_v39 = vpop.f32.mrb[66].mxu0  ;;  %8385 = vmatprep.subr.bf16.mxu0 %v8384_v57  ;;  %v9018_v57 = vld [vmem:[%s9236_s19 + $0x380] sm:$0xff]  ;;  %v9019_v20 = vld [vmem:[%s9236_s19 + $0x730] sm:$0xff] }
 0x18f   : > { %14825 = vst [vmem:[#allocation108_spill] sm:$0xff] %v10886_v39  ;;  %v10894_v0 = vpop.f32.mrb[66].mxu1  ;;  %2791 = vmatmul.mubr.f32.gmra.mrb[172].mxu0 %v9016_v2  ;;  %v10897_v21 = vpop.f32.mrb[67].mxu0  ;;  %v2179_v2 = vld [vmem:[%s14702_s3 + $0x600] sm:$0xff]  ;;  %v2197_v40 = vld [vmem:[%s14702_s3 + $0x690] sm:$0xff] }
 0x190   : > { %14826 = vst [vmem:[#allocation109_spill] sm:$0xff] %v10894_v0  ;;  %14827 = vst [vmem:[#allocation110_spill] sm:$0xff] %v10897_v21  ;;  %v10899_v56 = vpop.f32.mrb[67].mxu1  ;;  %2686 = vmatmul.mubr.f32.gmra.mrb[172].mxu1 %v9017_v8  ;;  %2795 = vmatprep.mubr.f32.mxu0 %v9018_v57  ;;  %v9020_v57 = vld [vmem:[%s9236_s19 + $0x378] sm:$0xff]  ;;  %v2181_v39 = vld [vmem:[%s14702_s3 + $0x610] sm:$0xff] }
 0x191   : > { %14828 = vst [vmem:[#allocation111_spill] sm:$0xff] %v10899_v56  ;;  %2690 = vmatprep.mubr.f32.mxu1 %v9019_v20  ;;  %8387 = vmatpush3.bf16.msra.mxu0 %v8386_v12  ;;  %v2180_v56 = vld [vmem:[%s14702_s3 + $0x608] sm:$0xff]  ;;  %v2198_v12 = vld [vmem:[%s14702_s3 + $0x698] sm:$0xff] }
 0x192   : > { %v10904_v13 = vpop.f32.mrb[68].mxu0  ;;  %8389 = vmatprep.subr.bf16.mxu0 %v8388_v42  ;;  %v8396_v0 = vpack.c.bf16 %v2198_v12, %v2197_v40  ;;  %v9025_v12 = vld [vmem:[%s9236_s19 + $0x40] sm:$0xff] }
 0x193   : > { %14829 = vst [vmem:[#allocation112_spill] sm:$0xff] %v10904_v13  ;;  %v10912_v8 = vpop.f32.mrb[68].mxu1  ;;  %2796 = vmatmul.mubr.f32.gmra.mrb[174].mxu0 %v9020_v57  ;;  %v10915_v20 = vpop.f32.mrb[69].mxu0  ;;  %v9022_v57 = vld [vmem:[%s9236_s19 + $0x3f8] sm:$0xff]  ;;  %v8394_v13 = vpack.c.bf16 %v2180_v56, %v2179_v2  ;;  %v2200_v2 = vld [vmem:[%s14702_s3 + $0x6a8] sm:$0xff] }
 0x194   : > { %14830 = vst [vmem:[#allocation113_spill] sm:$0xff] %v10912_v8  ;;  %14831 = vst [vmem:[#allocation114_spill] sm:$0xff] %v10915_v20  ;;  %v10928_v42 = vpop.f32.mrb[69].mxu1  ;;  %v9021_v8 = vld [vmem:[%s9236_s19 + $0x728] sm:$0xff]  ;;  %2800 = vmatprep.mubr.f32.mxu0 %v9022_v57 }
 0x195   : > { %14832 = vst [vmem:[#allocation115_spill] sm:$0xff] %v10928_v42  ;;  %2691 = vmatmul.mubr.f32.gmra.mrb[174].mxu1 %v9021_v8  ;;  %v9023_v20 = vld [vmem:[%s9236_s19 + $0x48] sm:$0xff]  ;;  %8391 = vmatpush3.bf16.msra.mxu0 %v8390_v58  ;;  %v2182_v8 = vld [vmem:[%s14702_s3 + $0x618] sm:$0xff]  ;;  %v2199_v58 = vld [vmem:[%s14702_s3 + $0x6a0] sm:$0xff] }
 0x196   : > { %2905 = vmatprep.mubr.f32.mxu1 %v9023_v20  ;;  %v10933_v21 = vpop.f32.mrb[70].mxu0  ;;  %7818 = vmatprep.subr.mxu0 %v10926_v6  ;;  %v9024_v20 = vld [vmem:[%s9236_s19 + $0x3f0] sm:$0xff]  ;;  %v8400_v42 = vpack.c.bf16 %v2200_v2, %v2199_v58  ;;  %v9029_v58 = vld [vmem:[%s9236_s19 + $0xb8] sm:$0xff]  ;;  %v9030_v2 = vld [vmem:[%s9236_s19 + $0x4e8] sm:$0xff] }
 0x197   : > { %14833 = vst [vmem:[#allocation116_spill] sm:$0xff] %v10933_v21  ;;  %v10942_v57 = vpop.f32.mrb[70].mxu1  ;;  %2801 = vmatmul.mubr.f32.gmra.mrb[176].mxu0 %v9024_v20  ;;  %v10945_v56 = vpop.f32.mrb[71].mxu0  ;;  %v9026_v21 = vld [vmem:[%s9236_s19 + $0x470] sm:$0xff]  ;;  %v9027_v20 = vld [vmem:[%s9236_s19 + $0xc0] sm:$0xff] }
 0x198   : > { %14834 = vst [vmem:[#allocation117_spill] sm:$0xff] %v10942_v57  ;;  %14835 = vst [vmem:[#allocation118_spill] sm:$0xff] %v10945_v56  ;;  %v10953_v40 = vpop.f32.mrb[71].mxu1  ;;  %2805 = vmatprep.mubr.f32.mxu0 %v9026_v21  ;;  %v8398_v56 = vpack.c.bf16 %v2182_v8, %v2181_v39  ;;  %v2201_v39 = vld [vmem:[%s14702_s3 + $0x6b0] sm:$0xff] }
 0x199   : > { %14836 = vst [vmem:[#allocation119_spill] sm:$0xff] %v10953_v40  ;;  %2906 = vmatmul.mubr.f32.vlgmr.msra.gmra.mrb[176].mxu1 %v9025_v12  ;;  %v2184_v12 = vld [vmem:[%s14702_s3 + $0x628] sm:$0xff]  ;;  %v2185_v40 = vld [vmem:[%s14702_s3 + $0x630] sm:$0xff] }
 0x19a   : > { %8395 = vmatpush3.bf16.msra.mxu1 %v8394_v13  ;;  %2910 = vmatprep.mubr.f32.mxu1 %v9027_v20  ;;  %v10958_v57 = vpop.f32.mrb[72].mxu0  ;;  %v9028_v13 = vld [vmem:[%s9236_s19 + $0x468] sm:$0xff] }
 0x19b   : > { %14837 = vst [vmem:[#allocation120_spill] sm:$0xff] %v10958_v57  ;;  %8397 = vmatprep.subr.bf16.mxu1 %v8396_v0  ;;  %v10966_v21 = vpop.f32.mrb[72].mxu1  ;;  %2806 = vmatmul.mubr.f32.gmra.mrb[178].mxu0 %v9028_v13  ;;  %v10969_v20 = vpop.f32.mrb[73].mxu0  ;;  %v2202_v0 = vld [vmem:[%s14702_s3 + $0x6b8] sm:$0xff]  ;;  %v8402_v13 = vpack.c.bf16 %v2184_v12, %v2183_v43  ;;  %v2203_v43 = vld [vmem:[%s14702_s3 + $0x6c0] sm:$0xff] }
 0x19c   : > { %14838 = vst [vmem:[#allocation121_spill] sm:$0xff] %v10966_v21  ;;  %14839 = vst [vmem:[#allocation122_spill] sm:$0xff] %v10969_v20  ;;  %v10977_v8 = vpop.f32.mrb[73].mxu1  ;;  %2810 = vmatprep.mubr.f32.mxu0 %v9030_v2  ;;  %v9031_v21 = vld [vmem:[%s9236_s19 + $0x138] sm:$0xff]  ;;  %v8404_v57 = vpack.c.bf16 %v2202_v0, %v2201_v39  ;;  %v9034_v39 = vld [vmem:[%s9236_s19 + $0x560] sm:$0xff] }
 0x19d   : > { %14840 = vst [vmem:[#allocation123_spill] sm:$0xff] %v10977_v8  ;;  %2911 = vmatmul.mubr.f32.gmra.mrb[178].mxu1 %v9029_v58  ;;  %v2186_v58 = vld [vmem:[%s14702_s3 + $0x638] sm:$0xff]  ;;  %v9032_v8 = vld [vmem:[%s9236_s19 + $0x4e0] sm:$0xff]  ;;  %v9035_v0 = vld [vmem:[%s9236_s19 + $0x1b0] sm:$0xff] }
 0x19e   : > { %2915 = vmatprep.mubr.f32.mxu1 %v9031_v21  ;;  %8399 = vmatpush3.bf16.msra.mxu1 %v8398_v56  ;;  %v10982_v20 = vpop.f32.mrb[74].mxu0  ;;  %v9033_v21 = vld [vmem:[%s9236_s19 + $0x130] sm:$0xff] }
 0x19f   : > { %14841 = vst [vmem:[#allocation124_spill] sm:$0xff] %v10982_v20  ;;  %8401 = vmatprep.subr.bf16.mxu1 %v8400_v42  ;;  %v10990_v2 = vpop.f32.mrb[74].mxu1  ;;  %2811 = vmatmul.mubr.f32.gmra.mrb[180].mxu0 %v9032_v8  ;;  %v10993_v56 = vpop.f32.mrb[75].mxu0  ;;  %v2204_v42 = vld [vmem:[%s14702_s3 + $0x6c8] sm:$0xff]  ;;  %v8406_v8 = vpack.c.bf16 %v2186_v58, %v2185_v40  ;;  %v2187_v20 = vld [vmem:[%s14702_s3 + $0x640] sm:$0xff]  ;;  %v2205_v40 = vld [vmem:[%s14702_s3 + $0x6d0] sm:$0xff] }
 0x1a0   : > { %14842 = vst [vmem:[#allocation125_spill] sm:$0xff] %v10990_v2  ;;  %14843 = vst [vmem:[#allocation126_spill] sm:$0xff] %v10993_v56  ;;  %v11001_v12 = vpop.f32.mrb[75].mxu1  ;;  %2815 = vmatprep.mubr.f32.mxu0 %v9034_v39  ;;  %v8408_v2 = vpack.c.bf16 %v2204_v42, %v2203_v43  ;;  %v9037_v43 = vld [vmem:[%s9236_s19 + $0x1a8] sm:$0xff]  ;;  %v9038_v42 = vld [vmem:[%s9236_s19 + $0x5d8] sm:$0xff] }
 0x1a1   : > { %14844 = vst [vmem:[#allocation127_spill] sm:$0xff] %v11001_v12  ;;  %2916 = vmatmul.mubr.f32.gmra.mrb[180].mxu1 %v9033_v21  ;;  %v2188_v21 = vld [vmem:[%s14702_s3 + $0x648] sm:$0xff]  ;;  %v9036_v12 = vld [vmem:[%s9236_s19 + $0x558] sm:$0xff] }
 0x1a2   : > { %2920 = vmatprep.mubr.f32.mxu1 %v9035_v0  ;;  %8403 = vmatpush3.bf16.msra.mxu1 %v8402_v13  ;;  %v11006_v56 = vpop.f32.mrb[76].mxu0  ;;  %v9039_v0 = vld [vmem:[%s9236_s19 + $0x228] sm:$0xff] }
 0x1a3   : > { %14845 = vst [vmem:[#allocation128_spill] sm:$0xff] %v11006_v56  ;;  %8405 = vmatprep.subr.bf16.mxu1 %v8404_v57  ;;  %v11014_v39 = vpop.f32.mrb[76].mxu1  ;;  %2816 = vmatmul.mubr.f32.gmra.mrb[182].mxu0 %v9036_v12  ;;  %v11017_v13 = vpop.f32.mrb[77].mxu0  ;;  %v2206_v57 = vld [vmem:[%s14702_s3 + $0x6d8] sm:$0xff]  ;;  %v8410_v12 = vpack.c.bf16 %v2188_v21, %v2187_v20  ;;  %v2189_v56 = vld [vmem:[%s14702_s3 + $0x650] sm:$0xff]  ;;  %v2207_v20 = vld [vmem:[%s14702_s3 + $0x6e0] sm:$0xff] }
 0x1a4   : > { %14846 = vst [vmem:[#allocation129_spill] sm:$0xff] %v11014_v39  ;;  %14847 = vst [vmem:[#allocation130_spill] sm:$0xff] %v11017_v13  ;;  %v11025_v58 = vpop.f32.mrb[77].mxu1  ;;  %2820 = vmatprep.mubr.f32.mxu0 %v9038_v42  ;;  %v8412_v39 = vpack.c.bf16 %v2206_v57, %v2205_v40  ;;  %v9041_v40 = vld [vmem:[%s9236_s19 + $0x220] sm:$0xff]  ;;  %v9042_v57 = vld [vmem:[%s9236_s19 + $0x650] sm:$0xff] }
 0x1a5   : > { %14848 = vst [vmem:[#allocation131_spill] sm:$0xff] %v11025_v58  ;;  %2921 = vmatmul.mubr.f32.gmra.mrb[182].mxu1 %v9037_v43  ;;  %v2190_v43 = vld [vmem:[%s14702_s3 + $0x658] sm:$0xff]  ;;  %v9040_v58 = vld [vmem:[%s9236_s19 + $0x5d0] sm:$0xff] }
 0x1a6   : > { %2925 = vmatprep.mubr.f32.mxu1 %v9039_v0  ;;  %8407 = vmatpush3.bf16.msra.mxu1 %v8406_v8  ;;  %v11030_v13 = vpop.f32.mrb[78].mxu0  ;;  %v9043_v0 = vld [vmem:[%s9236_s19 + $0x2a0] sm:$0xff] }
 0x1a7   : > { %14849 = vst [vmem:[#allocation132_spill] sm:$0xff] %v11030_v13  ;;  %8409 = vmatprep.subr.bf16.mxu1 %v8408_v2  ;;  %v11038_v42 = vpop.f32.mrb[78].mxu1  ;;  %2821 = vmatmul.mubr.f32.gmra.mrb[184].mxu0 %v9040_v58  ;;  %v11041_v8 = vpop.f32.mrb[79].mxu0  ;;  %v2208_v2 = vld [vmem:[%s14702_s3 + $0x6e8] sm:$0xff]  ;;  %v8414_v58 = vpack.c.bf16 %v2190_v43, %v2189_v56  ;;  %v2191_v13 = vld [vmem:[%s14702_s3 + $0x660] sm:$0xff]  ;;  %v2209_v56 = vld [vmem:[%s14702_s3 + $0x6f0] sm:$0xff] }
 0x1a8   : > { %14850 = vst [vmem:[#allocation133_spill] sm:$0xff] %v11038_v42  ;;  %14851 = vst [vmem:[#allocation134_spill] sm:$0xff] %v11041_v8  ;;  %v11049_v21 = vpop.f32.mrb[79].mxu1  ;;  %2825 = vmatprep.mubr.f32.mxu0 %v9042_v57  ;;  %v8416_v42 = vpack.c.bf16 %v2208_v2, %v2207_v20  ;;  %v9045_v20 = vld [vmem:[%s9236_s19 + $0x298] sm:$0xff]  ;;  %v9046_v2 = vld [vmem:[%s9236_s19 + $0x6c8] sm:$0xff] }
 0x1a9   : > { %14852 = vst [vmem:[#allocation135_spill] sm:$0xff] %v11049_v21  ;;  %2926 = vmatmul.mubr.f32.gmra.mrb[184].mxu1 %v9041_v40  ;;  %v2192_v40 = vld [vmem:[%s14702_s3 + $0x668] sm:$0xff] }
 0x1aa   : > { %2930 = vmatprep.mubr.f32.mxu1 %v9043_v0  ;;  %8411 = vmatpush3.bf16.msra.mxu1 %v8410_v12  ;;  %v11054_v8 = vpop.f32.mrb[80].mxu0  ;;  %v9044_v21 = vld [vmem:[%s9236_s19 + $0x648] sm:$0xff]  ;;  %v9047_v0 = vld [vmem:[%s9236_s19 + $0x318] sm:$0xff] }
 0x1ab   : > { %14853 = vst [vmem:[#allocation136_spill] sm:$0xff] %v11054_v8  ;;  %8413 = vmatprep.subr.bf16.mxu1 %v8412_v39  ;;  %v11062_v57 = vpop.f32.mrb[80].mxu1  ;;  %2826 = vmatmul.mubr.f32.gmra.mrb[186].mxu0 %v9044_v21  ;;  %v11065_v12 = vpop.f32.mrb[81].mxu0  ;;  %v2210_v39 = vld [vmem:[%s14702_s3 + $0x6f8] sm:$0xff]  ;;  %v8418_v21 = vpack.c.bf16 %v2192_v40, %v2191_v13  ;;  %v2193_v8 = vld [vmem:[%s14702_s3 + $0x670] sm:$0xff]  ;;  %v9050_v40 = vld [vmem:[%s9236_s19 + $0x740] sm:$0xff] }
 0x1ac   : > { %14854 = vst [vmem:[#allocation137_spill] sm:$0xff] %v11062_v57  ;;  %14855 = vst [vmem:[#allocation138_spill] sm:$0xff] %v11065_v12  ;;  %v11073_v43 = vpop.f32.mrb[81].mxu1  ;;  %2830 = vmatprep.mubr.f32.mxu0 %v9046_v2  ;;  %v8420_v57 = vpack.c.bf16 %v2210_v39, %v2209_v56  ;;  %v9048_v2 = vld [vmem:[%s9236_s19 + $0x6c0] sm:$0xff]  ;;  %v9051_v56 = vld [vmem:[%s9236_s19 + $0x390] sm:$0xff] }
 0x1ad   : > { %14856 = vst [vmem:[#allocation139_spill] sm:$0xff] %v11073_v43  ;;  %2931 = vmatmul.mubr.f32.gmra.mrb[186].mxu1 %v9045_v20  ;;  %v2194_v20 = vld [vmem:[%s14702_s3 + $0x678] sm:$0xff] }
 0x1ae   : > { %2935 = vmatprep.mubr.f32.mxu1 %v9047_v0  ;;  %8415 = vmatpush3.bf16.msra.mxu1 %v8414_v58  ;;  %v11078_v12 = vpop.f32.mrb[82].mxu0  ;;  %v8422_v39 = vpack.c.bf16 %v2194_v20, %v2193_v8  ;;  %v9055_v8 = vld [vmem:[%s9236_s19 + $0x408] sm:$0xff]  ;;  %v9056_v20 = vld [vmem:[%s9236_s19 + $0x50] sm:$0xff] }
 0x1af   : > { %14857 = vst [vmem:[#allocation140_spill] sm:$0xff] %v11078_v12  ;;  %8417 = vmatprep.subr.bf16.mxu1 %v8416_v42  ;;  %v11086_v43 = vpop.f32.mrb[82].mxu1  ;;  %2831 = vmatmul.mubr.f32.gmra.mrb[188].mxu0 %v9048_v2  ;;  %v11089_v58 = vpop.f32.mrb[83].mxu0  ;;  %v9049_v42 = vld [vmem:[%s9236_s19 + $0x310] sm:$0xff] }
 0x1b0   : > { %14858 = vst [vmem:[#allocation141_spill] sm:$0xff] %v11086_v43  ;;  %14859 = vst [vmem:[#allocation142_spill] sm:$0xff] %v11089_v58  ;;  %v11091_v13 = vpop.f32.mrb[83].mxu1  ;;  %2835 = vmatprep.mubr.f32.mxu0 %v9050_v40  ;;  %v9052_v58 = vld [vmem:[%s9236_s19 + $0x738] sm:$0xff]  ;;  %v9053_v40 = vld [vmem:[%s9236_s19 + $0x388] sm:$0xff] }
 0x1b1   : > { %14860 = vst [vmem:[#allocation143_spill] sm:$0xff] %v11091_v13  ;;  %2936 = vmatmul.mubr.f32.gmra.mrb[188].mxu1 %v9049_v42  ;;  %v9122_v43 = vld [vmem:[%s9236_s19 + $0x160] sm:$0xff]  ;;  %v9126_v12 = vld [vmem:[%s9236_s19 + $0x250] sm:$0xff] }
 0x1b2   : > { %2940 = vmatprep.mubr.f32.mxu1 %v9051_v56  ;;  %8419 = vmatpush3.bf16.msra.mxu1 %v8418_v21  ;;  %v11096_v0 = vpop.f32.mrb[84].mxu0  ;;  %v9054_v56 = vld [vmem:[%s9236_s19 + $0x58] sm:$0xff] }
 0x1b3   : > { %14861 = vst [vmem:[#allocation144_spill] sm:$0xff] %v11096_v0  ;;  %8421 = vmatprep.subr.bf16.mxu1 %v8420_v57  ;;  %v11098_v2 = vpop.f32.mrb[84].mxu1  ;;  %2836 = vmatmul.mubr.f32.gmra.mrb[190].mxu0 %v9052_v58  ;;  %v11101_v13 = vpop.f32.mrb[85].mxu0 }
 0x1b4   : > { %14862 = vst [vmem:[#allocation145_spill] sm:$0xff] %v11098_v2  ;;  %14863 = vst [vmem:[#allocation146_spill] sm:$0xff] %v11101_v13  ;;  %v11103_v42 = vpop.f32.mrb[85].mxu1  ;;  %3050 = vmatprep.mubr.f32.mxu0 %v9054_v56  ;;  %v9058_v56 = vld [vmem:[%s9236_s19 + $0xd0] sm:$0xff]  ;;  %v9112_v13 = vld [vmem:[%s9236_s19 + $0x6e0] sm:$0xff] }
 0x1b5   : > { %14864 = vst [vmem:[#allocation147_spill] sm:$0xff] %v11103_v42  ;;  %2941 = vmatmul.mubr.f32.gmra.mrb[190].mxu1 %v9053_v40  ;;  %v9057_v40 = vld [vmem:[%s9236_s19 + $0x400] sm:$0xff]  ;;  %v9113_v2 = vld [vmem:[%s9236_s19 + $0x330] sm:$0xff] }
 0x1b6   : > { %2945 = vmatprep.mubr.f32.mxu1 %v9055_v8  ;;  %8423 = vmatpush3.bf16.msra.mxu1 %v8422_v39  ;;  %v11108_v57 = vpop.f32.mrb[86].mxu0  ;;  %v9059_v8 = vld [vmem:[%s9236_s19 + $0x480] sm:$0xff] }
 0x1b7   : > { %14865 = vst [vmem:[#allocation148_spill] sm:$0xff] %v11108_v57  ;;  %v11110_v21 = vpop.f32.mrb[86].mxu1  ;;  %3051 = vmatmul.mubr.f32.vlgmr.msra.gmra.mrb[192].mxu0 %v9056_v20  ;;  %v11113_v58 = vpop.f32.mrb[87].mxu0  ;;  %v9060_v20 = vld [vmem:[%s9236_s19 + $0xc8] sm:$0xff]  ;;  %v9109_v57 = vld [vmem:[%s9236_s19 + $0x2b8] sm:$0xff] }
 0x1b8   : > { %14866 = vst [vmem:[#allocation149_spill] sm:$0xff] %v11110_v21  ;;  %14867 = vst [vmem:[#allocation150_spill] sm:$0xff] %v11113_v58  ;;  %v11115_v42 = vpop.f32.mrb[87].mxu1  ;;  %3055 = vmatprep.mubr.f32.mxu0 %v9058_v56  ;;  %7819 = vmatpush3.msra.mxu0 %v10926_v6  ;;  %v9062_v56 = vld [vmem:[%s9236_s19 + $0x148] sm:$0xff] }
 0x1b9   : > { %14868 = vst [vmem:[#allocation151_spill] sm:$0xff] %v11115_v42  ;;  %2946 = vmatmul.mubr.f32.gmra.mrb[192].mxu1 %v9057_v40  ;;  %v9061_v40 = vld [vmem:[%s9236_s19 + $0x478] sm:$0xff] }
 0x1ba   : > { %2950 = vmatprep.mubr.f32.mxu1 %v9059_v8  ;;  %v11121_v39 = vpop.f32.mrb[88].mxu0  ;;  %v9063_v8 = vld [vmem:[%s9236_s19 + $0x4f8] sm:$0xff] }
 0x1bb   : > { %14869 = vst [vmem:[#allocation152_spill] sm:$0xff] %v11121_v39  ;;  %v11123_v21 = vpop.f32.mrb[88].mxu1  ;;  %3056 = vmatmul.mubr.f32.gmra.mrb[194].mxu0 %v9060_v20  ;;  %v11126_v58 = vpop.f32.mrb[89].mxu0 }
 0x1bc   : > { %14870 = vst [vmem:[#allocation153_spill] sm:$0xff] %v11123_v21  ;;  %14871 = vst [vmem:[#allocation154_spill] sm:$0xff] %v11126_v58  ;;  %v11128_v42 = vpop.f32.mrb[89].mxu1  ;;  %3060 = vmatprep.mubr.f32.mxu0 %v9062_v56  ;;  %v9064_v21 = vld [vmem:[%s9236_s19 + $0x140] sm:$0xff]  ;;  %v9067_v56 = vld [vmem:[%s9236_s19 + $0x570] sm:$0xff] }
 0x1bd   : > { %14872 = vst [vmem:[#allocation155_spill] sm:$0xff] %v11128_v42  ;;  %2951 = vmatmul.mubr.f32.gmra.mrb[194].mxu1 %v9061_v40  ;;  %v9065_v42 = vld [vmem:[%s9236_s19 + $0x4f0] sm:$0xff]  ;;  %v9066_v40 = vld [vmem:[%s9236_s19 + $0x1c0] sm:$0xff] }
 0x1be   : > { %2955 = vmatprep.mubr.f32.mxu1 %v9063_v8  ;;  %v11133_v6 = vpop.f32.mrb[90].mxu0 }
 0x1bf   : > { %14873 = vst [vmem:[#allocation156_spill] sm:$0xff] %v11133_v6  ;;  %v11135_v39 = vpop.f32.mrb[90].mxu1  ;;  %3061 = vmatmul.mubr.f32.gmra.mrb[196].mxu0 %v9064_v21  ;;  %v11138_v20 = vpop.f32.mrb[91].mxu0 }
 0x1c0   : > { %14874 = vst [vmem:[#allocation157_spill] sm:$0xff] %v11135_v39  ;;  %14875 = vst [vmem:[#allocation158_spill] sm:$0xff] %v11138_v20  ;;  %v11140_v58 = vpop.f32.mrb[91].mxu1  ;;  %3065 = vmatprep.mubr.f32.mxu0 %v9066_v40  ;;  %v9068_v39 = vld [vmem:[%s9236_s19 + $0x1b8] sm:$0xff]  ;;  %v9071_v40 = vld [vmem:[%s9236_s19 + $0x5e8] sm:$0xff] }
 0x1c1   : > { %14876 = vst [vmem:[#allocation159_spill] sm:$0xff] %v11140_v58  ;;  %2956 = vmatmul.mubr.f32.gmra.mrb[196].mxu1 %v9065_v42  ;;  %v9069_v58 = vld [vmem:[%s9236_s19 + $0x568] sm:$0xff]  ;;  %v9070_v42 = vld [vmem:[%s9236_s19 + $0x238] sm:$0xff] }
 0x1c2   : > { %2960 = vmatprep.mubr.f32.mxu1 %v9067_v56  ;;  %v11145_v8 = vpop.f32.mrb[92].mxu0 }
 0x1c3   : > { %14877 = vst [vmem:[#allocation160_spill] sm:$0xff] %v11145_v8  ;;  %v11147_v6 = vpop.f32.mrb[92].mxu1  ;;  %3066 = vmatmul.mubr.f32.gmra.mrb[198].mxu0 %v9068_v39  ;;  %v11150_v21 = vpop.f32.mrb[93].mxu0 }
 0x1c4   : > { %14878 = vst [vmem:[#allocation161_spill] sm:$0xff] %v11147_v6  ;;  %14879 = vst [vmem:[#allocation162_spill] sm:$0xff] %v11150_v21  ;;  %v11152_v20 = vpop.f32.mrb[93].mxu1  ;;  %3070 = vmatprep.mubr.f32.mxu0 %v9070_v42  ;;  %v9072_v6 = vld [vmem:[%s9236_s19 + $0x230] sm:$0xff]  ;;  %v9075_v42 = vld [vmem:[%s9236_s19 + $0x660] sm:$0xff] }
 0x1c5   : > { %14880 = vst [vmem:[#allocation163_spill] sm:$0xff] %v11152_v20  ;;  %2961 = vmatmul.mubr.f32.gmra.mrb[198].mxu1 %v9069_v58  ;;  %v9073_v20 = vld [vmem:[%s9236_s19 + $0x5e0] sm:$0xff]  ;;  %v9074_v58 = vld [vmem:[%s9236_s19 + $0x2b0] sm:$0xff] }
 0x1c6   : > { %2965 = vmatprep.mubr.f32.mxu1 %v9071_v40  ;;  %v11157_v56 = vpop.f32.mrb[94].mxu0 }
 0x1c7   : > { %14881 = vst [vmem:[#allocation164_spill] sm:$0xff] %v11157_v56  ;;  %v11159_v8 = vpop.f32.mrb[94].mxu1  ;;  %3071 = vmatmul.mubr.f32.gmra.mrb[200].mxu0 %v9072_v6  ;;  %v11162_v39 = vpop.f32.mrb[95].mxu0 }
 0x1c8   : > { %14882 = vst [vmem:[#allocation165_spill] sm:$0xff] %v11159_v8  ;;  %14883 = vst [vmem:[#allocation166_spill] sm:$0xff] %v11162_v39  ;;  %v11164_v21 = vpop.f32.mrb[95].mxu1  ;;  %3075 = vmatprep.mubr.f32.mxu0 %v9074_v58  ;;  %v9076_v8 = vld [vmem:[%s9236_s19 + $0x2a8] sm:$0xff]  ;;  %v9079_v58 = vld [vmem:[%s9236_s19 + $0x6d8] sm:$0xff] }
 0x1c9   : > { %14884 = vst [vmem:[#allocation167_spill] sm:$0xff] %v11164_v21  ;;  %2966 = vmatmul.mubr.f32.gmra.mrb[200].mxu1 %v9073_v20  ;;  %v9077_v21 = vld [vmem:[%s9236_s19 + $0x658] sm:$0xff]  ;;  %v9078_v20 = vld [vmem:[%s9236_s19 + $0x328] sm:$0xff] }
 0x1ca   : > { %2970 = vmatprep.mubr.f32.mxu1 %v9075_v42  ;;  %v11169_v40 = vpop.f32.mrb[96].mxu0 }
 0x1cb   : > { %14885 = vst [vmem:[#allocation168_spill] sm:$0xff] %v11169_v40  ;;  %v11171_v56 = vpop.f32.mrb[96].mxu1  ;;  %3076 = vmatmul.mubr.f32.gmra.mrb[202].mxu0 %v9076_v8  ;;  %v11174_v6 = vpop.f32.mrb[97].mxu0 }
 0x1cc   : > { %14886 = vst [vmem:[#allocation169_spill] sm:$0xff] %v11171_v56  ;;  %14887 = vst [vmem:[#allocation170_spill] sm:$0xff] %v11174_v6  ;;  %v11176_v39 = vpop.f32.mrb[97].mxu1  ;;  %3080 = vmatprep.mubr.f32.mxu0 %v9078_v20  ;;  %v9080_v56 = vld [vmem:[%s9236_s19 + $0x320] sm:$0xff]  ;;  %v9083_v20 = vld [vmem:[%s9236_s19 + $0x750] sm:$0xff] }
 0x1cd   : > { %14888 = vst [vmem:[#allocation171_spill] sm:$0xff] %v11176_v39  ;;  %2971 = vmatmul.mubr.f32.gmra.mrb[202].mxu1 %v9077_v21  ;;  %v9081_v39 = vld [vmem:[%s9236_s19 + $0x6d0] sm:$0xff]  ;;  %v9082_v21 = vld [vmem:[%s9236_s19 + $0x3a0] sm:$0xff] }
 0x1ce   : > { %2975 = vmatprep.mubr.f32.mxu1 %v9079_v58  ;;  %v11181_v42 = vpop.f32.mrb[98].mxu0 }
 0x1cf   : > { %14889 = vst [vmem:[#allocation172_spill] sm:$0xff] %v11181_v42  ;;  %v11183_v40 = vpop.f32.mrb[98].mxu1  ;;  %3081 = vmatmul.mubr.f32.gmra.mrb[204].mxu0 %v9080_v56  ;;  %v11186_v8 = vpop.f32.mrb[99].mxu0 }
 0x1d0   : > { %14890 = vst [vmem:[#allocation173_spill] sm:$0xff] %v11183_v40  ;;  %14891 = vst [vmem:[#allocation174_spill] sm:$0xff] %v11186_v8  ;;  %v11188_v6 = vpop.f32.mrb[99].mxu1  ;;  %3085 = vmatprep.mubr.f32.mxu0 %v9082_v21  ;;  %v9084_v40 = vld [vmem:[%s9236_s19 + $0x398] sm:$0xff]  ;;  %v9087_v21 = vld [vmem:[%s9236_s19 + $0x68] sm:$0xff] }
 0x1d1   : > { %14892 = vst [vmem:[#allocation175_spill] sm:$0xff] %v11188_v6  ;;  %2976 = vmatmul.mubr.f32.gmra.mrb[204].mxu1 %v9081_v39  ;;  %v9085_v6 = vld [vmem:[%s9236_s19 + $0x748] sm:$0xff]  ;;  %v9086_v39 = vld [vmem:[%s9236_s19 + $0x418] sm:$0xff] }
 0x1d2   : > { %2980 = vmatprep.mubr.f32.mxu1 %v9083_v20  ;;  %v11193_v58 = vpop.f32.mrb[100].mxu0 }
 0x1d3   : > { %14893 = vst [vmem:[#allocation176_spill] sm:$0xff] %v11193_v58  ;;  %v11195_v42 = vpop.f32.mrb[100].mxu1  ;;  %3086 = vmatmul.mubr.f32.gmra.mrb[206].mxu0 %v9084_v40  ;;  %v11198_v56 = vpop.f32.mrb[101].mxu0 }
 0x1d4   : > { %14894 = vst [vmem:[#allocation177_spill] sm:$0xff] %v11195_v42  ;;  %14895 = vst [vmem:[#allocation178_spill] sm:$0xff] %v11198_v56  ;;  %v11200_v8 = vpop.f32.mrb[101].mxu1  ;;  %3090 = vmatprep.mubr.f32.mxu0 %v9086_v39  ;;  %v9088_v42 = vld [vmem:[%s9236_s19 + $0x410] sm:$0xff]  ;;  %v9091_v39 = vld [vmem:[%s9236_s19 + $0xe0] sm:$0xff] }
 0x1d5   : > { %14896 = vst [vmem:[#allocation179_spill] sm:$0xff] %v11200_v8  ;;  %2981 = vmatmul.mubr.f32.gmra.mrb[206].mxu1 %v9085_v6  ;;  %v9089_v8 = vld [vmem:[%s9236_s19 + $0x60] sm:$0xff]  ;;  %v9090_v6 = vld [vmem:[%s9236_s19 + $0x490] sm:$0xff] }
 0x1d6   : > { %3195 = vmatprep.mubr.f32.mxu1 %v9087_v21  ;;  %v11205_v20 = vpop.f32.mrb[102].mxu0 }
 0x1d7   : > { %14897 = vst [vmem:[#allocation180_spill] sm:$0xff] %v11205_v20  ;;  %v11207_v58 = vpop.f32.mrb[102].mxu1  ;;  %3091 = vmatmul.mubr.f32.gmra.mrb[208].mxu0 %v9088_v42  ;;  %v11210_v40 = vpop.f32.mrb[103].mxu0 }
 0x1d8   : > { %14898 = vst [vmem:[#allocation181_spill] sm:$0xff] %v11207_v58  ;;  %14899 = vst [vmem:[#allocation182_spill] sm:$0xff] %v11210_v40  ;;  %v11212_v56 = vpop.f32.mrb[103].mxu1  ;;  %3095 = vmatprep.mubr.f32.mxu0 %v9090_v6  ;;  %v9092_v58 = vld [vmem:[%s9236_s19 + $0x488] sm:$0xff]  ;;  %v9095_v6 = vld [vmem:[%s9236_s19 + $0x158] sm:$0xff] }
 0x1d9   : > { %14900 = vst [vmem:[#allocation183_spill] sm:$0xff] %v11212_v56  ;;  %3196 = vmatmul.mubr.f32.vlgmr.msra.gmra.mrb[208].mxu1 %v9089_v8  ;;  %v9093_v56 = vld [vmem:[%s9236_s19 + $0xd8] sm:$0xff]  ;;  %v9094_v8 = vld [vmem:[%s9236_s19 + $0x508] sm:$0xff] }
 0x1da   : > { %3200 = vmatprep.mubr.f32.mxu1 %v9091_v39  ;;  %v11217_v21 = vpop.f32.mrb[104].mxu0 }
 0x1db   : > { %14901 = vst [vmem:[#allocation184_spill] sm:$0xff] %v11217_v21  ;;  %v11219_v20 = vpop.f32.mrb[104].mxu1  ;;  %3096 = vmatmul.mubr.f32.gmra.mrb[210].mxu0 %v9092_v58  ;;  %v11222_v42 = vpop.f32.mrb[105].mxu0 }
 0x1dc   : > { %14902 = vst [vmem:[#allocation185_spill] sm:$0xff] %v11219_v20  ;;  %14903 = vst [vmem:[#allocation186_spill] sm:$0xff] %v11222_v42  ;;  %v11224_v40 = vpop.f32.mrb[105].mxu1  ;;  %3100 = vmatprep.mubr.f32.mxu0 %v9094_v8  ;;  %v9096_v20 = vld [vmem:[%s9236_s19 + $0x500] sm:$0xff]  ;;  %v9099_v8 = vld [vmem:[%s9236_s19 + $0x1d0] sm:$0xff] }
 0x1dd   : > { %14904 = vst [vmem:[#allocation187_spill] sm:$0xff] %v11224_v40  ;;  %3201 = vmatmul.mubr.f32.gmra.mrb[210].mxu1 %v9093_v56  ;;  %v9097_v40 = vld [vmem:[%s9236_s19 + $0x150] sm:$0xff]  ;;  %v9098_v56 = vld [vmem:[%s9236_s19 + $0x580] sm:$0xff] }
 0x1de   : > { %3205 = vmatprep.mubr.f32.mxu1 %v9095_v6  ;;  %v11229_v39 = vpop.f32.mrb[106].mxu0 }
 0x1df   : > { %14905 = vst [vmem:[#allocation188_spill] sm:$0xff] %v11229_v39  ;;  %v11231_v21 = vpop.f32.mrb[106].mxu1  ;;  %3101 = vmatmul.mubr.f32.gmra.mrb[212].mxu0 %v9096_v20  ;;  %v11234_v58 = vpop.f32.mrb[107].mxu0 }
 0x1e0   : > { %14906 = vst [vmem:[#allocation189_spill] sm:$0xff] %v11231_v21  ;;  %14907 = vst [vmem:[#allocation190_spill] sm:$0xff] %v11234_v58  ;;  %v11236_v42 = vpop.f32.mrb[107].mxu1  ;;  %3105 = vmatprep.mubr.f32.mxu0 %v9098_v56  ;;  %v9100_v21 = vld [vmem:[%s9236_s19 + $0x578] sm:$0xff]  ;;  %v9103_v56 = vld [vmem:[%s9236_s19 + $0x248] sm:$0xff] }
 0x1e1   : > { %14908 = vst [vmem:[#allocation191_spill] sm:$0xff] %v11236_v42  ;;  %3206 = vmatmul.mubr.f32.gmra.mrb[212].mxu1 %v9097_v40  ;;  %v9101_v42 = vld [vmem:[%s9236_s19 + $0x1c8] sm:$0xff]  ;;  %v9102_v40 = vld [vmem:[%s9236_s19 + $0x5f8] sm:$0xff] }
 0x1e2   : > { %3210 = vmatprep.mubr.f32.mxu1 %v9099_v8  ;;  %v11241_v6 = vpop.f32.mrb[108].mxu0 }
 0x1e3   : > { %14909 = vst [vmem:[#allocation192_spill] sm:$0xff] %v11241_v6  ;;  %v11243_v39 = vpop.f32.mrb[108].mxu1  ;;  %3106 = vmatmul.mubr.f32.gmra.mrb[214].mxu0 %v9100_v21  ;;  %v11246_v20 = vpop.f32.mrb[109].mxu0 }
 0x1e4   : > { %14910 = vst [vmem:[#allocation193_spill] sm:$0xff] %v11243_v39  ;;  %14911 = vst [vmem:[#allocation194_spill] sm:$0xff] %v11246_v20  ;;  %v11248_v58 = vpop.f32.mrb[109].mxu1  ;;  %3110 = vmatprep.mubr.f32.mxu0 %v9102_v40  ;;  %v9104_v39 = vld [vmem:[%s9236_s19 + $0x5f0] sm:$0xff]  ;;  %v9107_v40 = vld [vmem:[%s9236_s19 + $0x2c0] sm:$0xff] }
 0x1e5   : > { %14912 = vst [vmem:[#allocation195_spill] sm:$0xff] %v11248_v58  ;;  %3211 = vmatmul.mubr.f32.gmra.mrb[214].mxu1 %v9101_v42  ;;  %v9105_v58 = vld [vmem:[%s9236_s19 + $0x240] sm:$0xff]  ;;  %v9106_v42 = vld [vmem:[%s9236_s19 + $0x670] sm:$0xff] }
 0x1e6   : > { %3215 = vmatprep.mubr.f32.mxu1 %v9103_v56  ;;  %v11253_v8 = vpop.f32.mrb[110].mxu0 }
 0x1e7   : > { %14913 = vst [vmem:[#allocation196_spill] sm:$0xff] %v11253_v8  ;;  %v11255_v6 = vpop.f32.mrb[110].mxu1  ;;  %3111 = vmatmul.mubr.f32.gmra.mrb[216].mxu0 %v9104_v39  ;;  %v11258_v21 = vpop.f32.mrb[111].mxu0 }
 0x1e8   : > { %14914 = vst [vmem:[#allocation197_spill] sm:$0xff] %v11255_v6  ;;  %14915 = vst [vmem:[#allocation198_spill] sm:$0xff] %v11258_v21  ;;  %v11260_v20 = vpop.f32.mrb[111].mxu1  ;;  %3115 = vmatprep.mubr.f32.mxu0 %v9106_v42  ;;  %v9108_v6 = vld [vmem:[%s9236_s19 + $0x668] sm:$0xff]  ;;  %v9111_v42 = vld [vmem:[%s9236_s19 + $0x338] sm:$0xff] }
 0x1e9   : > { %14916 = vst [vmem:[#allocation199_spill] sm:$0xff] %v11260_v20  ;;  %3216 = vmatmul.mubr.f32.gmra.mrb[216].mxu1 %v9105_v58  ;;  %v9110_v20 = vld [vmem:[%s9236_s19 + $0x6e8] sm:$0xff] }
 0x1ea   : > { %3220 = vmatprep.mubr.f32.mxu1 %v9107_v40  ;;  %v11265_v56 = vpop.f32.mrb[112].mxu0 }
 0x1eb   : > { %14917 = vst [vmem:[#allocation200_spill] sm:$0xff] %v11265_v56  ;;  %v7159_v8 = vpop.f32.mrb[112].mxu1  ;;  %3116 = vmatmul.mubr.f32.gmra.mrb[218].mxu0 %v9108_v6  ;;  %v11268_v39 = vpop.f32.mrb[113].mxu0 }
 0x1ec   : > { %14918 = vst [vmem:[#allocation201_spill] sm:$0xff] %v11268_v39  ;;  %v7160_v21 = vpop.f32.mrb[113].mxu1  ;;  %3120 = vmatprep.mubr.f32.mxu0 %v9110_v20 }
 0x1ed   : > { %3221 = vmatmul.mubr.f32.gmra.mrb[218].mxu1 %v9109_v57  ;;  %v11272_v58 = vadd.f32 %v7160_v21, %v7159_v8  ;;  %v9114_v57 = vld [vmem:[%s9236_s19 + $0x760] sm:$0xff]  ;;  %v9115_v8 = vld [vmem:[%s9236_s19 + $0x3b0] sm:$0xff] }
 0x1ee   : > { %3225 = vmatprep.mubr.f32.mxu1 %v9111_v42  ;;  %v11275_v40 = vpop.f32.mrb[114].mxu0 }
 0x1ef   : > { %14919 = vst [vmem:[#allocation202_spill] sm:$0xff] %v11275_v40  ;;  %v7162_v56 = vpop.f32.mrb[114].mxu1  ;;  %3121 = vmatmul.mubr.f32.gmra.mrb[220].mxu0 %v9112_v13  ;;  %v11278_v6 = vpop.f32.mrb[115].mxu0  ;;  %v9116_v13 = vld [vmem:[%s9236_s19 + $0x758] sm:$0xff] }
 0x1f0   : > { %14920 = vst [vmem:[#allocation203_spill] sm:$0xff] %v11278_v6  ;;  %v7163_v39 = vpop.f32.mrb[115].mxu1  ;;  %3125 = vmatprep.mubr.f32.mxu0 %v9114_v57  ;;  %v9118_v57 = vld [vmem:[%s9236_s19 + $0x70] sm:$0xff] }
 0x1f1   : > { %3226 = vmatmul.mubr.f32.gmra.mrb[220].mxu1 %v9113_v2  ;;  %v11282_v20 = vadd.f32 %v7163_v39, %v7162_v56  ;;  %v9117_v2 = vld [vmem:[%s9236_s19 + $0x3a8] sm:$0xff] }
 0x1f2   : > { %3230 = vmatprep.mubr.f32.mxu1 %v9115_v8  ;;  %v11285_v21 = vpop.f32.mrb[116].mxu0  ;;  %v9119_v39 = vld [vmem:[%s9236_s19 + $0x428] sm:$0xff] }
 0x1f3   : > { %14921 = vst [vmem:[#allocation204_spill] sm:$0xff] %v11285_v21  ;;  %v7165_v42 = vpop.f32.mrb[116].mxu1  ;;  %3126 = vmatmul.mubr.f32.gmra.mrb[222].mxu0 %v9116_v13  ;;  %v11288_v6 = vpop.f32.mrb[117].mxu0  ;;  %v9120_v13 = vld [vmem:[%s9236_s19 + $0xe8] sm:$0xff] }
 0x1f4   : > { %14922 = vst [vmem:[#allocation205_spill] sm:$0xff] %v11288_v6  ;;  %v7166_v40 = vpop.f32.mrb[117].mxu1  ;;  %7820 = vmatprep.mubr.msk.f32.mxu0 %vm2212_vm0, %v9118_v57 }
 0x1f5   : > { %3231 = vmatmul.mubr.f32.gmra.mrb[222].mxu1 %v9117_v2  ;;  %v11293_v56 = vadd.f32 %v7166_v40, %v7165_v42  ;;  %v9121_v2 = vld [vmem:[%s9236_s19 + $0x420] sm:$0xff] }
 0x1f6   : > { %3235 = vmatprep.mubr.f32.mxu1 %v9119_v39  ;;  %v11296_v8 = vpop.f32.mrb[118].mxu0  ;;  %v9123_v42 = vld [vmem:[%s9236_s19 + $0x4a0] sm:$0xff] }
 0x1f7   : > { %14923 = vst [vmem:[#allocation206_spill] sm:$0xff] %v11296_v8  ;;  %v7168_v21 = vpop.f32.mrb[118].mxu1  ;;  %7821 = vmatmul.mubr.msk.f32.vlgmr.msra.gmra.mrb[224].mxu0 %vm2212_vm0, %v9120_v13  ;;  %v11300_v6 = vpop.f32.mrb[119].mxu0  ;;  %v9124_v13 = vld [vmem:[%s9236_s19 + $0x1d8] sm:$0xff] }
 0x1f8   : > { %14924 = vst [vmem:[#allocation207_spill] sm:$0xff] %v11300_v6  ;;  %v7169_v0 = vpop.f32.mrb[119].mxu1  ;;  %7823 = vmatprep.mubr.msk.f32.mxu0 %vm2212_vm0, %v9122_v43 }
 0x1f9   : > { %3236 = vmatmul.mubr.f32.gmra.mrb[224].mxu1 %v9121_v2  ;;  %v11305_v40 = vadd.f32 %v7169_v0, %v7168_v21  ;;  %v9125_v2 = vld [vmem:[%s9236_s19 + $0x498] sm:$0xff] }
 0x1fa   : > { %3240 = vmatprep.mubr.f32.mxu1 %v9123_v42  ;;  %v11308_v57 = vpop.f32.mrb[120].mxu0  ;;  %v9127_v0 = vld [vmem:[%s9236_s19 + $0x518] sm:$0xff] }
 0x1fb   : > { %14925 = vst [vmem:[#allocation208_spill] sm:$0xff] %v11308_v57  ;;  %v7171_v39 = vpop.f32.mrb[120].mxu1  ;;  %7824 = vmatmul.mubr.msk.f32.gmra.mrb[226].mxu0 %vm2212_vm0, %v9124_v13  ;;  %v11312_v6 = vpop.f32.mrb[121].mxu0  ;;  %v9128_v13 = vld [vmem:[%s9236_s19 + $0x2c8] sm:$0xff] }
 0x1fc   : > { %14926 = vst [vmem:[#allocation209_spill] sm:$0xff] %v11312_v6  ;;  %v7172_v8 = vpop.f32.mrb[121].mxu1  ;;  %7826 = vmatprep.mubr.msk.f32.mxu0 %vm2212_vm0, %v9126_v12 }
 0x1fd   : > { %3241 = vmatmul.mubr.f32.gmra.mrb[226].mxu1 %v9125_v2  ;;  %v11317_v43 = vadd.f32 %v7172_v8, %v7171_v39  ;;  %v9129_v2 = vld [vmem:[%s9236_s19 + $0x510] sm:$0xff] }
 0x1fe   : > { %3245 = vmatprep.mubr.f32.mxu1 %v9127_v0  ;;  %v11320_v21 = vpop.f32.mrb[122].mxu0  ;;  %v9131_v8 = vld [vmem:[%s9236_s19 + $0x590] sm:$0xff] }
 0x1ff   : > { %14927 = vst [vmem:[#allocation210_spill] sm:$0xff] %v11320_v21  ;;  %v7174_v42 = vpop.f32.mrb[122].mxu1  ;;  %7827 = vmatmul.mubr.msk.f32.gmra.mrb[228].mxu0 %vm2212_vm0, %v9128_v13  ;;  %v11324_v6 = vpop.f32.mrb[123].mxu0  ;;  %v9132_v13 = vld [vmem:[%s9236_s19 + $0x3b8] sm:$0xff] }
 0x200   : > { %14928 = vst [vmem:[#allocation211_spill] sm:$0xff] %v11324_v6  ;;  %v7175_v57 = vpop.f32.mrb[123].mxu1  ;;  %7829 = vmatprep.mubr.msk.f32.mxu0 %vm2212_vm0, %v9130_v61 }
 0x201   : > { %3246 = vmatmul.mubr.f32.gmra.mrb[228].mxu1 %v9129_v2  ;;  %v11329_v12 = vadd.f32 %v7175_v57, %v7174_v42  ;;  %v9133_v2 = vld [vmem:[%s9236_s19 + $0x588] sm:$0xff] }
 0x202   : > { %3250 = vmatprep.mubr.f32.mxu1 %v9131_v8  ;;  %v11332_v39 = vpop.f32.mrb[124].mxu0  ;;  %v9135_v57 = vld [vmem:[%s9236_s19 + $0x608] sm:$0xff] }
 0x203   : > { %14929 = vst [vmem:[#allocation212_spill] sm:$0xff] %v11332_v39  ;;  %v7177_v0 = vpop.f32.mrb[124].mxu1  ;;  %7830 = vmatmul.mubr.msk.f32.gmra.mrb[230].mxu0 %vm2212_vm0, %v9132_v13  ;;  %v11336_v6 = vpop.f32.mrb[125].mxu0  ;;  %v9136_v13 = vld [vmem:[%s9236_s19 + $0x4a8] sm:$0xff] }
 0x204   : > { %14930 = vst [vmem:[#allocation213_spill] sm:$0xff] %v11336_v6  ;;  %v7178_v21 = vpop.f32.mrb[125].mxu1  ;;  %7832 = vmatprep.mubr.msk.f32.mxu0 %vm2212_vm0, %v9134_v15 }
 0x205   : > { %3251 = vmatmul.mubr.f32.gmra.mrb[230].mxu1 %v9133_v2  ;;  %v11341_v61 = vadd.f32 %v7178_v21, %v7177_v0  ;;  %v9137_v2 = vld [vmem:[%s9236_s19 + $0x600] sm:$0xff] }
 0x206   : > { %3255 = vmatprep.mubr.f32.mxu1 %v9135_v57  ;;  %v11344_v42 = vpop.f32.mrb[126].mxu0  ;;  %v9139_v21 = vld [vmem:[%s9236_s19 + $0x680] sm:$0xff] }
 0x207   : > { %14931 = vst [vmem:[#allocation214_spill] sm:$0xff] %v11344_v42  ;;  %v7180_v8 = vpop.f32.mrb[126].mxu1  ;;  %7833 = vmatmul.mubr.msk.f32.gmra.mrb[232].mxu0 %vm2212_vm0, %v9136_v13  ;;  %v11348_v6 = vpop.f32.mrb[127].mxu0  ;;  %v9140_v13 = vld [vmem:[%s9236_s19 + $0x598] sm:$0xff] }
 0x208   : > { %14932 = vst [vmem:[#allocation215_spill] sm:$0xff] %v11348_v6  ;;  %v7181_v39 = vpop.f32.mrb[127].mxu1  ;;  %7835 = vmatprep.mubr.msk.f32.mxu0 %vm2212_vm0, %v9138_v50 }
 0x209   : > { %3256 = vmatmul.mubr.f32.gmra.mrb[232].mxu1 %v9137_v2  ;;  %v11353_v15 = vadd.f32 %v7181_v39, %v7180_v8  ;;  %v9142_v2 = vld [vmem:[%s9236_s19 + $0x610] sm:$0xff]  ;;  %v9143_v39 = vld [vmem:[%s9236_s19 + $0x6f8] sm:$0xff] }
 0x20a   : > { %3260 = vmatprep.mubr.f32.mxu1 %v9139_v21  ;;  %v7239_v0 = vpop.f32.mrb[128].mxu0 }
 0x20b   : > { %v7183_v57 = vpop.f32.mrb[128].mxu1  ;;  %v7240_v42 = vpop.f32.mrb[129].mxu0  ;;  %7836 = vmatmul.mubr.msk.f32.gmra.mrb[234].mxu0 %vm2212_vm0, %v9140_v13 }
 0x20c   : > { %v7184_v6 = vpop.f32.mrb[129].mxu1  ;;  %v7241_v59 = vadd.f32 %v7240_v42, %v7239_v0  ;;  %7838 = vmatprep.mubr.msk.f32.mxu0 %vm2212_vm0, %v9142_v2  ;;  %v9144_v42 = vld [vmem:[%s9236_s19 + $0x688] sm:$0xff]  ;;  %v9147_v2 = vld [vmem:[%s9236_s19 + $0x770] sm:$0xff] }
 0x20d   : > { %3261 = vmatmul.mubr.f32.gmra.mrb[234].mxu1 %v9141_v14  ;;  %v11361_v50 = vadd.f32 %v7184_v6, %v7183_v57  ;;  %v9146_v6 = vld [vmem:[%s9236_s19 + $0x700] sm:$0xff] }
 0x20e   : > { %3265 = vmatprep.mubr.f32.mxu1 %v9143_v39  ;;  %v11365_v8 = vadd.f32 %v7241_v59, %v11272_v58  ;;  %v7242_v21 = vpop.f32.mrb[130].mxu0 }
 0x20f   : > { %v7186_v30 = vpop.f32.mrb[130].mxu1  ;;  %v7243_v13 = vpop.f32.mrb[131].mxu0  ;;  %7839 = vmatmul.mubr.msk.f32.gmra.mrb[236].mxu0 %vm2212_vm0, %v9144_v42  ;;  %v9149_v42 = vld [vmem:[%s9236_s19 + $0x768] sm:$0xff] }
 0x210   : > { %v7187_v14 = vpop.f32.mrb[131].mxu1  ;;  %v7244_v0 = vadd.f32 %v7243_v13, %v7242_v21  ;;  %7841 = vmatprep.mubr.msk.f32.mxu0 %vm2212_vm0, %v9146_v6 }
 0x211   : > { %3266 = vmatmul.mubr.f32.gmra.mrb[236].mxu1 %v9145_v60  ;;  %v11372_v57 = vadd.f32 %v7187_v14, %v7186_v30 }
 0x212   : > { %3270 = vmatprep.mubr.f32.mxu1 %v9147_v2  ;;  %v11376_v59 = vadd.f32 %v7244_v0, %v11282_v20  ;;  %v7245_v58 = vpop.f32.mrb[132].mxu0 }
 0x213   : > { %v7189_v39 = vpop.f32.mrb[132].mxu1  ;;  %v7246_v19 = vpop.f32.mrb[133].mxu0  ;;  %7842 = vmatmul.mubr.msk.f32.gmra.mrb[238].mxu0 %vm2212_vm0, %v9148_v31 }
 0x214   : > { %v7190_v21 = vpop.f32.mrb[133].mxu1  ;;  %v7247_v13 = vadd.f32 %v7246_v19, %v7245_v58 }
 0x215   : > { %3271 = vmatmul.mubr.f32.gmra.mrb[238].mxu1 %v9149_v42  ;;  %v7191_v60 = vadd.f32 %v7190_v21, %v7189_v39 }
 0x216   : > { %4001 = vmatprep.mubr.f32.mxu1 %v14933_v54  ;;  %v2483_v30 = vadd.f32 %v7247_v13, %v11293_v56  ;;  %v7248_v14 = vpop.f32.mrb[134].mxu0 }
 0x217   : > { %v7192_v6 = vpop.f32.mrb[134].mxu1  ;;  %v7249_v2 = vpop.f32.mrb[135].mxu0 }
 0x218   : > { %v7193_v20 = vpop.f32.mrb[135].mxu1  ;;  %v7250_v0 = vadd.f32 %v7249_v2, %v7248_v14 }
 0x219   : > { %v7194_v18 = vadd.f32 %v7193_v20, %v7192_v6 }
 0x21a   : > { %v2488_v10 = vadd.f32 %v7250_v0, %v11305_v40  ;;  %v7251_v34 = vpop.f32.mrb[136].mxu0 }
 0x21b   : > { %v7195_v45 = vpop.f32.mrb[136].mxu1  ;;  %v7252_v31 = vpop.f32.mrb[137].mxu0 }
 0x21c   : > { %v7196_v1 = vpop.f32.mrb[137].mxu1  ;;  %v7253_v19 = vadd.f32 %v7252_v31, %v7251_v34 }
 0x21d   : > { %v7197_v58 = vadd.f32 %v7196_v1, %v7195_v45 }
 0x21e   : > { %v2493_v39 = vadd.f32 %v7253_v19, %v11317_v43  ;;  %v7254_v21 = vpop.f32.mrb[138].mxu0 }
 0x21f   : > { %v7198_v42 = vpop.f32.mrb[138].mxu1  ;;  %v7255_v63 = vpop.f32.mrb[139].mxu0 }
 0x220   : > { %v7199_v56 = vpop.f32.mrb[139].mxu1  ;;  %v7256_v13 = vadd.f32 %v7255_v63, %v7254_v21 }
 0x221   : > { %v7200_v51 = vadd.f32 %v7199_v56, %v7198_v42 }
 0x222   : > { %v11386_v41 = vadd.f32 %v7256_v13, %v11329_v12  ;;  %v7257_v14 = vpop.f32.mrb[140].mxu0 }
 0x223   : > { %v7201_v6 = vpop.f32.mrb[140].mxu1  ;;  %v7258_v40 = vpop.f32.mrb[141].mxu0 }
 0x224   : > { %v7202_v2 = vpop.f32.mrb[141].mxu1  ;;  %v7259_v20 = vadd.f32 %v7258_v40, %v7257_v14 }
 0x225   : > { %v11388_v0 = vadd.f32 %v7202_v2, %v7201_v6 }
 0x226   : > { %v11391_v1 = vadd.f32 %v7259_v20, %v11341_v61  ;;  %v7260_v45 = vpop.f32.mrb[142].mxu0 }
 0x227   : > { %v7204_v34 = vpop.f32.mrb[142].mxu1  ;;  %v7261_v43 = vpop.f32.mrb[143].mxu0 }
 0x228   : > { %v7205_v31 = vpop.f32.mrb[143].mxu1  ;;  %v7262_v19 = vadd.f32 %v7261_v43, %v7260_v45 }
 0x229   : > { %v11393_v63 = vadd.f32 %v7205_v31, %v7204_v34 }
 0x22a   : > { %v11396_v12 = vadd.f32 %v7262_v19, %v11353_v15  ;;  %v7263_v21 = vpop.f32.mrb[144].mxu0 }
 0x22b   : > { %v7319_v42 = vpop.f32.mrb[144].mxu1  ;;  %v7264_v56 = vpop.f32.mrb[145].mxu0 }
 0x22c   : > { %v7265_v13 = vadd.f32 %v7264_v56, %v7263_v21  ;;  %v7320_v14 = vpop.f32.mrb[145].mxu1 }
 0x22d   : > { %v7321_v6 = vadd.f32 %v7320_v14, %v7319_v42 }
 0x22e   : > { %v11399_v40 = vadd.f32 %v7265_v13, %v11361_v50  ;;  %v7266_v61 = vpop.f32.mrb[146].mxu0 }
 0x22f   : > { %v2618_v2 = vadd.f32 %v7321_v6, %v11365_v8  ;;  %v7322_v20 = vpop.f32.mrb[146].mxu1  ;;  %v7267_v28 = vpop.f32.mrb[147].mxu0 }
 0x230   : > { %v7268_v45 = vadd.f32 %v7267_v28, %v7266_v61  ;;  %v7323_v34 = vpop.f32.mrb[147].mxu1 }
 0x231   : > { %v7324_v43 = vadd.f32 %v7323_v34, %v7322_v20 }
 0x232   : > { %v11403_v15 = vadd.f32 %v7268_v45, %v11372_v57  ;;  %v7269_v31 = vpop.f32.mrb[148].mxu0 }
 0x233   : > { %v2623_v19 = vadd.f32 %v7324_v43, %v11376_v59  ;;  %v7325_v21 = vpop.f32.mrb[148].mxu1  ;;  %v7270_v56 = vpop.f32.mrb[149].mxu0 }
 0x234   : > { %v7271_v42 = vadd.f32 %v7270_v56, %v7269_v31  ;;  %v7326_v14 = vpop.f32.mrb[149].mxu1 }
 0x235   : > { %v7327_v50 = vadd.f32 %v7326_v14, %v7325_v21 }
 0x236   : > { %v11406_v13 = vadd.f32 %v7271_v42, %v7191_v60  ;;  %v7272_v35 = vpop.f32.mrb[150].mxu0 }
 0x237   : > { %v2628_v8 = vadd.f32 %v7327_v50, %v2483_v30  ;;  %v7328_v6 = vpop.f32.mrb[150].mxu1  ;;  %v7273_v53 = vpop.f32.mrb[151].mxu0 }
 0x238   : > { %v7274_v28 = vadd.f32 %v7273_v53, %v7272_v35  ;;  %v7329_v61 = vpop.f32.mrb[151].mxu1 }
 0x239   : > { %v7330_v20 = vadd.f32 %v7329_v61, %v7328_v6 }
 0x23a   : > { %v11408_v34 = vadd.f32 %v7274_v28, %v7194_v18  ;;  %v7275_v57 = vpop.f32.mrb[152].mxu0 }
 0x23b   : > { %v2633_v45 = vadd.f32 %v7330_v20, %v2488_v10  ;;  %v7331_v26 = vpop.f32.mrb[152].mxu1  ;;  %v7276_v59 = vpop.f32.mrb[153].mxu0 }
 0x23c   : > { %v7277_v43 = vadd.f32 %v7276_v59, %v7275_v57  ;;  %v7332_v25 = vpop.f32.mrb[153].mxu1 }
 0x23d   : > { %v7333_v31 = vadd.f32 %v7332_v25, %v7331_v26 }
 0x23e   : > { %v11410_v56 = vadd.f32 %v7277_v43, %v7197_v58  ;;  %v7278_v60 = vpop.f32.mrb[154].mxu0 }
 0x23f   : > { %v2638_v21 = vadd.f32 %v7333_v31, %v2493_v39  ;;  %v7334_v42 = vpop.f32.mrb[154].mxu1  ;;  %v7279_v30 = vpop.f32.mrb[155].mxu0 }
 0x240   : > { %v7280_v14 = vadd.f32 %v7279_v30, %v7278_v60  ;;  %v7335_v50 = vpop.f32.mrb[155].mxu1 }
 0x241   : > { %v7336_v53 = vadd.f32 %v7335_v50, %v7334_v42 }
 0x242   : > { %v11412_v35 = vadd.f32 %v7280_v14, %v7200_v51  ;;  %v7281_v18 = vpop.f32.mrb[156].mxu0 }
 0x243   : > { %v2643_v6 = vadd.f32 %v7336_v53, %v11386_v41  ;;  %v7337_v10 = vpop.f32.mrb[156].mxu1  ;;  %v7282_v28 = vpop.f32.mrb[157].mxu0 }
 0x244   : > { %v7283_v61 = vadd.f32 %v7282_v28, %v7281_v18  ;;  %v7338_v20 = vpop.f32.mrb[157].mxu1 }
 0x245   : > { %v7339_v57 = vadd.f32 %v7338_v20, %v7337_v10 }
 0x246   : > { %v11416_v25 = vadd.f32 %v7283_v61, %v11388_v0  ;;  %v7284_v26 = vpop.f32.mrb[158].mxu0 }
 0x247   : > { %v2648_v58 = vadd.f32 %v7339_v57, %v11391_v1  ;;  %v7340_v39 = vpop.f32.mrb[158].mxu1  ;;  %v7285_v59 = vpop.f32.mrb[159].mxu0 }
 0x248   : > { %v7286_v43 = vadd.f32 %v7285_v59, %v7284_v26  ;;  %v7341_v31 = vpop.f32.mrb[159].mxu1 }
 0x249   : > { %v7342_v51 = vadd.f32 %v7341_v31, %v7340_v39 }
 0x24a   : > { %v11420_v60 = vadd.f32 %v7286_v43, %v11393_v63  ;;  %v7399_v41 = vpop.f32.mrb[160].mxu0 }
 0x24b   : > { %v2653_v42 = vadd.f32 %v7342_v51, %v11396_v12  ;;  %v7343_v30 = vpop.f32.mrb[160].mxu1  ;;  %v7400_v14 = vpop.f32.mrb[161].mxu0 }
 0x24c   : > { %v7344_v50 = vpop.f32.mrb[161].mxu1  ;;  %v7401_v53 = vadd.f32 %v7400_v14, %v7399_v41 }
 0x24d   : > { %v7345_v0 = vadd.f32 %v7344_v50, %v7343_v30 }
 0x24e   : > { %v11423_v18 = vadd.f32 %v7401_v53, %v2618_v2  ;;  %v7402_v10 = vpop.f32.mrb[162].mxu0 }
 0x24f   : > { %v2658_v1 = vadd.f32 %v7345_v0, %v11399_v40  ;;  %v7346_v28 = vpop.f32.mrb[162].mxu1  ;;  %v7403_v61 = vpop.f32.mrb[163].mxu0 }
 0x250   : > { %v7347_v20 = vpop.f32.mrb[163].mxu1  ;;  %v7404_v57 = vadd.f32 %v7403_v61, %v7402_v10 }
 0x251   : > { %v7348_v26 = vadd.f32 %v7347_v20, %v7346_v28 }
 0x252   : > { %v11426_v63 = vadd.f32 %v7404_v57, %v2623_v19  ;;  %v7405_v39 = vpop.f32.mrb[164].mxu0 }
 0x253   : > { %v2663_v12 = vadd.f32 %v7348_v26, %v11403_v15  ;;  %v7349_v59 = vpop.f32.mrb[164].mxu1  ;;  %v7406_v43 = vpop.f32.mrb[165].mxu0 }
 0x254   : > { %v7350_v31 = vpop.f32.mrb[165].mxu1  ;;  %v7407_v51 = vadd.f32 %v7406_v43, %v7405_v39 }
 0x255   : > { %v7351_v41 = vadd.f32 %v7350_v31, %v7349_v59 }
 0x256   : > { %v11429_v2 = vadd.f32 %v7407_v51, %v2628_v8  ;;  %v7408_v30 = vpop.f32.mrb[166].mxu0 }
 0x257   : > { %v11432_v40 = vadd.f32 %v7351_v41, %v11406_v13  ;;  %v7352_v14 = vpop.f32.mrb[166].mxu1  ;;  %v7409_v50 = vpop.f32.mrb[167].mxu0 }
 0x258   : > { %v7353_v53 = vpop.f32.mrb[167].mxu1  ;;  %v7410_v0 = vadd.f32 %v7409_v50, %v7408_v30 }
 0x259   : > { %v7354_v19 = vadd.f32 %v7353_v53, %v7352_v14 }
 0x25a   : > { %v11434_v10 = vadd.f32 %v7410_v0, %v2633_v45  ;;  %v7411_v28 = vpop.f32.mrb[168].mxu0 }
 0x25b   : > { %v11437_v15 = vadd.f32 %v7354_v19, %v11408_v34  ;;  %v7355_v61 = vpop.f32.mrb[168].mxu1  ;;  %v7412_v20 = vpop.f32.mrb[169].mxu0 }
 0x25c   : > { %v7356_v57 = vpop.f32.mrb[169].mxu1  ;;  %v7413_v8 = vadd.f32 %v7412_v20, %v7411_v28 }
 0x25d   : > { %v7357_v26 = vadd.f32 %v7356_v57, %v7355_v61 }
 0x25e   : > { %v11439_v39 = vadd.f32 %v7413_v8, %v2638_v21  ;;  %v7414_v13 = vpop.f32.mrb[170].mxu0 }
 0x25f   : > { %v11442_v59 = vadd.f32 %v7357_v26, %v11410_v56  ;;  %v7358_v43 = vpop.f32.mrb[170].mxu1  ;;  %v7415_v31 = vpop.f32.mrb[171].mxu0 }
 0x260   : > { %v7359_v51 = vpop.f32.mrb[171].mxu1  ;;  %v7416_v45 = vadd.f32 %v7415_v31, %v7414_v13 }
 0x261   : > { %v7360_v41 = vadd.f32 %v7359_v51, %v7358_v43 }
 0x262   : > { %v11444_v30 = vadd.f32 %v7416_v45, %v2643_v6  ;;  %v7417_v34 = vpop.f32.mrb[172].mxu0 }
 0x263   : > { %v11447_v14 = vadd.f32 %v7360_v41, %v11412_v35  ;;  %v7361_v50 = vpop.f32.mrb[172].mxu1  ;;  %v7418_v53 = vpop.f32.mrb[173].mxu0 }
 0x264   : > { %v7362_v0 = vpop.f32.mrb[173].mxu1  ;;  %v7419_v21 = vadd.f32 %v7418_v53, %v7417_v34 }
 0x265   : > { %v7363_v19 = vadd.f32 %v7362_v0, %v7361_v50 }
 0x266   : > { %v11449_v28 = vadd.f32 %v7419_v21, %v2648_v58  ;;  %v7420_v56 = vpop.f32.mrb[174].mxu0 }
 0x267   : > { %v11452_v61 = vadd.f32 %v7363_v19, %v11416_v25  ;;  %v7421_v57 = vpop.f32.mrb[175].mxu0 }
 0x268   : > { %v7364_v20 = vpop.f32.mrb[174].mxu1  ;;  %v7422_v6 = vadd.f32 %v7421_v57, %v7420_v56 }
 0x269   : > { %v7365_v8 = vpop.f32.mrb[175].mxu1 }
 0x26a   : > { %v7366_v26 = vadd.f32 %v7365_v8, %v7364_v20  ;;  %v11454_v13 = vadd.f32 %v7422_v6, %v2653_v42  ;;  %v7423_v35 = vpop.f32.mrb[176].mxu0 }
 0x26b   : > { %v7424_v51 = vpop.f32.mrb[177].mxu0 }
 0x26c   : > { %v11457_v43 = vadd.f32 %v7366_v26, %v11420_v60  ;;  %v7479_v31 = vpop.f32.mrb[176].mxu1  ;;  %v7425_v45 = vadd.f32 %v7424_v51, %v7423_v35 }
 0x26d   : > { %v7480_v58 = vpop.f32.mrb[177].mxu1 }
 0x26e   : > { %v7481_v41 = vadd.f32 %v7480_v58, %v7479_v31  ;;  %v11459_v34 = vadd.f32 %v7425_v45, %v2658_v1  ;;  %v7426_v25 = vpop.f32.mrb[178].mxu0 }
 0x26f   : > { %v7427_v0 = vpop.f32.mrb[179].mxu0 }
 0x270   : > { %v11462_v50 = vadd.f32 %v7481_v41, %v11423_v18  ;;  %v7482_v53 = vpop.f32.mrb[178].mxu1  ;;  %v7428_v21 = vadd.f32 %v7427_v0, %v7426_v25  ;;  %v587_v18 = vld [vmem:[%s14700_s1 + $0x80] sm:$0xff] }
 0x271   : > { %v7483_v42 = vpop.f32.mrb[179].mxu1  ;;  %7876 = vmatprep.mubr.f32.mxu0 %v587_v18 }
 0x272   : > { %v7484_v19 = vadd.f32 %v7483_v42, %v7482_v53  ;;  %v11464_v56 = vadd.f32 %v7428_v21, %v2663_v12  ;;  %v7429_v60 = vpop.f32.mrb[180].mxu0 }
 0x273   : > { %v7430_v8 = vpop.f32.mrb[181].mxu0 }
 0x274   : > { %v11467_v20 = vadd.f32 %v7484_v19, %v11426_v63  ;;  %v7485_v57 = vpop.f32.mrb[180].mxu1  ;;  %v7431_v6 = vadd.f32 %v7430_v8, %v7429_v60 }
 0x275   : > { %v7486_v1 = vpop.f32.mrb[181].mxu1 }
 0x276   : > { %v7487_v26 = vadd.f32 %v7486_v1, %v7485_v57  ;;  %v11473_v35 = vadd.f32 %v7431_v6, %v11432_v40  ;;  %v7432_v31 = vpop.f32.mrb[182].mxu0 }
 0x277   : > { %v7433_v63 = vpop.f32.mrb[183].mxu0 }
 0x278   : > { %v11476_v12 = vadd.f32 %v7487_v26, %v11429_v2  ;;  %v7488_v51 = vpop.f32.mrb[182].mxu1  ;;  %v7434_v45 = vadd.f32 %v7433_v63, %v7432_v31 }
 0x279   : > { %v7489_v58 = vpop.f32.mrb[183].mxu1 }
 0x27a   : > { %v7490_v41 = vadd.f32 %v7489_v58, %v7488_v51  ;;  %v11479_v25 = vadd.f32 %v7434_v45, %v11437_v15  ;;  %v7435_v53 = vpop.f32.mrb[184].mxu0 }
 0x27b   : > { %v7436_v42 = vpop.f32.mrb[185].mxu0 }
 0x27c   : > { %v11482_v0 = vadd.f32 %v7490_v41, %v11434_v10  ;;  %v7491_v21 = vpop.f32.mrb[184].mxu1  ;;  %v7437_v40 = vadd.f32 %v7436_v42, %v7435_v53 }
 0x27d   : > { %v7492_v19 = vpop.f32.mrb[185].mxu1 }
 0x27e   : > { %v7493_v60 = vadd.f32 %v7492_v19, %v7491_v21  ;;  %v11485_v2 = vadd.f32 %v7437_v40, %v11442_v59  ;;  %v7438_v57 = vpop.f32.mrb[186].mxu0 }
 0x27f   : > { %v7439_v1 = vpop.f32.mrb[187].mxu0 }
 0x280   : > { %v11488_v8 = vadd.f32 %v7493_v60, %v11439_v39  ;;  %v7494_v6 = vpop.f32.mrb[186].mxu1  ;;  %v7440_v15 = vadd.f32 %v7439_v1, %v7438_v57 }
 0x281   : > { %v7495_v18 = vpop.f32.mrb[187].mxu1 }
 0x282   : > { %v7496_v26 = vadd.f32 %v7495_v18, %v7494_v6  ;;  %v11491_v10 = vadd.f32 %v7440_v15, %v11447_v14  ;;  %v7441_v31 = vpop.f32.mrb[188].mxu0 }
 0x283   : > { %v7442_v45 = vpop.f32.mrb[189].mxu0 }
 0x284   : > { %v11494_v51 = vadd.f32 %v7496_v26, %v11444_v30  ;;  %v7497_v63 = vpop.f32.mrb[188].mxu1  ;;  %v7443_v59 = vadd.f32 %v7442_v45, %v7441_v31 }
 0x285   : > { %v7498_v58 = vpop.f32.mrb[189].mxu1 }
 0x286   : > { %v7499_v41 = vadd.f32 %v7498_v58, %v7497_v63  ;;  %v11497_v39 = vadd.f32 %v7443_v59, %v11452_v61  ;;  %v7444_v53 = vpop.f32.mrb[190].mxu0 }
 0x287   : > { %v7445_v40 = vpop.f32.mrb[191].mxu0 }
 0x288   : > { %v11500_v21 = vadd.f32 %v7499_v41, %v11449_v28  ;;  %v7500_v42 = vpop.f32.mrb[190].mxu1  ;;  %v7446_v14 = vadd.f32 %v7445_v40, %v7444_v53 }
 0x289   : > { %v7501_v19 = vpop.f32.mrb[191].mxu1 }
 0x28a   : > { %v7502_v60 = vadd.f32 %v7501_v19, %v7500_v42  ;;  %v11503_v30 = vadd.f32 %v7446_v14, %v11457_v43  ;;  %v7559_v57 = vpop.f32.mrb[192].mxu0  ;;  %v3692_v19 = vld [vmem:[%s14703_s4] sm:$0xff] }
 0x28b   : > { %v7560_v15 = vpop.f32.mrb[193].mxu0 }
 0x28c   : > { %v11506_v6 = vadd.f32 %v7502_v60, %v11454_v13  ;;  %v7503_v1 = vpop.f32.mrb[192].mxu1  ;;  %v7561_v18 = vadd.f32 %v7560_v15, %v7559_v57  ;;  %v3738_v15 = vld [vmem:[%s14703_s4 + $0x170] sm:$0xff] }
 0x28d   : > { %v7504_v61 = vpop.f32.mrb[193].mxu1 }
 0x28e   : > { %v7505_v26 = vadd.f32 %v7504_v61, %v7503_v1  ;;  %v11509_v28 = vadd.f32 %v7561_v18, %v11462_v50  ;;  %v7562_v31 = vpop.f32.mrb[194].mxu0  ;;  %v3693_v50 = vld [vmem:[%s14703_s4 + $0x8] sm:$0xff]  ;;  %v3723_v1 = vld [vmem:[%s14703_s4 + $0xf8] sm:$0xff] }
 0x28f   : > { %v7563_v59 = vpop.f32.mrb[195].mxu0 }
 0x290   : > { %v11512_v63 = vadd.f32 %v7505_v26, %v11459_v34  ;;  %v7506_v45 = vpop.f32.mrb[194].mxu1  ;;  %v7564_v58 = vadd.f32 %v7563_v59, %v7562_v31  ;;  %v3708_v34 = vld [vmem:[%s14703_s4 + $0x80] sm:$0xff]  ;;  %v8460_v26 = vpack.c.bf16 %v3738_v15, %v3723_v1  ;;  %v3722_v31 = vld [vmem:[%s14703_s4 + $0xf0] sm:$0xff]  ;;  %v3753_v59 = vld [vmem:[%s14703_s4 + $0x1e8] sm:$0xff] }
 0x291   : > { %v7507_v43 = vpop.f32.mrb[195].mxu1  ;;  %v8456_v57 = vpack.c.bf16 %v3708_v34, %v3693_v50 }
 0x292   : > { %v7508_v41 = vadd.f32 %v7507_v43, %v7506_v45  ;;  %v11515_v13 = vadd.f32 %v7564_v58, %v11467_v20  ;;  %v7565_v53 = vpop.f32.mrb[196].mxu0  ;;  %v3737_v45 = vld [vmem:[%s14703_s4 + $0x168] sm:$0xff] }
 0x293   : > { %v7566_v14 = vpop.f32.mrb[197].mxu0  ;;  %8457 = vmatprep.subr.bf16.mxu1 %v8456_v57  ;;  %v8462_v50 = vpack.c.bf16 %v3737_v45, %v3722_v31 }
 0x294   : > { %v11518_v42 = vadd.f32 %v7508_v41, %v11464_v56  ;;  %v7509_v40 = vpop.f32.mrb[196].mxu1  ;;  %v7567_v60 = vadd.f32 %v7566_v14, %v7565_v53  ;;  %v3707_v56 = vld [vmem:[%s14703_s4 + $0x78] sm:$0xff]  ;;  %v3768_v41 = vld [vmem:[%s14703_s4 + $0x260] sm:$0xff] }
 0x295   : > { %v7510_v20 = vpop.f32.mrb[197].mxu1  ;;  %v8458_v18 = vpack.c.bf16 %v3707_v56, %v3692_v19  ;;  %v3798_v56 = vld [vmem:[%s14703_s4 + $0x350] sm:$0xff] }
 0x296   : > { %v7511_v61 = vadd.f32 %v7510_v20, %v7509_v40  ;;  %v11548_v43 = vadd.f32 %v7567_v60, %v11476_v12  ;;  %v7568_v58 = vpop.f32.mrb[198].mxu0  ;;  %v8464_v20 = vpack.c.bf16 %v3768_v41, %v3753_v59  ;;  %v3752_v12 = vld [vmem:[%s14703_s4 + $0x1e0] sm:$0xff]  ;;  %v3767_v60 = vld [vmem:[%s14703_s4 + $0x258] sm:$0xff]  ;;  %v3782_v41 = vld [vmem:[%s14703_s4 + $0x2d0] sm:$0xff] }
 0x297   : > { %v7569_v14 = vpop.f32.mrb[199].mxu0  ;;  %8459 = vmatpush1.bf16.msra.mxu1 %v8458_v18  ;;  %v8466_v31 = vpack.c.bf16 %v3767_v60, %v3752_v12 }
 0x298   : > { %v11554_v53 = vadd.f32 %v7511_v61, %v11473_v35  ;;  %v7512_v40 = vpop.f32.mrb[198].mxu1  ;;  %v7570_v19 = vadd.f32 %v7569_v14, %v7568_v58  ;;  %8461 = vmatprep.subr.bf16.mxu1 %v8460_v26  ;;  %v3783_v35 = vld [vmem:[%s14703_s4 + $0x2d8] sm:$0xff]  ;;  %v3828_v14 = vld [vmem:[%s14703_s4 + $0x440] sm:$0xf] }
 0x299   : > { %v7513_v34 = vpop.f32.mrb[199].mxu1  ;;  %v8468_v58 = vpack.c.bf16 %v3798_v56, %v3783_v35 }
 0x29a   : > { %v7514_v57 = vadd.f32 %v7513_v34, %v7512_v40  ;;  %v11569_v1 = vadd.f32 %v7570_v19, %v11482_v0  ;;  %v7571_v15 = vpop.f32.mrb[200].mxu0  ;;  %v3797_v0 = vld [vmem:[%s14703_s4 + $0x348] sm:$0xff] }
 0x29b   : > { %v7572_v26 = vpop.f32.mrb[201].mxu0  ;;  %8463 = vmatpush1.bf16.msra.mxu1 %v8462_v50  ;;  %v8470_v60 = vpack.c.bf16 %v3797_v0, %v3782_v41 }
 0x29c   : > { %v11572_v61 = vadd.f32 %v7514_v57, %v11479_v25  ;;  %v7515_v18 = vpop.f32.mrb[200].mxu1  ;;  %v7573_v59 = vadd.f32 %v7572_v26, %v7571_v15  ;;  %8465 = vmatprep.subr.bf16.mxu1 %v8464_v20  ;;  %v3813_v25 = vld [vmem:[%s14703_s4 + $0x3c8] sm:$0xff]  ;;  %v3812_v15 = vld [vmem:[%s14703_s4 + $0x3c0] sm:$0xff] }
 0x29d   : > { %v7516_v45 = vpop.f32.mrb[201].mxu1  ;;  %v8472_v56 = vpack.c.bf16 %v3828_v14, %v3813_v25 }
 0x29e   : > { %v7517_v40 = vadd.f32 %v7516_v45, %v7515_v18  ;;  %v11587_v50 = vadd.f32 %v7573_v59, %v11488_v8  ;;  %v7574_v34 = vpop.f32.mrb[202].mxu0  ;;  %v3827_v8 = vld [vmem:[%s14703_s4 + $0x438] sm:$0xf] }
 0x29f   : > { %v7575_v12 = vpop.f32.mrb[203].mxu0  ;;  %8467 = vmatpush1.bf16.msra.mxu1 %v8466_v31  ;;  %v8475_v41 = vpack.c.bf16 %v3827_v8, %v3812_v15 }
 0x2a0   : > { %v11590_v19 = vadd.f32 %v7517_v40, %v11485_v2  ;;  %v7518_v20 = vpop.f32.mrb[202].mxu1  ;;  %v7576_v35 = vadd.f32 %v7575_v12, %v7574_v34  ;;  %8469 = vmatprep.subr.bf16.mxu1 %v8468_v58 }
 0x2a1   : > { %v7519_v57 = vpop.f32.mrb[203].mxu1 }
 0x2a2   : > { %v7520_v18 = vadd.f32 %v7519_v57, %v7518_v20  ;;  %v11603_v26 = vadd.f32 %v7576_v35, %v11494_v51  ;;  %v7577_v31 = vpop.f32.mrb[204].mxu0 }
 0x2a3   : > { %v7578_v58 = vpop.f32.mrb[205].mxu0  ;;  %8471 = vmatpush1.bf16.msra.mxu1 %v8470_v60 }
 0x2a4   : > { %v11606_v45 = vadd.f32 %v7520_v18, %v11491_v10  ;;  %v7521_v59 = vpop.f32.mrb[204].mxu1  ;;  %v7579_v40 = vadd.f32 %v7578_v58, %v7577_v31  ;;  %8474 = vmatprep.subr.msk.bf16.mxu1 %vm11598_vm3, %v8472_v56 }
 0x2a5   : > { %v7522_v0 = vpop.f32.mrb[205].mxu1 }
 0x2a6   : > { %v7523_v25 = vadd.f32 %v7522_v0, %v7521_v59  ;;  %v11611_v14 = vadd.f32 %v7579_v40, %v11500_v21  ;;  %v7580_v34 = vpop.f32.mrb[206].mxu0 }
 0x2a7   : > { %v7581_v10 = vpop.f32.mrb[207].mxu0  ;;  %8477 = vmatpush1.bf16.msk.msra.mxu1 %vm11598_vm3, %v8475_v41 }
 0x2a8   : > { %v11614_v51 = vadd.f32 %v7523_v25, %v11497_v39  ;;  %v7524_v20 = vpop.f32.mrb[206].mxu1  ;;  %v7582_v60 = vadd.f32 %v7581_v10, %v7580_v34 }
 0x2a9   : > { %v7525_v12 = vpop.f32.mrb[207].mxu1 }
 0x2aa   : > { %v7526_v57 = vadd.f32 %v7525_v12, %v7524_v20  ;;  %v11619_v35 = vadd.f32 %v7582_v60, %v11506_v6  ;;  %v7583_v56 = vpop.f32.mrb[208].mxu0 }
 0x2ab   : > { %v7584_v8 = vpop.f32.mrb[209].mxu0 }
 0x2ac   : > { %v2983_v15 = vadd.f32 %v7526_v57, %v11503_v30  ;;  %v7639_v21 = vpop.f32.mrb[208].mxu1  ;;  %v7585_v18 = vadd.f32 %v7584_v8, %v7583_v56 }
 0x2ad   : > { %v7640_v31 = vpop.f32.mrb[209].mxu1 }
 0x2ae   : > { %v7641_v39 = vadd.f32 %v7640_v31, %v7639_v21  ;;  %v11623_v59 = vadd.f32 %v7585_v18, %v11512_v63  ;;  %v7586_v58 = vpop.f32.mrb[210].mxu0 }
 0x2af   : > { %v7587_v41 = vpop.f32.mrb[211].mxu0 }
 0x2b0   : > { %v7642_v0 = vpop.f32.mrb[210].mxu1  ;;  %v3198_v40 = vadd.f32 %v7641_v39, %v11509_v28  ;;  %v7588_v25 = vadd.f32 %v7587_v41, %v7586_v58 }
 0x2b1   : > { %v7643_v34 = vpop.f32.mrb[211].mxu1 }
 0x2b2   : > { %v7644_v6 = vadd.f32 %v7643_v34, %v7642_v0  ;;  %v11627_v20 = vadd.f32 %v7588_v25, %v11518_v42  ;;  %v7589_v30 = vpop.f32.mrb[212].mxu0 }
 0x2b3   : > { %v7590_v12 = vpop.f32.mrb[213].mxu0 }
 0x2b4   : > { %v7645_v10 = vpop.f32.mrb[212].mxu1  ;;  %v3203_v60 = vadd.f32 %v7644_v6, %v11515_v13  ;;  %v7591_v57 = vadd.f32 %v7590_v12, %v7589_v30 }
 0x2b5   : > { %v7646_v56 = vpop.f32.mrb[213].mxu1 }
 0x2b6   : > { %v7647_v63 = vadd.f32 %v7646_v56, %v7645_v10  ;;  %v11631_v21 = vadd.f32 %v7591_v57, %v11554_v53  ;;  %v7592_v8 = vpop.f32.mrb[214].mxu0 }
 0x2b7   : > { %v7593_v28 = vpop.f32.mrb[215].mxu0 }
 0x2b8   : > { %v7648_v18 = vpop.f32.mrb[214].mxu1  ;;  %v3208_v31 = vadd.f32 %v7647_v63, %v11548_v43  ;;  %v7594_v39 = vadd.f32 %v7593_v28, %v7592_v8 }
 0x2b9   : > { %v7649_v58 = vpop.f32.mrb[215].mxu1 }
 0x2ba   : > { %v7650_v42 = vadd.f32 %v7649_v58, %v7648_v18  ;;  %v11635_v0 = vadd.f32 %v7594_v39, %v11572_v61  ;;  %v7595_v41 = vpop.f32.mrb[216].mxu0 }
 0x2bb   : > { %v7596_v13 = vpop.f32.mrb[217].mxu0 }
 0x2bc   : > { %v7651_v25 = vpop.f32.mrb[216].mxu1  ;;  %v3213_v34 = vadd.f32 %v7650_v42, %v11569_v1  ;;  %v7597_v6 = vadd.f32 %v7596_v13, %v7595_v41 }
 0x2bd   : > { %v7652_v30 = vpop.f32.mrb[217].mxu1 }
 0x2be   : > { %v7653_v53 = vadd.f32 %v7652_v30, %v7651_v25  ;;  %v11639_v10 = vadd.f32 %v7597_v6, %v11590_v19  ;;  %v7598_v12 = vpop.f32.mrb[218].mxu0 }
 0x2bf   : > { %v7599_v43 = vpop.f32.mrb[219].mxu0 }
 0x2c0   : > { %v7654_v57 = vpop.f32.mrb[218].mxu1  ;;  %v3218_v56 = vadd.f32 %v7653_v53, %v11587_v50  ;;  %v7600_v63 = vadd.f32 %v7599_v43, %v7598_v12 }
 0x2c1   : > { %v7655_v8 = vpop.f32.mrb[219].mxu1 }
 0x2c2   : > { %v7656_v61 = vadd.f32 %v7655_v8, %v7654_v57  ;;  %v11643_v18 = vadd.f32 %v7600_v63, %v11606_v45  ;;  %v7601_v28 = vpop.f32.mrb[220].mxu0 }
 0x2c3   : > { %v7602_v1 = vpop.f32.mrb[221].mxu0 }
 0x2c4   : > { %v7657_v39 = vpop.f32.mrb[220].mxu1  ;;  %v3223_v58 = vadd.f32 %v7656_v61, %v11603_v26  ;;  %v7603_v42 = vadd.f32 %v7602_v1, %v7601_v28  ;;  %v11655_v26 = vld [vmem:[%s14704_s5] ss:$0 sm:$0xff] }
 0x2c5   : > { %v7658_v41 = vpop.f32.mrb[221].mxu1 }
 0x2c6   : > { %v7659_v19 = vadd.f32 %v7658_v41, %v7657_v39  ;;  %v11647_v25 = vadd.f32 %v7603_v42, %v11614_v51  ;;  %v7604_v13 = vpop.f32.mrb[222].mxu0 }
 0x2c7   : > { %v7605_v50 = vpop.f32.mrb[223].mxu0 }
 0x2c8   : > { %v7660_v6 = vpop.f32.mrb[222].mxu1  ;;  %v3228_v30 = vadd.f32 %v7659_v19, %v11611_v14  ;;  %v7606_v53 = vadd.f32 %v7605_v50, %v7604_v13 }
 0x2c9   : > { %v7661_v12 = vpop.f32.mrb[223].mxu1 }
 0x2ca   : > { %v7662_v45 = vadd.f32 %v7661_v12, %v7660_v6  ;;  %v11650_v57 = vadd.f32 %v7606_v53, %v2983_v15  ;;  %v7822_v43 = vpop.f32.mrb[224].mxu0 }
 0x2cb   : > { %v3348_v8 = vadd.f32 %v7822_v43, %v3203_v60  ;;  %v3342_v51 = vpop.f32.mrb[225].mxu0 }
 0x2cc   : > { %v7663_v63 = vpop.f32.mrb[224].mxu1  ;;  %v3233_v61 = vadd.f32 %v7662_v45, %v11619_v35  ;;  %v3343_v39 = vadd.f32 %v3342_v51, %v3198_v40 }
 0x2cd   : > { %v7664_v28 = vpop.f32.mrb[225].mxu1  ;;  %v3429_v14 = vmul.f32 %v11655_v26, %v3348_v8 }
 0x2ce   : > { %v7665_v1 = vadd.f32 %v7664_v28, %v7663_v63  ;;  %v3428_v42 = vmul.f32 %v11655_v26, %v3343_v39  ;;  %v7825_v15 = vpop.f32.mrb[226].mxu0 }
 0x2cf   : > { %v3358_v19 = vadd.f32 %v7825_v15, %v3213_v34  ;;  %v3352_v13 = vpop.f32.mrb[227].mxu0 }
 0x2d0   : > { %v7666_v41 = vpop.f32.mrb[226].mxu1  ;;  %v3238_v6 = vadd.f32 %v7665_v1, %v11623_v59  ;;  %v3353_v53 = vadd.f32 %v3352_v13, %v3208_v31  ;;  %v8424_v12 = vpack.c.bf16 %v3429_v14, %v3428_v42 }
 0x2d1   : > { %v7667_v50 = vpop.f32.mrb[227].mxu1  ;;  %v3431_v60 = vmul.f32 %v11655_v26, %v3358_v19 }
 0x2d2   : > { %v7668_v43 = vadd.f32 %v7667_v50, %v7666_v41  ;;  %v3430_v35 = vmul.f32 %v11655_v26, %v3353_v53  ;;  %v7828_v40 = vpop.f32.mrb[228].mxu0  ;;  %8425 = vmatprep.subr.bf16.mxu0 %v8424_v12 }
 0x2d3   : > { %v3368_v63 = vadd.f32 %v7828_v40, %v3223_v58  ;;  %v3362_v8 = vpop.f32.mrb[229].mxu0  ;;  %8427 = vmatpush3.bf16.msra.mxu0 %v8424_v12 }
 0x2d4   : > { %v7669_v45 = vpop.f32.mrb[228].mxu1  ;;  %v3243_v51 = vadd.f32 %v7668_v43, %v11627_v20  ;;  %v3363_v28 = vadd.f32 %v3362_v8, %v3218_v56  ;;  %v8428_v39 = vpack.c.bf16 %v3431_v60, %v3430_v35 }
 0x2d5   : > { %v7670_v34 = vpop.f32.mrb[229].mxu1  ;;  %v3433_v59 = vmul.f32 %v11655_v26, %v3368_v63 }
 0x2d6   : > { %v7671_v31 = vadd.f32 %v7670_v34, %v7669_v45  ;;  %v3432_v14 = vmul.f32 %v11655_v26, %v3363_v28  ;;  %v7831_v1 = vpop.f32.mrb[230].mxu0  ;;  %8429 = vmatprep.subr.bf16.mxu0 %v8428_v39 }
 0x2d7   : > { %v3378_v15 = vadd.f32 %v7831_v1, %v3233_v61  ;;  %v3372_v41 = vpop.f32.mrb[231].mxu0  ;;  %8431 = vmatpush3.bf16.msra.mxu0 %v8428_v39 }
 0x2d8   : > { %v7672_v42 = vpop.f32.mrb[230].mxu1  ;;  %v3248_v58 = vadd.f32 %v7671_v31, %v11631_v21  ;;  %v3373_v13 = vadd.f32 %v3372_v41, %v3228_v30  ;;  %v8432_v50 = vpack.c.bf16 %v3433_v59, %v3432_v14 }
 0x2d9   : > { %v7673_v19 = vpop.f32.mrb[231].mxu1  ;;  %v3435_v20 = vmul.f32 %v11655_v26, %v3378_v15 }
 0x2da   : > { %v7674_v56 = vadd.f32 %v7673_v19, %v7672_v42  ;;  %v3434_v53 = vmul.f32 %v11655_v26, %v3373_v13  ;;  %v7834_v12 = vpop.f32.mrb[232].mxu0  ;;  %8433 = vmatprep.subr.bf16.mxu0 %v8432_v50 }
 0x2db   : > { %v3388_v43 = vadd.f32 %v7834_v12, %v3243_v51  ;;  %v3382_v35 = vpop.f32.mrb[233].mxu0  ;;  %8435 = vmatpush3.bf16.msra.mxu0 %v8432_v50 }
 0x2dc   : > { %v7675_v60 = vpop.f32.mrb[232].mxu1  ;;  %v3253_v61 = vadd.f32 %v7674_v56, %v11635_v0  ;;  %v3383_v45 = vadd.f32 %v3382_v35, %v3238_v6  ;;  %v8436_v63 = vpack.c.bf16 %v3435_v20, %v3434_v53 }
 0x2dd   : > { %v7676_v40 = vpop.f32.mrb[233].mxu1  ;;  %v3437_v21 = vmul.f32 %v11655_v26, %v3388_v43 }
 0x2de   : > { %v7677_v30 = vadd.f32 %v7676_v40, %v7675_v60  ;;  %v3436_v8 = vmul.f32 %v11655_v26, %v3383_v45  ;;  %v7837_v34 = vpop.f32.mrb[234].mxu0  ;;  %8437 = vmatprep.subr.bf16.mxu0 %v8436_v63 }
 0x2df   : > { %v3398_v39 = vadd.f32 %v7837_v34, %v3253_v61  ;;  %v3392_v59 = vpop.f32.mrb[235].mxu0  ;;  %8439 = vmatpush3.bf16.msra.mxu0 %v8436_v63  ;;  %v3710_v34 = vld [vmem:[%s14703_s4 + $0x90] sm:$0xff] }
 0x2e0   : > { %v7678_v28 = vpop.f32.mrb[234].mxu1  ;;  %v3258_v51 = vadd.f32 %v7677_v30, %v11639_v10  ;;  %v3393_v14 = vadd.f32 %v3392_v59, %v3248_v58  ;;  %v8440_v1 = vpack.c.bf16 %v3437_v21, %v3436_v8  ;;  %v3695_v8 = vld [vmem:[%s14703_s4 + $0x18] sm:$0xff] }
 0x2e1   : > { %v7679_v31 = vpop.f32.mrb[235].mxu1  ;;  %v3439_v0 = vmul.f32 %v11655_v26, %v3398_v39  ;;  %v8478_v59 = vpack.c.bf16 %v3710_v34, %v3695_v8  ;;  %v597_v8 = vld [vmem:[%s14700_s1 + $0xd0] sm:$0xff]  ;;  %v598_v34 = vld [vmem:[%s14700_s1 + $0xd8] sm:$0xff] }
 0x2e2   : > { %v7680_v6 = vadd.f32 %v7679_v31, %v7678_v28  ;;  %v3438_v42 = vmul.f32 %v11655_v26, %v3393_v14  ;;  %v7840_v15 = vpop.f32.mrb[236].mxu0  ;;  %8441 = vmatprep.subr.bf16.mxu0 %v8440_v1  ;;  %v3725_v31 = vld [vmem:[%s14703_s4 + $0x108] sm:$0xff]  ;;  %v3740_v14 = vld [vmem:[%s14703_s4 + $0x180] sm:$0xff] }
 0x2e3   : > { %v3402_v13 = vpop.f32.mrb[237].mxu0  ;;  %8443 = vmatpush3.bf16.msra.mxu0 %v8440_v1 }
 0x2e4   : > { %v7681_v41 = vpop.f32.mrb[236].mxu1  ;;  %v3263_v19 = vadd.f32 %v7680_v6, %v11643_v18  ;;  %v3403_v20 = vadd.f32 %v3402_v13, %v3258_v51  ;;  %v8444_v56 = vpack.c.bf16 %v3439_v0, %v3438_v42  ;;  %v3709_v51 = vld [vmem:[%s14703_s4 + $0x88] sm:$0xff]  ;;  %v589_v0 = vld [vmem:[%s14700_s1 + $0x90] sm:$0xff]  ;;  %v8482_v6 = vpack.c.bf16 %v3740_v14, %v3725_v31  ;;  %v3724_v42 = vld [vmem:[%s14703_s4 + $0x100] sm:$0xff] }
 0x2e5   : > { %v7682_v50 = vpop.f32.mrb[237].mxu1  ;;  %v590_v13 = vld [vmem:[%s14700_s1 + $0x98] sm:$0xff]  ;;  %v3814_v14 = vld [vmem:[%s14703_s4 + $0x3d0] sm:$0xff] }
 0x2e6   : > { %v3408_v53 = vadd.f32 %v7840_v15, %v3263_v19  ;;  %v7683_v10 = vadd.f32 %v7682_v50, %v7681_v41  ;;  %v3440_v58 = vmul.f32 %v11655_v26, %v3403_v20  ;;  %v7843_v12 = vpop.f32.mrb[238].mxu0  ;;  %8445 = vmatprep.subr.bf16.mxu0 %v8444_v56  ;;  %v3739_v15 = vld [vmem:[%s14703_s4 + $0x178] sm:$0xff]  ;;  %v3770_v19 = vld [vmem:[%s14703_s4 + $0x270] sm:$0xff]  ;;  %v591_v20 = vld [vmem:[%s14700_s1 + $0xa0] sm:$0xff] }
 0x2e7   : > { %v3412_v61 = vpop.f32.mrb[239].mxu0  ;;  %8447 = vmatpush3.bf16.msra.mxu0 %v8444_v56  ;;  %v3755_v41 = vld [vmem:[%s14703_s4 + $0x1f8] sm:$0xff]  ;;  %v8484_v50 = vpack.c.bf16 %v3739_v15, %v3724_v42 }
 0x2e8   : > { %v3441_v60 = vmul.f32 %v11655_v26, %v3408_v53  ;;  %v7684_v43 = vpop.f32.mrb[238].mxu1  ;;  %v3268_v35 = vadd.f32 %v7683_v10, %v11647_v25  ;;  %v8486_v56 = vpack.c.bf16 %v3770_v19, %v3755_v41  ;;  %v3754_v53 = vld [vmem:[%s14703_s4 + $0x1f0] sm:$0xff]  ;;  %v3769_v10 = vld [vmem:[%s14703_s4 + $0x268] sm:$0xff]  ;;  %v3699_v15 = vld [vmem:[%s14703_s4 + $0x38] sm:$0xff] }
 0x2e9   : > { %v7685_v40 = vpop.f32.mrb[239].mxu1  ;;  %v3714_v41 = vld [vmem:[%s14703_s4 + $0xb0] sm:$0xff] }
 0x2ea   : > { %v7686_v18 = vadd.f32 %v7685_v40, %v7684_v43  ;;  %v3413_v45 = vadd.f32 %v3412_v61, %v3268_v35  ;;  %v8448_v63 = vpack.c.bf16 %v3441_v60, %v3440_v58  ;;  %v3785_v58 = vld [vmem:[%s14703_s4 + $0x2e8] sm:$0xff]  ;;  %v8488_v43 = vpack.c.bf16 %v3769_v10, %v3754_v53  ;;  %v593_v35 = vld [vmem:[%s14700_s1 + $0xb0] sm:$0xff]  ;;  %v3784_v40 = vld [vmem:[%s14703_s4 + $0x2e0] sm:$0xff] }
 0x2eb   : > { %v592_v60 = vld [vmem:[%s14700_s1 + $0xa8] sm:$0xff]  ;;  %v8522_v19 = vpack.c.bf16 %v3714_v41, %v3699_v15  ;;  %v11813_v53 = vld [vmem:[%s14705_s6] ss:$0 sm:$0xff]  ;;  %v3771_v15 = vld [vmem:[%s14703_s4 + $0x278] sm:$0xff] }
 0x2ec   : > { %v3273_v21 = vadd.f32 %v7686_v18, %v11650_v57  ;;  %8449 = vmatprep.subr.bf16.mxu0 %v8448_v63  ;;  %v3442_v25 = vmul.f32 %v11655_v26, %v3413_v45  ;;  %v3694_v57 = vld [vmem:[%s14703_s4 + $0x10] sm:$0xff]  ;;  %v3799_v18 = vld [vmem:[%s14703_s4 + $0x358] sm:$0xff] }
 0x2ed   : > { %8451 = vmatpush3.bf16.msra.mxu0 %v8448_v63  ;;  %v8480_v1 = vpack.c.bf16 %v3709_v51, %v3694_v57  ;;  %v594_v45 = vld [vmem:[%s14700_s1 + $0xb8] sm:$0xff]  ;;  %v8492_v63 = vpack.c.bf16 %v3799_v18, %v3784_v40  ;;  %v3830_v51 = vld [vmem:[%s14703_s4 + $0x450] sm:$0xf] }
 0x2ee   : > { %v3418_v30 = vadd.f32 %v7843_v12, %v3273_v21  ;;  %v3800_v12 = vld [vmem:[%s14703_s4 + $0x360] sm:$0xff]  ;;  %v3815_v57 = vld [vmem:[%s14703_s4 + $0x3d8] sm:$0xff] }
 0x2ef   : > { %v8490_v61 = vpack.c.bf16 %v3800_v12, %v3785_v58  ;;  %v595_v21 = vld [vmem:[%s14700_s1 + $0xc0] sm:$0xff]  ;;  %v8494_v31 = vpack.c.bf16 %v3830_v51, %v3815_v57  ;;  %v3727_v58 = vld [vmem:[%s14703_s4 + $0x118] sm:$0xff]  ;;  %v3742_v12 = vld [vmem:[%s14703_s4 + $0x190] sm:$0xff] }
 0x2f0   : > { %v3443_v28 = vmul.f32 %v11655_v26, %v3418_v30  ;;  %v588_v26 = vld [vmem:[%s14700_s1 + $0x88] sm:$0xff]  ;;  %v3744_v57 = vld [vmem:[%s14703_s4 + $0x1a0] sm:$0xff] }
 0x2f1   : > { %v596_v30 = vld [vmem:[%s14700_s1 + $0xc8] sm:$0xff] }
 0x2f2   : > { %v8452_v39 = vpack.c.bf16 %v3443_v28, %v3442_v25  ;;  %v599_v25 = vld [vmem:[%s14700_s1 + $0xe0] sm:$0xff]  ;;  %v600_v28 = vld [vmem:[%s14700_s1 + $0xe8] sm:$0xff] }
 0x2f4   : > { %8453 = vmatprep.subr.bf16.mxu0 %v8452_v39 }
 0x2f5   : > { %8455 = vmatpush3.bf16.msra.mxu0 %v8452_v39  ;;  %v601_v39 = vld [vmem:[%s14700_s1 + $0xf0] sm:$0xff] }
 0x2f6   : > { %8479 = vmatprep.subr.bf16.mxu0 %v8478_v59  ;;  %v602_v59 = vld [vmem:[%s14700_s1 + $0xf8] sm:$0xff] }
 0x2f8   : > { %7877 = vmatmul.mubr.f32.vlgmr.msra.gmra.mrb[240].mxu0 %v588_v26  ;;  %v3829_v26 = vld [vmem:[%s14703_s4 + $0x448] sm:$0xf] }
 0x2f9   : > { %7879 = vmatprep.mubr.f32.mxu0 %v589_v0  ;;  %8481 = vmatpush1.bf16.msra.mxu0 %v8480_v1  ;;  %v8497_v1 = vpack.c.bf16 %v3829_v26, %v3814_v14  ;;  %v3697_v0 = vld [vmem:[%s14703_s4 + $0x28] sm:$0xff]  ;;  %v3728_v14 = vld [vmem:[%s14703_s4 + $0x120] sm:$0xff]  ;;  %v3743_v26 = vld [vmem:[%s14703_s4 + $0x198] sm:$0xff] }
 0x2fa   : > { %8483 = vmatprep.subr.bf16.mxu0 %v8482_v6  ;;  %v3712_v6 = vld [vmem:[%s14703_s4 + $0xa0] sm:$0xff] }
 0x2fb   : > { %v8500_v42 = vpack.c.bf16 %v3712_v6, %v3697_v0 }
 0x2fc   : > { %7880 = vmatmul.mubr.f32.gmra.mrb[242].mxu0 %v590_v13  ;;  %v3447_v13 = vpop.permute.xlu0 %3446 }
 0x2fd   : > { %7882 = vmatprep.mubr.f32.mxu0 %v591_v20  ;;  %8485 = vmatpush1.bf16.msra.mxu0 %v8484_v50  ;;  %v3696_v20 = vld [vmem:[%s14703_s4 + $0x20] sm:$0xff] }
 0x2fe   : > { %8487 = vmatprep.subr.bf16.mxu0 %v8486_v56  ;;  %8501 = vmatprep.subr.bf16.mxu1 %v8500_v42  ;;  %v3711_v56 = vld [vmem:[%s14703_s4 + $0x98] sm:$0xff]  ;;  %v3756_v42 = vld [vmem:[%s14703_s4 + $0x200] sm:$0xff] }
 0x2ff   : > { %v8502_v40 = vpack.c.bf16 %v3711_v56, %v3696_v20  ;;  %v8528_v20 = vpack.c.bf16 %v3743_v26, %v3728_v14  ;;  %v3759_v56 = vld [vmem:[%s14703_s4 + $0x218] sm:$0xff] }
 0x300   : > { %7883 = vmatmul.mubr.f32.gmra.mrb[244].mxu0 %v592_v60 }
 0x301   : > { %7885 = vmatprep.mubr.f32.mxu0 %v593_v35  ;;  %8489 = vmatpush1.bf16.msra.mxu0 %v8488_v43  ;;  %v3698_v43 = vld [vmem:[%s14703_s4 + $0x30] sm:$0xff]  ;;  %v3713_v35 = vld [vmem:[%s14703_s4 + $0xa8] sm:$0xff] }
 0x302   : > { %8491 = vmatprep.subr.bf16.mxu0 %v8490_v61  ;;  %v3452_v61 = vpop.permute.xlu0 %3451 }
 0x304   : > { %7886 = vmatmul.mubr.f32.gmra.mrb[246].mxu0 %v594_v45 }
 0x305   : > { %7888 = vmatprep.mubr.f32.mxu0 %v595_v21  ;;  %8493 = vmatpush1.bf16.msra.mxu0 %v8492_v63  ;;  %v8504_v21 = vpack.c.bf16 %v3742_v12, %v3727_v58  ;;  %v3802_v12 = vld [vmem:[%s14703_s4 + $0x370] sm:$0xff] }
 0x306   : > { %8496 = vmatprep.subr.msk.bf16.mxu0 %vm11598_vm3, %v8494_v31  ;;  %v3772_v31 = vld [vmem:[%s14703_s4 + $0x280] sm:$0xff]  ;;  %v3467_v14 = vpop.permute.xlu0 %3466 }
 0x308   : > { %7889 = vmatmul.mubr.f32.gmra.mrb[248].mxu0 %v596_v30  ;;  %v3726_v30 = vld [vmem:[%s14703_s4 + $0x110] sm:$0xff] }
 0x309   : > { %7891 = vmatprep.mubr.f32.mxu0 %v597_v8  ;;  %8499 = vmatpush1.bf16.msk.msra.mxu0 %vm11598_vm3, %v8497_v1  ;;  %v3741_v8 = vld [vmem:[%s14703_s4 + $0x188] sm:$0xff] }
 0x30a   : > { %8523 = vmatprep.subr.bf16.mxu0 %v8522_v19  ;;  %v8506_v6 = vpack.c.bf16 %v3741_v8, %v3726_v30  ;;  %v3801_v30 = vld [vmem:[%s14703_s4 + $0x368] sm:$0xff] }
 0x30c   : > { %7892 = vmatmul.mubr.f32.gmra.mrb[250].mxu0 %v598_v34  ;;  %v3457_v34 = vpop.permute.xlu1 %3456 }
 0x30d   : > { %7894 = vmatprep.mubr.f32.mxu0 %v599_v25 }
 0x310   : > { %7895 = vmatmul.mubr.f32.gmra.mrb[252].mxu0 %v600_v28  ;;  %v3757_v28 = vld [vmem:[%s14703_s4 + $0x208] sm:$0xff] }
 0x311   : > { %7897 = vmatprep.mubr.f32.mxu0 %v601_v39  ;;  %v8524_v39 = vpack.c.bf16 %v3713_v35, %v3698_v43  ;;  %v3773_v43 = vld [vmem:[%s14703_s4 + $0x288] sm:$0xff]  ;;  %v3462_v35 = vpop.permute.xlu1 %3461 }
 0x314   : > { %7898 = vmatmul.mubr.f32.gmra.mrb[254].mxu0 %v602_v59  ;;  %v3729_v59 = vld [vmem:[%s14703_s4 + $0x128] sm:$0xff] }
 0x315   : > { %4162 = vmatprep.mubr.f32.mxu0 %v14933_v54  ;;  %v8526_v41 = vpack.c.bf16 %v3744_v57, %v3729_v59  ;;  %v3804_v59 = vld [vmem:[%s14703_s4 + $0x380] sm:$0xff] }
 0x316   : > { %v3832_v57 = vld [vmem:[%s14703_s4 + $0x460] sm:$0xf] }
 0x3cb   : > { %v7878_v50 = vpop.f32.mrb[240].mxu0 }
 0x3cc   : > { %v3590_v10 = vpop.f32.mrb[241].mxu0  ;;  %v3596_v18 = vadd.f32 %v7878_v50, %v3452_v61  ;;  %v3787_v50 = vld [vmem:[%s14703_s4 + $0x2f8] sm:$0xff] }
 0x3cd   : > { %v3591_v60 = vadd.f32 %v3590_v10, %v3447_v13  ;;  %v8508_v13 = vpack.c.bf16 %v3772_v31, %v3757_v28  ;;  %v3774_v10 = vld [vmem:[%s14703_s4 + $0x290] sm:$0xff]  ;;  %v3803_v31 = vld [vmem:[%s14703_s4 + $0x378] sm:$0xff] }
 0x3ce   : > { %v11860_v1 = vmul.f32 %v11813_v53, %v3596_v18  ;;  %v8510_v18 = vpack.c.bf16 %v3771_v15, %v3756_v42  ;;  %v8530_v8 = vpack.c.bf16 %v3774_v10, %v3759_v56 }
 0x3cf   : > { %v11828_v45 = vmul.f32 %v11813_v53, %v3591_v60  ;;  %v7881_v63 = vpop.f32.mrb[242].mxu0  ;;  %v3758_v60 = vld [vmem:[%s14703_s4 + $0x210] sm:$0xff] }
 0x3d0   : > { %v3600_v25 = vpop.f32.mrb[243].mxu0  ;;  %14937 = vst [vmem:[#allocation217_spill] sm:$0xff] %v11860_v1  ;;  %v3606_v61 = vadd.f32 %v7881_v63, %v3462_v35  ;;  %v3817_v63 = vld [vmem:[%s14703_s4 + $0x3e8] sm:$0xff]  ;;  %v8532_v28 = vpack.c.bf16 %v3773_v43, %v3758_v60  ;;  %v3818_v60 = vld [vmem:[%s14703_s4 + $0x3f0] sm:$0xff] }
 0x3d1   : > { %14936 = vst [vmem:[#allocation216_spill] sm:$0xff] %v11828_v45  ;;  %6892 = vmatmul.mubr.msk.f32.vlgmr.msra.gmra.mrb[240].mxu1 %vm3842_vm4, %v11828_v45  ;;  %6910 = vmatmul.mubr.msk.f32.vlgmr.msra.gmra.mrb[0].mxu0 %vm3842_vm4, %v11828_v45  ;;  %v3601_v51 = vadd.f32 %v3600_v25, %v3457_v34  ;;  %v8512_v25 = vpack.c.bf16 %v3802_v12, %v3787_v50  ;;  %v3834_v12 = vld [vmem:[%s14703_s4 + $0x470] sm:$0xf]  ;;  %v3833_v43 = vld [vmem:[%s14703_s4 + $0x468] sm:$0xf] }
 0x3d2   : > { %8503 = vmatpush1.bf16.msra.mxu1 %v8502_v40  ;;  %4007 = vmatprep.mubr.f32.mxu1 %v14933_v54  ;;  %v8516_v56 = vpack.c.bf16 %v3832_v57, %v3817_v63  ;;  %v3701_v35 = vld [vmem:[%s14703_s4 + $0x48] sm:$0xff]  ;;  %v3703_v57 = vld [vmem:[%s14703_s4 + $0x58] sm:$0xff] }
 0x3d3   : > { %v11862_v0 = vpop.f32.mrb[244].mxu0  ;;  %4168 = vmatprep.mubr.f32.mxu0 %v14933_v54  ;;  %8505 = vmatprep.subr.bf16.mxu1 %v8504_v21  ;;  %v11881_v58 = vmul.f32 %v11813_v53, %v3601_v51  ;;  %v3786_v21 = vld [vmem:[%s14703_s4 + $0x2f0] sm:$0xff]  ;;  %v3788_v51 = vld [vmem:[%s14703_s4 + $0x300] sm:$0xff] }
 0x3d4   : > { %v3610_v19 = vpop.f32.mrb[245].mxu0  ;;  %8525 = vmatpush1.bf16.msra.mxu0 %v8524_v39  ;;  %v3789_v39 = vld [vmem:[%s14703_s4 + $0x308] sm:$0xff]  ;;  %v8514_v26 = vpack.c.bf16 %v3801_v30, %v3786_v21  ;;  %v8536_v10 = vpack.c.bf16 %v3803_v31, %v3788_v51  ;;  %v3477_v51 = vpop.permute.xlu0 %3476 }
 0x3d5   : > { %14938 = vst [vmem:[#allocation218_spill] sm:$0xff] %v11881_v58  ;;  %6893 = vmatmul.mubr.msk.f32.gmra.mrb[242].mxu1 %vm3842_vm4, %v11860_v1  ;;  %6911 = vmatmul.mubr.msk.f32.gmra.mrb[2].mxu0 %vm3842_vm4, %v11860_v1  ;;  %v3611_v42 = vadd.f32 %v3610_v19, %v3467_v14  ;;  %v8534_v50 = vpack.c.bf16 %v3804_v59, %v3789_v39  ;;  %v3819_v19 = vld [vmem:[%s14703_s4 + $0x3f8] sm:$0xff] }
 0x3d6   : > { %4013 = vmatprep.mubr.f32.mxu1 %v14933_v54  ;;  %4174 = vmatprep.mubr.f32.mxu0 %v14933_v54  ;;  %v8538_v63 = vpack.c.bf16 %v3834_v12, %v3819_v19  ;;  %v8541_v39 = vpack.c.bf16 %v3833_v43, %v3818_v60 }
 0x3d7   : > { %v11898_v40 = vpop.f32.mrb[246].mxu0  ;;  %8507 = vmatpush1.bf16.msra.mxu1 %v8506_v6  ;;  %8527 = vmatprep.subr.bf16.mxu0 %v8526_v41  ;;  %v11931_v6 = vmul.f32 %v11813_v53, %v3606_v61  ;;  %v3816_v41 = vld [vmem:[%s14703_s4 + $0x3e0] sm:$0xff] }
 0x3d8   : > { %v3620_v34 = vpop.f32.mrb[247].mxu0  ;;  %8509 = vmatprep.subr.bf16.mxu1 %v8508_v13  ;;  %8529 = vmatpush1.bf16.msra.mxu0 %v8528_v20  ;;  %v3831_v13 = vld [vmem:[%s14703_s4 + $0x458] sm:$0xf]  ;;  %v3716_v61 = vld [vmem:[%s14703_s4 + $0xc0] sm:$0xff]  ;;  %v3487_v19 = vpop.permute.xlu0 %3486 }
 0x3d9   : > { %6894 = vmatmul.mubr.msk.f32.gmra.mrb[244].mxu1 %vm3842_vm4, %v11881_v58  ;;  %6912 = vmatmul.mubr.msk.f32.gmra.mrb[4].mxu0 %vm3842_vm4, %v11881_v58  ;;  %v8519_v21 = vpack.c.bf16 %v3831_v13, %v3816_v41  ;;  %v8544_v59 = vpack.c.bf16 %v3716_v61, %v3701_v35  ;;  %v3621_v14 = vadd.f32 %v3620_v34, %v3477_v51 }
 0x3da   : > { %4019 = vmatprep.mubr.f32.mxu1 %v14933_v54  ;;  %4180 = vmatprep.mubr.f32.mxu0 %v14933_v54 }
 0x3db   : > { %v11933_v15 = vpop.f32.mrb[248].mxu0  ;;  %8511 = vmatpush1.bf16.msra.mxu1 %v8510_v18  ;;  %8531 = vmatprep.subr.bf16.mxu0 %v8530_v8  ;;  %v3472_v18 = vpop.permute.xlu1 %3471  ;;  %v11967_v8 = vmul.f32 %v11813_v53, %v3611_v42 }
 0x3dc   : > { %v3630_v20 = vpop.f32.mrb[249].mxu0  ;;  %8513 = vmatprep.subr.bf16.mxu1 %v8512_v25  ;;  %8533 = vmatpush1.bf16.msra.mxu0 %v8532_v28  ;;  %v3616_v30 = vadd.f32 %v11862_v0, %v3472_v18  ;;  %v3718_v0 = vld [vmem:[%s14703_s4 + $0xd0] sm:$0xff] }
 0x3dd   : > { %6895 = vmatmul.mubr.msk.f32.gmra.mrb[246].mxu1 %vm3842_vm4, %v11931_v6  ;;  %6913 = vmatmul.mubr.msk.f32.gmra.mrb[6].mxu0 %vm3842_vm4, %v11931_v6  ;;  %v8566_v42 = vpack.c.bf16 %v3718_v0, %v3703_v57 }
 0x3de   : > { %4025 = vmatprep.mubr.f32.mxu1 %v14933_v54  ;;  %4186 = vmatprep.mubr.f32.mxu0 %v14933_v54  ;;  %v11984_v31 = vmul.f32 %v11813_v53, %v3616_v30 }
 0x3df   : > { %v7893_v25 = vpop.f32.mrb[250].mxu0  ;;  %8515 = vmatpush1.bf16.msra.mxu1 %v8514_v26  ;;  %8535 = vmatprep.subr.bf16.mxu0 %v8534_v50  ;;  %v3482_v34 = vpop.permute.xlu1 %3481  ;;  %v12000_v50 = vmul.f32 %v11813_v53, %v3621_v14 }
 0x3e0   : > { %v3640_v28 = vpop.f32.mrb[251].mxu0  ;;  %8518 = vmatprep.subr.msk.bf16.mxu1 %vm11598_vm3, %v8516_v56  ;;  %8537 = vmatpush1.bf16.msra.mxu0 %v8536_v10  ;;  %v3626_v13 = vadd.f32 %v11898_v40, %v3482_v34  ;;  %v3631_v40 = vadd.f32 %v3630_v20, %v3487_v19  ;;  %v3497_v20 = vpop.permute.xlu0 %3496  ;;  %v3746_v19 = vld [vmem:[%s14703_s4 + $0x1b0] sm:$0xff] }
 0x3e1   : > { %6896 = vmatmul.mubr.msk.f32.gmra.mrb[248].mxu1 %vm3842_vm4, %v11967_v8  ;;  %6914 = vmatmul.mubr.msk.f32.gmra.mrb[8].mxu0 %vm3842_vm4, %v11967_v8  ;;  %v3641_v18 = vadd.f32 %v3640_v28, %v3497_v20  ;;  %v3730_v20 = vld [vmem:[%s14703_s4 + $0x130] sm:$0xff] }
 0x3e2   : > { %4031 = vmatprep.mubr.f32.mxu1 %v14933_v54  ;;  %4192 = vmatprep.mubr.f32.mxu0 %v14933_v54  ;;  %v12009_v12 = vmul.f32 %v11813_v53, %v3626_v13  ;;  %v12019_v35 = vmul.f32 %v11813_v53, %v3631_v40  ;;  %v3700_v13 = vld [vmem:[%s14703_s4 + $0x40] sm:$0xff]  ;;  %v3717_v40 = vld [vmem:[%s14703_s4 + $0xc8] sm:$0xff] }
 0x3e3   : > { %v7896_v26 = vpop.f32.mrb[252].mxu0  ;;  %8521 = vmatpush1.bf16.msk.msra.mxu1 %vm11598_vm3, %v8519_v21  ;;  %8540 = vmatprep.subr.msk.bf16.mxu0 %vm11598_vm3, %v8538_v63  ;;  %v3492_v60 = vpop.permute.xlu1 %3491  ;;  %v12037_v30 = vmul.f32 %v11813_v53, %v3641_v18  ;;  %v3745_v18 = vld [vmem:[%s14703_s4 + $0x1a8] sm:$0xff] }
 0x3e4   : > { %v3650_v41 = vpop.f32.mrb[253].mxu0  ;;  %8543 = vmatpush1.bf16.msk.msra.mxu0 %vm11598_vm3, %v8541_v39  ;;  %8545 = vmatprep.subr.bf16.mxu1 %v8544_v59  ;;  %v3636_v43 = vadd.f32 %v11933_v15, %v3492_v60  ;;  %v3507_v63 = vpop.permute.xlu0 %3506 }
 0x3e5   : > { %6897 = vmatmul.mubr.msk.f32.gmra.mrb[250].mxu1 %vm3842_vm4, %v11984_v31  ;;  %6915 = vmatmul.mubr.msk.f32.gmra.mrb[10].mxu0 %vm3842_vm4, %v11984_v31  ;;  %v3651_v39 = vadd.f32 %v3650_v41, %v3507_v63  ;;  %v3733_v63 = vld [vmem:[%s14703_s4 + $0x148] sm:$0xff] }
 0x3e6   : > { %4037 = vmatprep.mubr.f32.mxu1 %v14933_v54  ;;  %4198 = vmatprep.mubr.f32.mxu0 %v14933_v54  ;;  %v12028_v61 = vmul.f32 %v11813_v53, %v3636_v43 }
 0x3e7   : > { %v7899_v56 = vpop.f32.mrb[254].mxu0  ;;  %8567 = vmatprep.subr.bf16.mxu0 %v8566_v42  ;;  %v3502_v15 = vpop.permute.xlu1 %3501  ;;  %v12055_v57 = vmul.f32 %v11813_v53, %v3651_v39  ;;  %v3748_v39 = vld [vmem:[%s14703_s4 + $0x1c0] sm:$0xff] }
 0x3e8   : > { %v3660_v10 = vpop.f32.mrb[255].mxu0  ;;  %v3646_v21 = vadd.f32 %v7893_v25, %v3502_v15  ;;  %v3517_v0 = vpop.permute.xlu0 %3516  ;;  %v3761_v15 = vld [vmem:[%s14703_s4 + $0x228] sm:$0xff] }
 0x3e9   : > { %6898 = vmatmul.mubr.msk.f32.gmra.mrb[252].mxu1 %vm3842_vm4, %v12000_v50  ;;  %6916 = vmatmul.mubr.msk.f32.gmra.mrb[12].mxu0 %vm3842_vm4, %v12000_v50  ;;  %v3661_v14 = vadd.f32 %v3660_v10, %v3517_v0  ;;  %v3731_v10 = vld [vmem:[%s14703_s4 + $0x138] sm:$0xff] }
 0x3ea   : > { %4043 = vmatprep.mubr.f32.mxu1 %v14933_v54  ;;  %4204 = vmatprep.mubr.f32.mxu0 %v14933_v54  ;;  %v12046_v28 = vmul.f32 %v11813_v53, %v3646_v21  ;;  %v8548_v43 = vpack.c.bf16 %v3746_v19, %v3731_v10  ;;  %v3747_v0 = vld [vmem:[%s14703_s4 + $0x1b8] sm:$0xff] }
 0x3eb   : > { %v3512_v25 = vpop.permute.xlu1 %3511  ;;  %v12073_v41 = vmul.f32 %v11813_v53, %v3661_v14  ;;  %v8550_v14 = vpack.c.bf16 %v3745_v18, %v3730_v20  ;;  %v3791_v10 = vld [vmem:[%s14703_s4 + $0x318] sm:$0xff]  ;;  %v3777_v20 = vld [vmem:[%s14703_s4 + $0x2a8] sm:$0xff] }
 0x3ec   : > { %v3656_v59 = vadd.f32 %v7896_v26, %v3512_v25  ;;  %v3776_v25 = vld [vmem:[%s14703_s4 + $0x2a0] sm:$0xff] }
 0x3ed   : > { %6899 = vmatmul.mubr.msk.f32.gmra.mrb[254].mxu1 %vm3842_vm4, %v12009_v12  ;;  %6917 = vmatmul.mubr.msk.f32.gmra.mrb[14].mxu0 %vm3842_vm4, %v12009_v12 }
 0x3ee   : > { %4049 = vmatprep.mubr.f32.mxu1 %v14933_v54  ;;  %4210 = vmatprep.mubr.f32.mxu0 %v14933_v54  ;;  %v12064_v51 = vmul.f32 %v11813_v53, %v3656_v59  ;;  %v3732_v59 = vld [vmem:[%s14703_s4 + $0x140] sm:$0xff] }
 0x3ef   : > { %v3522_v26 = vpop.permute.xlu1 %3521  ;;  %v8572_v19 = vpack.c.bf16 %v3747_v0, %v3732_v59  ;;  %v3793_v0 = vld [vmem:[%s14703_s4 + $0x328] sm:$0xff] }
 0x3f0   : > { %v3666_v42 = vadd.f32 %v7899_v56, %v3522_v26  ;;  %v3715_v56 = vld [vmem:[%s14703_s4 + $0xb8] sm:$0xff]  ;;  %v3760_v26 = vld [vmem:[%s14703_s4 + $0x220] sm:$0xff] }
 0x3f1   : > { %6900 = vmatmul.mubr.msk.f32.gmra.mrb[0].mxu1 %vm3842_vm4, %v12019_v35  ;;  %6918 = vmatmul.mubr.msk.f32.gmra.mrb[16].mxu0 %vm3842_vm4, %v12019_v35  ;;  %v8546_v60 = vpack.c.bf16 %v3715_v56, %v3700_v13  ;;  %v8570_v13 = vpack.c.bf16 %v3748_v39, %v3733_v63  ;;  %v8552_v56 = vpack.c.bf16 %v3776_v25, %v3761_v15  ;;  %v3790_v15 = vld [vmem:[%s14703_s4 + $0x310] sm:$0xff]  ;;  %v3821_v25 = vld [vmem:[%s14703_s4 + $0x408] sm:$0xff] }
 0x3f2   : > { %4055 = vmatprep.mubr.f32.mxu1 %v14933_v54  ;;  %4216 = vmatprep.mubr.f32.mxu0 %v14933_v54  ;;  %v12082_v34 = vmul.f32 %v11813_v53, %v3666_v42  ;;  %v3702_v53 = vld [vmem:[%s14703_s4 + $0x50] sm:$0xff]  ;;  %v3775_v42 = vld [vmem:[%s14703_s4 + $0x298] sm:$0xff] }
 0x3f3   : > { %v8568_v21 = vpack.c.bf16 %v3717_v40, %v3702_v53  ;;  %v3763_v53 = vld [vmem:[%s14703_s4 + $0x238] sm:$0xff]  ;;  %v3778_v40 = vld [vmem:[%s14703_s4 + $0x2b0] sm:$0xff]  ;;  %v8554_v18 = vpack.c.bf16 %v3775_v42, %v3760_v26  ;;  %v3836_v26 = vld [vmem:[%s14703_s4 + $0x480] sm:$0xf] }
 0x3f4   : > { %v8574_v63 = vpack.c.bf16 %v3778_v40, %v3763_v53  ;;  %v3792_v42 = vld [vmem:[%s14703_s4 + $0x320] sm:$0xff]  ;;  %v8560_v40 = vpack.c.bf16 %v3836_v26, %v3821_v25  ;;  %v3721_v26 = vld [vmem:[%s14703_s4 + $0xe8] sm:$0xff] }
 0x3f5   : > { %6901 = vmatmul.mubr.msk.f32.gmra.mrb[2].mxu1 %vm3842_vm4, %v12028_v61  ;;  %6919 = vmatmul.mubr.msk.f32.gmra.mrb[18].mxu0 %vm3842_vm4, %v12028_v61 }
 0x3f6   : > { %4061 = vmatprep.mubr.f32.mxu1 %v14933_v54  ;;  %4222 = vmatprep.mubr.f32.mxu0 %v14933_v54 }
 0x3f9   : > { %6902 = vmatmul.mubr.msk.f32.gmra.mrb[4].mxu1 %vm3842_vm4, %v12037_v30  ;;  %6920 = vmatmul.mubr.msk.f32.gmra.mrb[20].mxu0 %vm3842_vm4, %v12037_v30 }
 0x3fa   : > { %4067 = vmatprep.mubr.f32.mxu1 %v14933_v54  ;;  %4228 = vmatprep.mubr.f32.mxu0 %v14933_v54 }
 0x3fd   : > { %6903 = vmatmul.mubr.msk.f32.gmra.mrb[6].mxu1 %vm3842_vm4, %v12046_v28  ;;  %6921 = vmatmul.mubr.msk.f32.gmra.mrb[22].mxu0 %vm3842_vm4, %v12046_v28 }
 0x3fe   : > { %4073 = vmatprep.mubr.f32.mxu1 %v14933_v54  ;;  %4234 = vmatprep.mubr.f32.mxu0 %v14933_v54 }
 0x401   : > { %6904 = vmatmul.mubr.msk.f32.gmra.mrb[8].mxu1 %vm3842_vm4, %v12055_v57  ;;  %6922 = vmatmul.mubr.msk.f32.gmra.mrb[24].mxu0 %vm3842_vm4, %v12055_v57 }
 0x402   : > { %4079 = vmatprep.mubr.f32.mxu1 %v14933_v54  ;;  %4240 = vmatprep.mubr.f32.mxu0 %v14933_v54 }
 0x405   : > { %6905 = vmatmul.mubr.msk.f32.gmra.mrb[10].mxu1 %vm3842_vm4, %v12064_v51  ;;  %6923 = vmatmul.mubr.msk.f32.gmra.mrb[26].mxu0 %vm3842_vm4, %v12064_v51 }
 0x406   : > { %4085 = vmatprep.mubr.f32.mxu1 %v14933_v54  ;;  %4246 = vmatprep.mubr.f32.mxu0 %v14933_v54 }
 0x409   : > { %6906 = vmatmul.mubr.msk.f32.gmra.mrb[12].mxu1 %vm3842_vm4, %v12073_v41  ;;  %6924 = vmatmul.mubr.msk.f32.gmra.mrb[28].mxu0 %vm3842_vm4, %v12073_v41 }
 0x40a   : > { %4091 = vmatprep.mubr.f32.mxu1 %v14933_v54  ;;  %4252 = vmatprep.mubr.f32.mxu0 %v14933_v54 }
 0x40d   : > { %6907 = vmatmul.mubr.msk.f32.gmra.mrb[14].mxu1 %vm3842_vm4, %v12082_v34  ;;  %6925 = vmatmul.mubr.msk.f32.gmra.mrb[30].mxu0 %vm3842_vm4, %v12082_v34 }
 0x40e   : > { %4323 = vmatprep.mubr.f32.mxu1 %v14933_v54  ;;  %4484 = vmatprep.mubr.f32.mxu0 %v14933_v54 }
 0x411   : > { %6928 = vmatmul.mubr.msk.f32.vlgmr.msra.gmra.mrb[16].mxu1 %vm3842_vm4, %v11828_v45  ;;  %6946 = vmatmul.mubr.msk.f32.vlgmr.msra.gmra.mrb[32].mxu0 %vm3842_vm4, %v11828_v45 }
 0x412   : > { %8547 = vmatpush1.bf16.msra.mxu1 %v8546_v60  ;;  %4329 = vmatprep.mubr.f32.mxu1 %v14933_v54  ;;  %v3806_v60 = vld [vmem:[%s14703_s4 + $0x390] sm:$0xff] }
 0x413   : > { %4490 = vmatprep.mubr.f32.mxu0 %v14933_v54  ;;  %8549 = vmatprep.subr.bf16.mxu1 %v8548_v43  ;;  %v3762_v43 = vld [vmem:[%s14703_s4 + $0x230] sm:$0xff]  ;;  %v8556_v39 = vpack.c.bf16 %v3806_v60, %v3791_v10  ;;  %v3820_v10 = vld [vmem:[%s14703_s4 + $0x400] sm:$0xff] }
 0x414   : > { %8569 = vmatpush1.bf16.msra.mxu0 %v8568_v21  ;;  %v3805_v21 = vld [vmem:[%s14703_s4 + $0x388] sm:$0xff]  ;;  %v8576_v59 = vpack.c.bf16 %v3777_v20, %v3762_v43  ;;  %v3823_v43 = vld [vmem:[%s14703_s4 + $0x418] sm:$0xff]  ;;  %v3838_v20 = vld [vmem:[%s14703_s4 + $0x490] sm:$0xf] }
 0x415   : > { %6929 = vmatmul.mubr.msk.f32.gmra.mrb[18].mxu1 %vm3842_vm4, %v11860_v1  ;;  %6947 = vmatmul.mubr.msk.f32.gmra.mrb[34].mxu0 %vm3842_vm4, %v11860_v1  ;;  %v8582_v25 = vpack.c.bf16 %v3838_v20, %v3823_v43 }
 0x416   : > { %4335 = vmatprep.mubr.f32.mxu1 %v14933_v54  ;;  %4496 = vmatprep.mubr.f32.mxu0 %v14933_v54 }
 0x417   : > { %8551 = vmatpush1.bf16.msra.mxu1 %v8550_v14  ;;  %8571 = vmatprep.subr.bf16.mxu0 %v8570_v13  ;;  %v3808_v14 = vld [vmem:[%s14703_s4 + $0x3a0] sm:$0xff]  ;;  %v3807_v13 = vld [vmem:[%s14703_s4 + $0x398] sm:$0xff] }
 0x418   : > { %8553 = vmatprep.subr.bf16.mxu1 %v8552_v56  ;;  %8573 = vmatpush1.bf16.msra.mxu0 %v8572_v19  ;;  %v8558_v56 = vpack.c.bf16 %v3805_v21, %v3790_v15  ;;  %v3835_v19 = vld [vmem:[%s14703_s4 + $0x478] sm:$0xf]  ;;  %v8578_v53 = vpack.c.bf16 %v3808_v14, %v3793_v0  ;;  %v8580_v60 = vpack.c.bf16 %v3807_v13, %v3792_v42  ;;  %v3837_v15 = vld [vmem:[%s14703_s4 + $0x488] sm:$0xf]  ;;  %v3706_v14 = vld [vmem:[%s14703_s4 + $0x70] sm:$0xff]  ;;  %v12297_v13 = vpop.permute.xlu0 %657 }
 0x419   : > { %6930 = vmatmul.mubr.msk.f32.gmra.mrb[20].mxu1 %vm3842_vm4, %v11881_v58  ;;  %6948 = vmatmul.mubr.msk.f32.gmra.mrb[36].mxu0 %vm3842_vm4, %v11881_v58  ;;  %v3705_v21 = vld [vmem:[%s14703_s4 + $0x68] sm:$0xff]  ;;  %v12246_v42 = vpack.c.bf16 %v3721_v26, %v3706_v14  ;;  %v3764_v26 = vld [vmem:[%s14703_s4 + $0x240] sm:$0xff] }
 0x41a   : > { %4341 = vmatprep.mubr.f32.mxu1 %v14933_v54  ;;  %4502 = vmatprep.mubr.f32.mxu0 %v14933_v54 }
 0x41b   : > { %8555 = vmatpush1.bf16.msra.mxu1 %v8554_v18  ;;  %8575 = vmatprep.subr.bf16.mxu0 %v8574_v63  ;;  %v3822_v18 = vld [vmem:[%s14703_s4 + $0x410] sm:$0xff]  ;;  %v3720_v63 = vld [vmem:[%s14703_s4 + $0xe0] sm:$0xff] }
 0x41c   : > { %8557 = vmatprep.subr.bf16.mxu1 %v8556_v39  ;;  %8577 = vmatpush1.bf16.msra.mxu0 %v8576_v59  ;;  %v8563_v39 = vpack.c.bf16 %v3835_v19, %v3820_v10  ;;  %v8585_v59 = vpack.c.bf16 %v3837_v15, %v3822_v18  ;;  %v8588_v0 = vpack.c.bf16 %v3720_v63, %v3705_v21  ;;  %v3704_v10 = vld [vmem:[%s14703_s4 + $0x60] sm:$0xff]  ;;  %v3719_v19 = vld [vmem:[%s14703_s4 + $0xd8] sm:$0xff]  ;;  %v3734_v15 = vld [vmem:[%s14703_s4 + $0x150] sm:$0xff] }
 0x41d   : > { %6931 = vmatmul.mubr.msk.f32.gmra.mrb[22].mxu1 %vm3842_vm4, %v11931_v6  ;;  %6949 = vmatmul.mubr.msk.f32.gmra.mrb[38].mxu0 %vm3842_vm4, %v11931_v6  ;;  %v8590_v20 = vpack.c.bf16 %v3719_v19, %v3704_v10  ;;  %v3749_v21 = vld [vmem:[%s14703_s4 + $0x1c8] sm:$0xff]  ;;  %v3736_v63 = vld [vmem:[%s14703_s4 + $0x160] sm:$0xff] }
 0x41e   : > { %4347 = vmatprep.mubr.f32.mxu1 %v14933_v54  ;;  %4508 = vmatprep.mubr.f32.mxu0 %v14933_v54  ;;  %v8594_v14 = vpack.c.bf16 %v3749_v21, %v3734_v15  ;;  %v3795_v15 = vld [vmem:[%s14703_s4 + $0x338] sm:$0xff] }
 0x41f   : > { %8559 = vmatpush1.bf16.msra.mxu1 %v8558_v56  ;;  %8579 = vmatprep.subr.bf16.mxu0 %v8578_v53  ;;  %v12307_v56 = vpop.permute.xlu0 %637  ;;  %v3735_v53 = vld [vmem:[%s14703_s4 + $0x158] sm:$0xff] }
 0x420   : > { %8562 = vmatprep.subr.msk.bf16.mxu1 %vm11598_vm3, %v8560_v40  ;;  %8581 = vmatpush1.bf16.msra.mxu0 %v8580_v60  ;;  %v3750_v40 = vld [vmem:[%s14703_s4 + $0x1d0] sm:$0xff]  ;;  %v12327_v60 = vpop.permute.xlu1 %662  ;;  %v12470_v2 = vadd.f32 %v10057_v44, %v12307_v56 }
 0x421   : > { %6932 = vmatmul.mubr.msk.f32.gmra.mrb[24].mxu1 %vm3842_vm4, %v11967_v8  ;;  %6950 = vmatmul.mubr.msk.f32.gmra.mrb[40].mxu0 %vm3842_vm4, %v11967_v8  ;;  %v8592_v18 = vpack.c.bf16 %v3750_v40, %v3735_v53  ;;  %v3779_v40 = vld [vmem:[%s14703_s4 + $0x2b8] sm:$0xff] }
 0x422   : > { %4353 = vmatprep.mubr.f32.mxu1 %v14933_v54  ;;  %4514 = vmatprep.mubr.f32.mxu0 %v14933_v54  ;;  %v8598_v21 = vpack.c.bf16 %v3779_v40, %v3764_v26 }
 0x423   : > { %8565 = vmatpush1.bf16.msk.msra.mxu1 %vm11598_vm3, %v8563_v39  ;;  %8584 = vmatprep.subr.msk.bf16.mxu0 %vm11598_vm3, %v8582_v25  ;;  %v12333_v43 = vpop.permute.xlu0 %667  ;;  %v3751_v39 = vld [vmem:[%s14703_s4 + $0x1d8] sm:$0xff]  ;;  %v3765_v25 = vld [vmem:[%s14703_s4 + $0x248] sm:$0xff] }
 0x424   : > { %8587 = vmatpush1.bf16.msk.msra.mxu0 %vm11598_vm3, %v8585_v59  ;;  %8589 = vmatprep.subr.bf16.mxu1 %v8588_v0  ;;  %v3780_v59 = vld [vmem:[%s14703_s4 + $0x2c0] sm:$0xff]  ;;  %v12360_v0 = vpop.permute.xlu1 %642  ;;  %v8614_v10 = vpack.c.bf16 %v3751_v39, %v3736_v63  ;;  %v3794_v63 = vld [vmem:[%s14703_s4 + $0x330] sm:$0xff] }
 0x425   : > { %6933 = vmatmul.mubr.msk.f32.gmra.mrb[26].mxu1 %vm3842_vm4, %v11984_v31  ;;  %6951 = vmatmul.mubr.msk.f32.gmra.mrb[42].mxu0 %vm3842_vm4, %v11984_v31  ;;  %v8596_v53 = vpack.c.bf16 %v3780_v59, %v3765_v25  ;;  %v3809_v59 = vld [vmem:[%s14703_s4 + $0x3a8] sm:$0xff]  ;;  %v12490_v44 = vadd.f32 %v10105_v5, %v12360_v0 }
 0x426   : > { %4359 = vmatprep.mubr.f32.mxu1 %v14933_v54  ;;  %4520 = vmatprep.mubr.f32.mxu0 %v14933_v54 }
 0x427   : > { %8611 = vmatprep.subr.bf16.mxu0 %v12246_v42  ;;  %v12366_v19 = vpop.permute.xlu0 %682 }
 0x428   : > { %v12402_v26 = vpop.permute.xlu1 %677 }
 0x429   : > { %6934 = vmatmul.mubr.msk.f32.gmra.mrb[28].mxu1 %vm3842_vm4, %v12000_v50  ;;  %6952 = vmatmul.mubr.msk.f32.gmra.mrb[44].mxu0 %vm3842_vm4, %v12000_v50 }
 0x42a   : > { %4365 = vmatprep.mubr.f32.mxu1 %v14933_v54  ;;  %4526 = vmatprep.mubr.f32.mxu0 %v14933_v54 }
 0x42b   : > { %v12414_v40 = vpop.permute.xlu0 %672 }
 0x42d   : > { %6935 = vmatmul.mubr.msk.f32.gmra.mrb[30].mxu1 %vm3842_vm4, %v12009_v12  ;;  %6953 = vmatmul.mubr.msk.f32.gmra.mrb[46].mxu0 %vm3842_vm4, %v12009_v12 }
 0x42e   : > { %4371 = vmatprep.mubr.f32.mxu1 %v14933_v54  ;;  %4532 = vmatprep.mubr.f32.mxu0 %v14933_v54 }
 0x431   : > { %6936 = vmatmul.mubr.msk.f32.gmra.mrb[32].mxu1 %vm3842_vm4, %v12019_v35  ;;  %6954 = vmatmul.mubr.msk.f32.gmra.mrb[48].mxu0 %vm3842_vm4, %v12019_v35 }
 0x432   : > { %4377 = vmatprep.mubr.f32.mxu1 %v14933_v54  ;;  %4538 = vmatprep.mubr.f32.mxu0 %v14933_v54 }
 0x435   : > { %6937 = vmatmul.mubr.msk.f32.gmra.mrb[34].mxu1 %vm3842_vm4, %v12028_v61  ;;  %6955 = vmatmul.mubr.msk.f32.gmra.mrb[50].mxu0 %vm3842_vm4, %v12028_v61 }
 0x436   : > { %4383 = vmatprep.mubr.f32.mxu1 %v14933_v54  ;;  %4544 = vmatprep.mubr.f32.mxu0 %v14933_v54 }
 0x439   : > { %6938 = vmatmul.mubr.msk.f32.gmra.mrb[36].mxu1 %vm3842_vm4, %v12037_v30  ;;  %6956 = vmatmul.mubr.msk.f32.gmra.mrb[52].mxu0 %vm3842_vm4, %v12037_v30 }
 0x43a   : > { %4389 = vmatprep.mubr.f32.mxu1 %v14933_v54  ;;  %4550 = vmatprep.mubr.f32.mxu0 %v14933_v54 }
 0x43d   : > { %6939 = vmatmul.mubr.msk.f32.gmra.mrb[38].mxu1 %vm3842_vm4, %v12046_v28  ;;  %6957 = vmatmul.mubr.msk.f32.gmra.mrb[54].mxu0 %vm3842_vm4, %v12046_v28 }
 0x43e   : > { %4395 = vmatprep.mubr.f32.mxu1 %v14933_v54  ;;  %4556 = vmatprep.mubr.f32.mxu0 %v14933_v54 }
 0x441   : > { %6940 = vmatmul.mubr.msk.f32.gmra.mrb[40].mxu1 %vm3842_vm4, %v12055_v57  ;;  %6958 = vmatmul.mubr.msk.f32.gmra.mrb[56].mxu0 %vm3842_vm4, %v12055_v57 }
 0x442   : > { %4401 = vmatprep.mubr.f32.mxu1 %v14933_v54  ;;  %4562 = vmatprep.mubr.f32.mxu0 %v14933_v54 }
 0x445   : > { %6941 = vmatmul.mubr.msk.f32.gmra.mrb[42].mxu1 %vm3842_vm4, %v12064_v51  ;;  %6959 = vmatmul.mubr.msk.f32.gmra.mrb[58].mxu0 %vm3842_vm4, %v12064_v51 }
 0x446   : > { %4407 = vmatprep.mubr.f32.mxu1 %v14933_v54  ;;  %4568 = vmatprep.mubr.f32.mxu0 %v14933_v54 }
 0x449   : > { %6942 = vmatmul.mubr.msk.f32.gmra.mrb[44].mxu1 %vm3842_vm4, %v12073_v41  ;;  %6960 = vmatmul.mubr.msk.f32.gmra.mrb[60].mxu0 %vm3842_vm4, %v12073_v41 }
 0x44a   : > { %4413 = vmatprep.mubr.f32.mxu1 %v14933_v54  ;;  %4574 = vmatprep.mubr.f32.mxu0 %v14933_v54 }
 0x44d   : > { %6943 = vmatmul.mubr.msk.f32.gmra.mrb[46].mxu1 %vm3842_vm4, %v12082_v34  ;;  %6961 = vmatmul.mubr.msk.f32.gmra.mrb[62].mxu0 %vm3842_vm4, %v12082_v34 }
 0x44e   : > { %4645 = vmatprep.mubr.f32.mxu1 %v14933_v54  ;;  %4806 = vmatprep.mubr.f32.mxu0 %v14933_v54 }
 0x451   : > { %6964 = vmatmul.mubr.msk.f32.vlgmr.msra.gmra.mrb[48].mxu1 %vm3842_vm4, %v11828_v45  ;;  %6982 = vmatmul.mubr.msk.f32.vlgmr.msra.gmra.mrb[64].mxu0 %vm3842_vm4, %v11828_v45  ;;  %v3826_v45 = vld [vmem:[%s14703_s4 + $0x430] sm:$0xff] }
 0x452   : > { %8591 = vmatpush1.bf16.msra.mxu1 %v8590_v20  ;;  %4651 = vmatprep.mubr.f32.mxu1 %v14933_v54  ;;  %v3766_v20 = vld [vmem:[%s14703_s4 + $0x250] sm:$0xff] }
 0x453   : > { %4812 = vmatprep.mubr.f32.mxu0 %v14933_v54  ;;  %8593 = vmatprep.subr.bf16.mxu1 %v8592_v18  ;;  %v3781_v18 = vld [vmem:[%s14703_s4 + $0x2c8] sm:$0xff] }
 0x454   : > { %8613 = vmatpush3.bf16.msra.mxu0 %v12246_v42  ;;  %v3810_v42 = vld [vmem:[%s14703_s4 + $0x3b0] sm:$0xff]  ;;  %v8618_v39 = vpack.c.bf16 %v3781_v18, %v3766_v20  ;;  %v8602_v20 = vpack.c.bf16 %v3809_v59, %v3794_v63  ;;  %v3824_v18 = vld [vmem:[%s14703_s4 + $0x420] sm:$0xff] }
 0x455   : > { %6965 = vmatmul.mubr.msk.f32.gmra.mrb[50].mxu1 %vm3842_vm4, %v11860_v1  ;;  %6983 = vmatmul.mubr.msk.f32.gmra.mrb[66].mxu0 %vm3842_vm4, %v11860_v1  ;;  %v8600_v25 = vpack.c.bf16 %v3810_v42, %v3795_v15  ;;  %v3796_v1 = vld [vmem:[%s14703_s4 + $0x340] sm:$0xff] }
 0x456   : > { %4657 = vmatprep.mubr.f32.mxu1 %v14933_v54  ;;  %4818 = vmatprep.mubr.f32.mxu0 %v14933_v54 }
 0x457   : > { %8595 = vmatpush1.bf16.msra.mxu1 %v8594_v14  ;;  %8615 = vmatprep.subr.bf16.mxu0 %v8614_v10  ;;  %v3811_v14 = vld [vmem:[%s14703_s4 + $0x3b8] sm:$0xff] }
 0x458   : > { %8597 = vmatprep.subr.bf16.mxu1 %v8596_v53  ;;  %8617 = vmatpush3.bf16.msra.mxu0 %v8614_v10  ;;  %v3825_v10 = vld [vmem:[%s14703_s4 + $0x428] sm:$0xff]  ;;  %v3840_v53 = vld [vmem:[%s14703_s4 + $0x4a0] sm:$0xf]  ;;  %v8622_v15 = vpack.c.bf16 %v3811_v14, %v3796_v1  ;;  %v12436_v1 = vpop.permute.xlu1 %647  ;;  %v12474_v14 = vadd.f32 %v10059_v46, %v12307_v56  ;;  %v12494_v46 = vadd.f32 %v10116_v11, %v12360_v0 }
 0x459   : > { %6966 = vmatmul.mubr.msk.f32.gmra.mrb[52].mxu1 %vm3842_vm4, %v11881_v58  ;;  %6984 = vmatmul.mubr.msk.f32.gmra.mrb[68].mxu0 %vm3842_vm4, %v11881_v58  ;;  %v8604_v42 = vpack.c.bf16 %v3840_v53, %v3825_v10  ;;  %v3839_v58 = vld [vmem:[%s14703_s4 + $0x498] sm:$0xf]  ;;  %v12478_v10 = vadd.f32 %v10070_v52, %v12307_v56  ;;  %v12486_v53 = vadd.f32 %v10102_v4, %v12360_v0 }
 0x45a   : > { %4663 = vmatprep.mubr.f32.mxu1 %v14933_v54  ;;  %4824 = vmatprep.mubr.f32.mxu0 %v14933_v54  ;;  %v8607_v63 = vpack.c.bf16 %v3839_v58, %v3824_v18  ;;  %v12498_v52 = vadd.f32 %v10137_v17, %v12436_v1  ;;  %v12506_v4 = vadd.f32 %v10148_v24, %v12436_v1 }
 0x45b   : > { %8599 = vmatpush1.bf16.msra.mxu1 %v8598_v21  ;;  %8619 = vmatprep.subr.bf16.mxu0 %v8618_v39  ;;  %v3841_v21 = vld [vmem:[%s14703_s4 + $0x4a8] sm:$0xf]  ;;  %v12510_v5 = vadd.f32 %v10156_v36, %v12436_v1  ;;  %v12538_v36 = vadd.f32 %v10190_v38, %v12297_v13  ;;  %v12558_v38 = vadd.f32 %v10222_v3, %v12327_v60  ;;  %v14944_v3 = vld [vmem:[#allocation2_spill] sm:$0xff] }
 0x45c   : > { %8601 = vmatprep.subr.bf16.mxu1 %v8600_v25  ;;  %8621 = vmatpush3.bf16.msra.mxu0 %v8618_v39  ;;  %v8626_v39 = vpack.c.bf16 %v3841_v21, %v3826_v45  ;;  %v12438_v25 = vpop.permute.xlu0 %697  ;;  %v12448_v59 = vpop.permute.xlu1 %687  ;;  %v12462_v45 = vadd.f32 %v10046_v37, %v12307_v56  ;;  %v12482_v37 = vadd.f32 %v10091_v62, %v12360_v0  ;;  %v14952_v21 = vld [vmem:[#allocation6_spill] sm:$0xff] }
 0x45d   : > { %6967 = vmatmul.mubr.msk.f32.gmra.mrb[54].mxu1 %vm3842_vm4, %v11931_v6  ;;  %6985 = vmatmul.mubr.msk.f32.gmra.mrb[70].mxu0 %vm3842_vm4, %v11931_v6  ;;  %v12502_v62 = vadd.f32 %v10145_v23, %v12436_v1  ;;  %14939 = vst [vmem:[#allocation219_spill] sm:$0xff] %v12558_v38  ;;  %v15217_v38 = vld [vmem:[#allocation136_spill] sm:$0xff] }
 0x45e   : > { %4669 = vmatprep.mubr.f32.mxu1 %v14933_v54  ;;  %4830 = vmatprep.mubr.f32.mxu0 %v14933_v54 }
 0x45f   : > { %8603 = vmatpush1.bf16.msra.mxu1 %v8602_v20  ;;  %8623 = vmatprep.subr.bf16.mxu0 %v8622_v15 }
 0x460   : > { %8606 = vmatprep.subr.msk.bf16.mxu1 %vm11598_vm3, %v8604_v42  ;;  %8625 = vmatpush3.bf16.msra.mxu0 %v8622_v15  ;;  %v12464_v58 = vpop.permute.xlu0 %652  ;;  %v12512_v20 = vpop.permute.xlu1 %702 }
 0x461   : > { %6968 = vmatmul.mubr.msk.f32.gmra.mrb[56].mxu1 %vm3842_vm4, %v11967_v8  ;;  %6986 = vmatmul.mubr.msk.f32.gmra.mrb[72].mxu0 %vm3842_vm4, %v11967_v8  ;;  %v12520_v11 = vadd.f32 %v10166_v47, %v12464_v58  ;;  %v12524_v17 = vadd.f32 %v10174_v27, %v12464_v58  ;;  %v12528_v23 = vadd.f32 %v10177_v29, %v12464_v58 }
 0x462   : > { %4675 = vmatprep.mubr.f32.mxu1 %v14933_v54  ;;  %4836 = vmatprep.mubr.f32.mxu0 %v14933_v54  ;;  %v12534_v24 = vadd.f32 %v10185_v33, %v12464_v58  ;;  %v12542_v47 = vadd.f32 %v10198_v48, %v12297_v13  ;;  %v12546_v27 = vadd.f32 %v10201_v49, %v12297_v13 }
 0x463   : > { %8609 = vmatpush1.bf16.msk.msra.mxu1 %vm11598_vm3, %v8607_v63  ;;  %8628 = vmatprep.subr.msk.bf16.mxu0 %vm11598_vm3, %v8626_v39  ;;  %v12550_v29 = vadd.f32 %v10209_v55, %v12297_v13  ;;  %v12554_v33 = vadd.f32 %v10214_v32, %v12327_v60  ;;  %v12562_v48 = vadd.f32 %v10225_v7, %v12327_v60 }
 0x464   : > { %8631 = vmatpush3.bf16.msk.msra.mxu0 %vm11598_vm3, %v8626_v39  ;;  %v12566_v49 = vadd.f32 %v10233_v9, %v12327_v60  ;;  %v12570_v55 = vadd.f32 %v10238_v16, %v12333_v43  ;;  %v12574_v32 = vadd.f32 %v10246_v22, %v12333_v43  ;;  %v12582_v7 = vadd.f32 %v14944_v3, %v12333_v43  ;;  %v14946_v9 = vld [vmem:[#allocation3_spill] sm:$0xff]  ;;  %v14948_v16 = vld [vmem:[#allocation4_spill] sm:$0xff]  ;;  %v14950_v22 = vld [vmem:[#allocation5_spill] sm:$0xff] }
 0x465   : > { %6969 = vmatmul.mubr.msk.f32.gmra.mrb[58].mxu1 %vm3842_vm4, %v11984_v31  ;;  %6987 = vmatmul.mubr.msk.f32.gmra.mrb[74].mxu0 %vm3842_vm4, %v11984_v31  ;;  %14940 = vst [vmem:[#allocation220_spill] sm:$0xff] %v12562_v48  ;;  %v12586_v18 = vadd.f32 %v14946_v9, %v12333_v43  ;;  %v12590_v15 = vadd.f32 %v14948_v16, %v12414_v40  ;;  %v14954_v39 = vld [vmem:[#allocation7_spill] sm:$0xff]  ;;  %v12606_v9 = vpop.permute.xlu1 %692  ;;  %v14956_v16 = vld [vmem:[#allocation8_spill] sm:$0xff]  ;;  %v15187_v48 = vld [vmem:[#allocation122_spill] sm:$0xff] }
 0x466   : > { %4681 = vmatprep.mubr.f32.mxu1 %v14933_v54  ;;  %4842 = vmatprep.mubr.f32.mxu0 %v14933_v54  ;;  %14941 = vst [vmem:[#allocation221_spill] sm:$0xff] %v12566_v49  ;;  %14942 = vst [vmem:[#allocation222_spill] sm:$0xff] %v12570_v55  ;;  %v12596_v42 = vadd.f32 %v14950_v22, %v12414_v40  ;;  %v12600_v63 = vadd.f32 %v14952_v21, %v12414_v40  ;;  %v14960_v22 = vld [vmem:[#allocation10_spill] sm:$0xff]  ;;  %v14962_v21 = vld [vmem:[#allocation11_spill] sm:$0xff] }
 0x467   : > { %14943 = vst [vmem:[#allocation223_spill] sm:$0xff] %v12574_v32  ;;  %14945 = vst [vmem:[#allocation2_spill] sm:$0xff] %v12582_v7  ;;  %v12604_v3 = vadd.f32 %v14954_v39, %v12414_v40  ;;  %v14964_v39 = vld [vmem:[#allocation12_spill] sm:$0xff]  ;;  %v14966_v32 = vld [vmem:[#allocation13_spill] sm:$0xff] }
 0x468   : > { %14947 = vst [vmem:[#allocation3_spill] sm:$0xff] %v12586_v18  ;;  %14949 = vst [vmem:[#allocation4_spill] sm:$0xff] %v12590_v15  ;;  %v12610_v15 = vadd.f32 %v14956_v16, %v12402_v26  ;;  %v14958_v18 = vld [vmem:[#allocation9_spill] sm:$0xff]  ;;  %v12630_v16 = vadd.f32 %v14966_v32, %v12366_v19  ;;  %v15018_v49 = vld [vmem:[#allocation38_spill] sm:$0xff] }
 0x469   : > { %6970 = vmatmul.mubr.msk.f32.gmra.mrb[60].mxu1 %vm3842_vm4, %v12000_v50  ;;  %6988 = vmatmul.mubr.msk.f32.gmra.mrb[76].mxu0 %vm3842_vm4, %v12000_v50  ;;  %14951 = vst [vmem:[#allocation5_spill] sm:$0xff] %v12596_v42  ;;  %14953 = vst [vmem:[#allocation6_spill] sm:$0xff] %v12600_v63  ;;  %v12614_v7 = vadd.f32 %v14958_v18, %v12402_v26  ;;  %v12618_v42 = vadd.f32 %v14960_v22, %v12402_v26  ;;  %v14974_v32 = vld [vmem:[#allocation17_spill] sm:$0xff] }
 0x46a   : > { %4687 = vmatprep.mubr.f32.mxu1 %v14933_v54  ;;  %4848 = vmatprep.mubr.f32.mxu0 %v14933_v54  ;;  %14955 = vst [vmem:[#allocation7_spill] sm:$0xff] %v12604_v3  ;;  %14957 = vst [vmem:[#allocation8_spill] sm:$0xff] %v12610_v15  ;;  %v12622_v63 = vadd.f32 %v14962_v21, %v12402_v26  ;;  %v12626_v3 = vadd.f32 %v14964_v39, %v12366_v19  ;;  %v14968_v15 = vld [vmem:[#allocation14_spill] sm:$0xff]  ;;  %v14972_v21 = vld [vmem:[#allocation16_spill] sm:$0xff] }
 0x46b   : > { %14959 = vst [vmem:[#allocation9_spill] sm:$0xff] %v12614_v7  ;;  %14961 = vst [vmem:[#allocation10_spill] sm:$0xff] %v12618_v42  ;;  %v12634_v18 = vadd.f32 %v14968_v15, %v12366_v19  ;;  %v14970_v7 = vld [vmem:[#allocation15_spill] sm:$0xff]  ;;  %v12646_v39 = vadd.f32 %v14972_v21, %v12448_v59  ;;  %v14976_v15 = vld [vmem:[#allocation18_spill] sm:$0xff] }
 0x46c   : > { %14963 = vst [vmem:[#allocation11_spill] sm:$0xff] %v12622_v63  ;;  %14965 = vst [vmem:[#allocation12_spill] sm:$0xff] %v12626_v3  ;;  %v12638_v22 = vadd.f32 %v14970_v7, %v12366_v19  ;;  %v14978_v7 = vld [vmem:[#allocation19_spill] sm:$0xff]  ;;  %v14980_v3 = vld [vmem:[#allocation20_spill] sm:$0xff] }
 0x46d   : > { %6971 = vmatmul.mubr.msk.f32.gmra.mrb[62].mxu1 %vm3842_vm4, %v12009_v12  ;;  %6989 = vmatmul.mubr.msk.f32.gmra.mrb[78].mxu0 %vm3842_vm4, %v12009_v12  ;;  %14967 = vst [vmem:[#allocation13_spill] sm:$0xff] %v12630_v16  ;;  %14969 = vst [vmem:[#allocation14_spill] sm:$0xff] %v12634_v18  ;;  %v12650_v16 = vadd.f32 %v14974_v32, %v12448_v59  ;;  %v12654_v18 = vadd.f32 %v14976_v15, %v12448_v59  ;;  %v14985_v15 = vld [vmem:[#allocation22_spill] sm:$0xff]  ;;  %v14987_v63 = vld [vmem:[#allocation23_spill] sm:$0xff] }
 0x46e   : > { %4693 = vmatprep.mubr.f32.mxu1 %v14933_v54  ;;  %4854 = vmatprep.mubr.f32.mxu0 %v14933_v54  ;;  %14971 = vst [vmem:[#allocation15_spill] sm:$0xff] %v12638_v22  ;;  %14973 = vst [vmem:[#allocation16_spill] sm:$0xff] %v12646_v39  ;;  %v12660_v22 = vadd.f32 %v14978_v7, %v12448_v59  ;;  %v12664_v21 = vadd.f32 %v14980_v3, %v12606_v9  ;;  %v14982_v39 = vld [vmem:[#allocation21_spill] sm:$0xff]  ;;  %v14989_v7 = vld [vmem:[#allocation24_spill] sm:$0xff] }
 0x46f   : > { %14975 = vst [vmem:[#allocation17_spill] sm:$0xff] %v12650_v16  ;;  %14977 = vst [vmem:[#allocation18_spill] sm:$0xff] %v12654_v18  ;;  %v12668_v32 = vadd.f32 %v14982_v39, %v12606_v9  ;;  %v12670_v16 = vpop.permute.xlu0 %707  ;;  %v12674_v18 = vadd.f32 %v14985_v15, %v12606_v9  ;;  %v12678_v42 = vadd.f32 %v14987_v63, %v12606_v9  ;;  %v14991_v3 = vld [vmem:[#allocation25_spill] sm:$0xff]  ;;  %v12688_v39 = vpop.permute.xlu1 %712  ;;  %v14996_v15 = vld [vmem:[#allocation27_spill] sm:$0xff] }
 0x470   : > { %14979 = vst [vmem:[#allocation19_spill] sm:$0xff] %v12660_v22  ;;  %14981 = vst [vmem:[#allocation20_spill] sm:$0xff] %v12664_v21  ;;  %v12682_v22 = vadd.f32 %v14989_v7, %v12438_v25  ;;  %v12686_v21 = vadd.f32 %v14991_v3, %v12438_v25  ;;  %v14998_v63 = vld [vmem:[#allocation28_spill] sm:$0xff]  ;;  %v15000_v7 = vld [vmem:[#allocation29_spill] sm:$0xff] }
 0x471   : > { %6972 = vmatmul.mubr.msk.f32.gmra.mrb[64].mxu1 %vm3842_vm4, %v12019_v35  ;;  %6990 = vmatmul.mubr.msk.f32.gmra.mrb[80].mxu0 %vm3842_vm4, %v12019_v35  ;;  %14983 = vst [vmem:[#allocation21_spill] sm:$0xff] %v12668_v32  ;;  %14984 = vst [vmem:[#allocation224_spill] sm:$0xff] %v12670_v16  ;;  %v14994_v32 = vld [vmem:[#allocation26_spill] sm:$0xff] }
 0x472   : > { %4699 = vmatprep.mubr.f32.mxu1 %v14933_v54  ;;  %4860 = vmatprep.mubr.f32.mxu0 %v14933_v54  ;;  %14986 = vst [vmem:[#allocation22_spill] sm:$0xff] %v12674_v18  ;;  %14988 = vst [vmem:[#allocation23_spill] sm:$0xff] %v12678_v42  ;;  %v12692_v55 = vadd.f32 %v14994_v32, %v12438_v25  ;;  %v12696_v18 = vadd.f32 %v14996_v15, %v12438_v25  ;;  %v15002_v32 = vld [vmem:[#allocation30_spill] sm:$0xff]  ;;  %v15004_v15 = vld [vmem:[#allocation31_spill] sm:$0xff] }
 0x473   : > { %14990 = vst [vmem:[#allocation24_spill] sm:$0xff] %v12682_v22  ;;  %14992 = vst [vmem:[#allocation25_spill] sm:$0xff] %v12686_v21  ;;  %v12700_v42 = vadd.f32 %v14998_v63, %v12512_v20  ;;  %v12704_v22 = vadd.f32 %v15000_v7, %v12512_v20  ;;  %v12712_v3 = vadd.f32 %v15002_v32, %v12512_v20  ;;  %v15006_v63 = vld [vmem:[#allocation32_spill] sm:$0xff]  ;;  %v15008_v7 = vld [vmem:[#allocation33_spill] sm:$0xff] }
 0x474   : > { %14993 = vst [vmem:[#allocation225_spill] sm:$0xff] %v12688_v39  ;;  %14995 = vst [vmem:[#allocation26_spill] sm:$0xff] %v12692_v55  ;;  %v15010_v55 = vld [vmem:[#allocation34_spill] sm:$0xff] }
 0x475   : > { %14997 = vst [vmem:[#allocation27_spill] sm:$0xff] %v12696_v18  ;;  %14999 = vst [vmem:[#allocation28_spill] sm:$0xff] %v12700_v42  ;;  %6973 = vmatmul.mubr.msk.f32.gmra.mrb[66].mxu1 %vm3842_vm4, %v12028_v61  ;;  %6991 = vmatmul.mubr.msk.f32.gmra.mrb[82].mxu0 %vm3842_vm4, %v12028_v61  ;;  %v12716_v18 = vadd.f32 %v15004_v15, %v12512_v20  ;;  %v12720_v42 = vadd.f32 %v15006_v63, %v12670_v16 }
 0x476   : > { %15001 = vst [vmem:[#allocation29_spill] sm:$0xff] %v12704_v22  ;;  %15003 = vst [vmem:[#allocation30_spill] sm:$0xff] %v12712_v3  ;;  %4705 = vmatprep.mubr.f32.mxu1 %v14933_v54  ;;  %4866 = vmatprep.mubr.f32.mxu0 %v14933_v54  ;;  %v12726_v22 = vadd.f32 %v15008_v7, %v12670_v16  ;;  %v12730_v32 = vadd.f32 %v15010_v55, %v12670_v16  ;;  %v15012_v3 = vld [vmem:[#allocation35_spill] sm:$0xff] }
 0x477   : > { %15005 = vst [vmem:[#allocation31_spill] sm:$0xff] %v12716_v18  ;;  %15007 = vst [vmem:[#allocation32_spill] sm:$0xff] %v12720_v42  ;;  %v12734_v15 = vadd.f32 %v15012_v3, %v12670_v16  ;;  %v15014_v18 = vld [vmem:[#allocation36_spill] sm:$0xff]  ;;  %v15016_v42 = vld [vmem:[#allocation37_spill] sm:$0xff]  ;;  %v12746_v7 = vadd.f32 %v15018_v49, %v12688_v39 }
 0x478   : > { %15009 = vst [vmem:[#allocation33_spill] sm:$0xff] %v12726_v22  ;;  %15011 = vst [vmem:[#allocation34_spill] sm:$0xff] %v12730_v32  ;;  %v12738_v63 = vadd.f32 %v15014_v18, %v12688_v39  ;;  %v12742_v21 = vadd.f32 %v15016_v42, %v12688_v39  ;;  %v15020_v22 = vld [vmem:[#allocation39_spill] sm:$0xff]  ;;  %v15022_v32 = vld [vmem:[#allocation40_spill] sm:$0xff] }
 0x479   : > { %15013 = vst [vmem:[#allocation35_spill] sm:$0xff] %v12734_v15  ;;  %15019 = vst [vmem:[#allocation38_spill] sm:$0xff] %v12746_v7  ;;  %v12750_v55 = vadd.f32 %v15020_v22, %v12688_v39  ;;  %v12754_v3 = vadd.f32 %v15022_v32, %v12307_v56  ;;  %v15024_v15 = vld [vmem:[#allocation41_spill] sm:$0xff]  ;;  %6974 = vmatmul.mubr.msk.f32.gmra.mrb[68].mxu1 %vm3842_vm4, %v12037_v30  ;;  %6992 = vmatmul.mubr.msk.f32.gmra.mrb[84].mxu0 %vm3842_vm4, %v12037_v30  ;;  %v15030_v22 = vld [vmem:[#allocation44_spill] sm:$0xff] }
 0x47a   : > { %15015 = vst [vmem:[#allocation36_spill] sm:$0xff] %v12738_v63  ;;  %15017 = vst [vmem:[#allocation37_spill] sm:$0xff] %v12742_v21  ;;  %v12758_v18 = vadd.f32 %v15024_v15, %v12307_v56  ;;  %v15026_v63 = vld [vmem:[#allocation42_spill] sm:$0xff]  ;;  %v15028_v21 = vld [vmem:[#allocation43_spill] sm:$0xff]  ;;  %v12774_v32 = vadd.f32 %v15030_v22, %v12360_v0  ;;  %4711 = vmatprep.mubr.f32.mxu1 %v14933_v54  ;;  %4872 = vmatprep.mubr.f32.mxu0 %v14933_v54 }
 0x47b   : > { %15021 = vst [vmem:[#allocation39_spill] sm:$0xff] %v12750_v55  ;;  %15023 = vst [vmem:[#allocation40_spill] sm:$0xff] %v12754_v3  ;;  %v12762_v42 = vadd.f32 %v15026_v63, %v12307_v56  ;;  %v12766_v49 = vadd.f32 %v15028_v21, %v12307_v56  ;;  %v15032_v15 = vld [vmem:[#allocation45_spill] sm:$0xff]  ;;  %v15034_v63 = vld [vmem:[#allocation46_spill] sm:$0xff] }
 0x47c   : > { %15025 = vst [vmem:[#allocation41_spill] sm:$0xff] %v12758_v18  ;;  %15031 = vst [vmem:[#allocation44_spill] sm:$0xff] %v12774_v32  ;;  %v12778_v18 = vadd.f32 %v15032_v15, %v12360_v0  ;;  %v15036_v21 = vld [vmem:[#allocation47_spill] sm:$0xff]  ;;  %v15038_v3 = vld [vmem:[#allocation48_spill] sm:$0xff] }
 0x47d   : > { %15027 = vst [vmem:[#allocation42_spill] sm:$0xff] %v12762_v42  ;;  %15029 = vst [vmem:[#allocation43_spill] sm:$0xff] %v12766_v49  ;;  %v12782_v42 = vadd.f32 %v15034_v63, %v12360_v0  ;;  %v12788_v49 = vadd.f32 %v15036_v21, %v12360_v0  ;;  %v12792_v22 = vadd.f32 %v15038_v3, %v12436_v1  ;;  %v15040_v32 = vld [vmem:[#allocation49_spill] sm:$0xff]  ;;  %v15046_v7 = vld [vmem:[#allocation52_spill] sm:$0xff]  ;;  %6975 = vmatmul.mubr.msk.f32.gmra.mrb[70].mxu1 %vm3842_vm4, %v12046_v28 }
 0x47e   : > { %15033 = vst [vmem:[#allocation45_spill] sm:$0xff] %v12778_v18  ;;  %v12796_v15 = vadd.f32 %v15040_v32, %v12436_v1  ;;  %v15042_v18 = vld [vmem:[#allocation50_spill] sm:$0xff]  ;;  %v12808_v21 = vadd.f32 %v15046_v7, %v12464_v58  ;;  %6993 = vmatmul.mubr.msk.f32.gmra.mrb[86].mxu0 %vm3842_vm4, %v12046_v28  ;;  %4717 = vmatprep.mubr.f32.mxu1 %v14933_v54 }
 0x47f   : > { %15035 = vst [vmem:[#allocation46_spill] sm:$0xff] %v12782_v42  ;;  %15037 = vst [vmem:[#allocation47_spill] sm:$0xff] %v12788_v49  ;;  %v12800_v63 = vadd.f32 %v15042_v18, %v12436_v1  ;;  %v15044_v42 = vld [vmem:[#allocation51_spill] sm:$0xff]  ;;  %v15048_v49 = vld [vmem:[#allocation53_spill] sm:$0xff]  ;;  %4878 = vmatprep.mubr.f32.mxu0 %v14933_v54 }
 0x480   : > { %15039 = vst [vmem:[#allocation48_spill] sm:$0xff] %v12792_v22  ;;  %15041 = vst [vmem:[#allocation49_spill] sm:$0xff] %v12796_v15  ;;  %v12804_v55 = vadd.f32 %v15044_v42, %v12436_v1  ;;  %v12812_v3 = vadd.f32 %v15048_v49, %v12464_v58  ;;  %v15050_v22 = vld [vmem:[#allocation54_spill] sm:$0xff]  ;;  %v15052_v15 = vld [vmem:[#allocation55_spill] sm:$0xff] }
 0x481   : > { %15043 = vst [vmem:[#allocation50_spill] sm:$0xff] %v12800_v63  ;;  %15047 = vst [vmem:[#allocation52_spill] sm:$0xff] %v12808_v21  ;;  %v12816_v32 = vadd.f32 %v15050_v22, %v12464_v58  ;;  %v12820_v18 = vadd.f32 %v15052_v15, %v12464_v58  ;;  %v15054_v63 = vld [vmem:[#allocation56_spill] sm:$0xff]  ;;  %v15058_v49 = vld [vmem:[#allocation58_spill] sm:$0xff]  ;;  %6976 = vmatmul.mubr.msk.f32.gmra.mrb[72].mxu1 %vm3842_vm4, %v12055_v57 }
 0x482   : > { %15045 = vst [vmem:[#allocation51_spill] sm:$0xff] %v12804_v55  ;;  %15049 = vst [vmem:[#allocation53_spill] sm:$0xff] %v12812_v3  ;;  %v12824_v42 = vadd.f32 %v15054_v63, %v12297_v13  ;;  %v15056_v55 = vld [vmem:[#allocation57_spill] sm:$0xff]  ;;  %v12836_v22 = vadd.f32 %v15058_v49, %v12297_v13  ;;  %v15060_v15 = vld [vmem:[#allocation59_spill] sm:$0xff]  ;;  %6994 = vmatmul.mubr.msk.f32.gmra.mrb[88].mxu0 %vm3842_vm4, %v12055_v57  ;;  %4723 = vmatprep.mubr.f32.mxu1 %v14933_v54 }
 0x483   : > { %15051 = vst [vmem:[#allocation54_spill] sm:$0xff] %v12816_v32  ;;  %15053 = vst [vmem:[#allocation55_spill] sm:$0xff] %v12820_v18  ;;  %v12828_v7 = vadd.f32 %v15056_v55, %v12297_v13  ;;  %v12840_v18 = vadd.f32 %v15060_v15, %v12297_v13  ;;  %v15062_v63 = vld [vmem:[#allocation60_spill] sm:$0xff]  ;;  %v15064_v55 = vld [vmem:[#allocation61_spill] sm:$0xff]  ;;  %4884 = vmatprep.mubr.f32.mxu0 %v14933_v54 }
 0x484   : > { %15055 = vst [vmem:[#allocation56_spill] sm:$0xff] %v12824_v42  ;;  %15059 = vst [vmem:[#allocation58_spill] sm:$0xff] %v12836_v22  ;;  %v12844_v42 = vadd.f32 %v15062_v63, %v12327_v60  ;;  %v15066_v32 = vld [vmem:[#allocation62_spill] sm:$0xff]  ;;  %v15068_v22 = vld [vmem:[#allocation63_spill] sm:$0xff] }
 0x485   : > { %15057 = vst [vmem:[#allocation57_spill] sm:$0xff] %v12828_v7  ;;  %15061 = vst [vmem:[#allocation59_spill] sm:$0xff] %v12840_v18  ;;  %v12850_v7 = vadd.f32 %v15064_v55, %v12327_v60  ;;  %v12854_v49 = vadd.f32 %v15066_v32, %v12327_v60  ;;  %v12858_v15 = vadd.f32 %v15068_v22, %v12327_v60  ;;  %v15070_v18 = vld [vmem:[#allocation64_spill] sm:$0xff]  ;;  %v15074_v21 = vld [vmem:[#allocation66_spill] sm:$0xff]  ;;  %6977 = vmatmul.mubr.msk.f32.gmra.mrb[74].mxu1 %vm3842_vm4, %v12064_v51 }
 0x486   : > { %15063 = vst [vmem:[#allocation60_spill] sm:$0xff] %v12844_v42  ;;  %v12862_v63 = vadd.f32 %v15070_v18, %v12333_v43  ;;  %v15072_v42 = vld [vmem:[#allocation65_spill] sm:$0xff]  ;;  %v12870_v55 = vadd.f32 %v15074_v21, %v12333_v43  ;;  %6995 = vmatmul.mubr.msk.f32.gmra.mrb[90].mxu0 %vm3842_vm4, %v12064_v51  ;;  %4729 = vmatprep.mubr.f32.mxu1 %v14933_v54 }
 0x487   : > { %15065 = vst [vmem:[#allocation61_spill] sm:$0xff] %v12850_v7  ;;  %15067 = vst [vmem:[#allocation62_spill] sm:$0xff] %v12854_v49  ;;  %v12866_v3 = vadd.f32 %v15072_v42, %v12333_v43  ;;  %v15076_v7 = vld [vmem:[#allocation67_spill] sm:$0xff]  ;;  %v15078_v49 = vld [vmem:[#allocation68_spill] sm:$0xff]  ;;  %4890 = vmatprep.mubr.f32.mxu0 %v14933_v54 }
 0x488   : > { %15069 = vst [vmem:[#allocation63_spill] sm:$0xff] %v12858_v15  ;;  %15071 = vst [vmem:[#allocation64_spill] sm:$0xff] %v12862_v63  ;;  %v12874_v32 = vadd.f32 %v15076_v7, %v12333_v43  ;;  %v12878_v22 = vadd.f32 %v15078_v49, %v12414_v40  ;;  %v15080_v15 = vld [vmem:[#allocation69_spill] sm:$0xff]  ;;  %v15082_v63 = vld [vmem:[#allocation70_spill] sm:$0xff] }
 0x489   : > { %15073 = vst [vmem:[#allocation65_spill] sm:$0xff] %v12866_v3  ;;  %15075 = vst [vmem:[#allocation66_spill] sm:$0xff] %v12870_v55  ;;  %v12882_v18 = vadd.f32 %v15080_v15, %v12414_v40  ;;  %v12886_v42 = vadd.f32 %v15082_v63, %v12414_v40  ;;  %v15084_v3 = vld [vmem:[#allocation71_spill] sm:$0xff]  ;;  %v15086_v7 = vld [vmem:[#allocation72_spill] sm:$0xff]  ;;  %6978 = vmatmul.mubr.msk.f32.gmra.mrb[76].mxu1 %vm3842_vm4, %v12073_v41 }
 0x48a   : > { %15077 = vst [vmem:[#allocation67_spill] sm:$0xff] %v12874_v32  ;;  %15079 = vst [vmem:[#allocation68_spill] sm:$0xff] %v12878_v22  ;;  %v12890_v21 = vadd.f32 %v15084_v3, %v12414_v40  ;;  %v12898_v49 = vadd.f32 %v15086_v7, %v12402_v26  ;;  %v15088_v15 = vld [vmem:[#allocation73_spill] sm:$0xff]  ;;  %v15090_v63 = vld [vmem:[#allocation74_spill] sm:$0xff]  ;;  %6996 = vmatmul.mubr.msk.f32.gmra.mrb[92].mxu0 %vm3842_vm4, %v12073_v41  ;;  %4735 = vmatprep.mubr.f32.mxu1 %v14933_v54 }
 0x48b   : > { %15081 = vst [vmem:[#allocation69_spill] sm:$0xff] %v12882_v18  ;;  %15083 = vst [vmem:[#allocation70_spill] sm:$0xff] %v12886_v42  ;;  %v12902_v18 = vadd.f32 %v15088_v15, %v12402_v26  ;;  %v12906_v42 = vadd.f32 %v15090_v63, %v12402_v26  ;;  %v15092_v3 = vld [vmem:[#allocation75_spill] sm:$0xff]  ;;  %v15094_v22 = vld [vmem:[#allocation76_spill] sm:$0xff]  ;;  %4896 = vmatprep.mubr.f32.mxu0 %v14933_v54 }
 0x48c   : > { %15085 = vst [vmem:[#allocation71_spill] sm:$0xff] %v12890_v21  ;;  %15087 = vst [vmem:[#allocation72_spill] sm:$0xff] %v12898_v49  ;;  %v12912_v21 = vadd.f32 %v15092_v3, %v12402_v26  ;;  %v12916_v7 = vadd.f32 %v15094_v22, %v12366_v19  ;;  %v15096_v49 = vld [vmem:[#allocation77_spill] sm:$0xff]  ;;  %v15102_v55 = vld [vmem:[#allocation80_spill] sm:$0xff] }
 0x48d   : > { %15089 = vst [vmem:[#allocation73_spill] sm:$0xff] %v12902_v18  ;;  %15091 = vst [vmem:[#allocation74_spill] sm:$0xff] %v12906_v42  ;;  %v12920_v15 = vadd.f32 %v15096_v49, %v12366_v19  ;;  %v15098_v18 = vld [vmem:[#allocation78_spill] sm:$0xff]  ;;  %v15100_v42 = vld [vmem:[#allocation79_spill] sm:$0xff]  ;;  %v12932_v3 = vadd.f32 %v15102_v55, %v12448_v59  ;;  %6979 = vmatmul.mubr.msk.f32.gmra.mrb[78].mxu1 %vm3842_vm4, %v12082_v34 }
 0x48e   : > { %15093 = vst [vmem:[#allocation75_spill] sm:$0xff] %v12912_v21  ;;  %15095 = vst [vmem:[#allocation76_spill] sm:$0xff] %v12916_v7  ;;  %v12924_v63 = vadd.f32 %v15098_v18, %v12366_v19  ;;  %v12928_v32 = vadd.f32 %v15100_v42, %v12366_v19  ;;  %v15104_v21 = vld [vmem:[#allocation81_spill] sm:$0xff]  ;;  %v15106_v7 = vld [vmem:[#allocation82_spill] sm:$0xff]  ;;  %6997 = vmatmul.mubr.msk.f32.gmra.mrb[94].mxu0 %vm3842_vm4, %v12082_v34  ;;  %4967 = vmatprep.mubr.f32.mxu1 %v14933_v54 }
 0x48f   : > { %15097 = vst [vmem:[#allocation77_spill] sm:$0xff] %v12920_v15  ;;  %15103 = vst [vmem:[#allocation80_spill] sm:$0xff] %v12932_v3  ;;  %v12936_v22 = vadd.f32 %v15104_v21, %v12448_v59  ;;  %v12940_v49 = vadd.f32 %v15106_v7, %v12448_v59  ;;  %v15108_v15 = vld [vmem:[#allocation83_spill] sm:$0xff]  ;;  %v15114_v21 = vld [vmem:[#allocation86_spill] sm:$0xff] }
 0x490   : > { %15099 = vst [vmem:[#allocation78_spill] sm:$0xff] %v12924_v63  ;;  %15101 = vst [vmem:[#allocation79_spill] sm:$0xff] %v12928_v32  ;;  %v12944_v18 = vadd.f32 %v15108_v15, %v12448_v59  ;;  %v15110_v63 = vld [vmem:[#allocation84_spill] sm:$0xff]  ;;  %v15112_v32 = vld [vmem:[#allocation85_spill] sm:$0xff]  ;;  %v12960_v7 = vadd.f32 %v15114_v21, %v12606_v9 }
 0x491   : > { %15105 = vst [vmem:[#allocation81_spill] sm:$0xff] %v12936_v22  ;;  %15107 = vst [vmem:[#allocation82_spill] sm:$0xff] %v12940_v49  ;;  %v12948_v42 = vadd.f32 %v15110_v63, %v12606_v9  ;;  %v12952_v55 = vadd.f32 %v15112_v32, %v12606_v9  ;;  %v15116_v15 = vld [vmem:[#allocation87_spill] sm:$0xff]  ;;  %v15118_v63 = vld [vmem:[#allocation88_spill] sm:$0xff] }
 0x492   : > { %15109 = vst [vmem:[#allocation83_spill] sm:$0xff] %v12944_v18  ;;  %15115 = vst [vmem:[#allocation86_spill] sm:$0xff] %v12960_v7  ;;  %v12964_v18 = vadd.f32 %v15116_v15, %v12606_v9  ;;  %v15120_v32 = vld [vmem:[#allocation89_spill] sm:$0xff]  ;;  %v15122_v49 = vld [vmem:[#allocation90_spill] sm:$0xff] }
 0x493   : > { %15111 = vst [vmem:[#allocation84_spill] sm:$0xff] %v12948_v42  ;;  %15113 = vst [vmem:[#allocation85_spill] sm:$0xff] %v12952_v55  ;;  %v12968_v42 = vadd.f32 %v15118_v63, %v12438_v25  ;;  %v12974_v55 = vadd.f32 %v15120_v32, %v12438_v25  ;;  %v12978_v21 = vadd.f32 %v15122_v49, %v12438_v25  ;;  %v15124_v7 = vld [vmem:[#allocation91_spill] sm:$0xff]  ;;  %v15130_v3 = vld [vmem:[#allocation94_spill] sm:$0xff] }
 0x494   : > { %15117 = vst [vmem:[#allocation87_spill] sm:$0xff] %v12964_v18  ;;  %v12982_v15 = vadd.f32 %v15124_v7, %v12438_v25  ;;  %v15126_v18 = vld [vmem:[#allocation92_spill] sm:$0xff]  ;;  %v12994_v32 = vadd.f32 %v15130_v3, %v12512_v20 }
 0x495   : > { %15119 = vst [vmem:[#allocation88_spill] sm:$0xff] %v12968_v42  ;;  %15121 = vst [vmem:[#allocation89_spill] sm:$0xff] %v12974_v55  ;;  %v12986_v63 = vadd.f32 %v15126_v18, %v12512_v20  ;;  %v15128_v42 = vld [vmem:[#allocation93_spill] sm:$0xff]  ;;  %v15132_v55 = vld [vmem:[#allocation95_spill] sm:$0xff] }
 0x496   : > { %15123 = vst [vmem:[#allocation90_spill] sm:$0xff] %v12978_v21  ;;  %15125 = vst [vmem:[#allocation91_spill] sm:$0xff] %v12982_v15  ;;  %v12990_v22 = vadd.f32 %v15128_v42, %v12512_v20  ;;  %v12998_v49 = vadd.f32 %v15132_v55, %v12512_v20  ;;  %v15134_v21 = vld [vmem:[#allocation96_spill] sm:$0xff]  ;;  %v15136_v15 = vld [vmem:[#allocation97_spill] sm:$0xff] }
 0x497   : > { %15127 = vst [vmem:[#allocation92_spill] sm:$0xff] %v12986_v63  ;;  %15131 = vst [vmem:[#allocation94_spill] sm:$0xff] %v12994_v32  ;;  %v13002_v7 = vadd.f32 %v15134_v21, %v12670_v16  ;;  %v13006_v18 = vadd.f32 %v15136_v15, %v12670_v16  ;;  %v15138_v63 = vld [vmem:[#allocation98_spill] sm:$0xff]  ;;  %v15142_v55 = vld [vmem:[#allocation100_spill] sm:$0xff] }
 0x498   : > { %15129 = vst [vmem:[#allocation93_spill] sm:$0xff] %v12990_v22  ;;  %15133 = vst [vmem:[#allocation95_spill] sm:$0xff] %v12998_v49  ;;  %v13010_v42 = vadd.f32 %v15138_v63, %v12670_v16  ;;  %v15140_v22 = vld [vmem:[#allocation99_spill] sm:$0xff]  ;;  %v13022_v21 = vadd.f32 %v15142_v55, %v12688_v39  ;;  %v15144_v15 = vld [vmem:[#allocation101_spill] sm:$0xff] }
 0x499   : > { %15135 = vst [vmem:[#allocation96_spill] sm:$0xff] %v13002_v7  ;;  %15137 = vst [vmem:[#allocation97_spill] sm:$0xff] %v13006_v18  ;;  %v13014_v3 = vadd.f32 %v15140_v22, %v12670_v16  ;;  %v13026_v18 = vadd.f32 %v15144_v15, %v12688_v39  ;;  %v15146_v63 = vld [vmem:[#allocation102_spill] sm:$0xff]  ;;  %v15148_v22 = vld [vmem:[#allocation103_spill] sm:$0xff] }
 0x49a   : > { %15139 = vst [vmem:[#allocation98_spill] sm:$0xff] %v13010_v42  ;;  %15143 = vst [vmem:[#allocation100_spill] sm:$0xff] %v13022_v21  ;;  %v13030_v42 = vadd.f32 %v15146_v63, %v12688_v39  ;;  %v15150_v7 = vld [vmem:[#allocation104_spill] sm:$0xff]  ;;  %v15152_v21 = vld [vmem:[#allocation105_spill] sm:$0xff] }
 0x49b   : > { %15141 = vst [vmem:[#allocation99_spill] sm:$0xff] %v13014_v3  ;;  %15145 = vst [vmem:[#allocation101_spill] sm:$0xff] %v13026_v18  ;;  %v13036_v3 = vadd.f32 %v15148_v22, %v12688_v39  ;;  %v13040_v55 = vadd.f32 %v15150_v7, %v12307_v56  ;;  %v13044_v15 = vadd.f32 %v15152_v21, %v12307_v56  ;;  %v15154_v18 = vld [vmem:[#allocation106_spill] sm:$0xff]  ;;  %v15158_v32 = vld [vmem:[#allocation108_spill] sm:$0xff] }
 0x49c   : > { %15147 = vst [vmem:[#allocation102_spill] sm:$0xff] %v13030_v42  ;;  %v13048_v63 = vadd.f32 %v15154_v18, %v12307_v56  ;;  %v15156_v42 = vld [vmem:[#allocation107_spill] sm:$0xff]  ;;  %v13056_v22 = vadd.f32 %v15158_v32, %v12360_v0 }
 0x49d   : > { %15149 = vst [vmem:[#allocation103_spill] sm:$0xff] %v13036_v3  ;;  %15151 = vst [vmem:[#allocation104_spill] sm:$0xff] %v13040_v55  ;;  %v13052_v49 = vadd.f32 %v15156_v42, %v12307_v56  ;;  %v15160_v3 = vld [vmem:[#allocation109_spill] sm:$0xff]  ;;  %v15162_v55 = vld [vmem:[#allocation110_spill] sm:$0xff] }
 0x49e   : > { %15153 = vst [vmem:[#allocation105_spill] sm:$0xff] %v13044_v15  ;;  %15155 = vst [vmem:[#allocation106_spill] sm:$0xff] %v13048_v63  ;;  %v13060_v7 = vadd.f32 %v15160_v3, %v12360_v0  ;;  %v13064_v21 = vadd.f32 %v15162_v55, %v12360_v0  ;;  %v15164_v15 = vld [vmem:[#allocation111_spill] sm:$0xff]  ;;  %v15166_v63 = vld [vmem:[#allocation112_spill] sm:$0xff] }
 0x49f   : > { %15157 = vst [vmem:[#allocation107_spill] sm:$0xff] %v13052_v49  ;;  %15159 = vst [vmem:[#allocation108_spill] sm:$0xff] %v13056_v22  ;;  %v13068_v18 = vadd.f32 %v15164_v15, %v12360_v0  ;;  %v13072_v42 = vadd.f32 %v15166_v63, %v12436_v1  ;;  %v15168_v49 = vld [vmem:[#allocation113_spill] sm:$0xff]  ;;  %v15170_v3 = vld [vmem:[#allocation114_spill] sm:$0xff] }
 0x4a0   : > { %15161 = vst [vmem:[#allocation109_spill] sm:$0xff] %v13060_v7  ;;  %15163 = vst [vmem:[#allocation110_spill] sm:$0xff] %v13064_v21  ;;  %v13076_v32 = vadd.f32 %v15168_v49, %v12436_v1  ;;  %v13084_v55 = vadd.f32 %v15170_v3, %v12436_v1  ;;  %v15172_v15 = vld [vmem:[#allocation115_spill] sm:$0xff]  ;;  %v15174_v63 = vld [vmem:[#allocation116_spill] sm:$0xff] }
 0x4a1   : > { %15165 = vst [vmem:[#allocation111_spill] sm:$0xff] %v13068_v18  ;;  %15167 = vst [vmem:[#allocation112_spill] sm:$0xff] %v13072_v42  ;;  %v13088_v18 = vadd.f32 %v15172_v15, %v12436_v1  ;;  %v13092_v42 = vadd.f32 %v15174_v63, %v12464_v58  ;;  %v15176_v49 = vld [vmem:[#allocation216_spill] sm:$0xff]  ;;  %v15179_v3 = vld [vmem:[#allocation118_spill] sm:$0xff] }
 0x4a2   : > { %15169 = vst [vmem:[#allocation113_spill] sm:$0xff] %v13076_v32  ;;  %15171 = vst [vmem:[#allocation114_spill] sm:$0xff] %v13084_v55  ;;  %7920 = vmatprep.mubr.msk.f32.mxu0 %vm3842_vm4, %v15176_v49  ;;  %v15177_v32 = vld [vmem:[#allocation117_spill] sm:$0xff]  ;;  %v13103_v55 = vadd.f32 %v15179_v3, %v12464_v58  ;;  %v15181_v15 = vld [vmem:[#allocation119_spill] sm:$0xff]  ;;  %7000 = vmatmul.mubr.msk.f32.vlgmr.msra.gmra.mrb[80].mxu1 %vm3842_vm4, %v15176_v49 }
 0x4a3   : > { %15173 = vst [vmem:[#allocation115_spill] sm:$0xff] %v13088_v18  ;;  %15175 = vst [vmem:[#allocation116_spill] sm:$0xff] %v13092_v42  ;;  %v13099_v21 = vadd.f32 %v15177_v32, %v12464_v58  ;;  %v13107_v18 = vadd.f32 %v15181_v15, %v12464_v58  ;;  %v15183_v63 = vld [vmem:[#allocation120_spill] sm:$0xff]  ;;  %v15185_v7 = vld [vmem:[#allocation121_spill] sm:$0xff]  ;;  %v13119_v32 = vadd.f32 %v15187_v48, %v12297_v13  ;;  %4973 = vmatprep.mubr.f32.mxu1 %v14933_v54 }
 0x4a4   : > { %15180 = vst [vmem:[#allocation117_spill] sm:$0xff] %v13103_v55  ;;  %v13111_v42 = vadd.f32 %v15183_v63, %v12297_v13  ;;  %v13115_v22 = vadd.f32 %v15185_v7, %v12297_v13  ;;  %v15191_v55 = vld [vmem:[#allocation124_spill] sm:$0xff]  ;;  %v15207_v49 = vld [vmem:[#allocation131_spill] sm:$0xff] }
 0x4a5   : > { %15178 = vst [vmem:[#allocation216_spill] sm:$0xff] %v13099_v21  ;;  %15182 = vst [vmem:[#allocation118_spill] sm:$0xff] %v13107_v18  ;;  %v15189_v21 = vld [vmem:[#allocation123_spill] sm:$0xff]  ;;  %v13127_v15 = vadd.f32 %v15191_v55, %v12327_v60  ;;  %v15193_v18 = vld [vmem:[#allocation125_spill] sm:$0xff] }
 0x4a6   : > { %15184 = vst [vmem:[#allocation119_spill] sm:$0xff] %v13111_v42  ;;  %15186 = vst [vmem:[#allocation120_spill] sm:$0xff] %v13115_v22  ;;  %v13123_v3 = vadd.f32 %v15189_v21, %v12297_v13  ;;  %v13131_v63 = vadd.f32 %v15193_v18, %v12327_v60  ;;  %v15195_v42 = vld [vmem:[#allocation126_spill] sm:$0xff]  ;;  %v15197_v22 = vld [vmem:[#allocation127_spill] sm:$0xff] }
 0x4a7   : > { %15188 = vst [vmem:[#allocation121_spill] sm:$0xff] %v13119_v32  ;;  %15192 = vst [vmem:[#allocation123_spill] sm:$0xff] %v13127_v15  ;;  %v13135_v7 = vadd.f32 %v15195_v42, %v12327_v60  ;;  %v13139_v48 = vadd.f32 %v15197_v22, %v12327_v60  ;;  %v15199_v21 = vld [vmem:[#allocation217_spill] sm:$0xff]  ;;  %v15200_v55 = vld [vmem:[#allocation128_spill] sm:$0xff] }
 0x4a8   : > { %15190 = vst [vmem:[#allocation122_spill] sm:$0xff] %v13123_v3  ;;  %15194 = vst [vmem:[#allocation124_spill] sm:$0xff] %v13131_v63  ;;  %7921 = vmatmul.mubr.msk.f32.vlgmr.msra.gmra.mrb[96].mxu0 %vm3842_vm4, %v15199_v21  ;;  %v13147_v15 = vadd.f32 %v15200_v55, %v12333_v43  ;;  %v15202_v18 = vld [vmem:[#allocation129_spill] sm:$0xff]  ;;  %v15204_v42 = vld [vmem:[#allocation130_spill] sm:$0xff]  ;;  %7001 = vmatmul.mubr.msk.f32.gmra.mrb[82].mxu1 %vm3842_vm4, %v15199_v21 }
 0x4a9   : > { %15196 = vst [vmem:[#allocation125_spill] sm:$0xff] %v13135_v7  ;;  %15198 = vst [vmem:[#allocation126_spill] sm:$0xff] %v13139_v48  ;;  %v13151_v63 = vadd.f32 %v15202_v18, %v12333_v43  ;;  %v13155_v7 = vadd.f32 %v15204_v42, %v12333_v43  ;;  %v15206_v22 = vld [vmem:[#allocation218_spill] sm:$0xff]  ;;  %v13162_v48 = vadd.f32 %v15207_v49, %v12333_v43  ;;  %v15209_v55 = vld [vmem:[#allocation132_spill] sm:$0xff]  ;;  %4979 = vmatprep.mubr.f32.mxu1 %v14933_v54 }
 0x4aa   : > { %15201 = vst [vmem:[#allocation127_spill] sm:$0xff] %v13147_v15  ;;  %7923 = vmatprep.mubr.msk.f32.mxu0 %vm3842_vm4, %v15206_v22  ;;  %v13166_v15 = vadd.f32 %v15209_v55, %v12414_v40  ;;  %v15211_v18 = vld [vmem:[#allocation133_spill] sm:$0xff]  ;;  %v15213_v42 = vld [vmem:[#allocation134_spill] sm:$0xff]  ;;  %v15215_v3 = vld [vmem:[#allocation135_spill] sm:$0xff]  ;;  %v13182_v49 = vadd.f32 %v15217_v38, %v12402_v26 }
 0x4ab   : > { %15203 = vst [vmem:[#allocation217_spill] sm:$0xff] %v13151_v63  ;;  %15205 = vst [vmem:[#allocation128_spill] sm:$0xff] %v13155_v7  ;;  %v13170_v63 = vadd.f32 %v15211_v18, %v12414_v40  ;;  %v13174_v7 = vadd.f32 %v15213_v42, %v12414_v40  ;;  %v13178_v32 = vadd.f32 %v15215_v3, %v12414_v40 }
 0x4ac   : > { %15208 = vst [vmem:[#allocation129_spill] sm:$0xff] %v13162_v48  ;;  %15210 = vst [vmem:[#allocation130_spill] sm:$0xff] %v13166_v15  ;;  %v15219_v48 = vld [vmem:[#allocation137_spill] sm:$0xff]  ;;  %v15221_v15 = vld [vmem:[#allocation138_spill] sm:$0xff]  ;;  %7924 = vmatmul.mubr.msk.f32.gmra.mrb[98].mxu0 %vm3842_vm4, %v11931_v6  ;;  %7002 = vmatmul.mubr.msk.f32.gmra.mrb[84].mxu1 %vm3842_vm4, %v15206_v22 }
 0x4ad   : > { %15212 = vst [vmem:[#allocation218_spill] sm:$0xff] %v13170_v63  ;;  %15214 = vst [vmem:[#allocation131_spill] sm:$0xff] %v13174_v7  ;;  %v13186_v55 = vadd.f32 %v15219_v48, %v12402_v26  ;;  %v13190_v18 = vadd.f32 %v15221_v15, %v12402_v26  ;;  %v15223_v63 = vld [vmem:[#allocation139_spill] sm:$0xff]  ;;  %v15225_v7 = vld [vmem:[#allocation140_spill] sm:$0xff]  ;;  %7926 = vmatprep.mubr.msk.f32.mxu0 %vm3842_vm4, %v11967_v8  ;;  %4985 = vmatprep.mubr.f32.mxu1 %v14933_v54 }
 0x4ae   : > { %15216 = vst [vmem:[#allocation132_spill] sm:$0xff] %v13178_v32  ;;  %15218 = vst [vmem:[#allocation133_spill] sm:$0xff] %v13182_v49  ;;  %v13194_v42 = vadd.f32 %v15223_v63, %v12402_v26  ;;  %v13198_v3 = vadd.f32 %v15225_v7, %v12366_v19  ;;  %v15227_v32 = vld [vmem:[#allocation141_spill] sm:$0xff]  ;;  %v15229_v15 = vld [vmem:[#allocation142_spill] sm:$0xff] }
 0x4af   : > { %15220 = vst [vmem:[#allocation134_spill] sm:$0xff] %v13186_v55  ;;  %15222 = vst [vmem:[#allocation135_spill] sm:$0xff] %v13190_v18  ;;  %v13202_v38 = vadd.f32 %v15227_v32, %v12366_v19  ;;  %v13210_v48 = vadd.f32 %v15229_v15, %v12366_v19  ;;  %v15231_v63 = vld [vmem:[#allocation143_spill] sm:$0xff]  ;;  %v15233_v7 = vld [vmem:[#allocation144_spill] sm:$0xff] }
 0x4b0   : > { %15224 = vst [vmem:[#allocation136_spill] sm:$0xff] %v13194_v42  ;;  %15226 = vst [vmem:[#allocation137_spill] sm:$0xff] %v13198_v3  ;;  %v13214_v42 = vadd.f32 %v15231_v63, %v12366_v19  ;;  %v13218_v3 = vadd.f32 %v15233_v7, %v12448_v59  ;;  %v15235_v32 = vld [vmem:[#allocation145_spill] sm:$0xff]  ;;  %v15237_v15 = vld [vmem:[#allocation146_spill] sm:$0xff]  ;;  %7927 = vmatmul.mubr.msk.f32.gmra.mrb[100].mxu0 %vm3842_vm4, %v11984_v31  ;;  %7003 = vmatmul.mubr.msk.f32.gmra.mrb[86].mxu1 %vm3842_vm4, %v11931_v6 }
 0x4b1   : > { %15228 = vst [vmem:[#allocation138_spill] sm:$0xff] %v13202_v38  ;;  %15230 = vst [vmem:[#allocation139_spill] sm:$0xff] %v13210_v48  ;;  %v13225_v21 = vadd.f32 %v15235_v32, %v12448_v59  ;;  %v13229_v48 = vadd.f32 %v15237_v15, %v12448_v59  ;;  %v15239_v63 = vld [vmem:[#allocation147_spill] sm:$0xff]  ;;  %v15241_v7 = vld [vmem:[#allocation148_spill] sm:$0xff]  ;;  %7929 = vmatprep.mubr.msk.f32.mxu0 %vm3842_vm4, %v12000_v50  ;;  %4991 = vmatprep.mubr.f32.mxu1 %v14933_v54 }
 0x4b2   : > { %15232 = vst [vmem:[#allocation140_spill] sm:$0xff] %v13214_v42  ;;  %15234 = vst [vmem:[#allocation141_spill] sm:$0xff] %v13218_v3  ;;  %v13233_v42 = vadd.f32 %v15239_v63, %v12448_v59  ;;  %v13237_v3 = vadd.f32 %v15241_v7, %v12606_v9  ;;  %v15243_v38 = vld [vmem:[#allocation149_spill] sm:$0xff]  ;;  %v15245_v32 = vld [vmem:[#allocation150_spill] sm:$0xff] }
 0x4b3   : > { %15236 = vst [vmem:[#allocation142_spill] sm:$0xff] %v13225_v21  ;;  %15238 = vst [vmem:[#allocation143_spill] sm:$0xff] %v13229_v48  ;;  %v13241_v18 = vadd.f32 %v15243_v38, %v12606_v9  ;;  %v13245_v21 = vadd.f32 %v15245_v32, %v12606_v9  ;;  %v15247_v15 = vld [vmem:[#allocation151_spill] sm:$0xff]  ;;  %v15249_v63 = vld [vmem:[#allocation152_spill] sm:$0xff] }
 0x4b4   : > { %15240 = vst [vmem:[#allocation144_spill] sm:$0xff] %v13233_v42  ;;  %15242 = vst [vmem:[#allocation145_spill] sm:$0xff] %v13237_v3  ;;  %v13249_v48 = vadd.f32 %v15247_v15, %v12606_v9  ;;  %v13253_v42 = vadd.f32 %v15249_v63, %v12438_v25  ;;  %v15251_v55 = vld [vmem:[#allocation153_spill] sm:$0xff]  ;;  %v15253_v3 = vld [vmem:[#allocation154_spill] sm:$0xff]  ;;  %7930 = vmatmul.mubr.msk.f32.gmra.mrb[102].mxu0 %vm3842_vm4, %v12009_v12  ;;  %7004 = vmatmul.mubr.msk.f32.gmra.mrb[88].mxu1 %vm3842_vm4, %v11967_v8 }
 0x4b5   : > { %15244 = vst [vmem:[#allocation146_spill] sm:$0xff] %v13241_v18  ;;  %15246 = vst [vmem:[#allocation147_spill] sm:$0xff] %v13245_v21  ;;  %v13257_v7 = vadd.f32 %v15251_v55, %v12438_v25  ;;  %v13261_v38 = vadd.f32 %v15253_v3, %v12438_v25  ;;  %v15255_v18 = vld [vmem:[#allocation155_spill] sm:$0xff]  ;;  %v15257_v15 = vld [vmem:[#allocation156_spill] sm:$0xff]  ;;  %7932 = vmatprep.mubr.msk.f32.mxu0 %vm3842_vm4, %v12019_v35  ;;  %4997 = vmatprep.mubr.f32.mxu1 %v14933_v54 }
 0x4b6   : > { %15248 = vst [vmem:[#allocation148_spill] sm:$0xff] %v13249_v48  ;;  %15250 = vst [vmem:[#allocation149_spill] sm:$0xff] %v13253_v42  ;;  %v13265_v32 = vadd.f32 %v15255_v18, %v12438_v25  ;;  %v13273_v63 = vadd.f32 %v15257_v15, %v12512_v20  ;;  %v15259_v55 = vld [vmem:[#allocation157_spill] sm:$0xff]  ;;  %v15261_v3 = vld [vmem:[#allocation158_spill] sm:$0xff] }
 0x4b7   : > { %15252 = vst [vmem:[#allocation150_spill] sm:$0xff] %v13257_v7  ;;  %15254 = vst [vmem:[#allocation151_spill] sm:$0xff] %v13261_v38  ;;  %v13277_v7 = vadd.f32 %v15259_v55, %v12512_v20  ;;  %v13281_v38 = vadd.f32 %v15261_v3, %v12512_v20  ;;  %v15263_v22 = vld [vmem:[#allocation159_spill] sm:$0xff]  ;;  %v15265_v15 = vld [vmem:[#allocation160_spill] sm:$0xff] }
 0x4b8   : > { %15256 = vst [vmem:[#allocation152_spill] sm:$0xff] %v13265_v32  ;;  %15258 = vst [vmem:[#allocation153_spill] sm:$0xff] %v13273_v63  ;;  %v13289_v18 = vadd.f32 %v15263_v22, %v12512_v20  ;;  %v13293_v63 = vadd.f32 %v15265_v15, %v12670_v16  ;;  %v15267_v55 = vld [vmem:[#allocation161_spill] sm:$0xff]  ;;  %v15269_v3 = vld [vmem:[#allocation162_spill] sm:$0xff]  ;;  %7933 = vmatmul.mubr.msk.f32.gmra.mrb[104].mxu0 %vm3842_vm4, %v12028_v61  ;;  %7005 = vmatmul.mubr.msk.f32.gmra.mrb[90].mxu1 %vm3842_vm4, %v11984_v31 }
 0x4b9   : > { %15260 = vst [vmem:[#allocation154_spill] sm:$0xff] %v13277_v7  ;;  %15262 = vst [vmem:[#allocation155_spill] sm:$0xff] %v13281_v38  ;;  %v13297_v7 = vadd.f32 %v15267_v55, %v12670_v16  ;;  %v13301_v38 = vadd.f32 %v15269_v3, %v12670_v16  ;;  %v15271_v32 = vld [vmem:[#allocation163_spill] sm:$0xff]  ;;  %v15273_v22 = vld [vmem:[#allocation164_spill] sm:$0xff]  ;;  %7935 = vmatprep.mubr.msk.f32.mxu0 %vm3842_vm4, %v12037_v30  ;;  %5003 = vmatprep.mubr.f32.mxu1 %v14933_v54 }
 0x4ba   : > { %15264 = vst [vmem:[#allocation156_spill] sm:$0xff] %v13289_v18  ;;  %15266 = vst [vmem:[#allocation157_spill] sm:$0xff] %v13293_v63  ;;  %v13305_v42 = vadd.f32 %v15271_v32, %v12670_v16  ;;  %v13309_v18 = vadd.f32 %v15273_v22, %v12688_v39  ;;  %v15275_v15 = vld [vmem:[#allocation165_spill] sm:$0xff]  ;;  %v15277_v55 = vld [vmem:[#allocation166_spill] sm:$0xff] }
 0x4bb   : > { %15268 = vst [vmem:[#allocation158_spill] sm:$0xff] %v13297_v7  ;;  %15270 = vst [vmem:[#allocation159_spill] sm:$0xff] %v13301_v38  ;;  %v13313_v63 = vadd.f32 %v15275_v15, %v12688_v39  ;;  %v13317_v7 = vadd.f32 %v15277_v55, %v12688_v39  ;;  %v15279_v48 = vld [vmem:[#allocation167_spill] sm:$0xff]  ;;  %v15281_v38 = vld [vmem:[#allocation168_spill] sm:$0xff] }
 0x4bc   : > { %15272 = vst [vmem:[#allocation160_spill] sm:$0xff] %v13305_v42  ;;  %15274 = vst [vmem:[#allocation161_spill] sm:$0xff] %v13309_v18  ;;  %v13321_v3 = vadd.f32 %v15279_v48, %v12688_v39  ;;  %v13325_v32 = vadd.f32 %v15281_v38, %v12307_v56  ;;  %v15283_v42 = vld [vmem:[#allocation169_spill] sm:$0xff]  ;;  %v15285_v15 = vld [vmem:[#allocation170_spill] sm:$0xff]  ;;  %7936 = vmatmul.mubr.msk.f32.gmra.mrb[106].mxu0 %vm3842_vm4, %v12046_v28  ;;  %7006 = vmatmul.mubr.msk.f32.gmra.mrb[92].mxu1 %vm3842_vm4, %v12000_v50 }
 0x4bd   : > { %15276 = vst [vmem:[#allocation162_spill] sm:$0xff] %v13313_v63  ;;  %15278 = vst [vmem:[#allocation163_spill] sm:$0xff] %v13317_v7  ;;  %v13329_v22 = vadd.f32 %v15283_v42, %v12360_v0  ;;  %v13337_v55 = vadd.f32 %v15285_v15, %v12307_v56  ;;  %v15287_v48 = vld [vmem:[#allocation171_spill] sm:$0xff]  ;;  %v15289_v38 = vld [vmem:[#allocation172_spill] sm:$0xff]  ;;  %7938 = vmatprep.mubr.msk.f32.mxu0 %vm3842_vm4, %v12055_v57  ;;  %5009 = vmatprep.mubr.f32.mxu1 %v14933_v54 }
 0x4be   : > { %15280 = vst [vmem:[#allocation164_spill] sm:$0xff] %v13321_v3  ;;  %15282 = vst [vmem:[#allocation165_spill] sm:$0xff] %v13325_v32  ;;  %v13341_v3 = vadd.f32 %v15287_v48, %v12307_v56  ;;  %v13345_v32 = vadd.f32 %v15289_v38, %v12360_v0  ;;  %v15291_v6 = vld [vmem:[#allocation173_spill] sm:$0xff]  ;;  %v15293_v15 = vld [vmem:[#allocation174_spill] sm:$0xff] }
 0x4bf   : > { %15284 = vst [vmem:[#allocation166_spill] sm:$0xff] %v13329_v22  ;;  %15286 = vst [vmem:[#allocation167_spill] sm:$0xff] %v13337_v55  ;;  %v13357_v42 = vadd.f32 %v15291_v6, %v12464_v58  ;;  %v13361_v56 = vadd.f32 %v15293_v15, %v12360_v0  ;;  %v15295_v48 = vld [vmem:[#allocation175_spill] sm:$0xff]  ;;  %v15299_v55 = vld [vmem:[#allocation177_spill] sm:$0xff] }
 0x4c0   : > { %15288 = vst [vmem:[#allocation168_spill] sm:$0xff] %v13341_v3  ;;  %15290 = vst [vmem:[#allocation169_spill] sm:$0xff] %v13345_v32  ;;  %v13365_v38 = vadd.f32 %v15295_v48, %v12436_v1  ;;  %v15297_v32 = vld [vmem:[#allocation176_spill] sm:$0xff]  ;;  %v13373_v22 = vadd.f32 %v15299_v55, %v12327_v60  ;;  %v15301_v6 = vld [vmem:[#allocation178_spill] sm:$0xff]  ;;  %7939 = vmatmul.mubr.msk.f32.gmra.mrb[108].mxu0 %vm3842_vm4, %v12064_v51  ;;  %7007 = vmatmul.mubr.msk.f32.gmra.mrb[94].mxu1 %vm3842_vm4, %v12009_v12 }
 0x4c1   : > { %15292 = vst [vmem:[#allocation170_spill] sm:$0xff] %v13357_v42  ;;  %15294 = vst [vmem:[#allocation171_spill] sm:$0xff] %v13361_v56  ;;  %v13369_v3 = vadd.f32 %v15297_v32, %v12436_v1  ;;  %v13377_v42 = vadd.f32 %v15301_v6, %v12436_v1  ;;  %v15303_v0 = vld [vmem:[#allocation179_spill] sm:$0xff]  ;;  %v15305_v48 = vld [vmem:[#allocation180_spill] sm:$0xff]  ;;  %7941 = vmatprep.mubr.msk.f32.mxu0 %vm3842_vm4, %v12073_v41  ;;  %5015 = vmatprep.mubr.f32.mxu1 %v14933_v54 }
 0x4c2   : > { %15296 = vst [vmem:[#allocation172_spill] sm:$0xff] %v13365_v38  ;;  %15300 = vst [vmem:[#allocation174_spill] sm:$0xff] %v13373_v22  ;;  %v13381_v15 = vadd.f32 %v15303_v0, %v12297_v13  ;;  %v13385_v38 = vadd.f32 %v15305_v48, %v12464_v58  ;;  %v15307_v56 = vld [vmem:[#allocation181_spill] sm:$0xff]  ;;  %v15311_v22 = vld [vmem:[#allocation183_spill] sm:$0xff] }
 0x4c3   : > { %15298 = vst [vmem:[#allocation173_spill] sm:$0xff] %v13369_v3  ;;  %15302 = vst [vmem:[#allocation175_spill] sm:$0xff] %v13377_v42  ;;  %v13389_v32 = vadd.f32 %v15307_v56, %v12414_v40  ;;  %v15309_v3 = vld [vmem:[#allocation182_spill] sm:$0xff]  ;;  %v13397_v1 = vadd.f32 %v15311_v22, %v12333_v43  ;;  %v15313_v6 = vld [vmem:[#allocation184_spill] sm:$0xff] }
 0x4c4   : > { %15304 = vst [vmem:[#allocation176_spill] sm:$0xff] %v13381_v15  ;;  %15306 = vst [vmem:[#allocation177_spill] sm:$0xff] %v13385_v38  ;;  %v13393_v55 = vadd.f32 %v15309_v3, %v12464_v58  ;;  %v13405_v0 = vadd.f32 %v15313_v6, %v12297_v13  ;;  %v15315_v56 = vld [vmem:[#allocation185_spill] sm:$0xff]  ;;  %v15317_v58 = vld [vmem:[#allocation186_spill] sm:$0xff]  ;;  %7942 = vmatmul.mubr.msk.f32.gmra.mrb[110].mxu0 %vm3842_vm4, %v12082_v34  ;;  %7008 = vmatmul.mubr.msk.f32.gmra.mrb[96].mxu1 %vm3842_vm4, %v12019_v35 }
 0x4c5   : > { %15308 = vst [vmem:[#allocation178_spill] sm:$0xff] %v13389_v32  ;;  %15312 = vst [vmem:[#allocation180_spill] sm:$0xff] %v13397_v1  ;;  %v13409_v48 = vadd.f32 %v15315_v56, %v12366_v19  ;;  %v13413_v3 = vadd.f32 %v15317_v58, %v12297_v13  ;;  %v15319_v8 = vld [vmem:[#allocation187_spill] sm:$0xff]  ;;  %v15321_v6 = vld [vmem:[#allocation188_spill] sm:$0xff]  ;;  %v4164_v32 = vpop.f32.mrb[0].mxu0  ;;  %5021 = vmatprep.mubr.f32.mxu1 %v14933_v54 }
 0x4c6   : > { %15310 = vst [vmem:[#allocation179_spill] sm:$0xff] %v13393_v55  ;;  %15314 = vst [vmem:[#allocation181_spill] sm:$0xff] %v13405_v0  ;;  %v13421_v22 = vadd.f32 %v15319_v8, %v12402_v26  ;;  %v13425_v0 = vadd.f32 %v15321_v6, %v12327_v60  ;;  %v15323_v56 = vld [vmem:[#allocation189_spill] sm:$0xff]  ;;  %v15325_v13 = vld [vmem:[#allocation190_spill] sm:$0xff]  ;;  %v4166_v38 = vpop.f32.mrb[1].mxu0 }
 0x4c7   : > { %15316 = vst [vmem:[#allocation182_spill] sm:$0xff] %v13409_v48  ;;  %15318 = vst [vmem:[#allocation183_spill] sm:$0xff] %v13413_v3  ;;  %v13429_v48 = vadd.f32 %v15323_v56, %v12606_v9  ;;  %v13433_v58 = vadd.f32 %v15325_v13, %v12327_v60  ;;  %v15327_v3 = vld [vmem:[#allocation191_spill] sm:$0xff]  ;;  %v15329_v55 = vld [vmem:[#allocation192_spill] sm:$0xff] }
 0x4c8   : > { %15320 = vst [vmem:[#allocation184_spill] sm:$0xff] %v13421_v22  ;;  %15322 = vst [vmem:[#allocation185_spill] sm:$0xff] %v13425_v0  ;;  %v13437_v1 = vadd.f32 %v15327_v3, %v12448_v59  ;;  %v13441_v8 = vadd.f32 %v15329_v55, %v12333_v43  ;;  %v15331_v22 = vld [vmem:[#allocation193_spill] sm:$0xff]  ;;  %v4003_v0 = vpop.f32.mrb[240].mxu1  ;;  %v15333_v56 = vld [vmem:[#allocation194_spill] sm:$0xff]  ;;  %7009 = vmatmul.mubr.msk.f32.gmra.mrb[98].mxu1 %vm3842_vm4, %v12028_v61 }
 0x4c9   : > { %15324 = vst [vmem:[#allocation186_spill] sm:$0xff] %v13429_v48  ;;  %15326 = vst [vmem:[#allocation187_spill] sm:$0xff] %v13433_v58  ;;  %v13445_v6 = vadd.f32 %v15331_v22, %v12512_v20  ;;  %v13449_v48 = vadd.f32 %v15333_v56, %v12333_v43  ;;  %v15335_v60 = vld [vmem:[#allocation195_spill] sm:$0xff]  ;;  %v15337_v3 = vld [vmem:[#allocation196_spill] sm:$0xff]  ;;  %v5209_v22 = vmul.f32 %v4003_v0, %v12462_v45  ;;  %v4005_v58 = vpop.f32.mrb[241].mxu1  ;;  %5027 = vmatprep.mubr.f32.mxu1 %v14933_v54 }
 0x4ca   : > { %15328 = vst [vmem:[#allocation188_spill] sm:$0xff] %v13437_v1  ;;  %15330 = vst [vmem:[#allocation189_spill] sm:$0xff] %v13441_v8  ;;  %v13453_v13 = vadd.f32 %v15335_v60, %v12438_v25  ;;  %v13457_v1 = vadd.f32 %v15337_v3, %v12414_v40  ;;  %v15339_v55 = vld [vmem:[#allocation197_spill] sm:$0xff]  ;;  %v15341_v43 = vld [vmem:[#allocation198_spill] sm:$0xff]  ;;  %v5210_v60 = vmul.f32 %v4005_v58, %v12474_v14 }
 0x4cb   : > { %15332 = vst [vmem:[#allocation190_spill] sm:$0xff] %v13445_v6  ;;  %15334 = vst [vmem:[#allocation191_spill] sm:$0xff] %v13449_v48  ;;  %v13461_v8 = vadd.f32 %v15339_v55, %v12688_v39  ;;  %v5211_v6 = vmul.f32 %v4164_v32, %v12470_v2  ;;  %v13471_v56 = vadd.f32 %v15341_v43, %v12414_v40  ;;  %v15343_v31 = vld [vmem:[#allocation199_spill] sm:$0xff]  ;;  %v15345_v40 = vld [vmem:[#allocation200_spill] sm:$0xff] }
 0x4cc   : > { %15336 = vst [vmem:[#allocation192_spill] sm:$0xff] %v13453_v13  ;;  %15338 = vst [vmem:[#allocation193_spill] sm:$0xff] %v13457_v1  ;;  %v5212_v3 = vmul.f32 %v4166_v38, %v12478_v10  ;;  %v13487_v45 = vadd.f32 %v15343_v31, %v12670_v16  ;;  %v13491_v2 = vadd.f32 %v15345_v40, %v12402_v26  ;;  %v15347_v14 = vld [vmem:[#allocation201_spill] sm:$0xff]  ;;  %v15349_v38 = vld [vmem:[#allocation202_spill] sm:$0xff]  ;;  %7010 = vmatmul.mubr.msk.f32.gmra.mrb[100].mxu1 %vm3842_vm4, %v12037_v30 }
 0x4cd   : > { %15340 = vst [vmem:[#allocation194_spill] sm:$0xff] %v13461_v8  ;;  %15342 = vst [vmem:[#allocation195_spill] sm:$0xff] %v13471_v56  ;;  %v13495_v10 = vadd.f32 %v15347_v14, %v12402_v26  ;;  %v13499_v32 = vadd.f32 %v15349_v38, %v12366_v19  ;;  %v15351_v0 = vld [vmem:[#allocation203_spill] sm:$0xff]  ;;  %v15353_v55 = vld [vmem:[#allocation204_spill] sm:$0xff]  ;;  %5033 = vmatprep.mubr.f32.mxu1 %v14933_v54 }
 0x4ce   : > { %15344 = vst [vmem:[#allocation196_spill] sm:$0xff] %v13487_v45  ;;  %15346 = vst [vmem:[#allocation197_spill] sm:$0xff] %v13491_v2  ;;  %v13503_v58 = vadd.f32 %v15351_v0, %v12366_v19  ;;  %v13507_v43 = vadd.f32 %v15353_v55, %v12448_v59  ;;  %v15355_v31 = vld [vmem:[#allocation205_spill] sm:$0xff]  ;;  %v15357_v26 = vld [vmem:[#allocation206_spill] sm:$0xff]  ;;  %v4170_v19 = vpop.f32.mrb[2].mxu0 }
 0x4cf   : > { %15348 = vst [vmem:[#allocation198_spill] sm:$0xff] %v13495_v10  ;;  %15350 = vst [vmem:[#allocation199_spill] sm:$0xff] %v13499_v32  ;;  %v13511_v40 = vadd.f32 %v15355_v31, %v12448_v59  ;;  %v13515_v14 = vadd.f32 %v15357_v26, %v12606_v9  ;;  %v15359_v10 = vld [vmem:[#allocation207_spill] sm:$0xff]  ;;  %v4009_v32 = vpop.f32.mrb[242].mxu1  ;;  %v15361_v0 = vld [vmem:[#allocation208_spill] sm:$0xff]  ;;  %v5226_v59 = vmul.f32 %v4170_v19, %v12486_v53 }
 0x4d0   : > { %15352 = vst [vmem:[#allocation200_spill] sm:$0xff] %v13503_v58  ;;  %15354 = vst [vmem:[#allocation201_spill] sm:$0xff] %v13507_v43  ;;  %v13519_v38 = vadd.f32 %v15359_v10, %v12606_v9  ;;  %v13523_v58 = vadd.f32 %v15361_v0, %v12438_v25  ;;  %v5224_v55 = vmul.f32 %v4009_v32, %v12482_v37  ;;  %v4011_v31 = vpop.f32.mrb[243].mxu1  ;;  %v13532_v9 = vld [vmem:[%s13483_s18] sm:$0xff]  ;;  %v15363_v10 = vld [vmem:[#allocation209_spill] sm:$0xff]  ;;  %7011 = vmatmul.mubr.msk.f32.gmra.mrb[102].mxu1 %vm3842_vm4, %v12046_v28 }
 0x4d1   : > { %15356 = vst [vmem:[#allocation202_spill] sm:$0xff] %v13511_v40  ;;  %15358 = vst [vmem:[#allocation203_spill] sm:$0xff] %v13515_v14  ;;  %v4172_v40 = vpop.f32.mrb[3].mxu0  ;;  %v13536_v26 = vadd.f32 %v15363_v10, %v12438_v25  ;;  %v5225_v0 = vmul.f32 %v4011_v31, %v12490_v44  ;;  %v13544_v53 = vld [vmem:[%s13483_s18 + $0x8] sm:$0xff]  ;;  %v15365_v50 = vld [vmem:[#allocation210_spill] sm:$0xff]  ;;  %v5467_v10 = vadd.f32 %v5226_v59, %v5211_v6  ;;  %5039 = vmatprep.mubr.f32.mxu1 %v14933_v54 }
 0x4d2   : > { %15360 = vst [vmem:[#allocation204_spill] sm:$0xff] %v13519_v38  ;;  %15362 = vst [vmem:[#allocation205_spill] sm:$0xff] %v13523_v58  ;;  %v5227_v37 = vmul.f32 %v4172_v40, %v12494_v46  ;;  %v13548_v32 = vadd.f32 %v15365_v50, %v12512_v20  ;;  %v15367_v19 = vld [vmem:[#allocation211_spill] sm:$0xff]  ;;  %v5449_v25 = vadd.f32 %v5224_v55, %v5209_v22  ;;  %v15369_v44 = vld [vmem:[#allocation212_spill] sm:$0xff]  ;;  %v4176_v38 = vpop.f32.mrb[4].mxu0 }
 0x4d3   : > { %15364 = vst [vmem:[#allocation206_spill] sm:$0xff] %v13536_v26  ;;  %v13552_v58 = vadd.f32 %v15367_v19, %v12512_v20  ;;  %v13556_v46 = vadd.f32 %v15369_v44, %v12670_v16  ;;  %v5458_v40 = vadd.f32 %v5225_v0, %v5210_v60  ;;  %v4015_v26 = vpop.f32.mrb[244].mxu1  ;;  %v13560_v14 = vcombine.high %v13532_v9, %v13532_v9  ;;  %v4178_v19 = vpop.f32.mrb[5].mxu0  ;;  %v15375_v2 = vld [vmem:[#allocation223_spill] sm:$0xff] }
 0x4d4   : > { %15366 = vst [vmem:[#allocation207_spill] sm:$0xff] %v13548_v32  ;;  %v5476_v31 = vadd.f32 %v5227_v37, %v5212_v3  ;;  %v5239_v50 = vmul.f32 %v4015_v26, %v12498_v52  ;;  %v5241_v32 = vmul.f32 %v4176_v38, %v12502_v62  ;;  %v4017_v20 = vpop.f32.mrb[245].mxu1  ;;  %v13570_v6 = vcombine.high %v13544_v53, %v13544_v53 }
 0x4d5   : > { %15368 = vst [vmem:[#allocation208_spill] sm:$0xff] %v13552_v58  ;;  %15370 = vst [vmem:[#allocation209_spill] sm:$0xff] %v13556_v46  ;;  %v5240_v22 = vmul.f32 %v4017_v20, %v12506_v4  ;;  %v5242_v60 = vmul.f32 %v4178_v19, %v12510_v5  ;;  %v4021_v0 = vpop.f32.mrb[246].mxu1  ;;  %v4182_v4 = vpop.f32.mrb[6].mxu0  ;;  %v15374_v58 = vld [vmem:[#allocation222_spill] sm:$0xff]  ;;  %7012 = vmatmul.mubr.msk.f32.gmra.mrb[104].mxu1 %vm3842_vm4, %v12055_v57 }
 0x4d6   : > { %v5450_v3 = vadd.f32 %v5449_v25, %v5239_v50  ;;  %v5468_v38 = vadd.f32 %v5467_v10, %v5241_v32  ;;  %v5254_v44 = vmul.f32 %v4021_v0, %v12520_v11  ;;  %v5256_v20 = vmul.f32 %v4182_v4, %v12524_v17  ;;  %v4023_v25 = vpop.f32.mrb[247].mxu1  ;;  %v4184_v32 = vpop.f32.mrb[7].mxu0  ;;  %v13591_v50 = vld [vmem:[%s13483_s18 + $0x18] sm:$0xff]  ;;  %5045 = vmatprep.mubr.f32.mxu1 %v14933_v54 }
 0x4d7   : > { %v5459_v59 = vadd.f32 %v5458_v40, %v5240_v22  ;;  %v5477_v26 = vadd.f32 %v5476_v31, %v5242_v60  ;;  %v13588_v31 = vld [vmem:[%s13483_s18 + $0x10] sm:$0xff]  ;;  %v5255_v19 = vmul.f32 %v4023_v25, %v12528_v23  ;;  %v5257_v22 = vmul.f32 %v4184_v32, %v12534_v24  ;;  %v4027_v37 = vpop.f32.mrb[248].mxu1  ;;  %v4188_v5 = vpop.f32.mrb[8].mxu0 }
 0x4d8   : > { %v5451_v60 = vadd.f32 %v5450_v3, %v5254_v44  ;;  %v5469_v35 = vadd.f32 %v5468_v38, %v5256_v20  ;;  %v13602_v23 = vcombine.high %v13588_v31, %v13588_v31  ;;  %v13606_v24 = vcombine.high %v13591_v50, %v13591_v50  ;;  %v4029_v44 = vpop.f32.mrb[249].mxu1  ;;  %v4190_v20 = vpop.f32.mrb[9].mxu0 }
 0x4d9   : > { %v5460_v40 = vadd.f32 %v5459_v59, %v5255_v19  ;;  %v5478_v10 = vadd.f32 %v5477_v26, %v5257_v22  ;;  %v5269_v3 = vmul.f32 %v4027_v37, %v12538_v36  ;;  %v5271_v38 = vmul.f32 %v4188_v5, %v12542_v47  ;;  %v4033_v37 = vpop.f32.mrb[250].mxu1  ;;  %v4194_v11 = vpop.f32.mrb[10].mxu0  ;;  %7013 = vmatmul.mubr.msk.f32.gmra.mrb[106].mxu1 %vm3842_vm4, %v12064_v51 }
 0x4da   : > { %v5452_v25 = vrot.slane %v5451_v60, 4  ;;  %v5470_v32 = vrot.slane %v5469_v35, 4  ;;  %v5270_v19 = vmul.f32 %v4029_v44, %v12546_v27  ;;  %v5272_v22 = vmul.f32 %v4190_v20, %v12550_v29  ;;  %v15371_v44 = vld [vmem:[#allocation219_spill] sm:$0xff]  ;;  %5051 = vmatprep.mubr.f32.mxu1 %v14933_v54 }
 0x4db   : > { %v5461_v59 = vrot.slane %v5460_v40, 4  ;;  %v5479_v26 = vrot.slane %v5478_v10, 4  ;;  %v5284_v29 = vmul.f32 %v4033_v37, %v12554_v33  ;;  %v5286_v20 = vmul.f32 %v4194_v11, %v15371_v44 }
 0x4dc   : > { %v5453_v4 = vadd.f32 %v5452_v25, %v5451_v60  ;;  %v5471_v0 = vadd.f32 %v5470_v32, %v5469_v35  ;;  %v4035_v60 = vpop.f32.mrb[251].mxu1  ;;  %v4196_v35 = vpop.f32.mrb[11].mxu0 }
 0x4dd   : > { %v5462_v47 = vadd.f32 %v5461_v59, %v5460_v40  ;;  %v5480_v5 = vadd.f32 %v5479_v26, %v5478_v10  ;;  %v15372_v10 = vld [vmem:[#allocation220_spill] sm:$0xff]  ;;  %v15373_v59 = vld [vmem:[#allocation221_spill] sm:$0xff]  ;;  %v5588_v36 = vadd.f32 %v5284_v29, %v5269_v3  ;;  %v5606_v17 = vadd.f32 %v5286_v20, %v5271_v38  ;;  %v4039_v62 = vpop.f32.mrb[252].mxu1  ;;  %v4200_v52 = vpop.f32.mrb[12].mxu0  ;;  %v15377_v38 = vld [vmem:[#allocation3_spill] sm:$0xff]  ;;  %7014 = vmatmul.mubr.msk.f32.gmra.mrb[108].mxu1 %vm3842_vm4, %v12073_v41 }
 0x4de   : > { %v5454_v12 = vrot.slane %v5453_v4, 2  ;;  %v5472_v27 = vrot.slane %v5471_v0, 2  ;;  %v5285_v32 = vmul.f32 %v4035_v60, %v15372_v10  ;;  %v5287_v26 = vmul.f32 %v4196_v35, %v15373_v59  ;;  %v4041_v10 = vpop.f32.mrb[253].mxu1  ;;  %v4202_v35 = vpop.f32.mrb[13].mxu0  ;;  %v15379_v59 = vld [vmem:[#allocation5_spill] sm:$0xff]  ;;  %5057 = vmatprep.mubr.f32.mxu1 %v14933_v54 }
 0x4df   : > { %v5463_v25 = vrot.slane %v5462_v47, 2  ;;  %v5481_v40 = vrot.slane %v5480_v5, 2  ;;  %v5299_v43 = vmul.f32 %v4039_v62, %v15374_v58  ;;  %v5301_v60 = vmul.f32 %v4200_v52, %v15375_v2  ;;  %v4045_v29 = vpop.f32.mrb[254].mxu1  ;;  %v4206_v20 = vpop.f32.mrb[14].mxu0 }
 0x4e0   : > { %v5455_v55 = vadd.f32 %v5454_v12, %v5453_v4  ;;  %v5473_v61 = vadd.f32 %v5472_v27, %v5471_v0  ;;  %v5597_v11 = vadd.f32 %v5285_v32, %v5270_v19  ;;  %v5615_v44 = vadd.f32 %v5287_v26, %v5272_v22  ;;  %v15376_v4 = vld [vmem:[#allocation2_spill] sm:$0xff] }
 0x4e1   : > { %v5464_v33 = vadd.f32 %v5463_v25, %v5462_v47  ;;  %v5482_v37 = vadd.f32 %v5481_v40, %v5480_v5  ;;  %v5300_v3 = vmul.f32 %v4041_v10, %v15376_v4  ;;  %v5302_v19 = vmul.f32 %v4202_v35, %v15377_v38  ;;  %v15378_v40 = vld [vmem:[#allocation4_spill] sm:$0xff]  ;;  %v4047_v10 = vpop.f32.mrb[255].mxu1  ;;  %v4208_v35 = vpop.f32.mrb[15].mxu0  ;;  %7015 = vmatmul.mubr.msk.f32.gmra.mrb[110].mxu1 %vm3842_vm4, %v12082_v34 }
 0x4e2   : > { %v5456_v46 = vrot.slane %v5455_v55, 1  ;;  %v5474_v30 = vrot.slane %v5473_v61, 1  ;;  %v5589_v5 = vadd.f32 %v5588_v36, %v5299_v43  ;;  %v5607_v27 = vadd.f32 %v5606_v17, %v5301_v60  ;;  %v15381_v36 = vld [vmem:[#allocation7_spill] sm:$0xff]  ;;  %v4051_v4 = vpop.f32.mrb[0].mxu1  ;;  %v4212_v57 = vpop.f32.mrb[16].mxu0 }
 0x4e3   : > { %v5465_v12 = vrot.slane %v5464_v33, 1  ;;  %v5483_v0 = vrot.slane %v5482_v37, 1  ;;  %v5598_v2 = vadd.f32 %v5597_v11, %v5300_v3  ;;  %v5616_v52 = vadd.f32 %v5615_v44, %v5302_v19 }
 0x4e4   : > { %v5457_v22 = vadd.f32 %v5456_v46, %v5455_v55  ;;  %v5475_v47 = vadd.f32 %v5474_v30, %v5473_v61  ;;  %v5314_v32 = vmul.f32 %v4045_v29, %v15378_v40  ;;  %v5316_v26 = vmul.f32 %v4206_v20, %v15379_v59  ;;  %v15380_v55 = vld [vmem:[#allocation6_spill] sm:$0xff]  ;;  %v4053_v20 = vpop.f32.mrb[1].mxu1 }
 0x4e5   : > { %v5466_v58 = vadd.f32 %v5465_v12, %v5464_v33  ;;  %v5484_v62 = vadd.f32 %v5483_v0, %v5482_v37  ;;  %v5315_v17 = vmul.f32 %v4047_v10, %v15380_v55  ;;  %v5317_v61 = vmul.f32 %v4208_v35, %v15381_v36 }
 0x4e6   : > { %v6133_v28 = vadd.f32 %v13532_v9, %v5457_v22  ;;  %v6135_v25 = vadd.f32 %v13544_v53, %v5475_v47  ;;  %v5590_v11 = vadd.f32 %v5589_v5, %v5314_v32  ;;  %v5608_v44 = vadd.f32 %v5607_v27, %v5316_v26  ;;  %v15383_v32 = vld [vmem:[#allocation9_spill] sm:$0xff]  ;;  %v4057_v26 = vpop.f32.mrb[2].mxu1 }
 0x4e7   : > { %v6134_v43 = vadd.f32 %v13560_v14, %v5466_v58  ;;  %v6136_v46 = vadd.f32 %v13570_v6, %v5484_v62  ;;  %v5599_v12 = vadd.f32 %v5598_v2, %v5315_v17  ;;  %v5617_v0 = vadd.f32 %v5616_v52, %v5317_v61  ;;  %v15382_v2 = vld [vmem:[#allocation8_spill] sm:$0xff]  ;;  %v4059_v55 = vpop.f32.mrb[3].mxu1 }
 0x4e8   : > { %v7033_v33 = vmul.f32 -33.33332, %v6133_v28  ;;  %v7035_v37 = vmul.f32 -33.33332, %v6135_v25  ;;  %v5591_v19 = vrot.slane %v5590_v11, 4  ;;  %v5609_v22 = vrot.slane %v5608_v44, 4 }
 0x4e9   : > { %v7034_v30 = vmul.f32 -33.33332, %v6134_v43  ;;  %v7036_v60 = vmul.f32 -33.33332, %v6136_v46  ;;  %v5600_v62 = vrot.slane %v5599_v12, 4  ;;  %v5618_v29 = vrot.slane %v5617_v0, 4 }
 0x4ea   : > { %v6313_v3 = vmul.f32 1.442695, %v7033_v33  ;;  %v6317_v38 = vmul.f32 1.442695, %v7035_v37  ;;  %v5592_v5 = vadd.f32 %v5591_v19, %v5590_v11  ;;  %v5610_v27 = vadd.f32 %v5609_v22, %v5608_v44  ;;  %v4214_v28 = vpop.f32.mrb[17].mxu0  ;;  %v15384_v43 = vld [vmem:[#allocation10_spill] sm:$0xff] }
 0x4eb   : > { %v6315_v47 = vmul.f32 1.442695, %v7034_v30  ;;  %v6319_v58 = vmul.f32 1.442695, %v7036_v60  ;;  %v5329_v52 = vmul.f32 %v4051_v4, %v15382_v2  ;;  %v5601_v25 = vadd.f32 %v5600_v62, %v5599_v12  ;;  %v4218_v51 = vpop.f32.mrb[18].mxu0  ;;  %v15385_v33 = vld [vmem:[#allocation11_spill] sm:$0xff] }
 0x4ec   : > { %8654 = vpow2.f32 %v6313_v3  ;;  %v5619_v40 = vadd.f32 %v5618_v29, %v5617_v0  ;;  %v5331_v59 = vmul.f32 %v4212_v57, %v15383_v32  ;;  %v5593_v10 = vrot.slane %v5592_v5, 2  ;;  %v4220_v17 = vpop.f32.mrb[19].mxu0  ;;  %v15386_v30 = vld [vmem:[#allocation12_spill] sm:$0xff]  ;;  %v15387_v12 = vld [vmem:[#allocation13_spill] sm:$0xff]  ;;  %v15388_v3 = vld [vmem:[#allocation14_spill] sm:$0xff]  ;;  %v4063_v41 = vpop.f32.mrb[4].mxu1 }
 0x4ed   : > { %8656 = vpow2.f32 %v6317_v38  ;;  %v5611_v35 = vrot.slane %v5610_v27, 2  ;;  %v5330_v46 = vmul.f32 %v4053_v20, %v15384_v43  ;;  %v5602_v36 = vrot.slane %v5601_v25, 2  ;;  %v15389_v19 = vld [vmem:[#allocation15_spill] sm:$0xff]  ;;  %v4065_v20 = vpop.f32.mrb[5].mxu1 }
 0x4ee   : > { %8658 = vpow2.f32 %v6315_v47  ;;  %v5620_v61 = vrot.slane %v5619_v40, 2  ;;  %v5332_v37 = vmul.f32 %v4214_v28, %v15385_v33  ;;  %v5594_v11 = vadd.f32 %v5593_v10, %v5592_v5  ;;  %v4224_v47 = vpop.f32.mrb[20].mxu0  ;;  %v15391_v10 = vld [vmem:[#allocation17_spill] sm:$0xff] }
 0x4ef   : > { %8660 = vpow2.f32 %v6319_v58  ;;  %v5612_v44 = vadd.f32 %v5611_v35, %v5610_v27  ;;  %v5344_v60 = vmul.f32 %v4057_v26, %v15386_v30  ;;  %v5346_v0 = vmul.f32 %v4218_v51, %v15387_v12  ;;  %v4226_v54 = vpop.f32.mrb[21].mxu0  ;;  %v15390_v26 = vld [vmem:[#allocation16_spill] sm:$0xff] }
 0x4f0   : > { %v5603_v4 = vadd.f32 %v5602_v36, %v5601_v25  ;;  %v5621_v57 = vadd.f32 %v5620_v61, %v5619_v40  ;;  %v5345_v38 = vmul.f32 %v4059_v55, %v15388_v3  ;;  %v5347_v22 = vmul.f32 %v4220_v17, %v15389_v19  ;;  %v15392_v17 = vld [vmem:[#allocation18_spill] sm:$0xff]  ;;  %v4069_v61 = vpop.f32.mrb[6].mxu1  ;;  %v4230_v33 = vpop.f32.mrb[22].mxu0 }
 0x4f1   : > { %v5595_v58 = vrot.slane %v5594_v11, 1  ;;  %v5613_v62 = vrot.slane %v5612_v44, 1  ;;  %v5727_v29 = vadd.f32 %v5344_v60, %v5329_v52  ;;  %v5745_v2 = vadd.f32 %v5346_v0, %v5331_v59  ;;  %v15393_v59 = vld [vmem:[#allocation19_spill] sm:$0xff]  ;;  %v4071_v12 = vpop.f32.mrb[7].mxu1  ;;  %v4232_v0 = vpop.f32.mrb[23].mxu0 }
 0x4f2   : > { %v5604_v5 = vrot.slane %v5603_v4, 1  ;;  %v5622_v27 = vrot.slane %v5621_v57, 1  ;;  %v5736_v28 = vadd.f32 %v5345_v38, %v5330_v46  ;;  %v5754_v25 = vadd.f32 %v5347_v22, %v5332_v37 }
 0x4f3   : > { %v5596_v40 = vadd.f32 %v5595_v58, %v5594_v11  ;;  %v5614_v32 = vadd.f32 %v5613_v62, %v5612_v44  ;;  %v5359_v51 = vmul.f32 %v4063_v41, %v15390_v26  ;;  %v5361_v35 = vmul.f32 %v4224_v47, %v15391_v10  ;;  %v4236_v10 = vpop.f32.mrb[24].mxu0 }
 0x4f4   : > { %v5605_v43 = vadd.f32 %v5604_v5, %v5603_v4  ;;  %v5623_v55 = vadd.f32 %v5622_v27, %v5621_v57  ;;  %v5360_v52 = vmul.f32 %v4065_v20, %v15392_v17  ;;  %v5362_v36 = vmul.f32 %v4226_v54, %v15393_v59 }
 0x4f5   : > { %v15394_v34 = vrot.slane %v13532_v9, 1  ;;  %v15395_v46 = vrot.slane %v13544_v53, 1  ;;  %v5728_v11 = vadd.f32 %v5727_v29, %v5359_v51  ;;  %v5746_v44 = vadd.f32 %v5745_v2, %v5361_v35 }
 0x4f6   : > { %v8655_v30 = vpop.eup %8654  ;;  %v15396_v57 = vrot.slane %v13560_v14, 1  ;;  %v15397_v19 = vrot.slane %v13570_v6, 1  ;;  %v5737_v41 = vadd.f32 %v5736_v28, %v5360_v52  ;;  %v5755_v54 = vadd.f32 %v5754_v25, %v5362_v36  ;;  %v15398_v28 = vld [vmem:[#allocation20_spill] sm:$0xff]  ;;  %v4238_v52 = vpop.f32.mrb[25].mxu0  ;;  %v15399_v25 = vld [vmem:[#allocation21_spill] sm:$0xff]  ;;  %v15400_v36 = vld [vmem:[#allocation22_spill] sm:$0xff] }
 0x4f7   : > { %v6148_v60 = vadd.f32 %v15394_v34, %v5596_v40  ;;  %v6150_v37 = vadd.f32 %v15395_v46, %v5614_v32  ;;  %v8657_v3 = vpop.eup %8656  ;;  %v6433_v4 = vadd.f32 1.0, %v8655_v30  ;;  %v4075_v40 = vpop.f32.mrb[8].mxu1  ;;  %v5376_v59 = vmul.f32 %v4230_v33, %v15399_v25  ;;  %v15401_v34 = vld [vmem:[#allocation23_spill] sm:$0xff] }
 0x4f8   : > { %v6149_v38 = vadd.f32 %v15396_v57, %v5605_v43  ;;  %v6151_v22 = vadd.f32 %v15397_v19, %v5623_v55  ;;  %v8659_v47 = vpop.eup %8658  ;;  %v6435_v58 = vadd.f32 1.0, %v8657_v3  ;;  %v5374_v55 = vmul.f32 %v4069_v61, %v15398_v28  ;;  %v4077_v17 = vpop.f32.mrb[9].mxu1  ;;  %v15409_v25 = vld [vmem:[#allocation31_spill] sm:$0xff] }
 0x4f9   : > { %v7048_v62 = vmul.f32 -33.33332, %v6148_v60  ;;  %v7050_v20 = vmul.f32 -33.33332, %v6150_v37  ;;  %v8661_v5 = vpop.eup %8660  ;;  %8662 = vrcp.f32 %v6433_v4  ;;  %v6434_v29 = vadd.f32 1.0, %v8659_v47  ;;  %v15402_v37 = vld [vmem:[#allocation24_spill] sm:$0xff] }
 0x4fa   : > { %v7049_v2 = vmul.f32 -33.33332, %v6149_v38  ;;  %v7051_v27 = vmul.f32 -33.33332, %v6151_v22  ;;  %8664 = vrcp.f32 %v6435_v58  ;;  %v6436_v32 = vadd.f32 1.0, %v8661_v5  ;;  %v15403_v4 = vld [vmem:[#allocation25_spill] sm:$0xff] }
 0x4fb   : > { %v6343_v26 = vmul.f32 1.442695, %v7048_v62  ;;  %v6347_v51 = vmul.f32 1.442695, %v7050_v20  ;;  %8666 = vrcp.f32 %v6434_v29  ;;  %v5375_v30 = vmul.f32 %v4071_v12, %v15400_v36  ;;  %v4081_v38 = vpop.f32.mrb[10].mxu1  ;;  %v4242_v19 = vpop.f32.mrb[26].mxu0 }
 0x4fc   : > { %v6345_v35 = vmul.f32 1.442695, %v7049_v2  ;;  %v6349_v43 = vmul.f32 1.442695, %v7051_v27  ;;  %8668 = vrcp.f32 %v6436_v32  ;;  %v5377_v60 = vmul.f32 %v4232_v0, %v15401_v34  ;;  %v4083_v58 = vpop.f32.mrb[11].mxu1  ;;  %v4244_v62 = vpop.f32.mrb[27].mxu0 }
 0x4fd   : > { %8670 = vpow2.f32 %v6343_v26  ;;  %v5729_v46 = vadd.f32 %v5728_v11, %v5374_v55  ;;  %v5389_v3 = vmul.f32 %v4075_v40, %v15402_v37  ;;  %v5391_v57 = vmul.f32 %v4236_v10, %v15403_v4  ;;  %v15404_v20 = vld [vmem:[#allocation26_spill] sm:$0xff]  ;;  %v15405_v5 = vld [vmem:[#allocation27_spill] sm:$0xff]  ;;  %v15406_v40 = vld [vmem:[#allocation28_spill] sm:$0xff]  ;;  %v4248_v10 = vpop.f32.mrb[28].mxu0 }
 0x4fe   : > { %8672 = vpow2.f32 %v6347_v51  ;;  %v5747_v22 = vadd.f32 %v5746_v44, %v5376_v59  ;;  %v5738_v61 = vadd.f32 %v5737_v41, %v5375_v30  ;;  %v5756_v47 = vadd.f32 %v5755_v54, %v5377_v60  ;;  %v15407_v26 = vld [vmem:[#allocation29_spill] sm:$0xff]  ;;  %v15408_v44 = vld [vmem:[#allocation30_spill] sm:$0xff]  ;;  %v4087_v54 = vpop.f32.mrb[12].mxu1 }
 0x4ff   : > { %8674 = vpow2.f32 %v6345_v35  ;;  %v5730_v33 = vrot.slane %v5729_v46, 4  ;;  %v5390_v12 = vmul.f32 %v4077_v17, %v15404_v20  ;;  %v5392_v0 = vmul.f32 %v4238_v52, %v15405_v5  ;;  %v4089_v59 = vpop.f32.mrb[13].mxu1  ;;  %v4250_v52 = vpop.f32.mrb[29].mxu0  ;;  %v15412_v20 = vld [vmem:[#allocation34_spill] sm:$0xff] }
 0x500   : > { %8676 = vpow2.f32 %v6349_v43  ;;  %v5748_v11 = vrot.slane %v5747_v22, 4  ;;  %v5739_v29 = vrot.slane %v5738_v61, 4  ;;  %v5757_v2 = vrot.slane %v5756_v47, 4 }
 0x501   : > { %v5731_v27 = vadd.f32 %v5730_v33, %v5729_v46  ;;  %v5404_v32 = vmul.f32 %v4081_v38, %v15406_v40  ;;  %v5406_v51 = vmul.f32 %v4242_v19, %v15407_v26  ;;  %v5405_v41 = vmul.f32 %v4083_v58, %v15408_v44 }
 0x502   : > { %v5749_v28 = vadd.f32 %v5748_v11, %v5747_v22  ;;  %v5740_v35 = vadd.f32 %v5739_v29, %v5738_v61  ;;  %v5758_v55 = vadd.f32 %v5757_v2, %v5756_v47  ;;  %v5407_v17 = vmul.f32 %v4244_v62, %v15409_v25  ;;  %v15410_v61 = vld [vmem:[#allocation32_spill] sm:$0xff]  ;;  %v15411_v62 = vld [vmem:[#allocation33_spill] sm:$0xff]  ;;  %v4093_v11 = vpop.f32.mrb[14].mxu1  ;;  %v4254_v29 = vpop.f32.mrb[30].mxu0 }
 0x503   : > { %v13684_v43 = vpop.eup %8662  ;;  %v5732_v36 = vrot.slane %v5731_v27, 2  ;;  %v5866_v30 = vadd.f32 %v5404_v32, %v5389_v3  ;;  %v5884_v34 = vadd.f32 %v5406_v51, %v5391_v57  ;;  %v5875_v60 = vadd.f32 %v5405_v41, %v5390_v12  ;;  %v4256_v32 = vpop.f32.mrb[31].mxu0 }
 0x504   : > { %v13686_v46 = vpop.eup %8664  ;;  %v5750_v37 = vrot.slane %v5749_v28, 2  ;;  %v5741_v4 = vrot.slane %v5740_v35, 2  ;;  %v5759_v38 = vrot.slane %v5758_v55, 2  ;;  %v5893_v19 = vadd.f32 %v5407_v17, %v5392_v0  ;;  %v4095_v0 = vpop.f32.mrb[15].mxu1 }
 0x505   : > { %v13688_v58 = vpop.eup %8666  ;;  %v5733_v22 = vadd.f32 %v5732_v36, %v5731_v27  ;;  %v5419_v47 = vmul.f32 %v4087_v54, %v15410_v61  ;;  %v5421_v33 = vmul.f32 %v4248_v10, %v15411_v62  ;;  %v5420_v5 = vmul.f32 %v4089_v59, %v15412_v20 }
 0x506   : > { %v13693_v3 = vpop.eup %8668  ;;  %v5751_v12 = vadd.f32 %v5750_v37, %v5749_v28  ;;  %v5742_v2 = vadd.f32 %v5741_v4, %v5740_v35  ;;  %v5760_v40 = vadd.f32 %v5759_v38, %v5758_v55  ;;  %v15413_v35 = vld [vmem:[#allocation35_spill] sm:$0xff]  ;;  %v4325_v37 = vpop.f32.mrb[16].mxu1 }
 0x507   : > { %v8671_v26 = vpop.eup %8670  ;;  %v5734_v51 = vrot.slane %v5733_v22, 1  ;;  %v5867_v44 = vadd.f32 %v5866_v30, %v5419_v47  ;;  %v5885_v41 = vadd.f32 %v5884_v34, %v5421_v33  ;;  %v5876_v28 = vadd.f32 %v5875_v60, %v5420_v5  ;;  %v4486_v4 = vpop.f32.mrb[32].mxu0 }
 0x508   : > { %v8673_v54 = vpop.eup %8672  ;;  %v6448_v10 = vadd.f32 1.0, %v8671_v26  ;;  %v5752_v25 = vrot.slane %v5751_v12, 1  ;;  %v5743_v17 = vrot.slane %v5742_v2, 1  ;;  %v5761_v59 = vrot.slane %v5760_v40, 1  ;;  %v4327_v30 = vpop.f32.mrb[17].mxu1 }
 0x509   : > { %v8675_v36 = vpop.eup %8674  ;;  %v6450_v61 = vadd.f32 1.0, %v8673_v54  ;;  %v5735_v62 = vadd.f32 %v5734_v51, %v5733_v22  ;;  %v5422_v55 = vmul.f32 %v4250_v52, %v15413_v35  ;;  %v4488_v34 = vpop.f32.mrb[33].mxu0  ;;  %v15414_v33 = vrot.slane %v13532_v9, 2  ;;  %v15420_v35 = vld [vmem:[#allocation38_spill] sm:$0xff] }
 0x50a   : > { %v8677_v38 = vpop.eup %8676  ;;  %8678 = vrcp.f32 %v6448_v10  ;;  %v6449_v20 = vadd.f32 1.0, %v8675_v36  ;;  %v5753_v27 = vadd.f32 %v5752_v25, %v5751_v12  ;;  %v5744_v57 = vadd.f32 %v5743_v17, %v5742_v2  ;;  %v15418_v10 = vld [vmem:[#allocation36_spill] sm:$0xff]  ;;  %v4331_v17 = vpop.f32.mrb[18].mxu1 }
 0x50b   : > { %8680 = vrcp.f32 %v6450_v61  ;;  %v6451_v47 = vadd.f32 1.0, %v8677_v38  ;;  %v6163_v26 = vadd.f32 %v15414_v33, %v5735_v62  ;;  %v5762_v45 = vadd.f32 %v5761_v59, %v5760_v40  ;;  %v4492_v36 = vpop.f32.mrb[34].mxu0  ;;  %v15419_v40 = vld [vmem:[#allocation37_spill] sm:$0xff] }
 0x50c   : > { %8682 = vrcp.f32 %v6449_v20  ;;  %v15415_v60 = vrot.slane %v13544_v53, 2  ;;  %v15416_v52 = vrot.slane %v13560_v14, 2  ;;  %v5894_v51 = vadd.f32 %v5893_v19, %v5422_v55  ;;  %v13711_v20 = vpop.f32.mrb[35].mxu0 }
 0x50d   : > { %8684 = vrcp.f32 %v6451_v47  ;;  %v7063_v54 = vmul.f32 -33.33332, %v6163_v26  ;;  %v15417_v12 = vrot.slane %v13570_v6, 2  ;;  %v5434_v25 = vmul.f32 %v4093_v11, %v15418_v10  ;;  %v15421_v47 = vld [vmem:[#allocation39_spill] sm:$0xff] }
 0x50e   : > { %v6165_v22 = vadd.f32 %v15415_v60, %v5753_v27  ;;  %v6164_v5 = vadd.f32 %v15416_v52, %v5744_v57  ;;  %v5436_v59 = vmul.f32 %v4254_v29, %v15419_v40  ;;  %v5435_v38 = vmul.f32 %v4095_v0, %v15420_v35  ;;  %v4333_v27 = vpop.f32.mrb[19].mxu1  ;;  %v13714_v0 = vpop.f32.mrb[36].mxu0 }
 0x50f   : > { %v6166_v2 = vadd.f32 %v15417_v12, %v5762_v45  ;;  %v6373_v57 = vmul.f32 1.442695, %v7063_v54  ;;  %v5868_v55 = vadd.f32 %v5867_v44, %v5434_v25  ;;  %v5437_v33 = vmul.f32 %v4256_v32, %v15421_v47  ;;  %v13719_v32 = vpop.f32.mrb[37].mxu0  ;;  %v15423_v25 = vld [vmem:[#allocation41_spill] sm:$0xff]  ;;  %v15425_v47 = vld [vmem:[#allocation43_spill] sm:$0xff] }
 0x510   : > { %v7065_v61 = vmul.f32 -33.33332, %v6165_v22  ;;  %v7064_v62 = vmul.f32 -33.33332, %v6164_v5  ;;  %v5886_v11 = vadd.f32 %v5885_v41, %v5436_v59  ;;  %v5877_v60 = vadd.f32 %v5876_v28, %v5435_v38  ;;  %v4337_v5 = vpop.f32.mrb[20].mxu1  ;;  %v15424_v59 = vld [vmem:[#allocation42_spill] sm:$0xff] }
 0x511   : > { %v7066_v19 = vmul.f32 -33.33332, %v6166_v2  ;;  %8686 = vpow2.f32 %v6373_v57  ;;  %v5869_v52 = vrot.slane %v5868_v55, 4  ;;  %v5895_v29 = vadd.f32 %v5894_v51, %v5437_v33  ;;  %v15422_v2 = vld [vmem:[#allocation40_spill] sm:$0xff]  ;;  %v13717_v10 = vpop.f32.mrb[21].mxu1 }
 0x512   : > { %v6377_v45 = vmul.f32 1.442695, %v7065_v61  ;;  %v6375_v26 = vmul.f32 1.442695, %v7064_v62  ;;  %v5887_v12 = vrot.slane %v5886_v11, 4  ;;  %v5878_v54 = vrot.slane %v5877_v60, 4 }
 0x513   : > { %v6379_v22 = vmul.f32 1.442695, %v7066_v19  ;;  %v5213_v44 = vmul.f32 %v4325_v37, %v15422_v2  ;;  %v5870_v41 = vadd.f32 %v5869_v52, %v5868_v55  ;;  %v5896_v28 = vrot.slane %v5895_v29, 4  ;;  %v15426_v33 = vld [vmem:[#allocation44_spill] sm:$0xff]  ;;  %v13727_v2 = vpop.f32.mrb[22].mxu1  ;;  %v13729_v55 = vpop.f32.mrb[38].mxu0 }
 0x514   : > { %8688 = vpow2.f32 %v6377_v45  ;;  %v5215_v61 = vmul.f32 %v4486_v4, %v15423_v25  ;;  %v8679_v62 = vpop.eup %8678  ;;  %v5888_v51 = vadd.f32 %v5887_v12, %v5886_v11  ;;  %v5879_v40 = vadd.f32 %v5878_v54, %v5877_v60  ;;  %v15428_v60 = vld [vmem:[#allocation46_spill] sm:$0xff]  ;;  %v13735_v54 = vpop.f32.mrb[39].mxu0 }
 0x515   : > { %8690 = vpow2.f32 %v6375_v26  ;;  %v5214_v35 = vmul.f32 %v4327_v30, %v15424_v59  ;;  %v8681_v38 = vpop.eup %8680  ;;  %v5871_v57 = vrot.slane %v5870_v41, 2  ;;  %v5897_v19 = vadd.f32 %v5896_v28, %v5895_v29  ;;  %v13733_v30 = vpop.f32.mrb[23].mxu1 }
 0x516   : > { %8692 = vpow2.f32 %v6379_v22  ;;  %v13724_v37 = vmul.f32 %v4488_v34, %v15425_v47  ;;  %v5228_v45 = vmul.f32 %v4331_v17, %v15426_v33  ;;  %v8683_v26 = vpop.eup %8682  ;;  %v5889_v4 = vrot.slane %v5888_v51, 2  ;;  %v15427_v22 = vld [vmem:[#allocation45_spill] sm:$0xff] }
 0x517   : > { %v5880_v52 = vrot.slane %v5879_v40, 2  ;;  %v5230_v11 = vmul.f32 %v4492_v36, %v15427_v22  ;;  %v5229_v12 = vmul.f32 %v4333_v27, %v15428_v60  ;;  %v8685_v29 = vpop.eup %8684  ;;  %v6680_v34 = vcombine.low %v8679_v62, %v8683_v26  ;;  %v13739_v22 = vpop.f32.mrb[24].mxu1  ;;  %v15429_v62 = vld [vmem:[#allocation47_spill] sm:$0xff] }
 0x518   : > { %v5872_v28 = vadd.f32 %v5871_v57, %v5870_v41  ;;  %v5898_v25 = vrot.slane %v5897_v19, 2  ;;  %v5485_v17 = vadd.f32 %v5228_v45, %v5213_v44  ;;  %v6681_v59 = vcombine.low %v8681_v38, %v8685_v29  ;;  %v13741_v27 = vpop.f32.mrb[40].mxu0  ;;  %v13745_v44 = vpop.f32.mrb[25].mxu1 }
 0x519   : > { %v5890_v47 = vadd.f32 %v5889_v4, %v5888_v51  ;;  %v5881_v33 = vadd.f32 %v5880_v52, %v5879_v40  ;;  %v13737_v56 = vadd.f32 %v5230_v11, %v5215_v61  ;;  %v6701_v8 = vrot.slane %v6680_v34, 7  ;;  %v13747_v51 = vpop.f32.mrb[41].mxu0 }
 0x51a   : > { %v5873_v39 = vrot.slane %v5872_v28, 1  ;;  %v5899_v1 = vadd.f32 %v5898_v25, %v5897_v19  ;;  %v5494_v36 = vadd.f32 %v5229_v12, %v5214_v35  ;;  %v6716_v60 = vrot.slane %v6681_v59, 7  ;;  %v15431_v19 = vld [vmem:[#allocation48_spill] sm:$0xff]  ;;  %v4516_v25 = vpop.f32.mrb[42].mxu0 }
 0x51b   : > { %v5891_v13 = vrot.slane %v5890_v47, 1  ;;  %v5882_v48 = vrot.slane %v5881_v33, 1  ;;  %v5231_v41 = vmul.f32 %v13711_v20, %v15429_v62  ;;  %v8687_v61 = vpop.eup %8686  ;;  %v15430_v40 = vcombine.low %v13684_v43, %v13688_v58 }
 0x51c   : > { %v5874_v38 = vadd.f32 %v5873_v39, %v5872_v28  ;;  %v5900_v57 = vrot.slane %v5899_v1, 1  ;;  %v5243_v45 = vmul.f32 %v4337_v5, %v15431_v19  ;;  %v15432_v20 = vcombine.low %v13686_v46, %v13693_v3  ;;  %v4355_v28 = vpop.f32.mrb[26].mxu1 }
 0x51d   : > { %v6703_v35 = vsel %vm6702_vm5, %v6701_v8, %v15430_v40  ;;  %v6463_v11 = vadd.f32 1.0, %v8687_v61  ;;  %v5892_v12 = vadd.f32 %v5891_v13, %v5890_v47  ;;  %v15433_v39 = vrot.slane %v13532_v9, 3  ;;  %v4357_v61 = vpop.f32.mrb[27].mxu1  ;;  %v13768_v13 = vpop.f32.mrb[43].mxu0 }
 0x51e   : > { %v8689_v26 = vpop.eup %8688  ;;  %v13755_v4 = vsel %vm6704_vm6, %v6701_v8, %v6703_v35  ;;  %v6717_v52 = vsel %vm6702_vm5, %v6716_v60, %v15432_v20  ;;  %v5883_v5 = vadd.f32 %v5882_v48, %v5881_v33  ;;  %v15434_v46 = vrot.slane %v13544_v53, 3 }
 0x51f   : > { %v8691_v29 = vpop.eup %8690  ;;  %v13762_v43 = vsel %vm6704_vm6, %v6716_v60, %v6717_v52  ;;  %v6465_v58 = vadd.f32 1.0, %v8689_v26  ;;  %v6178_v34 = vadd.f32 %v15433_v39, %v5874_v38  ;;  %8694 = vrcp.f32 %v6463_v11  ;;  %v13777_v26 = vpop.f32.mrb[44].mxu0  ;;  %v15437_v11 = vld [vmem:[#allocation49_spill] sm:$0xff] }
 0x520   : > { %v8693_v8 = vpop.eup %8692  ;;  %v6464_v59 = vadd.f32 1.0, %v8691_v29  ;;  %v6180_v3 = vadd.f32 %v15434_v46, %v5892_v12  ;;  %v5901_v62 = vadd.f32 %v5900_v57, %v5899_v1  ;;  %v15435_v40 = vrot.slane %v13560_v14, 3  ;;  %v13775_v57 = vpop.f32.mrb[28].mxu1  ;;  %v15438_v12 = vld [vmem:[#allocation50_spill] sm:$0xff] }
 0x521   : > { %8696 = vrcp.f32 %v6465_v58  ;;  %v6466_v47 = vadd.f32 1.0, %v8693_v8  ;;  %v7078_v60 = vmul.f32 -33.33332, %v6178_v34  ;;  %v15436_v33 = vrot.slane %v13570_v6, 3  ;;  %v13783_v6 = vpop.f32.mrb[29].mxu1  ;;  %v13785_v58 = vpop.f32.mrb[45].mxu0 }
 0x522   : > { %v6179_v9 = vadd.f32 %v15435_v40, %v5883_v5  ;;  %8698 = vrcp.f32 %v6464_v59  ;;  %v7080_v48 = vmul.f32 -33.33332, %v6180_v3  ;;  %v5512_v38 = vadd.f32 %v5231_v41, %v13724_v37  ;;  %v15439_v41 = vld [vmem:[#allocation51_spill] sm:$0xff]  ;;  %v15441_v59 = vld [vmem:[#allocation53_spill] sm:$0xff]  ;;  %v13794_v3 = vpop.f32.mrb[30].mxu1 }
 0x523   : > { %v6181_v35 = vadd.f32 %v15436_v33, %v5901_v62  ;;  %8700 = vrcp.f32 %v6466_v47  ;;  %v6403_v53 = vmul.f32 1.442695, %v7078_v60  ;;  %v5486_v1 = vadd.f32 %v5485_v17, %v5243_v45  ;;  %v15440_v45 = vld [vmem:[#allocation52_spill] sm:$0xff]  ;;  %v13796_v62 = vpop.f32.mrb[46].mxu0  ;;  %v15443_v47 = vld [vmem:[#allocation55_spill] sm:$0xff]  ;;  %v13804_v40 = vpop.f32.mrb[31].mxu1 }
 0x524   : > { %v7079_v19 = vmul.f32 -33.33332, %v6179_v9  ;;  %v6407_v20 = vmul.f32 1.442695, %v7080_v48  ;;  %v5245_v14 = vmul.f32 %v13714_v0, %v15437_v11  ;;  %v5244_v29 = vmul.f32 %v13717_v10, %v15438_v12  ;;  %v13806_v9 = vpop.f32.mrb[47].mxu0  ;;  %v15445_v33 = vld [vmem:[#allocation57_spill] sm:$0xff] }
 0x525   : > { %v7081_v52 = vmul.f32 -33.33332, %v6181_v35  ;;  %8702 = vpow2.f32 %v6403_v53  ;;  %v5246_v17 = vmul.f32 %v13719_v32, %v15439_v41  ;;  %v5258_v39 = vmul.f32 %v13727_v2, %v15440_v45  ;;  %v15442_v32 = vld [vmem:[#allocation54_spill] sm:$0xff]  ;;  %v13817_v45 = vpop.f32.mrb[32].mxu1 }
 0x526   : > { %v6405_v37 = vmul.f32 1.442695, %v7079_v19  ;;  %8704 = vpow2.f32 %v6407_v20  ;;  %v5504_v0 = vadd.f32 %v13737_v56, %v5245_v14  ;;  %v5495_v5 = vadd.f32 %v5494_v36, %v5244_v29  ;;  %v15444_v56 = vld [vmem:[#allocation56_spill] sm:$0xff]  ;;  %v15447_v20 = vld [vmem:[#allocation59_spill] sm:$0xff]  ;;  %v15449_v29 = vld [vmem:[#allocation61_spill] sm:$0xff] }
 0x527   : > { %v6409_v34 = vmul.f32 1.442695, %v7081_v52  ;;  %v5513_v10 = vadd.f32 %v5512_v38, %v5246_v17  ;;  %v5487_v8 = vadd.f32 %v5486_v1, %v5258_v39  ;;  %v5260_v46 = vmul.f32 %v13729_v55, %v15441_v59  ;;  %v15446_v38 = vld [vmem:[#allocation58_spill] sm:$0xff]  ;;  %v15448_v52 = vld [vmem:[#allocation60_spill] sm:$0xff] }
 0x528   : > { %8706 = vpow2.f32 %v6405_v37  ;;  %v5259_v2 = vmul.f32 %v13733_v30, %v15442_v32  ;;  %v5261_v60 = vmul.f32 %v13735_v54, %v15443_v47  ;;  %v5273_v36 = vmul.f32 %v13739_v22, %v15444_v56  ;;  %v15450_v41 = vld [vmem:[#allocation62_spill] sm:$0xff] }
 0x529   : > { %8708 = vpow2.f32 %v6409_v34  ;;  %v5488_v48 = vrot.slane %v5487_v8, 4  ;;  %v5505_v55 = vadd.f32 %v5504_v0, %v5260_v46  ;;  %v5275_v35 = vmul.f32 %v13741_v27, %v15445_v33  ;;  %v8695_v19 = vpop.eup %8694  ;;  %v13819_v27 = vpop.f32.mrb[48].mxu0 }
 0x52a   : > { %v5274_v53 = vmul.f32 %v13745_v44, %v15446_v38  ;;  %v5496_v30 = vadd.f32 %v5495_v5, %v5259_v2  ;;  %v5514_v1 = vadd.f32 %v5513_v10, %v5261_v60  ;;  %v5276_v54 = vmul.f32 %v13747_v51, %v15447_v20  ;;  %v15451_v5 = vld [vmem:[#allocation63_spill] sm:$0xff]  ;;  %v13823_v10 = vpop.f32.mrb[33].mxu1 }
 0x52b   : > { %v5288_v22 = vmul.f32 %v4355_v28, %v15448_v52  ;;  %v8697_v11 = vpop.eup %8696  ;;  %v5489_v14 = vadd.f32 %v5488_v48, %v5487_v8  ;;  %v5506_v12 = vrot.slane %v5505_v55, 4  ;;  %v5290_v37 = vmul.f32 %v4516_v25, %v15449_v29  ;;  %v13825_v28 = vpop.f32.mrb[49].mxu0 }
 0x52c   : > { %v5289_v17 = vmul.f32 %v4357_v61, %v15450_v41  ;;  %v8699_v44 = vpop.eup %8698  ;;  %v5497_v39 = vrot.slane %v5496_v30, 4  ;;  %v5515_v34 = vrot.slane %v5514_v1, 4  ;;  %v5291_v51 = vmul.f32 %v13768_v13, %v15451_v5  ;;  %v13827_v20 = vpop.f32.mrb[34].mxu1 }
 0x52d   : > { %v5624_v0 = vadd.f32 %v5288_v22, %v5273_v36  ;;  %v8701_v8 = vpop.eup %8700  ;;  %v6687_v59 = vcombine.low %v8695_v19, %v8699_v44  ;;  %v5490_v25 = vrot.slane %v5489_v14, 2  ;;  %v5507_v46 = vadd.f32 %v5506_v12, %v5505_v55  ;;  %v13829_v13 = vpop.f32.mrb[50].mxu0 }
 0x52e   : > { %v5642_v61 = vadd.f32 %v5290_v37, %v5275_v35  ;;  %v6688_v32 = vcombine.low %v8697_v11, %v8701_v8  ;;  %v5498_v2 = vadd.f32 %v5497_v39, %v5496_v30  ;;  %v5516_v47 = vadd.f32 %v5515_v34, %v5514_v1  ;;  %v13831_v55 = vpop.f32.mrb[35].mxu1  ;;  %v13833_v35 = vpop.f32.mrb[51].mxu0 }
 0x52f   : > { %v5633_v60 = vadd.f32 %v5289_v17, %v5274_v53  ;;  %v8703_v56 = vpop.eup %8702  ;;  %v6706_v48 = vrot.slane %v6687_v59, 6  ;;  %v5491_v33 = vadd.f32 %v5490_v25, %v5489_v14  ;;  %v5508_v36 = vrot.slane %v5507_v46, 2  ;;  %v13845_v5 = vpop.f32.mrb[36].mxu1 }
 0x530   : > { %v5651_v38 = vadd.f32 %v5291_v51, %v5276_v54  ;;  %v8705_v52 = vpop.eup %8704  ;;  %v6719_v22 = vrot.slane %v6688_v32, 6  ;;  %v6478_v29 = vadd.f32 1.0, %v8703_v56  ;;  %v5499_v19 = vrot.slane %v5498_v2, 2  ;;  %v13849_v25 = vpop.f32.mrb[37].mxu1  ;;  %v15452_v32 = vld [vmem:[#allocation64_spill] sm:$0xff] }
 0x531   : > { %v5517_v41 = vrot.slane %v5516_v47, 2  ;;  %v6708_v53 = vsel %vm6707_vm7, %v6706_v48, %v13755_v4  ;;  %v6480_v1 = vadd.f32 1.0, %v8705_v52  ;;  %v5492_v11 = vrot.slane %v5491_v33, 1  ;;  %v13847_v4 = vpop.f32.mrb[52].mxu0 }
 0x532   : > { %v8707_v30 = vpop.eup %8706  ;;  %v5509_v54 = vadd.f32 %v5508_v36, %v5507_v46  ;;  %v13838_v12 = vsel %vm6709_vm8, %v6706_v48, %v6708_v53  ;;  %v6720_v37 = vsel %vm6707_vm7, %v6719_v22, %v13762_v43  ;;  %8710 = vrcp.f32 %v6478_v29  ;;  %v13851_v46 = vpop.f32.mrb[53].mxu0  ;;  %v15453_v48 = vld [vmem:[#allocation65_spill] sm:$0xff]  ;;  %v15454_v29 = vld [vmem:[#allocation66_spill] sm:$0xff] }
 0x533   : > { %v8709_v14 = vpop.eup %8708  ;;  %v6479_v17 = vadd.f32 1.0, %v8707_v30  ;;  %v13843_v44 = vsel %vm6709_vm8, %v6719_v22, %v6720_v37  ;;  %8712 = vrcp.f32 %v6480_v1  ;;  %v5493_v34 = vadd.f32 %v5492_v11, %v5491_v33  ;;  %v15455_v30 = vld [vmem:[#allocation67_spill] sm:$0xff]  ;;  %v13862_v1 = vpop.f32.mrb[38].mxu1 }
 0x534   : > { %v6481_v39 = vadd.f32 1.0, %v8709_v14  ;;  %v5510_v51 = vrot.slane %v5509_v54, 1  ;;  %v5500_v8 = vadd.f32 %v5499_v19, %v5498_v2  ;;  %v5518_v59 = vadd.f32 %v5517_v41, %v5516_v47  ;;  %v13864_v11 = vpop.f32.mrb[54].mxu0 }
 0x535   : > { %8714 = vrcp.f32 %v6479_v17  ;;  %v6137_v43 = vadd.f32 %v13588_v31, %v5493_v34  ;;  %v5303_v56 = vmul.f32 %v13775_v57, %v15452_v32  ;;  %v5305_v33 = vmul.f32 %v13777_v26, %v15453_v48  ;;  %v13867_v57 = vld [vmem:[%s13483_s18 + $0x18] sm:$0xff]  ;;  %v13870_v17 = vpop.f32.mrb[39].mxu1 }
 0x536   : > { %8716 = vrcp.f32 %v6481_v39  ;;  %v5511_v36 = vadd.f32 %v5510_v51, %v5509_v54  ;;  %v5501_v52 = vrot.slane %v5500_v8, 1  ;;  %v5519_v22 = vrot.slane %v5518_v59, 1  ;;  %v15457_v34 = vld [vmem:[#allocation69_spill] sm:$0xff] }
 0x537   : > { %v5304_v2 = vmul.f32 %v13783_v6, %v15454_v29  ;;  %v7037_v47 = vmul.f32 -33.33332, %v6137_v43  ;;  %v5625_v19 = vadd.f32 %v5624_v0, %v5303_v56  ;;  %v5643_v41 = vadd.f32 %v5642_v61, %v5305_v33  ;;  %v13872_v6 = vpop.f32.mrb[55].mxu0  ;;  %v15459_v33 = vld [vmem:[#allocation71_spill] sm:$0xff] }
 0x538   : > { %v5306_v53 = vmul.f32 %v13785_v58, %v15455_v30  ;;  %v6139_v26 = vadd.f32 %v13867_v57, %v5511_v36  ;;  %v5502_v54 = vadd.f32 %v5501_v52, %v5500_v8  ;;  %v5520_v14 = vadd.f32 %v5519_v22, %v5518_v59  ;;  %v15456_v58 = vld [vmem:[#allocation68_spill] sm:$0xff]  ;;  %v15458_v59 = vld [vmem:[#allocation70_spill] sm:$0xff]  ;;  %v13884_v36 = vpop.f32.mrb[40].mxu1 }
 0x539   : > { %v5634_v37 = vadd.f32 %v5633_v60, %v5304_v2  ;;  %v6321_v0 = vmul.f32 1.442695, %v7037_v47  ;;  %v5318_v39 = vmul.f32 %v13794_v3, %v15456_v58  ;;  %v5320_v51 = vmul.f32 %v13796_v62, %v15457_v34  ;;  %v13886_v3 = vpop.f32.mrb[56].mxu0 }
 0x53a   : > { %v5652_v61 = vadd.f32 %v5651_v38, %v5306_v53  ;;  %v7039_v43 = vmul.f32 -33.33332, %v6139_v26  ;;  %v6138_v32 = vadd.f32 %v13602_v23, %v5502_v54  ;;  %v6140_v8 = vadd.f32 %v13606_v24, %v5520_v14  ;;  %v13892_v54 = vpop.f32.mrb[57].mxu0 }
 0x53b   : > { %v5319_v60 = vmul.f32 %v13804_v40, %v15458_v59  ;;  %8718 = vpow2.f32 %v6321_v0  ;;  %v5626_v56 = vadd.f32 %v5625_v19, %v5318_v39  ;;  %v5644_v48 = vadd.f32 %v5643_v41, %v5320_v51  ;;  %v15460_v40 = vld [vmem:[#allocation72_spill] sm:$0xff]  ;;  %v13890_v41 = vpop.f32.mrb[41].mxu1  ;;  %v15461_v59 = vld [vmem:[#allocation73_spill] sm:$0xff] }
 0x53c   : > { %v5321_v38 = vmul.f32 %v13806_v9, %v15459_v33  ;;  %v8711_v52 = vpop.eup %8710  ;;  %v6325_v62 = vmul.f32 1.442695, %v7039_v43  ;;  %v7038_v22 = vmul.f32 -33.33332, %v6138_v32  ;;  %v7040_v29 = vmul.f32 -33.33332, %v6140_v8 }
 0x53d   : > { %v5635_v2 = vadd.f32 %v5634_v37, %v5319_v60  ;;  %v8713_v47 = vpop.eup %8712  ;;  %v5627_v30 = vrot.slane %v5626_v56, 4  ;;  %v5645_v53 = vrot.slane %v5644_v48, 4  ;;  %v5333_v19 = vmul.f32 %v13817_v45, %v15460_v40  ;;  %v13894_v32 = vpop.f32.mrb[42].mxu1  ;;  %v15463_v40 = vld [vmem:[#allocation75_spill] sm:$0xff] }
 0x53e   : > { %v5653_v26 = vadd.f32 %v5652_v61, %v5321_v38  ;;  %8720 = vpow2.f32 %v6325_v62  ;;  %v6323_v14 = vmul.f32 1.442695, %v7038_v22  ;;  %v6327_v0 = vmul.f32 1.442695, %v7040_v29  ;;  %v13896_v61 = vpop.f32.mrb[58].mxu0  ;;  %v13900_v33 = vpop.f32.mrb[43].mxu1 }
 0x53f   : > { %v8715_v9 = vpop.eup %8714  ;;  %v5636_v58 = vrot.slane %v5635_v2, 4  ;;  %v5628_v37 = vadd.f32 %v5627_v30, %v5626_v56  ;;  %v5646_v51 = vadd.f32 %v5645_v53, %v5644_v48  ;;  %v5335_v60 = vmul.f32 %v13819_v27, %v15461_v59  ;;  %v13902_v38 = vpop.f32.mrb[59].mxu0 }
 0x540   : > { %v8717_v39 = vpop.eup %8716  ;;  %v6694_v34 = vcombine.low %v8711_v52, %v8715_v9  ;;  %v5654_v43 = vrot.slane %v5653_v26, 4  ;;  %8722 = vpow2.f32 %v6323_v14  ;;  %v5336_v9 = vmul.f32 %v13825_v28, %v15463_v40  ;;  %v13917_v14 = vpop.f32.mrb[44].mxu1  ;;  %v15466_v40 = vld [vmem:[#allocation78_spill] sm:$0xff] }
 0x541   : > { %v6695_v45 = vcombine.low %v8713_v47, %v8717_v39  ;;  %v5637_v8 = vadd.f32 %v5636_v58, %v5635_v2  ;;  %8724 = vpow2.f32 %v6327_v0  ;;  %v5629_v52 = vrot.slane %v5628_v37, 2  ;;  %v15462_v2 = vld [vmem:[#allocation74_spill] sm:$0xff]  ;;  %v13919_v0 = vpop.f32.mrb[60].mxu0 }
 0x542   : > { %v6711_v62 = vrot.slane %v6694_v34, 5  ;;  %v5647_v56 = vrot.slane %v5646_v51, 2  ;;  %v5655_v29 = vadd.f32 %v5654_v43, %v5653_v26  ;;  %v5334_v27 = vmul.f32 %v13823_v10, %v15462_v2  ;;  %v13924_v34 = vpop.f32.mrb[45].mxu1 }
 0x543   : > { %v6722_v48 = vrot.slane %v6695_v45, 5  ;;  %v5638_v22 = vrot.slane %v5637_v8, 2  ;;  %v5630_v30 = vadd.f32 %v5629_v52, %v5628_v37  ;;  %v15464_v45 = vld [vmem:[#allocation76_spill] sm:$0xff]  ;;  %v13937_v16 = vpop.f32.mrb[46].mxu1 }
 0x544   : > { %v6713_v47 = vsel %vm6712_vm9, %v6711_v62, %v13838_v12  ;;  %v5648_v53 = vadd.f32 %v5647_v56, %v5646_v51  ;;  %v5656_v10 = vrot.slane %v5655_v29, 2  ;;  %v13926_v12 = vpop.f32.mrb[61].mxu0  ;;  %v5348_v59 = vmul.f32 %v13827_v20, %v15464_v45  ;;  %v13941_v45 = vpop.f32.mrb[47].mxu1 }
 0x545   : > { %v6715_v58 = vsel %vm6714_vm10, %v6711_v62, %v6713_v47  ;;  %v6723_v26 = vsel %vm6712_vm9, %v6722_v48, %v13843_v44  ;;  %v5639_v39 = vadd.f32 %v5638_v22, %v5637_v8  ;;  %v8719_v37 = vpop.eup %8718  ;;  %v5631_v28 = vrot.slane %v5630_v30, 1  ;;  %v15465_v44 = vld [vmem:[#allocation77_spill] sm:$0xff] }
 0x546   : > { %6787 = vst [vmem:[%s13909_s21] sm:$0xff] %v6715_v58  ;;  %v6724_v51 = vsel %vm6714_vm10, %v6722_v48, %v6723_v26  ;;  %v5649_v43 = vrot.slane %v5648_v53, 1  ;;  %v6437_v62 = vadd.f32 1.0, %v8719_v37  ;;  %v5657_v56 = vadd.f32 %v5656_v10, %v5655_v29  ;;  %v13939_v48 = vpop.f32.mrb[62].mxu0 }
 0x547   : > { %6788 = vst [vmem:[%s13909_s21 + $0x8] sm:$0xff] %v6724_v51  ;;  %v5640_v52 = vrot.slane %v5639_v39, 1  ;;  %v5350_v8 = vmul.f32 %v13829_v13, %v15465_v44  ;;  %v5632_v22 = vadd.f32 %v5631_v28, %v5630_v30  ;;  %v5763_v47 = vadd.f32 %v5348_v59, %v5333_v19  ;;  %v13943_v29 = vpop.f32.mrb[63].mxu0 }
 0x548   : > { %v5650_v2 = vadd.f32 %v5649_v43, %v5648_v53  ;;  %v5349_v58 = vmul.f32 %v13831_v55, %v15466_v40  ;;  %v8721_v26 = vpop.eup %8720  ;;  %8726 = vrcp.f32 %v6437_v62  ;;  %v5658_v51 = vrot.slane %v5657_v56, 1 }
 0x549   : > { %v5641_v20 = vadd.f32 %v5640_v52, %v5639_v39  ;;  %v5781_v37 = vadd.f32 %v5350_v8, %v5335_v60  ;;  %v6439_v13 = vadd.f32 1.0, %v8721_v26  ;;  %v15467_v30 = vrot.slane %v13588_v31, 1  ;;  %v15470_v39 = vld [vmem:[#allocation79_spill] sm:$0xff]  ;;  %v15471_v52 = vld [vmem:[#allocation80_spill] sm:$0xff]  ;;  %v13955_v26 = vpop.f32.mrb[48].mxu1 }
 0x54a   : > { %v15468_v53 = vrot.slane %v13591_v50, 1  ;;  %v5772_v10 = vadd.f32 %v5349_v58, %v5334_v27  ;;  %v8723_v28 = vpop.eup %8722  ;;  %v15469_v43 = vrot.slane %v13602_v23, 1  ;;  %v5659_v62 = vadd.f32 %v5658_v51, %v5657_v56  ;;  %v13959_v56 = vpop.f32.mrb[64].mxu0 }
 0x54b   : > { %v6152_v19 = vadd.f32 %v15467_v30, %v5632_v22  ;;  %v5351_v60 = vmul.f32 %v13833_v35, %v15470_v39  ;;  %v5363_v44 = vmul.f32 %v13845_v5, %v15471_v52  ;;  %v8725_v8 = vpop.eup %8724  ;;  %8728 = vrcp.f32 %v6439_v13  ;;  %v13961_v51 = vpop.f32.mrb[49].mxu1  ;;  %v15476_v39 = vld [vmem:[#allocation84_spill] sm:$0xff] }
 0x54c   : > { %v6154_v55 = vadd.f32 %v15468_v53, %v5650_v2  ;;  %v6153_v59 = vadd.f32 %v15469_v43, %v5641_v20  ;;  %v6438_v40 = vadd.f32 1.0, %v8723_v28  ;;  %v6440_v50 = vadd.f32 1.0, %v8725_v8  ;;  %v13963_v30 = vpop.f32.mrb[65].mxu0  ;;  %v15474_v43 = vld [vmem:[#allocation82_spill] sm:$0xff]  ;;  %v13973_v52 = vpop.f32.mrb[50].mxu1 }
 0x54d   : > { %v7052_v31 = vmul.f32 -33.33332, %v6152_v19  ;;  %v15472_v2 = vrot.slane %v13606_v24, 1  ;;  %v5790_v20 = vadd.f32 %v5351_v60, %v5336_v9  ;;  %v5764_v13 = vadd.f32 %v5763_v47, %v5363_v44  ;;  %v13975_v47 = vpop.f32.mrb[66].mxu0 }
 0x54e   : > { %v7054_v22 = vmul.f32 -33.33332, %v6154_v55  ;;  %v7053_v27 = vmul.f32 -33.33332, %v6153_v59  ;;  %8730 = vrcp.f32 %v6438_v40  ;;  %v15473_v55 = vld [vmem:[#allocation81_spill] sm:$0xff]  ;;  %v5364_v9 = vmul.f32 %v13849_v25, %v15474_v43  ;;  %v15475_v59 = vld [vmem:[#allocation83_spill] sm:$0xff] }
 0x54f   : > { %v6155_v58 = vadd.f32 %v15472_v2, %v5659_v62  ;;  %v6351_v35 = vmul.f32 1.442695, %v7052_v31  ;;  %8732 = vrcp.f32 %v6440_v50  ;;  %v5365_v28 = vmul.f32 %v13847_v4, %v15473_v55  ;;  %v13978_v40 = vld [vmem:[%s13483_s18 + $0x10] sm:$0xff]  ;;  %v13981_v31 = vpop.f32.mrb[51].mxu1  ;;  %v13983_v25 = vpop.f32.mrb[67].mxu0  ;;  %v15479_v55 = vld [vmem:[#allocation87_spill] sm:$0xff] }
 0x550   : > { %v6355_v5 = vmul.f32 1.442695, %v7054_v22  ;;  %v6353_v19 = vmul.f32 1.442695, %v7053_v27  ;;  %v5366_v62 = vmul.f32 %v13851_v46, %v15475_v59  ;;  %v5378_v60 = vmul.f32 %v13862_v1, %v15476_v39  ;;  %v15477_v27 = vld [vmem:[#allocation85_spill] sm:$0xff] }
 0x551   : > { %v7055_v53 = vmul.f32 -33.33332, %v6155_v58  ;;  %8734 = vpow2.f32 %v6351_v35  ;;  %v5782_v8 = vadd.f32 %v5781_v37, %v5365_v28  ;;  %v5773_v46 = vadd.f32 %v5772_v10, %v5364_v9  ;;  %v15478_v58 = vld [vmem:[#allocation86_spill] sm:$0xff]  ;;  %v15481_v59 = vld [vmem:[#allocation89_spill] sm:$0xff] }
 0x552   : > { %8736 = vpow2.f32 %v6355_v5  ;;  %v5791_v22 = vadd.f32 %v5790_v20, %v5366_v62  ;;  %v5765_v50 = vadd.f32 %v5764_v13, %v5378_v60  ;;  %v13985_v1 = vpop.eup %8726  ;;  %v5380_v2 = vmul.f32 %v13864_v11, %v15477_v27  ;;  %v13996_v20 = vpop.f32.mrb[52].mxu1  ;;  %v15480_v11 = vld [vmem:[#allocation88_spill] sm:$0xff]  ;;  %v15482_v27 = vld [vmem:[#allocation90_spill] sm:$0xff] }
 0x553   : > { %v6357_v44 = vmul.f32 1.442695, %v7055_v53  ;;  %8738 = vpow2.f32 %v6353_v19  ;;  %v5379_v35 = vmul.f32 %v13870_v17, %v15478_v58  ;;  %v5381_v19 = vmul.f32 %v13872_v6, %v15479_v55  ;;  %v13998_v13 = vpop.f32.mrb[68].mxu0  ;;  %v14004_v62 = vpop.f32.mrb[53].mxu1  ;;  %v15483_v55 = vld [vmem:[#allocation91_spill] sm:$0xff] }
 0x554   : > { %v5766_v5 = vrot.slane %v5765_v50, 4  ;;  %v5783_v28 = vadd.f32 %v5782_v8, %v5380_v2  ;;  %v5393_v9 = vmul.f32 %v13884_v36, %v15480_v11  ;;  %v5395_v17 = vmul.f32 %v13886_v3, %v15481_v59  ;;  %v14006_v39 = vpop.f32.mrb[69].mxu0  ;;  %v15484_v36 = vld [vmem:[#allocation92_spill] sm:$0xff]  ;;  %v15485_v3 = vld [vmem:[#allocation93_spill] sm:$0xff] }
 0x555   : > { %8740 = vpow2.f32 %v6357_v44  ;;  %v5774_v43 = vadd.f32 %v5773_v46, %v5379_v35  ;;  %v14008_v60 = vpop.eup %8728  ;;  %v5792_v44 = vadd.f32 %v5791_v22, %v5381_v19  ;;  %v5394_v58 = vmul.f32 %v13890_v41, %v15482_v27  ;;  %v14024_v19 = vpop.f32.mrb[54].mxu1 }
 0x556   : > { %v5767_v6 = vadd.f32 %v5766_v5, %v5765_v50  ;;  %v5396_v8 = vmul.f32 %v13892_v54, %v15483_v55  ;;  %v5784_v46 = vrot.slane %v5783_v28, 4  ;;  %v5408_v35 = vmul.f32 %v13894_v32, %v15484_v36  ;;  %v15486_v50 = vld [vmem:[#allocation94_spill] sm:$0xff]  ;;  %v15487_v5 = vld [vmem:[#allocation95_spill] sm:$0xff]  ;;  %v14026_v54 = vpop.f32.mrb[70].mxu0 }
 0x557   : > { %v5775_v2 = vrot.slane %v5774_v43, 4  ;;  %v5410_v11 = vmul.f32 %v13896_v61, %v15485_v3  ;;  %v5793_v53 = vrot.slane %v5792_v44, 4  ;;  %v5409_v22 = vmul.f32 %v13900_v33, %v15486_v50  ;;  %v14032_v3 = vpop.f32.mrb[55].mxu1  ;;  %v14034_v37 = vpop.f32.mrb[71].mxu0 }
 0x558   : > { %v14018_v59 = vpop.eup %8730  ;;  %v5768_v10 = vrot.slane %v5767_v6, 2  ;;  %v5411_v41 = vmul.f32 %v13902_v38, %v15487_v5  ;;  %v5785_v61 = vadd.f32 %v5784_v46, %v5783_v28  ;;  %v5902_v36 = vadd.f32 %v5408_v35, %v5393_v9  ;;  %v14040_v35 = vpop.f32.mrb[72].mxu0 }
 0x559   : > { %v14028_v27 = vpop.eup %8732  ;;  %v5776_v55 = vadd.f32 %v5775_v2, %v5774_v43  ;;  %v5794_v5 = vadd.f32 %v5793_v53, %v5792_v44  ;;  %v5920_v4 = vadd.f32 %v5410_v11, %v5395_v17  ;;  %v5911_v18 = vadd.f32 %v5409_v22, %v5394_v58  ;;  %v14038_v2 = vpop.f32.mrb[56].mxu1  ;;  %v15488_v22 = vld [vmem:[#allocation96_spill] sm:$0xff] }
 0x55a   : > { %v5769_v50 = vadd.f32 %v5768_v10, %v5767_v6  ;;  %v5786_v7 = vrot.slane %v5785_v61, 2  ;;  %v5929_v46 = vadd.f32 %v5411_v41, %v5396_v8  ;;  %v14042_v17 = vpop.f32.mrb[57].mxu1  ;;  %v14044_v6 = vpop.f32.mrb[73].mxu0  ;;  %v5423_v41 = vmul.f32 %v13917_v14, %v15488_v22  ;;  %v15492_v22 = vld [vmem:[#allocation99_spill] sm:$0xff] }
 0x55b   : > { %v8735_v33 = vpop.eup %8734  ;;  %v5777_v63 = vrot.slane %v5776_v55, 2  ;;  %v5795_v9 = vrot.slane %v5794_v5, 2 }
 0x55c   : > { %v8737_v15 = vpop.eup %8736  ;;  %v6452_v42 = vadd.f32 1.0, %v8735_v33  ;;  %v5770_v43 = vrot.slane %v5769_v50, 1  ;;  %v5787_v10 = vadd.f32 %v5786_v7, %v5785_v61  ;;  %v14054_v33 = vpop.f32.mrb[74].mxu0 }
 0x55d   : > { %v8739_v32 = vpop.eup %8738  ;;  %v6454_v28 = vadd.f32 1.0, %v8737_v15  ;;  %v5778_v53 = vadd.f32 %v5777_v63, %v5776_v55  ;;  %v5796_v15 = vadd.f32 %v5795_v9, %v5794_v5  ;;  %v15490_v63 = vld [vmem:[#allocation97_spill] sm:$0xff]  ;;  %v14052_v55 = vpop.f32.mrb[58].mxu1  ;;  %v15491_v5 = vld [vmem:[#allocation98_spill] sm:$0xff] }
 0x55e   : > { %8742 = vrcp.f32 %v6452_v42  ;;  %v6453_v38 = vadd.f32 1.0, %v8739_v32  ;;  %v5771_v58 = vadd.f32 %v5770_v43, %v5769_v50  ;;  %v5788_v11 = vrot.slane %v5787_v10, 1  ;;  %v14058_v43 = vpop.f32.mrb[59].mxu1  ;;  %v14060_v14 = vpop.f32.mrb[75].mxu0 }
 0x55f   : > { %v8741_v21 = vpop.eup %8740  ;;  %8744 = vrcp.f32 %v6454_v28  ;;  %v5779_v8 = vrot.slane %v5778_v53, 1  ;;  %v15489_v42 = vrot.slane %v13978_v40, 2  ;;  %v5797_v7 = vrot.slane %v5796_v15, 1 }
 0x560   : > { %v6455_v44 = vadd.f32 1.0, %v8741_v21  ;;  %8746 = vrcp.f32 %v6453_v38  ;;  %v5425_v61 = vmul.f32 %v13919_v0, %v15490_v63  ;;  %v5789_v21 = vadd.f32 %v5788_v11, %v5787_v10  ;;  %v15495_v11 = vld [vmem:[#allocation100_spill] sm:$0xff] }
 0x561   : > { %v6167_v32 = vadd.f32 %v15489_v42, %v5771_v58  ;;  %v5780_v50 = vadd.f32 %v5779_v8, %v5778_v53  ;;  %v5903_v38 = vadd.f32 %v5902_v36, %v5423_v41  ;;  %v5424_v28 = vmul.f32 %v13924_v34, %v15491_v5 }
 0x562   : > { %8748 = vrcp.f32 %v6455_v44  ;;  %v5798_v44 = vadd.f32 %v5797_v7, %v5796_v15  ;;  %v5921_v58 = vadd.f32 %v5920_v4, %v5425_v61  ;;  %v5426_v0 = vmul.f32 %v13926_v12, %v15492_v22  ;;  %v14073_v15 = vpop.f32.mrb[60].mxu1  ;;  %v14075_v12 = vpop.f32.mrb[76].mxu0  ;;  %v15497_v22 = vld [vmem:[#allocation101_spill] sm:$0xff] }
 0x563   : > { %v7067_v9 = vmul.f32 -33.33332, %v6167_v32  ;;  %v15493_v42 = vrot.slane %v13867_v57, 2  ;;  %v15494_v10 = vrot.slane %v13602_v23, 2  ;;  %v5912_v36 = vadd.f32 %v5911_v18, %v5424_v28 }
 0x564   : > { %v5438_v34 = vmul.f32 %v13937_v16, %v15495_v11  ;;  %v15496_v41 = vrot.slane %v13606_v24, 2  ;;  %v5930_v32 = vadd.f32 %v5929_v46, %v5426_v0  ;;  %v5440_v18 = vmul.f32 %v13939_v48, %v15497_v22  ;;  %v14081_v16 = vpop.f32.mrb[77].mxu0 }
 0x565   : > { %v6169_v63 = vadd.f32 %v15493_v42, %v5789_v21  ;;  %v6168_v53 = vadd.f32 %v15494_v10, %v5780_v50  ;;  %v6381_v8 = vmul.f32 1.442695, %v7067_v9  ;;  %v14079_v50 = vpop.f32.mrb[61].mxu1  ;;  %v15498_v9 = vld [vmem:[#allocation102_spill] sm:$0xff] }
 0x566   : > { %v6170_v5 = vadd.f32 %v15496_v41, %v5798_v44  ;;  %v5904_v21 = vadd.f32 %v5903_v38, %v5438_v34  ;;  %v5439_v44 = vmul.f32 %v13941_v45, %v15498_v9  ;;  %v15499_v41 = vld [vmem:[#allocation103_spill] sm:$0xff] }
 0x567   : > { %v7069_v7 = vmul.f32 -33.33332, %v6169_v63  ;;  %v7068_v61 = vmul.f32 -33.33332, %v6168_v53  ;;  %8750 = vpow2.f32 %v6381_v8  ;;  %v5922_v53 = vadd.f32 %v5921_v58, %v5440_v18  ;;  %v14089_v8 = vpop.f32.mrb[62].mxu1 }
 0x568   : > { %v7070_v28 = vmul.f32 -33.33332, %v6170_v5  ;;  %v8743_v0 = vpop.eup %8742  ;;  %v5905_v63 = vrot.slane %v5904_v21, 4  ;;  %v5913_v34 = vadd.f32 %v5912_v36, %v5439_v44  ;;  %v5441_v22 = vmul.f32 %v13943_v29, %v15499_v41  ;;  %v14091_v5 = vpop.f32.mrb[78].mxu0 }
 0x569   : > { %v6385_v42 = vmul.f32 1.442695, %v7069_v7  ;;  %v6383_v10 = vmul.f32 1.442695, %v7068_v61  ;;  %v8745_v38 = vpop.eup %8744  ;;  %15500 = vst [vmem:[#allocation210_spill] sm:$0xff] %v14091_v5  ;;  %v5923_v9 = vrot.slane %v5922_v53, 4 }
 0x56a   : > { %v6387_v11 = vmul.f32 1.442695, %v7070_v28  ;;  %v8747_v46 = vpop.eup %8746  ;;  %v5906_v45 = vadd.f32 %v5905_v63, %v5904_v21  ;;  %v14094_v61 = vpop.f32.mrb[63].mxu1  ;;  %v5914_v28 = vrot.slane %v5913_v34, 4  ;;  %v5931_v44 = vadd.f32 %v5930_v32, %v5441_v22  ;;  %v15503_v21 = vld [vmem:[#allocation104_spill] sm:$0xff]  ;;  %v15506_v22 = vld [vmem:[#allocation106_spill] sm:$0xff] }
 0x56b   : > { %8752 = vpow2.f32 %v6385_v42  ;;  %15501 = vst [vmem:[#allocation211_spill] sm:$0xff] %v14094_v61  ;;  %v14096_v58 = vpop.f32.mrb[79].mxu0  ;;  %v6682_v18 = vcombine.low %v8743_v0, %v8747_v46  ;;  %v5924_v48 = vadd.f32 %v5923_v9, %v5922_v53  ;;  %v5217_v63 = vmul.f32 %v13955_v26, %v15503_v21  ;;  %v14100_v7 = vpop.f32.mrb[64].mxu1  ;;  %v15504_v0 = vld [vmem:[#allocation105_spill] sm:$0xff] }
 0x56c   : > { %15502 = vst [vmem:[#allocation212_spill] sm:$0xff] %v14096_v58  ;;  %v8749_v36 = vpop.eup %8748  ;;  %8754 = vpow2.f32 %v6383_v10  ;;  %v5907_v41 = vrot.slane %v5906_v45, 2  ;;  %v5915_v49 = vadd.f32 %v5914_v28, %v5913_v34  ;;  %v5932_v42 = vrot.slane %v5931_v44, 4  ;;  %v14102_v61 = vpop.f32.mrb[80].mxu0 }
 0x56d   : > { %v6683_v29 = vcombine.low %v8745_v38, %v8749_v36  ;;  %8756 = vpow2.f32 %v6387_v11  ;;  %v6725_v4 = vrot.slane %v6682_v18, 7  ;;  %v5925_v46 = vrot.slane %v5924_v48, 2  ;;  %v14106_v10 = vpop.f32.mrb[65].mxu1  ;;  %v14108_v38 = vpop.f32.mrb[81].mxu0 }
 0x56e   : > { %v5908_v5 = vadd.f32 %v5907_v41, %v5906_v45  ;;  %v5219_v32 = vmul.f32 %v13959_v56, %v15504_v0  ;;  %v15505_v53 = vcombine.low %v13985_v1, %v14018_v59  ;;  %v5916_v26 = vrot.slane %v5915_v49, 2 }
 0x56f   : > { %v6734_v58 = vrot.slane %v6683_v29, 7  ;;  %v5933_v34 = vadd.f32 %v5932_v42, %v5931_v44  ;;  %v5218_v9 = vmul.f32 %v13961_v51, %v15506_v22  ;;  %v15507_v56 = vcombine.low %v14008_v60, %v14028_v27  ;;  %v15508_v44 = vld [vmem:[#allocation107_spill] sm:$0xff]  ;;  %v14128_v51 = vpop.f32.mrb[66].mxu1  ;;  %v15510_v27 = vld [vmem:[#allocation108_spill] sm:$0xff] }
 0x570   : > { %v6726_v11 = vsel %vm6702_vm5, %v6725_v4, %v15505_v53  ;;  %v5909_v18 = vrot.slane %v5908_v5, 1  ;;  %v5926_v28 = vadd.f32 %v5925_v46, %v5924_v48  ;;  %v5917_v59 = vadd.f32 %v5916_v26, %v5915_v49  ;;  %v14134_v48 = vpop.f32.mrb[67].mxu1 }
 0x571   : > { %v14117_v45 = vsel %vm6704_vm6, %v6725_v4, %v6726_v11  ;;  %v6735_v36 = vsel %vm6702_vm5, %v6734_v58, %v15507_v56  ;;  %v8751_v29 = vpop.eup %8750  ;;  %v5934_v41 = vrot.slane %v5933_v34, 2  ;;  %v5220_v42 = vmul.f32 %v13963_v30, %v15508_v44  ;;  %v14130_v4 = vpop.f32.mrb[82].mxu0  ;;  %15511 = vst [vmem:[#allocation220_spill] sm:$0xff] %v14134_v48  ;;  %v15513_v11 = vld [vmem:[#allocation109_spill] sm:$0xff]  ;;  %v15514_v30 = vld [vmem:[#allocation110_spill] sm:$0xff] }
 0x572   : > { %v14124_v1 = vsel %vm6704_vm6, %v6734_v58, %v6735_v36  ;;  %15509 = vst [vmem:[#allocation219_spill] sm:$0xff] %v14130_v4  ;;  %v6467_v21 = vadd.f32 1.0, %v8751_v29  ;;  %v5910_v0 = vadd.f32 %v5909_v18, %v5908_v5  ;;  %v5927_v60 = vrot.slane %v5926_v28, 1  ;;  %v14136_v46 = vpop.f32.mrb[83].mxu0  ;;  %v14144_v4 = vpop.f32.mrb[68].mxu1 }
 0x573   : > { %v5232_v53 = vmul.f32 %v13973_v52, %v15510_v27  ;;  %15512 = vst [vmem:[#allocation221_spill] sm:$0xff] %v14136_v46  ;;  %v5918_v58 = vrot.slane %v5917_v59, 1  ;;  %v5935_v49 = vadd.f32 %v5934_v41, %v5933_v34  ;;  %v5234_v26 = vmul.f32 %v13975_v47, %v15513_v11  ;;  %v14146_v34 = vpop.f32.mrb[84].mxu0 }
 0x574   : > { %v5233_v22 = vmul.f32 %v13981_v31, %v15514_v30  ;;  %8758 = vrcp.f32 %v6467_v21  ;;  %v15515_v5 = vrot.slane %v13978_v40, 3  ;;  %v5928_v18 = vadd.f32 %v5927_v60, %v5926_v28  ;;  %v14150_v40 = vpop.f32.mrb[69].mxu1  ;;  %v14152_v28 = vpop.f32.mrb[85].mxu0 }
 0x575   : > { %v8753_v56 = vpop.eup %8752  ;;  %v5521_v29 = vadd.f32 %v5232_v53, %v5217_v63  ;;  %v5919_v27 = vadd.f32 %v5918_v58, %v5917_v59  ;;  %v5936_v48 = vrot.slane %v5935_v49, 1  ;;  %v5539_v46 = vadd.f32 %v5234_v26, %v5219_v32  ;;  %v15518_v58 = vld [vmem:[#allocation111_spill] sm:$0xff] }
 0x576   : > { %v6182_v36 = vadd.f32 %v15515_v5, %v5910_v0  ;;  %v8755_v52 = vpop.eup %8754  ;;  %v6469_v44 = vadd.f32 1.0, %v8753_v56  ;;  %v15516_v31 = vrot.slane %v13867_v57, 3  ;;  %v5530_v30 = vadd.f32 %v5233_v22, %v5218_v9  ;;  %v15520_v56 = vld [vmem:[#allocation112_spill] sm:$0xff] }
 0x577   : > { %v8757_v47 = vpop.eup %8756  ;;  %v6468_v41 = vadd.f32 1.0, %v8755_v52  ;;  %v15517_v59 = vrot.slane %v13602_v23, 3  ;;  %v5937_v0 = vadd.f32 %v5936_v48, %v5935_v49  ;;  %v5235_v26 = vmul.f32 %v13983_v25, %v15518_v58  ;;  %v14164_v23 = vpop.f32.mrb[86].mxu0 }
 0x578   : > { %v7082_v11 = vmul.f32 -33.33332, %v6182_v36  ;;  %v6184_v21 = vadd.f32 %v15516_v31, %v5928_v18  ;;  %8760 = vrcp.f32 %v6469_v44  ;;  %v6470_v63 = vadd.f32 1.0, %v8757_v47  ;;  %v14162_v36 = vpop.f32.mrb[70].mxu1  ;;  %v15521_v18 = vld [vmem:[#allocation113_spill] sm:$0xff]  ;;  %v14170_v44 = vpop.f32.mrb[87].mxu0 }
 0x579   : > { %v6183_v32 = vadd.f32 %v15517_v59, %v5919_v27  ;;  %8762 = vrcp.f32 %v6468_v41  ;;  %v15519_v9 = vrot.slane %v13606_v24, 3  ;;  %v5247_v5 = vmul.f32 %v13996_v20, %v15520_v56  ;;  %v14168_v52 = vpop.f32.mrb[71].mxu1  ;;  %v15522_v41 = vld [vmem:[#allocation114_spill] sm:$0xff]  ;;  %v14182_v59 = vld [vmem:[%s13483_s18 + $0x28] sm:$0xff] }
 0x57a   : > { %v6411_v60 = vmul.f32 1.442695, %v7082_v11  ;;  %v7084_v53 = vmul.f32 -33.33332, %v6184_v21  ;;  %8764 = vrcp.f32 %v6470_v63  ;;  %v5548_v49 = vadd.f32 %v5235_v26, %v5220_v42  ;;  %v14175_v11 = vld [vmem:[%s13483_s18 + $0x20] sm:$0xff]  ;;  %v15523_v21 = vld [vmem:[#allocation115_spill] sm:$0xff] }
 0x57b   : > { %v7083_v57 = vmul.f32 -33.33332, %v6183_v32  ;;  %v6185_v22 = vadd.f32 %v15519_v9, %v5937_v0  ;;  %v5249_v25 = vmul.f32 %v13998_v13, %v15521_v18  ;;  %v5522_v47 = vadd.f32 %v5521_v29, %v5247_v5  ;;  %v15524_v63 = vld [vmem:[#allocation116_spill] sm:$0xff] }
 0x57c   : > { %8766 = vpow2.f32 %v6411_v60  ;;  %v6415_v48 = vmul.f32 1.442695, %v7084_v53  ;;  %v5248_v20 = vmul.f32 %v14004_v62, %v15522_v41  ;;  %v5250_v42 = vmul.f32 %v14006_v39, %v15523_v21  ;;  %v15525_v60 = vld [vmem:[#allocation216_spill] sm:$0xff]  ;;  %v14186_v53 = vpop.f32.mrb[72].mxu1  ;;  %v14188_v62 = vpop.f32.mrb[88].mxu0  ;;  %v15531_v21 = vld [vmem:[#allocation122_spill] sm:$0xff] }
 0x57d   : > { %v6413_v24 = vmul.f32 1.442695, %v7083_v57  ;;  %v7085_v27 = vmul.f32 -33.33332, %v6185_v22  ;;  %v5540_v31 = vadd.f32 %v5539_v46, %v5249_v25  ;;  %v5262_v13 = vmul.f32 %v14024_v19, %v15524_v63  ;;  %v15526_v57 = vld [vmem:[#allocation117_spill] sm:$0xff]  ;;  %v14196_v9 = vpop.f32.mrb[73].mxu1 }
 0x57e   : > { %8768 = vpow2.f32 %v6415_v48  ;;  %v5531_v0 = vadd.f32 %v5530_v30, %v5248_v20  ;;  %v5264_v29 = vmul.f32 %v14026_v54, %v15525_v60  ;;  %v8759_v58 = vpop.eup %8758  ;;  %v5549_v46 = vadd.f32 %v5548_v49, %v5250_v42  ;;  %v14198_v30 = vpop.f32.mrb[89].mxu0  ;;  %v15527_v22 = vld [vmem:[#allocation118_spill] sm:$0xff]  ;;  %v15529_v25 = vld [vmem:[#allocation120_spill] sm:$0xff]  ;;  %v15530_v20 = vld [vmem:[#allocation121_spill] sm:$0xff] }
 0x57f   : > { %8770 = vpow2.f32 %v6413_v24  ;;  %v6417_v32 = vmul.f32 1.442695, %v7085_v27  ;;  %v5523_v26 = vadd.f32 %v5522_v47, %v5262_v13  ;;  %v5263_v39 = vmul.f32 %v14032_v3, %v15526_v57  ;;  %v15528_v3 = vld [vmem:[#allocation119_spill] sm:$0xff]  ;;  %v14216_v42 = vpop.f32.mrb[74].mxu1  ;;  %v14218_v63 = vpop.f32.mrb[90].mxu0  ;;  %v15535_v60 = vld [vmem:[#allocation124_spill] sm:$0xff] }
 0x580   : > { %v14194_v19 = vcombine.high %v14175_v11, %v14175_v11  ;;  %v5541_v54 = vadd.f32 %v5540_v31, %v5264_v29  ;;  %v5265_v56 = vmul.f32 %v14034_v37, %v15527_v22  ;;  %v14204_v5 = vcombine.high %v14182_v59, %v14182_v59  ;;  %15532 = vst [vmem:[#allocation222_spill] sm:$0xff] %v14216_v42 }
 0x581   : > { %8772 = vpow2.f32 %v6417_v32  ;;  %v5524_v48 = vrot.slane %v5523_v26, 4  ;;  %v5532_v49 = vadd.f32 %v5531_v0, %v5263_v39  ;;  %v5277_v18 = vmul.f32 %v14038_v2, %v15528_v3  ;;  %15533 = vst [vmem:[#allocation223_spill] sm:$0xff] %v14218_v63  ;;  %v15534_v0 = vld [vmem:[#allocation123_spill] sm:$0xff] }
 0x582   : > { %v5279_v24 = vmul.f32 %v14040_v35, %v15529_v25  ;;  %v8761_v27 = vpop.eup %8760  ;;  %v5542_v47 = vrot.slane %v5541_v54, 4  ;;  %v5550_v41 = vadd.f32 %v5549_v46, %v5265_v56  ;;  %v5278_v31 = vmul.f32 %v14042_v17, %v15530_v20  ;;  %v14224_v46 = vpop.f32.mrb[75].mxu1  ;;  %v15538_v56 = vld [vmem:[#allocation125_spill] sm:$0xff] }
 0x583   : > { %v14214_v37 = vmul.f32 %v14044_v6, %v15531_v21  ;;  %v8763_v13 = vpop.eup %8762  ;;  %v5525_v32 = vadd.f32 %v5524_v48, %v5523_v26  ;;  %v5533_v2 = vrot.slane %v5532_v49, 4  ;;  %v5292_v35 = vmul.f32 %v14052_v55, %v15534_v0  ;;  %15536 = vst [vmem:[#allocation2_spill] sm:$0xff] %v14224_v46  ;;  %v14226_v17 = vpop.f32.mrb[91].mxu0 }
 0x584   : > { %v5294_v29 = vmul.f32 %v14054_v33, %v15535_v60  ;;  %15537 = vst [vmem:[#allocation3_spill] sm:$0xff] %v14226_v17  ;;  %v8765_v57 = vpop.eup %8764  ;;  %v6689_v6 = vcombine.low %v8759_v58, %v8763_v13  ;;  %v5543_v39 = vadd.f32 %v5542_v47, %v5541_v54  ;;  %v5551_v22 = vrot.slane %v5550_v41, 4  ;;  %v14230_v60 = vpop.f32.mrb[76].mxu1 }
 0x585   : > { %v5293_v3 = vmul.f32 %v14058_v43, %v15538_v56  ;;  %v6690_v26 = vcombine.low %v8761_v27, %v8765_v57  ;;  %v5526_v48 = vrot.slane %v5525_v32, 2  ;;  %v5534_v20 = vadd.f32 %v5533_v2, %v5532_v49  ;;  %v14232_v46 = vpop.f32.mrb[92].mxu0  ;;  %v14234_v42 = vpop.f32.mrb[77].mxu1 }
 0x586   : > { %v8767_v25 = vpop.eup %8766  ;;  %v5660_v21 = vadd.f32 %v5292_v35, %v5277_v18  ;;  %v6728_v55 = vrot.slane %v6689_v6, 6  ;;  %v5544_v63 = vrot.slane %v5543_v39, 2  ;;  %v5552_v33 = vadd.f32 %v5551_v22, %v5550_v41  ;;  %v14236_v43 = vpop.f32.mrb[93].mxu0 }
 0x587   : > { %v6482_v0 = vadd.f32 1.0, %v8767_v25  ;;  %v6737_v58 = vrot.slane %v6690_v26, 6  ;;  %v5527_v54 = vadd.f32 %v5526_v48, %v5525_v32  ;;  %v5535_v47 = vrot.slane %v5534_v20, 2  ;;  %v14248_v56 = vpop.f32.mrb[78].mxu1 }
 0x588   : > { %v8769_v17 = vpop.eup %8768  ;;  %v5678_v13 = vadd.f32 %v5294_v29, %v5279_v24  ;;  %v6729_v49 = vsel %vm6707_vm7, %v6728_v55, %v14117_v45  ;;  %v5545_v41 = vadd.f32 %v5544_v63, %v5543_v39  ;;  %v14250_v45 = vpop.f32.mrb[94].mxu0  ;;  %v5553_v39 = vrot.slane %v5552_v33, 2 }
 0x589   : > { %v8771_v27 = vpop.eup %8770  ;;  %8774 = vrcp.f32 %v6482_v0  ;;  %v6484_v18 = vadd.f32 1.0, %v8769_v17  ;;  %v14241_v2 = vsel %vm6709_vm8, %v6728_v55, %v6729_v49  ;;  %v6738_v35 = vsel %vm6707_vm7, %v6737_v58, %v14124_v1  ;;  %v14252_v25 = vpop.f32.mrb[79].mxu1  ;;  %v15539_v0 = vld [vmem:[#allocation126_spill] sm:$0xff] }
 0x58a   : > { %v6483_v32 = vadd.f32 1.0, %v8771_v27  ;;  %v5528_v57 = vrot.slane %v5527_v54, 1  ;;  %v14246_v29 = vsel %vm6709_vm8, %v6737_v58, %v6738_v35  ;;  %v5546_v6 = vrot.slane %v5545_v41, 1  ;;  %v14254_v1 = vpop.f32.mrb[95].mxu0  ;;  %v15540_v27 = vld [vmem:[#allocation127_spill] sm:$0xff] }
 0x58b   : > { %v8773_v24 = vpop.eup %8772  ;;  %8776 = vrcp.f32 %v6484_v18  ;;  %v5536_v22 = vadd.f32 %v5535_v47, %v5534_v20  ;;  %v5669_v55 = vadd.f32 %v5293_v3, %v5278_v31  ;;  %v5295_v58 = vmul.f32 %v14060_v14, %v15539_v0  ;;  %v14267_v31 = vpop.f32.mrb[96].mxu0 }
 0x58c   : > { %8778 = vrcp.f32 %v6483_v32  ;;  %v6485_v63 = vadd.f32 1.0, %v8773_v24  ;;  %v5529_v17 = vadd.f32 %v5528_v57, %v5527_v54  ;;  %v5547_v26 = vadd.f32 %v5546_v6, %v5545_v41  ;;  %v15541_v32 = vld [vmem:[#allocation217_spill] sm:$0xff]  ;;  %v14265_v57 = vpop.f32.mrb[80].mxu1  ;;  %v15542_v6 = vld [vmem:[#allocation128_spill] sm:$0xff] }
 0x58d   : > { %v5537_v48 = vrot.slane %v5536_v22, 1  ;;  %v5554_v47 = vadd.f32 %v5553_v39, %v5552_v33  ;;  %v5307_v49 = vmul.f32 %v14073_v15, %v15540_v27  ;;  %v5687_v35 = vadd.f32 %v5295_v58, %v14214_v37  ;;  %v14273_v15 = vpop.f32.mrb[97].mxu0  ;;  %v15543_v39 = vld [vmem:[#allocation129_spill] sm:$0xff]  ;;  %v15544_v58 = vld [vmem:[#allocation130_spill] sm:$0xff] }
 0x58e   : > { %8780 = vrcp.f32 %v6485_v63  ;;  %v6141_v20 = vadd.f32 %v14175_v11, %v5529_v17  ;;  %v6143_v54 = vadd.f32 %v14182_v59, %v5547_v26  ;;  %v5309_v41 = vmul.f32 %v14075_v12, %v15541_v32  ;;  %v14271_v63 = vpop.f32.mrb[81].mxu1 }
 0x58f   : > { %v5538_v18 = vadd.f32 %v5537_v48, %v5536_v22  ;;  %v5555_v3 = vrot.slane %v5554_v47, 1  ;;  %v5661_v24 = vadd.f32 %v5660_v21, %v5307_v49  ;;  %v5308_v33 = vmul.f32 %v14079_v50, %v15542_v6  ;;  %v14281_v6 = vpop.f32.mrb[82].mxu1 }
 0x590   : > { %v7041_v14 = vmul.f32 -33.33332, %v6141_v20  ;;  %v7043_v22 = vmul.f32 -33.33332, %v6143_v54  ;;  %v5679_v17 = vadd.f32 %v5678_v13, %v5309_v41  ;;  %v5310_v12 = vmul.f32 %v14081_v16, %v15543_v39  ;;  %v15546_v16 = vld [vmem:[#allocation210_spill] sm:$0xff] }
 0x591   : > { %v6142_v37 = vadd.f32 %v14194_v19, %v5538_v18  ;;  %v5556_v48 = vadd.f32 %v5555_v3, %v5554_v47  ;;  %v5670_v0 = vadd.f32 %v5669_v55, %v5308_v33  ;;  %v5322_v21 = vmul.f32 %v14089_v8, %v15544_v58  ;;  %v15545_v18 = vld [vmem:[#allocation218_spill] sm:$0xff]  ;;  %v14286_v47 = vpop.f32.mrb[98].mxu0  ;;  %v14288_v55 = vpop.f32.mrb[83].mxu1  ;;  %v15548_v3 = vld [vmem:[#allocation131_spill] sm:$0xff] }
 0x592   : > { %v6329_v26 = vmul.f32 1.442695, %v7041_v14  ;;  %v6333_v27 = vmul.f32 1.442695, %v7043_v22  ;;  %v5688_v49 = vadd.f32 %v5687_v35, %v5310_v12  ;;  %v5324_v41 = vmul.f32 %v15546_v16, %v15545_v18  ;;  %15547 = vst [vmem:[#allocation4_spill] sm:$0xff] %v14288_v55  ;;  %v15549_v33 = vld [vmem:[#allocation211_spill] sm:$0xff] }
 0x593   : > { %v8775_v20 = vpop.eup %8774  ;;  %v7042_v50 = vmul.f32 -33.33332, %v6142_v37  ;;  %v6144_v13 = vadd.f32 %v14204_v5, %v5556_v48  ;;  %v5662_v54 = vadd.f32 %v5661_v24, %v5322_v21  ;;  %v5323_v22 = vmul.f32 %v15549_v33, %v15548_v3  ;;  %v14293_v37 = vpop.f32.mrb[99].mxu0  ;;  %v15551_v18 = vld [vmem:[#allocation132_spill] sm:$0xff] }
 0x594   : > { %8782 = vpow2.f32 %v6329_v26  ;;  %15550 = vst [vmem:[#allocation5_spill] sm:$0xff] %v14293_v37  ;;  %v5680_v26 = vadd.f32 %v5679_v17, %v5324_v41  ;;  %v15552_v16 = vld [vmem:[#allocation212_spill] sm:$0xff]  ;;  %v14300_v35 = vpop.f32.mrb[100].mxu0 }
 0x595   : > { %v8777_v8 = vpop.eup %8776  ;;  %8784 = vpow2.f32 %v6333_v27  ;;  %v6331_v14 = vmul.f32 1.442695, %v7042_v50  ;;  %v7044_v12 = vmul.f32 -33.33332, %v6144_v13  ;;  %v5663_v24 = vrot.slane %v5662_v54, 4  ;;  %v14298_v50 = vpop.f32.mrb[84].mxu1 }
 0x596   : > { %v8779_v39 = vpop.eup %8778  ;;  %v5671_v21 = vadd.f32 %v5670_v0, %v5323_v22  ;;  %v5325_v27 = vmul.f32 %v15552_v16, %v15551_v18  ;;  %v5681_v37 = vrot.slane %v5680_v26, 4  ;;  %v14303_v55 = vpop.f32.mrb[85].mxu1  ;;  %v15554_v18 = vld [vmem:[#allocation133_spill] sm:$0xff] }
 0x597   : > { %v6696_v58 = vcombine.low %v8775_v20, %v8779_v39  ;;  %8786 = vpow2.f32 %v6331_v14  ;;  %v6335_v3 = vmul.f32 1.442695, %v7044_v12  ;;  %v5664_v33 = vadd.f32 %v5663_v24, %v5662_v54  ;;  %v14305_v17 = vpop.f32.mrb[101].mxu0  ;;  %v14311_v48 = vpop.f32.mrb[86].mxu1 }
 0x598   : > { %v8781_v32 = vpop.eup %8780  ;;  %15553 = vst [vmem:[#allocation6_spill] sm:$0xff] %v14305_v17  ;;  %v5672_v0 = vrot.slane %v5671_v21, 4  ;;  %v5689_v14 = vadd.f32 %v5688_v49, %v5325_v27  ;;  %v5682_v39 = vadd.f32 %v5681_v37, %v5680_v26  ;;  %v5337_v16 = vmul.f32 %v14100_v7, %v15554_v18  ;;  %v14313_v17 = vpop.f32.mrb[102].mxu0  ;;  %v15560_v18 = vld [vmem:[#allocation136_spill] sm:$0xff] }
 0x599   : > { %v6731_v20 = vrot.slane %v6696_v58, 5  ;;  %v6697_v41 = vcombine.low %v8777_v8, %v8781_v32  ;;  %8788 = vpow2.f32 %v6335_v3  ;;  %v5665_v22 = vrot.slane %v5664_v33, 2  ;;  %15555 = vst [vmem:[#allocation7_spill] sm:$0xff] %v14313_v17  ;;  %v15556_v58 = vld [vmem:[#allocation134_spill] sm:$0xff]  ;;  %v14318_v26 = vpop.f32.mrb[87].mxu1  ;;  %v14320_v7 = vpop.f32.mrb[103].mxu0 }
 0x59a   : > { %v5673_v24 = vadd.f32 %v5672_v0, %v5671_v21  ;;  %v5690_v13 = vrot.slane %v5689_v14, 4  ;;  %v5683_v8 = vrot.slane %v5682_v39, 2  ;;  %v5339_v37 = vmul.f32 %v14102_v61, %v15556_v58  ;;  %15557 = vst [vmem:[#allocation8_spill] sm:$0xff] %v14318_v26  ;;  %15558 = vst [vmem:[#allocation9_spill] sm:$0xff] %v14320_v7  ;;  %v15559_v3 = vld [vmem:[#allocation135_spill] sm:$0xff]  ;;  %v15561_v26 = vld [vmem:[#allocation137_spill] sm:$0xff] }
 0x59b   : > { %v6732_v54 = vsel %vm6712_vm9, %v6731_v20, %v14241_v2  ;;  %v6740_v12 = vrot.slane %v6697_v41, 5  ;;  %v5666_v49 = vadd.f32 %v5665_v22, %v5664_v33  ;;  %v5338_v41 = vmul.f32 %v14106_v10, %v15559_v3 }
 0x59c   : > { %v6733_v32 = vsel %vm6714_vm10, %v6731_v20, %v6732_v54  ;;  %v5674_v21 = vrot.slane %v5673_v24, 2  ;;  %v5691_v27 = vadd.f32 %v5690_v13, %v5689_v14  ;;  %v5684_v22 = vadd.f32 %v5683_v8, %v5682_v39  ;;  %v14333_v13 = vpop.f32.mrb[88].mxu1  ;;  %v14335_v14 = vpop.f32.mrb[104].mxu0  ;;  %v15565_v39 = vld [vmem:[#allocation219_spill] sm:$0xff] }
 0x59d   : > { %6789 = vst [vmem:[%s13909_s21 + $0x10] sm:$0xff] %v6733_v32  ;;  %v6741_v2 = vsel %vm6712_vm9, %v6740_v12, %v14246_v29  ;;  %v5667_v0 = vrot.slane %v5666_v49, 1  ;;  %v5340_v61 = vmul.f32 %v14108_v38, %v15560_v18  ;;  %v5352_v29 = vmul.f32 %v14128_v51, %v15561_v26  ;;  %15562 = vst [vmem:[#allocation10_spill] sm:$0xff] %v14333_v13  ;;  %v14339_v17 = vpop.f32.mrb[89].mxu1  ;;  %v14341_v38 = vpop.f32.mrb[105].mxu0  ;;  %v15569_v13 = vld [vmem:[#allocation139_spill] sm:$0xff] }
 0x59e   : > { %v8783_v20 = vpop.eup %8782  ;;  %v6742_v33 = vsel %vm6714_vm10, %v6740_v12, %v6741_v2  ;;  %v5675_v32 = vadd.f32 %v5674_v21, %v5673_v24  ;;  %v5692_v7 = vrot.slane %v5691_v27, 2  ;;  %15563 = vst [vmem:[#allocation11_spill] sm:$0xff] %v14335_v14  ;;  %v5685_v12 = vrot.slane %v5684_v22, 1  ;;  %v15564_v2 = vld [vmem:[#allocation138_spill] sm:$0xff]  ;;  %15566 = vst [vmem:[#allocation12_spill] sm:$0xff] %v14339_v17  ;;  %v14347_v17 = vpop.f32.mrb[90].mxu1 }
 0x59f   : > { %v8785_v54 = vpop.eup %8784  ;;  %6790 = vst [vmem:[%s13909_s21 + $0x18] sm:$0xff] %v6742_v33  ;;  %v6441_v58 = vadd.f32 1.0, %v8783_v20  ;;  %v5668_v3 = vadd.f32 %v5667_v0, %v5666_v49  ;;  %v5354_v8 = vmul.f32 %v15565_v39, %v15564_v2  ;;  %15567 = vst [vmem:[#allocation13_spill] sm:$0xff] %v14341_v38  ;;  %v5799_v33 = vadd.f32 %v5352_v29, %v5337_v16  ;;  %v15570_v2 = vld [vmem:[#allocation220_spill] sm:$0xff]  ;;  %v14349_v38 = vpop.f32.mrb[106].mxu0 }
 0x5a0   : > { %v6443_v10 = vadd.f32 1.0, %v8785_v54  ;;  %v5676_v24 = vrot.slane %v5675_v32, 1  ;;  %v5693_v21 = vadd.f32 %v5692_v7, %v5691_v27  ;;  %v15568_v26 = vrot.slane %v14175_v11, 1  ;;  %v15572_v29 = vld [vmem:[#allocation140_spill] sm:$0xff] }
 0x5a1   : > { %v8787_v20 = vpop.eup %8786  ;;  %8790 = vrcp.f32 %v6441_v58  ;;  %v5686_v54 = vadd.f32 %v5685_v12, %v5684_v22  ;;  %v5817_v14 = vadd.f32 %v5354_v8, %v5339_v37  ;;  %v5353_v39 = vmul.f32 %v15570_v2, %v15569_v13  ;;  %v14355_v22 = vpop.f32.mrb[91].mxu1 }
 0x5a2   : > { %8792 = vrcp.f32 %v6443_v10  ;;  %v6442_v51 = vadd.f32 1.0, %v8787_v20  ;;  %v6156_v18 = vadd.f32 %v15568_v26, %v5668_v3  ;;  %v5677_v49 = vadd.f32 %v5676_v24, %v5675_v32  ;;  %v15573_v10 = vld [vmem:[#allocation221_spill] sm:$0xff]  ;;  %15574 = vst [vmem:[#allocation14_spill] sm:$0xff] %v14355_v22  ;;  %v14357_v32 = vpop.f32.mrb[107].mxu0 }
 0x5a3   : > { %v5694_v0 = vrot.slane %v5693_v21, 1  ;;  %v8789_v58 = vpop.eup %8788  ;;  %v15571_v16 = vrot.slane %v14182_v59, 1  ;;  %v5355_v3 = vmul.f32 %v15573_v10, %v15572_v29  ;;  %15575 = vst [vmem:[#allocation15_spill] sm:$0xff] %v14357_v32  ;;  %v15576_v13 = vrot.slane %v14194_v19, 1  ;;  %v15579_v10 = vld [vmem:[#allocation142_spill] sm:$0xff]  ;;  %v14369_v22 = vpop.f32.mrb[108].mxu0 }
 0x5a4   : > { %8794 = vrcp.f32 %v6442_v51  ;;  %v7056_v7 = vmul.f32 -33.33332, %v6156_v18  ;;  %v6444_v37 = vadd.f32 1.0, %v8789_v58  ;;  %v5808_v20 = vadd.f32 %v5353_v39, %v5338_v41  ;;  %v15577_v18 = vld [vmem:[#allocation141_spill] sm:$0xff]  ;;  %v14367_v58 = vpop.f32.mrb[92].mxu1 }
 0x5a5   : > { %v6158_v27 = vadd.f32 %v15571_v16, %v5686_v54  ;;  %v6157_v12 = vadd.f32 %v15576_v13, %v5677_v49  ;;  %v5695_v8 = vadd.f32 %v5694_v0, %v5693_v21  ;;  %v5826_v51 = vadd.f32 %v5355_v3, %v5340_v61  ;;  %v15580_v49 = vld [vmem:[#allocation143_spill] sm:$0xff]  ;;  %v14373_v0 = vpop.f32.mrb[93].mxu1  ;;  %v15581_v3 = vld [vmem:[#allocation144_spill] sm:$0xff]  ;;  %v15582_v13 = vld [vmem:[#allocation145_spill] sm:$0xff] }
 0x5a6   : > { %v6359_v24 = vmul.f32 1.442695, %v7056_v7  ;;  %v5367_v2 = vmul.f32 %v14144_v4, %v15577_v18  ;;  %8796 = vrcp.f32 %v6444_v37  ;;  %v15578_v16 = vrot.slane %v14204_v5, 1  ;;  %v14375_v4 = vpop.f32.mrb[109].mxu0 }
 0x5a7   : > { %v7058_v26 = vmul.f32 -33.33332, %v6158_v27  ;;  %v7057_v54 = vmul.f32 -33.33332, %v6157_v12  ;;  %v5369_v32 = vmul.f32 %v14146_v34, %v15579_v10  ;;  %v5368_v61 = vmul.f32 %v14150_v40, %v15580_v49  ;;  %v15589_v10 = vld [vmem:[#allocation148_spill] sm:$0xff] }
 0x5a8   : > { %v6159_v29 = vadd.f32 %v15578_v16, %v5695_v8  ;;  %8798 = vpow2.f32 %v6359_v24  ;;  %v5800_v21 = vadd.f32 %v5799_v33, %v5367_v2  ;;  %v5370_v34 = vmul.f32 %v14152_v28, %v15581_v3  ;;  %v14386_v2 = vpop.f32.mrb[94].mxu1  ;;  %v15591_v3 = vld [vmem:[#allocation150_spill] sm:$0xff] }
 0x5a9   : > { %v6363_v41 = vmul.f32 1.442695, %v7058_v26  ;;  %v6361_v39 = vmul.f32 1.442695, %v7057_v54  ;;  %v5818_v27 = vadd.f32 %v5817_v14, %v5369_v32  ;;  %v5809_v37 = vadd.f32 %v5808_v20, %v5368_v61  ;;  %v15583_v26 = vld [vmem:[#allocation146_spill] sm:$0xff]  ;;  %15584 = vst [vmem:[#allocation16_spill] sm:$0xff] %v14386_v2 }
 0x5aa   : > { %v7059_v7 = vmul.f32 -33.33332, %v6159_v29  ;;  %v5382_v12 = vmul.f32 %v14162_v36, %v15582_v13  ;;  %v5827_v24 = vadd.f32 %v5826_v51, %v5370_v34  ;;  %v5384_v18 = vmul.f32 %v14164_v23, %v15583_v26  ;;  %v14388_v14 = vpop.f32.mrb[110].mxu0  ;;  %v15586_v36 = vld [vmem:[#allocation147_spill] sm:$0xff]  ;;  %v14396_v29 = vpop.f32.mrb[95].mxu1 }
 0x5ab   : > { %8800 = vpow2.f32 %v6363_v41  ;;  %v14382_v8 = vpop.eup %8790  ;;  %15585 = vst [vmem:[#allocation17_spill] sm:$0xff] %v14388_v14  ;;  %v5383_v54 = vmul.f32 %v14168_v52, %v15586_v36  ;;  %15587 = vst [vmem:[#allocation18_spill] sm:$0xff] %v14396_v29  ;;  %v14398_v51 = vpop.f32.mrb[111].mxu0  ;;  %v5385_v41 = vmul.f32 %v14170_v44, %v15589_v10  ;;  %v5399_v34 = vmul.f32 %v14188_v62, %v15591_v3  ;;  %v15594_v10 = vld [vmem:[#allocation152_spill] sm:$0xff]  ;;  %v15603_v14 = vld [vmem:[#allocation3_spill] sm:$0xff] }
 0x5ac   : > { %8802 = vpow2.f32 %v6361_v39  ;;  %v6365_v40 = vmul.f32 1.442695, %v7059_v7  ;;  %v14390_v28 = vpop.eup %8792  ;;  %v5801_v32 = vadd.f32 %v5800_v21, %v5382_v12  ;;  %15588 = vst [vmem:[#allocation19_spill] sm:$0xff] %v14398_v51  ;;  %v5819_v23 = vadd.f32 %v5818_v27, %v5384_v18  ;;  %v15590_v7 = vld [vmem:[#allocation149_spill] sm:$0xff]  ;;  %v14413_v26 = vpop.f32.mrb[96].mxu1 }
 0x5ad   : > { %v5810_v39 = vadd.f32 %v5809_v37, %v5383_v54  ;;  %v5397_v52 = vmul.f32 %v14186_v53, %v15590_v7  ;;  %v5828_v27 = vadd.f32 %v5827_v24, %v5385_v41  ;;  %15593 = vst [vmem:[#allocation20_spill] sm:$0xff] %v14413_v26  ;;  %v5400_v37 = vmul.f32 %v14198_v30, %v15594_v10  ;;  %v15595_v54 = vld [vmem:[#allocation153_spill] sm:$0xff]  ;;  %v15596_v53 = vld [vmem:[#allocation222_spill] sm:$0xff]  ;;  %v14419_v49 = vpop.f32.mrb[97].mxu1  ;;  %v15599_v41 = vld [vmem:[#allocation223_spill] sm:$0xff] }
 0x5ae   : > { %8804 = vpow2.f32 %v6365_v40  ;;  %v14403_v61 = vpop.eup %8794  ;;  %v5802_v21 = vrot.slane %v5801_v32, 4  ;;  %v5820_v12 = vrot.slane %v5819_v23, 4  ;;  %v15592_v40 = vld [vmem:[#allocation151_spill] sm:$0xff]  ;;  %v5412_v7 = vmul.f32 %v15596_v53, %v15595_v54  ;;  %15597 = vst [vmem:[#allocation21_spill] sm:$0xff] %v14419_v49  ;;  %v15598_v24 = vld [vmem:[#allocation154_spill] sm:$0xff]  ;;  %v14429_v51 = vpop.f32.mrb[98].mxu1 }
 0x5af   : > { %v5398_v44 = vmul.f32 %v14196_v9, %v15592_v40  ;;  %v5811_v36 = vrot.slane %v5810_v39, 4  ;;  %v5829_v13 = vrot.slane %v5828_v27, 4  ;;  %v5414_v16 = vmul.f32 %v15599_v41, %v15598_v24  ;;  %v15600_v9 = vld [vmem:[#allocation155_spill] sm:$0xff]  ;;  %v15601_v40 = vld [vmem:[#allocation2_spill] sm:$0xff]  ;;  %v15602_v41 = vld [vmem:[#allocation156_spill] sm:$0xff] }
 0x5b0   : > { %v5803_v18 = vadd.f32 %v5802_v21, %v5801_v32  ;;  %v14421_v62 = vpop.eup %8796  ;;  %v5821_v3 = vadd.f32 %v5820_v12, %v5819_v23  ;;  %v5413_v20 = vmul.f32 %v15601_v40, %v15600_v9  ;;  %v5938_v33 = vadd.f32 %v5412_v7, %v5397_v52  ;;  %v14433_v40 = vpop.f32.mrb[99].mxu1 }
 0x5b1   : > { %v5812_v10 = vadd.f32 %v5811_v36, %v5810_v39  ;;  %v5830_v49 = vadd.f32 %v5829_v13, %v5828_v27  ;;  %v5956_v26 = vadd.f32 %v5414_v16, %v5399_v34  ;;  %v5415_v9 = vmul.f32 %v15603_v14, %v15602_v41 }
 0x5b2   : > { %v8799_v32 = vpop.eup %8798  ;;  %v5804_v30 = vrot.slane %v5803_v18, 2  ;;  %v5822_v53 = vrot.slane %v5821_v3, 2  ;;  %v5947_v24 = vadd.f32 %v5413_v20, %v5398_v44  ;;  %v14437_v44 = vpop.f32.mrb[100].mxu1 }
 0x5b3   : > { %v6456_v54 = vadd.f32 1.0, %v8799_v32  ;;  %v5813_v29 = vrot.slane %v5812_v10, 2  ;;  %v5831_v52 = vrot.slane %v5830_v49, 2  ;;  %v5965_v16 = vadd.f32 %v5415_v9, %v5400_v37  ;;  %v15604_v32 = vld [vmem:[#allocation157_spill] sm:$0xff] }
 0x5b4   : > { %v5805_v12 = vadd.f32 %v5804_v30, %v5803_v18  ;;  %v5823_v39 = vadd.f32 %v5822_v53, %v5821_v3  ;;  %v5427_v20 = vmul.f32 %v14230_v60, %v15604_v32  ;;  %v15607_v60 = vld [vmem:[#allocation159_spill] sm:$0xff]  ;;  %v15608_v9 = vrot.slane %v14182_v59, 2 }
 0x5b5   : > { %v8801_v23 = vpop.eup %8800  ;;  %8806 = vrcp.f32 %v6456_v54  ;;  %v5814_v13 = vadd.f32 %v5813_v29, %v5812_v10  ;;  %v5832_v18 = vadd.f32 %v5831_v52, %v5830_v49  ;;  %v15605_v29 = vld [vmem:[#allocation158_spill] sm:$0xff]  ;;  %v15606_v49 = vrot.slane %v14175_v11, 2 }
 0x5b6   : > { %v8803_v2 = vpop.eup %8802  ;;  %v6458_v21 = vadd.f32 1.0, %v8801_v23  ;;  %v5806_v7 = vrot.slane %v5805_v12, 1  ;;  %v5824_v27 = vrot.slane %v5823_v39, 1  ;;  %v14439_v23 = vpop.f32.mrb[101].mxu1  ;;  %v5939_v53 = vadd.f32 %v5938_v33, %v5427_v20  ;;  %v15611_v20 = vld [vmem:[#allocation161_spill] sm:$0xff] }
 0x5b7   : > { %v6457_v36 = vadd.f32 1.0, %v8803_v2  ;;  %v5815_v54 = vrot.slane %v5814_v13, 1  ;;  %v5833_v2 = vrot.slane %v5832_v18, 1  ;;  %v5429_v37 = vmul.f32 %v14232_v46, %v15605_v29  ;;  %v14451_v33 = vpop.f32.mrb[102].mxu1  ;;  %v15613_v29 = vld [vmem:[#allocation162_spill] sm:$0xff] }
 0x5b8   : > { %v8805_v34 = vpop.eup %8804  ;;  %8808 = vrcp.f32 %v6458_v21  ;;  %v5807_v30 = vadd.f32 %v5806_v7, %v5805_v12  ;;  %v5825_v3 = vadd.f32 %v5824_v27, %v5823_v39  ;;  %v5428_v41 = vmul.f32 %v14234_v42, %v15607_v60  ;;  %v15609_v7 = vld [vmem:[#allocation160_spill] sm:$0xff] }
 0x5b9   : > { %8810 = vrcp.f32 %v6457_v36  ;;  %v6459_v14 = vadd.f32 1.0, %v8805_v34  ;;  %v5816_v10 = vadd.f32 %v5815_v54, %v5814_v13  ;;  %v5834_v52 = vadd.f32 %v5833_v2, %v5832_v18 }
 0x5ba   : > { %v6171_v21 = vadd.f32 %v15606_v49, %v5807_v30  ;;  %v6173_v12 = vadd.f32 %v15608_v9, %v5825_v3  ;;  %v5957_v36 = vadd.f32 %v5956_v26, %v5429_v37  ;;  %v5430_v39 = vmul.f32 %v14236_v43, %v15609_v7 }
 0x5bb   : > { %8812 = vrcp.f32 %v6459_v14  ;;  %v15610_v46 = vrot.slane %v14194_v19, 2  ;;  %v5948_v32 = vadd.f32 %v5947_v24, %v5428_v41  ;;  %v5442_v13 = vmul.f32 %v14248_v56, %v15611_v20  ;;  %v14457_v14 = vpop.f32.mrb[103].mxu1  ;;  %v15615_v20 = vld [vmem:[#allocation164_spill] sm:$0xff] }
 0x5bc   : > { %v7071_v34 = vmul.f32 -33.33332, %v6171_v21  ;;  %v7073_v42 = vmul.f32 -33.33332, %v6173_v12  ;;  %v15612_v30 = vrot.slane %v14204_v5, 2  ;;  %v5966_v26 = vadd.f32 %v5965_v16, %v5430_v39  ;;  %v14467_v41 = vpop.f32.mrb[104].mxu1 }
 0x5bd   : > { %v6172_v27 = vadd.f32 %v15610_v46, %v5816_v10  ;;  %v6066_v54 = vrot.slane %v14175_v11, 3  ;;  %v5940_v2 = vadd.f32 %v5939_v53, %v5442_v13  ;;  %v5444_v37 = vmul.f32 %v14250_v45, %v15613_v29  ;;  %v15614_v10 = vld [vmem:[#allocation163_spill] sm:$0xff]  ;;  %v15616_v29 = vld [vmem:[#allocation165_spill] sm:$0xff] }
 0x5be   : > { %v6174_v18 = vadd.f32 %v15612_v30, %v5834_v52  ;;  %v6389_v43 = vmul.f32 1.442695, %v7071_v34  ;;  %v6393_v24 = vmul.f32 1.442695, %v7073_v42  ;;  %v6068_v56 = vrot.slane %v14182_v59, 3  ;;  %v14469_v52 = vpop.f32.mrb[105].mxu1 }
 0x5bf   : > { %v7072_v3 = vmul.f32 -33.33332, %v6172_v27  ;;  %v8807_v49 = vpop.eup %8806  ;;  %v5443_v60 = vmul.f32 %v14252_v25, %v15614_v10  ;;  %v5941_v9 = vrot.slane %v5940_v2, 4  ;;  %v5958_v12 = vadd.f32 %v5957_v36, %v5444_v37  ;;  %v14475_v30 = vpop.f32.mrb[106].mxu1  ;;  %v15626_v59 = vld [vmem:[#allocation172_spill] sm:$0xff] }
 0x5c0   : > { %v7074_v21 = vmul.f32 -33.33332, %v6174_v18  ;;  %8814 = vpow2.f32 %v6389_v43  ;;  %v6067_v39 = vrot.slane %v14194_v19, 3  ;;  %v5445_v25 = vmul.f32 %v14254_v1, %v15615_v20  ;;  %v15617_v1 = vld [vmem:[#allocation166_spill] sm:$0xff] }
 0x5c1   : > { %v6391_v16 = vmul.f32 1.442695, %v7072_v3  ;;  %8816 = vpow2.f32 %v6393_v24  ;;  %v5949_v45 = vadd.f32 %v5948_v32, %v5443_v60  ;;  %v5942_v46 = vadd.f32 %v5941_v9, %v5940_v2  ;;  %v14479_v24 = vpop.f32.mrb[107].mxu1 }
 0x5c2   : > { %v8809_v53 = vpop.eup %8808  ;;  %v6395_v7 = vmul.f32 1.442695, %v7074_v21  ;;  %v5959_v27 = vrot.slane %v5958_v12, 4  ;;  %v6069_v36 = vrot.slane %v14204_v5, 3  ;;  %v5967_v32 = vadd.f32 %v5966_v26, %v5445_v25  ;;  %v14539_v5 = vld [vmem:[%s13483_s18 + $0x30] sm:$0xff] }
 0x5c3   : > { %v8811_v34 = vpop.eup %8810  ;;  %8818 = vpow2.f32 %v6391_v16  ;;  %v5950_v42 = vrot.slane %v5949_v45, 4  ;;  %v5943_v43 = vrot.slane %v5942_v46, 2  ;;  %v5221_v37 = vmul.f32 %v14265_v57, %v15616_v29 }
 0x5c4   : > { %v6684_v13 = vcombine.low %v8807_v49, %v8811_v34  ;;  %8820 = vpow2.f32 %v6395_v7  ;;  %v5960_v3 = vadd.f32 %v5959_v27, %v5958_v12  ;;  %v5238_v49 = vmul.f32 %v14267_v31, %v15617_v1  ;;  %v15618_v7 = vld [vmem:[#allocation167_spill] sm:$0xff] }
 0x5c5   : > { %v8813_v18 = vpop.eup %8812  ;;  %v5951_v10 = vadd.f32 %v5950_v42, %v5949_v45  ;;  %v5944_v60 = vadd.f32 %v5943_v43, %v5942_v46  ;;  %v5968_v9 = vrot.slane %v5967_v32, 4  ;;  %v5222_v34 = vmul.f32 %v14271_v63, %v15618_v7  ;;  %v15621_v42 = vld [vmem:[#allocation168_spill] sm:$0xff]  ;;  %v15622_v43 = vld [vmem:[#allocation169_spill] sm:$0xff] }
 0x5c6   : > { %v6743_v2 = vrot.slane %v6684_v13, 7  ;;  %v6685_v21 = vcombine.low %v8809_v53, %v8813_v18  ;;  %v5961_v16 = vrot.slane %v5960_v3, 2  ;;  %v15619_v26 = vcombine.low %v14382_v8, %v14403_v61  ;;  %v14490_v53 = vpop.f32.mrb[108].mxu1 }
 0x5c7   : > { %v5952_v27 = vrot.slane %v5951_v10, 2  ;;  %v5576_v20 = vsel %vm2212_vm0, %v5238_v49, 0.0  ;;  %v5945_v31 = vrot.slane %v5944_v60, 1  ;;  %v5969_v25 = vadd.f32 %v5968_v9, %v5967_v32  ;;  %v14495_v13 = vpop.f32.mrb[109].mxu1 }
 0x5c8   : > { %v6744_v12 = vsel %vm6702_vm5, %v6743_v2, %v15619_v26  ;;  %v6752_v57 = vrot.slane %v6685_v21, 7  ;;  %v5962_v46 = vadd.f32 %v5961_v16, %v5960_v3  ;;  %v15620_v63 = vcombine.low %v14390_v28, %v14421_v62 }
 0x5c9   : > { %v14493_v45 = vsel %vm6704_vm6, %v6743_v2, %v6744_v12  ;;  %v5953_v61 = vadd.f32 %v5952_v27, %v5951_v10  ;;  %v5223_v18 = vmul.f32 %v14273_v15, %v15621_v42  ;;  %v5236_v29 = vmul.f32 %v14281_v6, %v15622_v43  ;;  %v14509_v10 = vpop.f32.mrb[110].mxu1 }
 0x5ca   : > { %v6753_v8 = vsel %vm6702_vm5, %v6752_v57, %v15620_v63  ;;  %v8815_v21 = vpop.eup %8814  ;;  %v5946_v3 = vadd.f32 %v5945_v31, %v5944_v60  ;;  %v5963_v32 = vrot.slane %v5962_v46, 1  ;;  %v5970_v1 = vrot.slane %v5969_v25, 2 }
 0x5cb   : > { %v14506_v2 = vsel %vm6704_vm6, %v6752_v57, %v6753_v8  ;;  %v8817_v49 = vpop.eup %8816  ;;  %v6471_v16 = vadd.f32 1.0, %v8815_v21  ;;  %v5954_v9 = vrot.slane %v5953_v61, 1  ;;  %v5575_v28 = vsel %vm2212_vm0, %v5223_v18, 0.0  ;;  %v14513_v57 = vpop.f32.mrb[111].mxu1 }
 0x5cc   : > { %v5557_v62 = vadd.f32 %v5236_v29, %v5221_v37  ;;  %v6473_v15 = vadd.f32 1.0, %v8817_v49  ;;  %v6186_v6 = vadd.f32 %v6066_v54, %v5946_v3  ;;  %v5964_v26 = vadd.f32 %v5963_v32, %v5962_v46  ;;  %v15623_v46 = vld [vmem:[#allocation170_spill] sm:$0xff]  ;;  %v15624_v29 = vld [vmem:[#allocation171_spill] sm:$0xff]  ;;  %v15628_v49 = vld [vmem:[#allocation173_spill] sm:$0xff] }
 0x5cd   : > { %v8819_v7 = vpop.eup %8818  ;;  %v5971_v12 = vadd.f32 %v5970_v1, %v5969_v25  ;;  %8822 = vrcp.f32 %v6471_v16  ;;  %v5955_v31 = vadd.f32 %v5954_v9, %v5953_v61  ;;  %v5577_v63 = vadd.f32 %v5576_v20, %v5575_v28  ;;  %v15625_v61 = vld [vmem:[#allocation4_spill] sm:$0xff] }
 0x5ce   : > { %v8821_v60 = vpop.eup %8820  ;;  %v6472_v27 = vadd.f32 1.0, %v8819_v7  ;;  %8824 = vrcp.f32 %v6473_v15  ;;  %v7086_v42 = vmul.f32 -33.33332, %v6186_v6  ;;  %v6188_v37 = vadd.f32 %v6068_v56, %v5964_v26  ;;  %v15627_v56 = vld [vmem:[#allocation5_spill] sm:$0xff]  ;;  %v15629_v7 = vld [vmem:[#allocation174_spill] sm:$0xff] }
 0x5cf   : > { %v6474_v8 = vadd.f32 1.0, %v8821_v60  ;;  %v6187_v11 = vadd.f32 %v6067_v39, %v5955_v31  ;;  %v5972_v54 = vrot.slane %v5971_v12, 1  ;;  %v5268_v25 = vmul.f32 %v14286_v47, %v15623_v46  ;;  %v15632_v31 = vld [vmem:[#allocation6_spill] sm:$0xff]  ;;  %v15636_v46 = vld [vmem:[#allocation224_spill] sm:$0xff] }
 0x5d0   : > { %8826 = vrcp.f32 %v6472_v27  ;;  %v6419_v18 = vmul.f32 1.442695, %v7086_v42  ;;  %v7088_v43 = vmul.f32 -33.33332, %v6188_v37  ;;  %v5237_v20 = vmul.f32 %v15625_v61, %v15624_v29  ;;  %v15633_v37 = vld [vmem:[#allocation177_spill] sm:$0xff]  ;;  %v15638_v29 = vld [vmem:[#allocation179_spill] sm:$0xff] }
 0x5d1   : > { %8828 = vrcp.f32 %v6474_v8  ;;  %v7087_v21 = vmul.f32 -33.33332, %v6187_v11  ;;  %v5973_v3 = vadd.f32 %v5972_v54, %v5971_v12  ;;  %v5580_v32 = vsel %vm2212_vm0, %v5268_v25, 0.0  ;;  %v15630_v12 = vld [vmem:[#allocation175_spill] sm:$0xff]  ;;  %v15634_v11 = vld [vmem:[#allocation178_spill] sm:$0xff]  ;;  %v15639_v61 = vld [vmem:[#allocation8_spill] sm:$0xff] }
 0x5d2   : > { %v5253_v1 = vmul.f32 %v15627_v56, %v15626_v59  ;;  %8830 = vpow2.f32 %v6419_v18  ;;  %v6423_v19 = vmul.f32 1.442695, %v7088_v43  ;;  %v5566_v39 = vadd.f32 %v5237_v20, %v5222_v34 }
 0x5d3   : > { %v5251_v47 = vmul.f32 %v14298_v50, %v15628_v49  ;;  %v6421_v16 = vmul.f32 1.442695, %v7087_v21  ;;  %v6189_v9 = vadd.f32 %v6069_v36, %v5973_v3  ;;  %v5298_v15 = vmul.f32 %v14300_v35, %v15629_v7  ;;  %v15631_v50 = vld [vmem:[#allocation176_spill] sm:$0xff]  ;;  %v15641_v49 = vld [vmem:[#allocation9_spill] sm:$0xff] }
 0x5d4   : > { %v5578_v28 = vsel %vm2212_vm0, %v5253_v1, 0.0  ;;  %8832 = vpow2.f32 %v6423_v19  ;;  %v5252_v60 = vmul.f32 %v14303_v55, %v15630_v12  ;;  %v5283_v8 = vmul.f32 %v15632_v31, %v15631_v50  ;;  %v15637_v55 = vld [vmem:[#allocation213_spill] sm:$0xff]  ;;  %v15645_v50 = vld [vmem:[#allocation11_spill] sm:$0xff] }
 0x5d5   : > { %v5579_v6 = vadd.f32 %v5578_v28, %v5577_v63  ;;  %v5558_v26 = vadd.f32 %v5557_v62, %v5251_v47  ;;  %8834 = vpow2.f32 %v6421_v16  ;;  %v7089_v34 = vmul.f32 -33.33332, %v6189_v9  ;;  %v15635_v63 = vld [vmem:[#allocation7_spill] sm:$0xff] }
 0x5d6   : > { %v5715_v27 = vsel %vm2212_vm0, %v5298_v15, 0.0  ;;  %v5567_v42 = vadd.f32 %v5566_v39, %v5252_v60  ;;  %v5266_v35 = vmul.f32 %v14311_v48, %v15633_v37  ;;  %v5328_v62 = vmul.f32 %v15635_v63, %v15634_v11  ;;  %v15640_v39 = vld [vmem:[#allocation180_spill] sm:$0xff]  ;;  %v15642_v15 = vld [vmem:[#allocation181_spill] sm:$0xff] }
 0x5d7   : > { %v5581_v36 = vadd.f32 %v5580_v32, %v5579_v6  ;;  %v8823_v54 = vpop.eup %8822  ;;  %v14547_v25 = vadd.f32 %v15637_v55, %v15636_v46  ;;  %v6425_v18 = vmul.f32 1.442695, %v7089_v34  ;;  %v5714_v43 = vsel %vm2212_vm0, %v5283_v8, 0.0  ;;  %v15643_v6 = vld [vmem:[#allocation10_spill] sm:$0xff] }
 0x5d8   : > { %v5267_v20 = vmul.f32 %v15639_v61, %v15638_v29  ;;  %v8825_v21 = vpop.eup %8824  ;;  %v5716_v32 = vadd.f32 %v5715_v27, %v5714_v43  ;;  %v5559_v59 = vadd.f32 %v5558_v26, %v5266_v35  ;;  %v14554_v48 = vcombine.high %v14539_v5, %v14539_v5  ;;  %v15644_v27 = vld [vmem:[#allocation182_spill] sm:$0xff] }
 0x5d9   : > { %v5582_v3 = vrot.slane %v5581_v36, 4  ;;  %8836 = vpow2.f32 %v6425_v18  ;;  %v5719_v1 = vsel %vm2212_vm0, %v5328_v62, 0.0  ;;  %v5313_v47 = vmul.f32 %v15641_v49, %v15640_v39  ;;  %v15646_v49 = vld [vmem:[#allocation183_spill] sm:$0xff] }
 0x5da   : > { %v8827_v56 = vpop.eup %8826  ;;  %v5568_v19 = vadd.f32 %v5567_v42, %v5267_v20  ;;  %v5560_v7 = vrot.slane %v5559_v59, 4  ;;  %v5281_v12 = vmul.f32 %v15643_v6, %v15642_v15  ;;  %v5358_v31 = vmul.f32 %v15645_v50, %v15644_v27  ;;  %v15651_v50 = vld [vmem:[#allocation186_spill] sm:$0xff] }
 0x5db   : > { %v8829_v16 = vpop.eup %8828  ;;  %v6691_v9 = vcombine.low %v8823_v54, %v8827_v56  ;;  %v5583_v28 = vadd.f32 %v5582_v3, %v5581_v36  ;;  %v5717_v34 = vsel %vm2212_vm0, %v5313_v47, 0.0  ;;  %v15647_v47 = vld [vmem:[#allocation12_spill] sm:$0xff] }
 0x5dc   : > { %v6692_v26 = vcombine.low %v8825_v21, %v8829_v16  ;;  %v5569_v60 = vrot.slane %v5568_v19, 4  ;;  %v8831_v8 = vpop.eup %8830  ;;  %v5561_v35 = vadd.f32 %v5560_v7, %v5559_v59  ;;  %v5718_v11 = vadd.f32 %v5717_v34, %v5716_v32  ;;  %v15649_v7 = vld [vmem:[#allocation13_spill] sm:$0xff] }
 0x5dd   : > { %v6746_v37 = vrot.slane %v6691_v9, 6  ;;  %v5584_v42 = vrot.slane %v5583_v28, 2  ;;  %v6486_v62 = vadd.f32 1.0, %v8831_v8  ;;  %v5854_v36 = vsel %vm2212_vm0, %v5358_v31, 0.0  ;;  %v15650_v34 = vld [vmem:[#allocation185_spill] sm:$0xff] }
 0x5de   : > { %v6755_v63 = vrot.slane %v6692_v26, 6  ;;  %v5570_v54 = vadd.f32 %v5569_v60, %v5568_v19  ;;  %v8833_v46 = vpop.eup %8832  ;;  %v5562_v43 = vrot.slane %v5561_v35, 2  ;;  %v5720_v29 = vadd.f32 %v5719_v1, %v5718_v11 }
 0x5df   : > { %v6747_v55 = vsel %vm6707_vm7, %v6746_v37, %v14493_v45  ;;  %v5585_v18 = vadd.f32 %v5584_v42, %v5583_v28  ;;  %v8835_v61 = vpop.eup %8834  ;;  %8838 = vrcp.f32 %v6486_v62  ;;  %v6488_v3 = vadd.f32 1.0, %v8833_v46  ;;  %v14576_v45 = vld [vmem:[%s13483_s18 + $0x38] sm:$0xf] }
 0x5e0   : > { %v14568_v20 = vsel %vm6709_vm8, %v6746_v37, %v6747_v55  ;;  %v6756_v21 = vsel %vm6707_vm7, %v6755_v63, %v14506_v2  ;;  %v6487_v59 = vadd.f32 1.0, %v8835_v61  ;;  %v5563_v19 = vadd.f32 %v5562_v43, %v5561_v35  ;;  %v15648_v2 = vld [vmem:[#allocation184_spill] sm:$0xff] }
 0x5e1   : > { %v14573_v32 = vsel %vm6709_vm8, %v6755_v63, %v6756_v21  ;;  %v5586_v56 = vrot.slane %v5585_v18, 1  ;;  %8840 = vrcp.f32 %v6488_v3  ;;  %v5571_v39 = vrot.slane %v5570_v54, 2  ;;  %v15654_v21 = vld [vmem:[#allocation188_spill] sm:$0xff]  ;;  %v15655_v3 = vld [vmem:[#allocation15_spill] sm:$0xff] }
 0x5e2   : > { %v5721_v1 = vrot.slane %v5720_v29, 4  ;;  %v5282_v16 = vmul.f32 %v15647_v47, %v15646_v49  ;;  %8842 = vrcp.f32 %v6487_v59  ;;  %v5564_v28 = vrot.slane %v5563_v19, 1 }
 0x5e3   : > { %v5587_v9 = vadd.f32 %v5586_v56, %v5585_v18  ;;  %v5343_v15 = vmul.f32 %v15649_v7, %v15648_v2  ;;  %v8837_v6 = vpop.eup %8836  ;;  %v5572_v26 = vadd.f32 %v5571_v39, %v5570_v54  ;;  %v5296_v27 = vmul.f32 %v14347_v17, %v15650_v34  ;;  %v15657_v34 = vld [vmem:[#allocation190_spill] sm:$0xff] }
 0x5e4   : > { %v5722_v60 = vadd.f32 %v5721_v1, %v5720_v29  ;;  %v5388_v31 = vmul.f32 %v14349_v38, %v15651_v50  ;;  %v6489_v8 = vadd.f32 1.0, %v8837_v6  ;;  %v5565_v42 = vadd.f32 %v5564_v28, %v5563_v19  ;;  %v15652_v29 = vld [vmem:[#allocation187_spill] sm:$0xff]  ;;  %v15653_v38 = vld [vmem:[#allocation14_spill] sm:$0xff] }
 0x5e5   : > { %v6147_v37 = vadd.f32 %v14576_v45, %v5587_v9  ;;  %v5853_v35 = vsel %vm2212_vm0, %v5343_v15, 0.0  ;;  %v5573_v11 = vrot.slane %v5572_v26, 1  ;;  %v5696_v46 = vadd.f32 %v5296_v27, %v5281_v12  ;;  %v15658_v50 = vld [vmem:[#allocation191_spill] sm:$0xff] }
 0x5e6   : > { %v5723_v63 = vrot.slane %v5722_v60, 2  ;;  %v5855_v62 = vadd.f32 %v5854_v36, %v5853_v35  ;;  %8844 = vrcp.f32 %v6489_v8  ;;  %v6145_v54 = vadd.f32 %v14539_v5, %v5565_v42  ;;  %v15656_v36 = vld [vmem:[#allocation189_spill] sm:$0xff]  ;;  %v15661_v35 = vld [vmem:[#allocation16_spill] sm:$0xff] }
 0x5e7   : > { %v7047_v55 = vmul.f32 -33.33332, %v6147_v37  ;;  %v6042_v18 = vrot.slane %v14576_v45, 1  ;;  %v5574_v17 = vadd.f32 %v5573_v11, %v5572_v26  ;;  %v5297_v61 = vmul.f32 %v15653_v38, %v15652_v29  ;;  %v15659_v37 = vld [vmem:[#allocation192_spill] sm:$0xff]  ;;  %v15660_v42 = vld [vmem:[#allocation193_spill] sm:$0xff] }
 0x5e8   : > { %v5724_v43 = vadd.f32 %v5723_v63, %v5722_v60  ;;  %v5373_v59 = vmul.f32 %v15655_v3, %v15654_v21  ;;  %v7045_v19 = vmul.f32 -33.33332, %v6145_v54  ;;  %v5858_v39 = vsel %vm2212_vm0, %v5388_v31, 0.0  ;;  %v15663_v21 = vld [vmem:[#allocation214_spill] sm:$0xff] }
 0x5e9   : > { %v6341_v56 = vmul.f32 1.442695, %v7047_v55  ;;  %v5311_v12 = vmul.f32 %v14367_v58, %v15656_v36  ;;  %v8839_v1 = vpop.eup %8838  ;;  %v6146_v49 = vadd.f32 %v14554_v48, %v5574_v17  ;;  %v5705_v9 = vadd.f32 %v5297_v61, %v5282_v16 }
 0x5ea   : > { %v5725_v47 = vrot.slane %v5724_v43, 1  ;;  %v5856_v28 = vsel %vm2212_vm0, %v5373_v59, 0.0  ;;  %v6337_v2 = vmul.f32 1.442695, %v7045_v19  ;;  %v5418_v27 = vmul.f32 %v14369_v22, %v15657_v34  ;;  %v15665_v19 = vld [vmem:[#allocation17_spill] sm:$0xff] }
 0x5eb   : > { %8846 = vpow2.f32 %v6341_v56  ;;  %v5857_v7 = vadd.f32 %v5856_v28, %v5855_v62  ;;  %v5697_v15 = vadd.f32 %v5696_v46, %v5311_v12  ;;  %v8841_v6 = vpop.eup %8840  ;;  %v7046_v26 = vmul.f32 -33.33332, %v6146_v49  ;;  %v15666_v49 = vld [vmem:[#allocation195_spill] sm:$0xff] }
 0x5ec   : > { %v5726_v60 = vadd.f32 %v5725_v47, %v5724_v43  ;;  %v5312_v58 = vmul.f32 %v14373_v0, %v15658_v50  ;;  %v8843_v31 = vpop.eup %8842  ;;  %8848 = vpow2.f32 %v6337_v2  ;;  %v5403_v16 = vmul.f32 %v14375_v4, %v15659_v37  ;;  %v15662_v4 = vld [vmem:[#allocation225_spill] sm:$0xff]  ;;  %v15667_v47 = vld [vmem:[#allocation18_spill] sm:$0xff]  ;;  %v15668_v28 = vld [vmem:[#allocation215_spill] sm:$0xff] }
 0x5ed   : > { %v5859_v8 = vadd.f32 %v5858_v39, %v5857_v7  ;;  %v5326_v11 = vmul.f32 %v15661_v35, %v15660_v42  ;;  %v6698_v63 = vcombine.low %v8839_v1, %v8843_v31  ;;  %v6339_v62 = vmul.f32 1.442695, %v7046_v26  ;;  %v15669_v31 = vld [vmem:[#allocation196_spill] sm:$0xff] }
 0x5ee   : > { %v6162_v46 = vadd.f32 %v6042_v18, %v5726_v60  ;;  %v5993_v55 = vsel %vm2212_vm0, %v5418_v27, 0.0  ;;  %v5706_v17 = vadd.f32 %v5705_v9, %v5312_v58  ;;  %v5992_v22 = vsel %vm2212_vm0, %v5403_v16, 0.0  ;;  %v15664_v18 = vld [vmem:[#allocation194_spill] sm:$0xff] }
 0x5ef   : > { %v5860_v54 = vrot.slane %v5859_v8, 4  ;;  %v5698_v43 = vadd.f32 %v5697_v15, %v5326_v11  ;;  %v6749_v0 = vrot.slane %v6698_v63, 5  ;;  %8850 = vpow2.f32 %v6339_v62 }
 0x5f0   : > { %v7062_v29 = vmul.f32 -33.33332, %v6162_v46  ;;  %v5994_v38 = vadd.f32 %v5993_v55, %v5992_v22  ;;  %v8845_v61 = vpop.eup %8844  ;;  %v14611_v3 = vadd.f32 %v15663_v21, %v15662_v4  ;;  %v5448_v39 = vmul.f32 %v15665_v19, %v15664_v18 }
 0x5f1   : > { %v5861_v59 = vadd.f32 %v5860_v54, %v5859_v8  ;;  %v5699_v56 = vrot.slane %v5698_v43, 4  ;;  %v6750_v36 = vsel %vm6712_vm9, %v6749_v0, %v14568_v20  ;;  %v6699_v12 = vcombine.low %v8841_v6, %v8845_v61  ;;  %v15670_v8 = vld [vmem:[#allocation19_spill] sm:$0xff] }
 0x5f2   : > { %v6371_v1 = vmul.f32 1.442695, %v7062_v29  ;;  %v5327_v9 = vmul.f32 %v15667_v47, %v15666_v49  ;;  %v14621_v2 = vadd.f32 %v15668_v28, %v15662_v4  ;;  %v6751_v7 = vsel %vm6714_vm10, %v6749_v0, %v6750_v36  ;;  %v15672_v4 = vld [vmem:[#allocation20_spill] sm:$0xff] }
 0x5f3   : > { %v5862_v15 = vrot.slane %v5861_v59, 2  ;;  %v5700_v26 = vadd.f32 %v5699_v56, %v5698_v43  ;;  %6791 = vst [vmem:[%s13909_s21 + $0x20] sm:$0xff] %v6751_v7  ;;  %v6758_v60 = vrot.slane %v6699_v12, 5  ;;  %v6057_v34 = vrot.slane %v14576_v45, 2  ;;  %v15674_v56 = vld [vmem:[#allocation21_spill] sm:$0xff]  ;;  %v15675_v12 = vld [vmem:[#allocation199_spill] sm:$0xff] }
 0x5f4   : > { %8852 = vpow2.f32 %v6371_v1  ;;  %v5707_v20 = vadd.f32 %v5706_v17, %v5327_v9  ;;  %v6040_v58 = vrot.slane %v14539_v5, 1  ;;  %v5433_v37 = vmul.f32 %v15670_v8, %v15669_v31  ;;  %v15676_v28 = vld [vmem:[#allocation200_spill] sm:$0xff] }
 0x5f5   : > { %v8847_v6 = vpop.eup %8846  ;;  %v5863_v27 = vadd.f32 %v5862_v15, %v5861_v59  ;;  %v5701_v50 = vrot.slane %v5700_v26, 2  ;;  %v6759_v16 = vsel %vm6712_vm9, %v6758_v60, %v14573_v32  ;;  %v5997_v42 = vsel %vm2212_vm0, %v5448_v39, 0.0  ;;  %v15671_v32 = vld [vmem:[#allocation197_spill] sm:$0xff]  ;;  %v15673_v59 = vld [vmem:[#allocation198_spill] sm:$0xff] }
 0x5f6   : > { %v5708_v35 = vrot.slane %v5707_v20, 4  ;;  %v6041_v11 = vrot.slane %v14554_v48, 1  ;;  %v8849_v63 = vpop.eup %8848  ;;  %v6760_v62 = vsel %vm6714_vm10, %v6758_v60, %v6759_v16  ;;  %v5995_v54 = vsel %vm2212_vm0, %v5433_v37, 0.0  ;;  %v15677_v60 = vld [vmem:[#allocation201_spill] sm:$0xff]  ;;  %v15678_v16 = vld [vmem:[#allocation202_spill] sm:$0xff] }
 0x5f7   : > { %v5864_v46 = vrot.slane %v5863_v27, 1  ;;  %v5702_v55 = vadd.f32 %v5701_v50, %v5700_v26  ;;  %6792 = vst [vmem:[%s13909_s21 + $0x28] sm:$0xff] %v6760_v62  ;;  %v6447_v17 = vadd.f32 1.0, %v8847_v6  ;;  %v6445_v22 = vadd.f32 1.0, %v8849_v63  ;;  %v15679_v63 = vld [vmem:[#allocation203_spill] sm:$0xff] }
 0x5f8   : > { %v5709_v43 = vadd.f32 %v5708_v35, %v5707_v20  ;;  %v5996_v0 = vadd.f32 %v5995_v54, %v5994_v38  ;;  %v5341_v21 = vmul.f32 %v15672_v4, %v15671_v32  ;;  %v5342_v18 = vmul.f32 %v15674_v56, %v15673_v59  ;;  %v15681_v4 = vld [vmem:[#allocation205_spill] sm:$0xff]  ;;  %v15682_v56 = vld [vmem:[#allocation206_spill] sm:$0xff] }
 0x5f9   : > { %v5865_v29 = vadd.f32 %v5864_v46, %v5863_v27  ;;  %v5703_v61 = vrot.slane %v5702_v55, 1  ;;  %v8851_v19 = vpop.eup %8850  ;;  %8854 = vrcp.f32 %v6445_v22  ;;  %v5356_v1 = vmul.f32 %v14429_v51, %v15675_v12  ;;  %v15680_v22 = vld [vmem:[#allocation204_spill] sm:$0xff]  ;;  %v15685_v12 = vld [vmem:[#allocation209_spill] sm:$0xff] }
 0x5fa   : > { %v5710_v39 = vrot.slane %v5709_v43, 2  ;;  %v5998_v36 = vadd.f32 %v5997_v42, %v5996_v0  ;;  %v6446_v49 = vadd.f32 1.0, %v8851_v19  ;;  %v5357_v38 = vmul.f32 %v14433_v40, %v15676_v28  ;;  %v15683_v19 = vld [vmem:[#allocation207_spill] sm:$0xff] }
 0x5fb   : > { %v6177_v47 = vadd.f32 %v6057_v34, %v5865_v29  ;;  %v5704_v9 = vadd.f32 %v5703_v61, %v5702_v55  ;;  %v5835_v26 = vadd.f32 %v5356_v1, %v5341_v21  ;;  %v5371_v20 = vmul.f32 %v14437_v44, %v15677_v60 }
 0x5fc   : > { %v5711_v7 = vadd.f32 %v5710_v39, %v5709_v43  ;;  %v5999_v15 = vrot.slane %v5998_v36, 4  ;;  %8856 = vrcp.f32 %v6446_v49  ;;  %v5844_v50 = vadd.f32 %v5357_v38, %v5342_v18 }
 0x5fd   : > { %v7077_v6 = vmul.f32 -33.33332, %v6177_v47  ;;  %v6160_v27 = vadd.f32 %v6040_v58, %v5704_v9  ;;  %v5836_v51 = vadd.f32 %v5835_v26, %v5371_v20  ;;  %v5372_v34 = vmul.f32 %v14439_v23, %v15678_v16 }
 0x5fe   : > { %v8853_v31 = vpop.eup %8852  ;;  %v5712_v8 = vrot.slane %v5711_v7, 1  ;;  %v6000_v37 = vadd.f32 %v5999_v15, %v5998_v36  ;;  %v5386_v62 = vmul.f32 %v14451_v33, %v15679_v63  ;;  %8858 = vrcp.f32 %v6447_v17  ;;  %v15684_v36 = vld [vmem:[#allocation208_spill] sm:$0xff] }
 0x5ff   : > { %v6462_v42 = vadd.f32 1.0, %v8853_v31  ;;  %v6401_v35 = vmul.f32 1.442695, %v7077_v6  ;;  %v7060_v40 = vmul.f32 -33.33332, %v6160_v27  ;;  %v5845_v55 = vadd.f32 %v5844_v50, %v5372_v34 }
 0x600   : > { %v5713_v46 = vadd.f32 %v5712_v8, %v5711_v7  ;;  %v6001_v44 = vrot.slane %v6000_v37, 2  ;;  %v5837_v54 = vadd.f32 %v5836_v51, %v5386_v62  ;;  %v5387_v43 = vmul.f32 %v14457_v14, %v15680_v22 }
 0x601   : > { %8860 = vrcp.f32 %v6462_v42  ;;  %v6367_v58 = vmul.f32 1.442695, %v7060_v40  ;;  %v6072_v23 = vrot.slane %v14576_v45, 3  ;;  %v5401_v33 = vmul.f32 %v14467_v41, %v15681_v4 }
 0x602   : > { %8862 = vpow2.f32 %v6401_v35  ;;  %v6161_v0 = vadd.f32 %v6041_v11, %v5713_v46  ;;  %v6002_v29 = vadd.f32 %v6001_v44, %v6000_v37  ;;  %v5838_v61 = vrot.slane %v5837_v54, 4 }
 0x603   : > { %8864 = vpow2.f32 %v6367_v58  ;;  %v5846_v32 = vadd.f32 %v5845_v55, %v5387_v43  ;;  %v14655_v17 = vpop.eup %8854  ;;  %v5402_v18 = vmul.f32 %v14469_v52, %v15682_v56  ;;  %v5416_v14 = vmul.f32 %v14475_v30, %v15683_v19 }
 0x604   : > { %v7061_v21 = vmul.f32 -33.33332, %v6161_v0  ;;  %v6003_v59 = vrot.slane %v6002_v29, 1  ;;  %v5839_v11 = vadd.f32 %v5838_v61, %v5837_v54  ;;  %v5417_v45 = vmul.f32 %v14479_v24, %v15684_v36 }
 0x605   : > { %v5847_v39 = vrot.slane %v5846_v32, 4  ;;  %v5431_v1 = vmul.f32 %v14490_v53, %v15685_v12  ;;  %v5974_v47 = vadd.f32 %v5416_v14, %v5401_v33  ;;  %v5432_v9 = vmul.f32 %v14495_v13, %v14547_v25 }
 0x606   : > { %v6369_v49 = vmul.f32 1.442695, %v7061_v21  ;;  %v6004_v41 = vadd.f32 %v6003_v59, %v6002_v29  ;;  %v14667_v28 = vpop.eup %8856  ;;  %v5840_v52 = vrot.slane %v5839_v11, 2  ;;  %v5983_v7 = vadd.f32 %v5417_v45, %v5402_v18 }
 0x607   : > { %v5848_v38 = vadd.f32 %v5847_v39, %v5846_v32  ;;  %v5446_v30 = vmul.f32 %v14509_v10, %v14611_v3  ;;  %v6679_v24 = vcombine.low %v14655_v17, %v14667_v28  ;;  %v5975_v53 = vadd.f32 %v5974_v47, %v5431_v1 }
 0x608   : > { %8866 = vpow2.f32 %v6369_v49  ;;  %v6192_v15 = vadd.f32 %v6072_v23, %v6004_v41  ;;  %v5841_v26 = vadd.f32 %v5840_v52, %v5839_v11  ;;  %v5984_v20 = vadd.f32 %v5983_v7, %v5432_v9  ;;  %v8859_v6 = vpop.eup %8858 }
 0x609   : > { %v5849_v60 = vrot.slane %v5848_v38, 2  ;;  %v5976_v13 = vadd.f32 %v5975_v53, %v5446_v30  ;;  %v5447_v25 = vmul.f32 %v14513_v57, %v14621_v2  ;;  %v6055_v8 = vrot.slane %v14539_v5, 2 }
 0x60a   : > { %v7092_v27 = vmul.f32 -33.33332, %v6192_v15  ;;  %v5842_v31 = vrot.slane %v5841_v26, 1  ;;  %v6056_v62 = vrot.slane %v14554_v48, 2  ;;  %v6070_v59 = vrot.slane %v14539_v5, 3 }
 0x60b   : > { %v8861_v50 = vpop.eup %8860  ;;  %v5850_v10 = vadd.f32 %v5849_v60, %v5848_v38  ;;  %v5977_v16 = vrot.slane %v5976_v13, 4  ;;  %v5985_v34 = vadd.f32 %v5984_v20, %v5447_v25  ;;  %v6071_v45 = vrot.slane %v14554_v48, 3 }
 0x60c   : > { %v8863_v3 = vpop.eup %8862  ;;  %v6770_v37 = vrot.slane %v8861_v50, 7  ;;  %v6431_v51 = vmul.f32 1.442695, %v7092_v27  ;;  %v5843_v40 = vadd.f32 %v5842_v31, %v5841_v26 }
 0x60d   : > { %v8865_v42 = vpop.eup %8864  ;;  %v6477_v35 = vadd.f32 1.0, %v8863_v3  ;;  %v5851_v63 = vrot.slane %v5850_v10, 1  ;;  %v5978_v57 = vadd.f32 %v5977_v16, %v5976_v13  ;;  %v5986_v22 = vrot.slane %v5985_v34, 4 }
 0x60e   : > { %v6771_v46 = vsel %vm6702_vm5, %v6770_v37, %v8859_v6  ;;  %v6460_v44 = vadd.f32 1.0, %v8865_v42  ;;  %8868 = vpow2.f32 %v6431_v51  ;;  %v6175_v55 = vadd.f32 %v6055_v8, %v5843_v40 }
 0x60f   : > { %v6772_v2 = vsel %vm6704_vm6, %v6770_v37, %v6771_v46  ;;  %8870 = vrcp.f32 %v6477_v35  ;;  %v5852_v58 = vadd.f32 %v5851_v63, %v5850_v10  ;;  %v5979_v54 = vrot.slane %v5978_v57, 2 }
 0x610   : > { %v7075_v43 = vmul.f32 -33.33332, %v6175_v55  ;;  %v5987_v61 = vadd.f32 %v5986_v22, %v5985_v34  ;;  %8872 = vrcp.f32 %v6460_v44 }
 0x611   : > { %v6176_v0 = vadd.f32 %v6056_v62, %v5852_v58  ;;  %v5980_v23 = vadd.f32 %v5979_v54, %v5978_v57 }
 0x612   : > { %v8867_v29 = vpop.eup %8866  ;;  %v6397_v4 = vmul.f32 1.442695, %v7075_v43  ;;  %v5988_v56 = vrot.slane %v5987_v61, 2 }
 0x613   : > { %v6461_v32 = vadd.f32 1.0, %v8867_v29  ;;  %v7076_v33 = vmul.f32 -33.33332, %v6176_v0  ;;  %v5981_v21 = vrot.slane %v5980_v23, 1 }
 0x614   : > { %v5989_v14 = vadd.f32 %v5988_v56, %v5987_v61 }
 0x615   : > { %8874 = vrcp.f32 %v6461_v32  ;;  %v6399_v18 = vmul.f32 1.442695, %v7076_v33  ;;  %v5982_v19 = vadd.f32 %v5981_v21, %v5980_v23 }
 0x616   : > { %8876 = vpow2.f32 %v6397_v4  ;;  %v5990_v36 = vrot.slane %v5989_v14, 1 }
 0x617   : > { %8878 = vpow2.f32 %v6399_v18  ;;  %v6190_v39 = vadd.f32 %v6070_v59, %v5982_v19 }
 0x618   : > { %v8869_v11 = vpop.eup %8868  ;;  %v5991_v47 = vadd.f32 %v5990_v36, %v5989_v14 }
 0x619   : > { %v8871_v12 = vpop.eup %8870  ;;  %v6492_v1 = vadd.f32 1.0, %v8869_v11  ;;  %v7090_v41 = vmul.f32 -33.33332, %v6190_v39 }
 0x61a   : > { %v6773_v49 = vrot.slane %v8871_v12, 6  ;;  %v6191_v52 = vadd.f32 %v6071_v45, %v5991_v47  ;;  %v8873_v38 = vpop.eup %8872 }
 0x61b   : > { %8880 = vrcp.f32 %v6492_v1  ;;  %v6427_v9 = vmul.f32 1.442695, %v7090_v41 }
 0x61c   : > { %v6774_v5 = vsel %vm6707_vm7, %v6773_v49, %v6772_v2  ;;  %v7091_v30 = vmul.f32 -33.33332, %v6191_v52 }
 0x61d   : > { %v6775_v7 = vsel %vm6709_vm8, %v6773_v49, %v6774_v5  ;;  %8882 = vpow2.f32 %v6427_v9 }
 0x61e   : > { %v6429_v60 = vmul.f32 1.442695, %v7091_v30 }
 0x61f   : > { %v8875_v15 = vpop.eup %8874 }
 0x620   : > { %v8877_v53 = vpop.eup %8876  ;;  %v6686_v26 = vcombine.low %v8873_v38, %v8875_v15  ;;  %8884 = vpow2.f32 %v6429_v60 }
 0x621   : > { %v8879_v48 = vpop.eup %8878  ;;  %v6475_v20 = vadd.f32 1.0, %v8877_v53 }
 0x622   : > { %v6761_v6 = vrot.slane %v6686_v26, 7  ;;  %v6476_v27 = vadd.f32 1.0, %v8879_v48 }
 0x623   : > { %8886 = vrcp.f32 %v6475_v20 }
 0x624   : > { %v6762_v13 = vsel %vm6702_vm5, %v6761_v6, %v6679_v24  ;;  %8888 = vrcp.f32 %v6476_v27 }
 0x625   : > { %v8881_v25 = vpop.eup %8880  ;;  %v6763_v50 = vsel %vm6704_vm6, %v6761_v6, %v6762_v13 }
 0x626   : > { %v6776_v31 = vrot.slane %v8881_v25, 5 }
 0x627   : > { %v8883_v8 = vpop.eup %8882 }
 0x628   : > { %v6777_v10 = vsel %vm6712_vm9, %v6776_v31, %v6775_v7  ;;  %v6490_v37 = vadd.f32 1.0, %v8883_v8 }
 0x629   : > { %v6778_v3 = vsel %vm6714_vm10, %v6776_v31, %v6777_v10 }
 0x62a   : > { %6795 = vst.msk [vmem:[%s13909_s21 + $0x38] sm:$0xf] %vm6794_vm11, %v6778_v3  ;;  %v8885_v51 = vpop.eup %8884  ;;  %8890 = vrcp.f32 %v6490_v37 }
 0x62b   : > { %v6491_v17 = vadd.f32 1.0, %v8885_v51 }
 0x62d   : > { %v8887_v16 = vpop.eup %8886  ;;  %8892 = vrcp.f32 %v6491_v17 }
 0x62e   : > { %v8889_v28 = vpop.eup %8888 }
 0x62f   : > { %v6693_v24 = vcombine.low %v8887_v16, %v8889_v28 }
 0x631   : > { %v6764_v34 = vrot.slane %v6693_v24, 6 }
 0x633   : > { %v6765_v42 = vsel %vm6707_vm7, %v6764_v34, %v6763_v50 }
 0x634   : > { %v6766_v35 = vsel %vm6709_vm8, %v6764_v34, %v6765_v42  ;;  %v8891_v40 = vpop.eup %8890 }
 0x637   : > { %v8893_v63 = vpop.eup %8892 }
 0x638   : > { %v6700_v62 = vcombine.low %v8891_v40, %v8893_v63 }
 0x63a   : > { %v6767_v46 = vrot.slane %v6700_v62, 5 }
 0x63c   : > { %v6768_v44 = vsel %vm6712_vm9, %v6767_v46, %v6766_v35 }
 0x63d   : > { %v6769_v57 = vsel %vm6714_vm10, %v6767_v46, %v6768_v44 }
 0x63e   : > { %6793 = vst [vmem:[%s13909_s21 + $0x30] sm:$0xff] %v6769_v57 }
 0x63f PF: > { %s18_s27 = sadd.s32 1, %s9158_s27  }
 0x640   : > { %p15_p5 = scmp.ge.s32.totalorder %s18_s27, 6  }
 0x642   :  { %17 = sbr.rel (!%p15_p5) target bundleno = 1 (0x1), region = 85 }

</bundles_post_ra>
